<compile_context>
chip_gen: v7x
topology: tpu7x:2x2x1
jax: 0.10.0
libtpu: 0.0.40
codegen_flags: <defaults>
</compile_context>

<pallas_src>
import functools

import jax
import jax.numpy as jnp
from jax import lax
from jax.experimental import pallas as pl
from jax.experimental.pallas import tpu as pltpu

LRELU_SLOPE = 0.2
BN_EPS = 1e-5
C_IN = 6
C_PAD = 8           # pad 6 input channels to a full 8-sublane slice


def _leaky(x):
    # LeakyReLU(negative_slope=0.2), computed in f32
    return jnp.maximum(x, LRELU_SLOPE * x)


# ---------------------------------------------------------------------------
# Fused kernel.  grid = (B, n_tiles); axis 0 parallel (batch), axis 1 arbitrary
# (N reduction with a resident accumulator + last-step head epilogue).
#
# x_ref block: (K, 8, tn) bf16 — channels on sublanes, points on lanes.
# All weights are stored transposed, (out, in), so every layer is W @ X.
# ---------------------------------------------------------------------------
def fused_kernel(x_ref, w1_ref, b1_ref, w2_ref, b2_ref, w3_ref, b3_ref,
                 w4_ref, b4_ref, w5_ref, b5_ref, wt_ref, bt_ref,
                 o_ref, acc_ref, *, k, tn, n_valid):
    j = pl.program_id(1)

    w1 = w1_ref[...]                       # (64, 8)   bf16
    b1 = b1_ref[...]                       # (64, 1)   f32
    w2 = w2_ref[...]                       # (128, 64) bf16

    # --- conv1 + conv2 with running max over the K neighbors ---------------
    # conv2's bias/LReLU are deferred past the max (monotone => exact).
    m = jnp.full((128, tn), -jnp.inf, jnp.float32)
    for kk in range(k):                                        # static unroll
        xk = x_ref[kk]                                         # (8, tn) bf16
        s1 = jnp.dot(w1, xk, preferred_element_type=jnp.float32)   # (64, tn)
        s1 = _leaky(s1 + b1)
        s2 = jnp.dot(w2, s1.astype(jnp.bfloat16),
                     preferred_element_type=jnp.float32)       # (128, tn)
        m = jnp.maximum(m, s2)

    m = _leaky(m + b2_ref[...])                                # (128, tn)

    # --- conv3 (128 -> 1024) -------------------------------------------------
    h3 = jnp.dot(w3_ref[...], m.astype(jnp.bfloat16),
                 preferred_element_type=jnp.float32)           # (1024, tn)
    h3 = _leaky(h3 + b3_ref[...])

    # Mask host-side N padding (static branch; only emitted when padding exists)
    if n_valid % tn != 0:
        lane = lax.broadcasted_iota(jnp.int32, (1, tn), 1)
        valid = (j * tn + lane) < n_valid
        h3 = jnp.where(valid, h3, -jnp.inf)

    # --- running max over the N (reduction) grid axis ------------------------
    @pl.when(j == 0)
    def _init():
        acc_ref[...] = jnp.full_like(acc_ref, -jnp.inf)

    acc_ref[...] = jnp.maximum(acc_ref[...], h3)

    # --- head epilogue on the last N tile ------------------------------------
    @pl.when(j == pl.num_programs(1) - 1)
    def _head():
        pooled = jnp.max(acc_ref[...], axis=1, keepdims=True)          # (1024,1)
        h4 = jnp.dot(w4_ref[...], pooled.astype(jnp.bfloat16),
                     preferred_element_type=jnp.float32)
        h4 = _leaky(h4 + b4_ref[...])                                  # (512, 1)
        h5 = jnp.dot(w5_ref[...], h4.astype(jnp.bfloat16),
                     preferred_element_type=jnp.float32)
        h5 = _leaky(h5 + b5_ref[...])                                  # (256, 1)
        out = jnp.dot(wt_ref[...], h5.astype(jnp.bfloat16),
                      preferred_element_type=jnp.float32) + bt_ref[...]  # (9,1)
        o_ref[...] = out


# ---------------------------------------------------------------------------
# Parameters (PyTorch (out, in) convention) and inference-mode BN folding.
# ---------------------------------------------------------------------------
def init_params(key):
    ks = jax.random.split(key, 5)
    p = {
        "w1": 0.1 * jax.random.normal(ks[0], (64, C_IN), jnp.float32),
        "w2": 0.1 * jax.random.normal(ks[1], (128, 64), jnp.float32),
        "w3": 0.05 * jax.random.normal(ks[2], (1024, 128), jnp.float32),
        "w4": 0.03 * jax.random.normal(ks[3], (512, 1024), jnp.float32),
        "w5": 0.03 * jax.random.normal(ks[4], (256, 512), jnp.float32),
        # transform layer: weight = 0, bias = flattened identity (module init)
        "wt": jnp.zeros((9, 256), jnp.float32),
        "bt": jnp.eye(3, dtype=jnp.float32).reshape(9, 1),
    }
    for name, nf in (("bn1", 64), ("bn2", 128), ("bn3_conv", 1024),
                     ("bn3_lin", 512), ("bn4", 256)):
        p[name] = dict(gamma=jnp.ones((nf,), jnp.float32),
                       beta=jnp.zeros((nf,), jnp.float32),
                       mean=jnp.zeros((nf,), jnp.float32),
                       var=jnp.ones((nf,), jnp.float32))
    return p


def _fold(w_oi, bn):
    scale = bn["gamma"] / jnp.sqrt(bn["var"] + BN_EPS)
    shift = bn["beta"] - bn["mean"] * scale
    return w_oi * scale[:, None], shift.reshape(-1, 1)


def fold_params(p):
    """Fold eval-mode BN into the preceding weights; weights -> bf16."""
    w1, b1 = _fold(p["w1"], p["bn1"])
    w1 = jnp.concatenate(                       # pad input channels 6 -> 8
        [w1, jnp.zeros((w1.shape[0], C_PAD - C_IN), w1.dtype)], axis=1)
    w2, b2 = _fold(p["w2"], p["bn2"])
    w3, b3 = _fold(p["w3"], p["bn3_conv"])
    w4, b4 = _fold(p["w4"], p["bn3_lin"])       # re-assigned bn3 (after linear1)
    w5, b5 = _fold(p["w5"], p["bn4"])
    return {
        "w1": w1.astype(jnp.bfloat16), "b1": b1,
        "w2": w2.astype(jnp.bfloat16), "b2": b2,
        "w3": w3.astype(jnp.bfloat16), "b3": b3,
        "w4": w4.astype(jnp.bfloat16), "b4": b4,
        "w5": w5.astype(jnp.bfloat16), "b5": b5,
        "wt": p["wt"].astype(jnp.bfloat16), "bt": p["bt"],
    }


# ---------------------------------------------------------------------------
# Tiling / VMEM budgeting (generation-aware).
# ---------------------------------------------------------------------------
def _vmem_capacity_bytes():
    try:
        return int(pltpu.get_tpu_info().vmem_capacity_bytes)
    except Exception:
        return 64 * 1024 * 1024        # conservative default (v7x physical)


def _choose_point_tile(n, k, vmem_cap):
    """Pick (tn, n_padded): tn is a multiple of 128 (or the full extent) whose
    variable per-step footprint fits a conservative slice of VMEM."""
    # bytes/point: input block (2 bufs, bf16, K*8) + f32 s1/s2/m/h3 + f32 acc
    per_point = 32 * k + (64 + 3 * 128 + 2 * 1024) * 4
    budget = max(4 * 1024 * 1024, vmem_cap // 5)
    cap = max(128, min(2048, budget // per_point))
    if n <= cap:
        return n, n                       # full-extent block, no padding
    best, t = None, 128
    while t <= cap:
        if n % t == 0:
            best = t
        t += 128
    if best is not None:
        return best, n
    tn = (cap // 128) * 128
    return tn, pl.cdiv(n, tn) * tn        # pad N; kernel masks padded lanes


# ---------------------------------------------------------------------------
# Forward
# ---------------------------------------------------------------------------
def transform_net_forward(x, folded, *, tn=None):
    """x: (B, 6, N, K) float32 (PyTorch NCHW convention). Returns (B, 3, 3)."""
    B, C, N, K = x.shape
    assert C == C_IN
    vmem_cap = _vmem_capacity_bytes()
    if tn is None:
        tn, n_pad = _choose_point_tile(N, K, vmem_cap)
    else:
        n_pad = pl.cdiv(N, tn) * tn
    n_tiles = n_pad // tn
    vmem_limit = min(int(0.6 * vmem_cap), 48 * 1024 * 1024)

    # host glue: (B,6,N,K) -> (B,K,8,N_pad) bf16 (channels on sublanes,
    # points on lanes).  TODO(synk): have the upstream op emit this directly.
    x_t = jnp.transpose(x, (0, 3, 1, 2))                       # (B, K, 6, N)
    x_t = jnp.pad(x_t, ((0, 0), (0, 0), (0, C_PAD - C_IN), (0, n_pad - N)))
    x_t = x_t.astype(jnp.bfloat16)                             # (B, K, 8, n_pad)

    const = lambda b, j: (0, 0)
    out = pl.pallas_call(
        functools.partial(fused_kernel, k=K, tn=tn, n_valid=N),
        out_shape=jax.ShapeDtypeStruct((B, 9, 1), jnp.float32),
        grid_spec=pltpu.PrefetchScalarGridSpec(
            num_scalar_prefetch=0,
            grid=(B, n_tiles),
            in_specs=[
                pl.BlockSpec((None, K, C_PAD, tn), lambda b, j: (b, 0, 0, j)),
                pl.BlockSpec((64, C_PAD), const),   # w1^T
                pl.BlockSpec((64, 1), const),       # b1
                pl.BlockSpec((128, 64), const),     # w2^T
                pl.BlockSpec((128, 1), const),      # b2
                pl.BlockSpec((1024, 128), const),   # w3^T
                pl.BlockSpec((1024, 1), const),     # b3
                pl.BlockSpec((512, 1024), const),   # w4^T (linear1)
                pl.BlockSpec((512, 1), const),      # b4
                pl.BlockSpec((256, 512), const),    # w5^T (linear2)
                pl.BlockSpec((256, 1), const),      # b5
                pl.BlockSpec((9, 256), const),      # transform weight
                pl.BlockSpec((9, 1), const),        # transform bias
            ],
            out_specs=pl.BlockSpec((None, 9, 1), lambda b, j: (b, 0, 0)),
            scratch_shapes=[pltpu.VMEM((1024, tn), jnp.float32)],
        ),
        compiler_params=pltpu.CompilerParams(
            dimension_semantics=("parallel", "arbitrary"),
            vmem_limit_bytes=vmem_limit),
    )(x_t, folded["w1"], folded["b1"], folded["w2"], folded["b2"],
      folded["w3"], folded["b3"], folded["w4"], folded["b4"],
      folded["w5"], folded["b5"], folded["wt"], folded["bt"])

    return out.reshape(B, 3, 3)


if __name__ == "__main__":
    key = jax.random.PRNGKey(0)
    kx, kp = jax.random.split(key)

    B, C, N, K = 2, 6, 16, 8          # small shapes consistent with the module
    x = jax.random.normal(kx, (B, C, N, K), jnp.float32)
    raw = init_params(kp)
    folded = fold_params(raw)

    out = transform_net_forward(x, folded)
    out = jax.block_until_ready(out)

    assert out.shape == (B, 3, 3)
    # With transform.weight == 0 and bias == eye(3) (the module's init), the
    # output is exactly the identity matrix for every batch element.
    # (For non-degenerate weights, bf16 matmuls need a looser tolerance.)
    expected = jnp.broadcast_to(jnp.eye(3, dtype=jnp.float32), (B, 3, 3))
    assert jnp.allclose(out, expected, atol=1e-5), out

    print("KERNEL_OK")
</pallas_src>

<mosaic_0001>
module attributes {stable_mosaic.version = 11 : i64} {
  func.func @fused_kernel(%arg0: i32, %arg1: i32, %arg2: memref<1x8x8x16xbf16, #tpu.memory_space<vmem>>, %arg3: memref<64x8xbf16, #tpu.memory_space<vmem>>, %arg4: memref<64x1xf32, #tpu.memory_space<vmem>>, %arg5: memref<128x64xbf16, #tpu.memory_space<vmem>>, %arg6: memref<128x1xf32, #tpu.memory_space<vmem>>, %arg7: memref<1024x128xbf16, #tpu.memory_space<vmem>>, %arg8: memref<1024x1xf32, #tpu.memory_space<vmem>>, %arg9: memref<512x1024xbf16, #tpu.memory_space<vmem>>, %arg10: memref<512x1xf32, #tpu.memory_space<vmem>>, %arg11: memref<256x512xbf16, #tpu.memory_space<vmem>>, %arg12: memref<256x1xf32, #tpu.memory_space<vmem>>, %arg13: memref<9x256xbf16, #tpu.memory_space<vmem>>, %arg14: memref<9x1xf32, #tpu.memory_space<vmem>>, %arg15: memref<1x9x1xf32, #tpu.memory_space<vmem>>, %arg16: memref<1024x16xf32, #tpu.memory_space<vmem>>) attributes {dimension_semantics = [#tpu.dimension_semantics<parallel>, #tpu.dimension_semantics<arbitrary>], iteration_bounds = array<i64: 2, 1>, scalar_prefetch = 0 : i64, scratch_operands = 1 : i64, tpu.core_type = #tpu.core_type<tc>, window_params = [{transform_indices = @transform_0, window_bounds = array<i64: 1, 8, 8, 16>}, {pipeline_mode = #tpu.pipeline_mode<synchronous>, transform_indices = @transform_1, window_bounds = array<i64: 64, 8>}, {pipeline_mode = #tpu.pipeline_mode<synchronous>, transform_indices = @transform_2, window_bounds = array<i64: 64, 1>}, {pipeline_mode = #tpu.pipeline_mode<synchronous>, transform_indices = @transform_3, window_bounds = array<i64: 128, 64>}, {pipeline_mode = #tpu.pipeline_mode<synchronous>, transform_indices = @transform_4, window_bounds = array<i64: 128, 1>}, {pipeline_mode = #tpu.pipeline_mode<synchronous>, transform_indices = @transform_5, window_bounds = array<i64: 1024, 128>}, {pipeline_mode = #tpu.pipeline_mode<synchronous>, transform_indices = @transform_6, window_bounds = array<i64: 1024, 1>}, {pipeline_mode = #tpu.pipeline_mode<synchronous>, transform_indices = @transform_7, window_bounds = array<i64: 512, 1024>}, {pipeline_mode = #tpu.pipeline_mode<synchronous>, transform_indices = @transform_8, window_bounds = array<i64: 512, 1>}, {pipeline_mode = #tpu.pipeline_mode<synchronous>, transform_indices = @transform_9, window_bounds = array<i64: 256, 512>}, {pipeline_mode = #tpu.pipeline_mode<synchronous>, transform_indices = @transform_10, window_bounds = array<i64: 256, 1>}, {pipeline_mode = #tpu.pipeline_mode<synchronous>, transform_indices = @transform_11, window_bounds = array<i64: 9, 256>}, {pipeline_mode = #tpu.pipeline_mode<synchronous>, transform_indices = @transform_12, window_bounds = array<i64: 9, 1>}, {transform_indices = @transform_13, window_bounds = array<i64: 1, 9, 1>}]} {
    %c0 = arith.constant 0 : index
    %c0_0 = arith.constant 0 : index
    %0 = vector.load %arg3[%c0, %c0_0] : memref<64x8xbf16, #tpu.memory_space<vmem>>, vector<64x8xbf16>
    %c0_1 = arith.constant 0 : index
    %c0_2 = arith.constant 0 : index
    %1 = vector.load %arg4[%c0_1, %c0_2] : memref<64x1xf32, #tpu.memory_space<vmem>>, vector<64x1xf32>
    %c0_3 = arith.constant 0 : index
    %c0_4 = arith.constant 0 : index
    %2 = vector.load %arg5[%c0_3, %c0_4] : memref<128x64xbf16, #tpu.memory_space<vmem>>, vector<128x64xbf16>
    %cst = arith.constant 0xFF800000 : f32
    %3 = vector.broadcast %cst : f32 to vector<128x16xf32>
    %c0_5 = arith.constant 0 : index
    %c0_6 = arith.constant 0 : index
    %c0_7 = arith.constant 0 : index
    %c0_8 = arith.constant 0 : index
    %4 = vector.load %arg2[%c0_5, %c0_6, %c0_7, %c0_8] : memref<1x8x8x16xbf16, #tpu.memory_space<vmem>>, vector<1x1x8x16xbf16>
    %5 = vector.shape_cast %4 : vector<1x1x8x16xbf16> to vector<8x16xbf16>
    %cst_9 = arith.constant dense<0.000000e+00> : vector<64x16xf32>
    %6 = tpu.matmul %0, %5, %cst_9 {dimension_numbers = #tpu.dot_dimension_numbers<[1], [0], [0], [1], [0, 0, 1, 1], [], []>} : vector<64x8xbf16>, vector<8x16xbf16>, vector<64x16xf32> -> vector<64x16xf32>
    %7 = vector.broadcast %1 : vector<64x1xf32> to vector<64x16xf32>
    %8 = arith.addf %6, %7 : vector<64x16xf32>
    %cst_10 = arith.constant 2.000000e-01 : f32
    %9 = vector.broadcast %cst_10 : f32 to vector<64x16xf32>
    %10 = arith.mulf %9, %8 : vector<64x16xf32>
    %11 = arith.maximumf %8, %10 : vector<64x16xf32>
    %12 = arith.truncf %11 : vector<64x16xf32> to vector<64x16xbf16>
    %cst_11 = arith.constant dense<0.000000e+00> : vector<128x16xf32>
    %13 = tpu.matmul %2, %12, %cst_11 {dimension_numbers = #tpu.dot_dimension_numbers<[1], [0], [0], [1], [0, 0, 1, 1], [], []>} : vector<128x64xbf16>, vector<64x16xbf16>, vector<128x16xf32> -> vector<128x16xf32>
    %14 = arith.maximumf %3, %13 : vector<128x16xf32>
    %c0_12 = arith.constant 0 : index
    %c1 = arith.constant 1 : index
    %c0_13 = arith.constant 0 : index
    %c0_14 = arith.constant 0 : index
    %15 = vector.load %arg2[%c0_12, %c1, %c0_13, %c0_14] : memref<1x8x8x16xbf16, #tpu.memory_space<vmem>>, vector<1x1x8x16xbf16>
    %16 = vector.shape_cast %15 : vector<1x1x8x16xbf16> to vector<8x16xbf16>
    %cst_15 = arith.constant dense<0.000000e+00> : vector<64x16xf32>
    %17 = tpu.matmul %0, %16, %cst_15 {dimension_numbers = #tpu.dot_dimension_numbers<[1], [0], [0], [1], [0, 0, 1, 1], [], []>} : vector<64x8xbf16>, vector<8x16xbf16>, vector<64x16xf32> -> vector<64x16xf32>
    %18 = vector.broadcast %1 : vector<64x1xf32> to vector<64x16xf32>
    %19 = arith.addf %17, %18 : vector<64x16xf32>
    %cst_16 = arith.constant 2.000000e-01 : f32
    %20 = vector.broadcast %cst_16 : f32 to vector<64x16xf32>
    %21 = arith.mulf %20, %19 : vector<64x16xf32>
    %22 = arith.maximumf %19, %21 : vector<64x16xf32>
    %23 = arith.truncf %22 : vector<64x16xf32> to vector<64x16xbf16>
    %cst_17 = arith.constant dense<0.000000e+00> : vector<128x16xf32>
    %24 = tpu.matmul %2, %23, %cst_17 {dimension_numbers = #tpu.dot_dimension_numbers<[1], [0], [0], [1], [0, 0, 1, 1], [], []>} : vector<128x64xbf16>, vector<64x16xbf16>, vector<128x16xf32> -> vector<128x16xf32>
    %25 = arith.maximumf %14, %24 : vector<128x16xf32>
    %c0_18 = arith.constant 0 : index
    %c2 = arith.constant 2 : index
    %c0_19 = arith.constant 0 : index
    %c0_20 = arith.constant 0 : index
    %26 = vector.load %arg2[%c0_18, %c2, %c0_19, %c0_20] : memref<1x8x8x16xbf16, #tpu.memory_space<vmem>>, vector<1x1x8x16xbf16>
    %27 = vector.shape_cast %26 : vector<1x1x8x16xbf16> to vector<8x16xbf16>
    %cst_21 = arith.constant dense<0.000000e+00> : vector<64x16xf32>
    %28 = tpu.matmul %0, %27, %cst_21 {dimension_numbers = #tpu.dot_dimension_numbers<[1], [0], [0], [1], [0, 0, 1, 1], [], []>} : vector<64x8xbf16>, vector<8x16xbf16>, vector<64x16xf32> -> vector<64x16xf32>
    %29 = vector.broadcast %1 : vector<64x1xf32> to vector<64x16xf32>
    %30 = arith.addf %28, %29 : vector<64x16xf32>
    %cst_22 = arith.constant 2.000000e-01 : f32
    %31 = vector.broadcast %cst_22 : f32 to vector<64x16xf32>
    %32 = arith.mulf %31, %30 : vector<64x16xf32>
    %33 = arith.maximumf %30, %32 : vector<64x16xf32>
    %34 = arith.truncf %33 : vector<64x16xf32> to vector<64x16xbf16>
    %cst_23 = arith.constant dense<0.000000e+00> : vector<128x16xf32>
    %35 = tpu.matmul %2, %34, %cst_23 {dimension_numbers = #tpu.dot_dimension_numbers<[1], [0], [0], [1], [0, 0, 1, 1], [], []>} : vector<128x64xbf16>, vector<64x16xbf16>, vector<128x16xf32> -> vector<128x16xf32>
    %36 = arith.maximumf %25, %35 : vector<128x16xf32>
    %c0_24 = arith.constant 0 : index
    %c3 = arith.constant 3 : index
    %c0_25 = arith.constant 0 : index
    %c0_26 = arith.constant 0 : index
    %37 = vector.load %arg2[%c0_24, %c3, %c0_25, %c0_26] : memref<1x8x8x16xbf16, #tpu.memory_space<vmem>>, vector<1x1x8x16xbf16>
    %38 = vector.shape_cast %37 : vector<1x1x8x16xbf16> to vector<8x16xbf16>
    %cst_27 = arith.constant dense<0.000000e+00> : vector<64x16xf32>
    %39 = tpu.matmul %0, %38, %cst_27 {dimension_numbers = #tpu.dot_dimension_numbers<[1], [0], [0], [1], [0, 0, 1, 1], [], []>} : vector<64x8xbf16>, vector<8x16xbf16>, vector<64x16xf32> -> vector<64x16xf32>
    %40 = vector.broadcast %1 : vector<64x1xf32> to vector<64x16xf32>
    %41 = arith.addf %39, %40 : vector<64x16xf32>
    %cst_28 = arith.constant 2.000000e-01 : f32
    %42 = vector.broadcast %cst_28 : f32 to vector<64x16xf32>
    %43 = arith.mulf %42, %41 : vector<64x16xf32>
    %44 = arith.maximumf %41, %43 : vector<64x16xf32>
    %45 = arith.truncf %44 : vector<64x16xf32> to vector<64x16xbf16>
    %cst_29 = arith.constant dense<0.000000e+00> : vector<128x16xf32>
    %46 = tpu.matmul %2, %45, %cst_29 {dimension_numbers = #tpu.dot_dimension_numbers<[1], [0], [0], [1], [0, 0, 1, 1], [], []>} : vector<128x64xbf16>, vector<64x16xbf16>, vector<128x16xf32> -> vector<128x16xf32>
    %47 = arith.maximumf %36, %46 : vector<128x16xf32>
    %c0_30 = arith.constant 0 : index
    %c4 = arith.constant 4 : index
    %c0_31 = arith.constant 0 : index
    %c0_32 = arith.constant 0 : index
    %48 = vector.load %arg2[%c0_30, %c4, %c0_31, %c0_32] : memref<1x8x8x16xbf16, #tpu.memory_space<vmem>>, vector<1x1x8x16xbf16>
    %49 = vector.shape_cast %48 : vector<1x1x8x16xbf16> to vector<8x16xbf16>
    %cst_33 = arith.constant dense<0.000000e+00> : vector<64x16xf32>
    %50 = tpu.matmul %0, %49, %cst_33 {dimension_numbers = #tpu.dot_dimension_numbers<[1], [0], [0], [1], [0, 0, 1, 1], [], []>} : vector<64x8xbf16>, vector<8x16xbf16>, vector<64x16xf32> -> vector<64x16xf32>
    %51 = vector.broadcast %1 : vector<64x1xf32> to vector<64x16xf32>
    %52 = arith.addf %50, %51 : vector<64x16xf32>
    %cst_34 = arith.constant 2.000000e-01 : f32
    %53 = vector.broadcast %cst_34 : f32 to vector<64x16xf32>
    %54 = arith.mulf %53, %52 : vector<64x16xf32>
    %55 = arith.maximumf %52, %54 : vector<64x16xf32>
    %56 = arith.truncf %55 : vector<64x16xf32> to vector<64x16xbf16>
    %cst_35 = arith.constant dense<0.000000e+00> : vector<128x16xf32>
    %57 = tpu.matmul %2, %56, %cst_35 {dimension_numbers = #tpu.dot_dimension_numbers<[1], [0], [0], [1], [0, 0, 1, 1], [], []>} : vector<128x64xbf16>, vector<64x16xbf16>, vector<128x16xf32> -> vector<128x16xf32>
    %58 = arith.maximumf %47, %57 : vector<128x16xf32>
    %c0_36 = arith.constant 0 : index
    %c5 = arith.constant 5 : index
    %c0_37 = arith.constant 0 : index
    %c0_38 = arith.constant 0 : index
    %59 = vector.load %arg2[%c0_36, %c5, %c0_37, %c0_38] : memref<1x8x8x16xbf16, #tpu.memory_space<vmem>>, vector<1x1x8x16xbf16>
    %60 = vector.shape_cast %59 : vector<1x1x8x16xbf16> to vector<8x16xbf16>
    %cst_39 = arith.constant dense<0.000000e+00> : vector<64x16xf32>
    %61 = tpu.matmul %0, %60, %cst_39 {dimension_numbers = #tpu.dot_dimension_numbers<[1], [0], [0], [1], [0, 0, 1, 1], [], []>} : vector<64x8xbf16>, vector<8x16xbf16>, vector<64x16xf32> -> vector<64x16xf32>
    %62 = vector.broadcast %1 : vector<64x1xf32> to vector<64x16xf32>
    %63 = arith.addf %61, %62 : vector<64x16xf32>
    %cst_40 = arith.constant 2.000000e-01 : f32
    %64 = vector.broadcast %cst_40 : f32 to vector<64x16xf32>
    %65 = arith.mulf %64, %63 : vector<64x16xf32>
    %66 = arith.maximumf %63, %65 : vector<64x16xf32>
    %67 = arith.truncf %66 : vector<64x16xf32> to vector<64x16xbf16>
    %cst_41 = arith.constant dense<0.000000e+00> : vector<128x16xf32>
    %68 = tpu.matmul %2, %67, %cst_41 {dimension_numbers = #tpu.dot_dimension_numbers<[1], [0], [0], [1], [0, 0, 1, 1], [], []>} : vector<128x64xbf16>, vector<64x16xbf16>, vector<128x16xf32> -> vector<128x16xf32>
    %69 = arith.maximumf %58, %68 : vector<128x16xf32>
    %c0_42 = arith.constant 0 : index
    %c6 = arith.constant 6 : index
    %c0_43 = arith.constant 0 : index
    %c0_44 = arith.constant 0 : index
    %70 = vector.load %arg2[%c0_42, %c6, %c0_43, %c0_44] : memref<1x8x8x16xbf16, #tpu.memory_space<vmem>>, vector<1x1x8x16xbf16>
    %71 = vector.shape_cast %70 : vector<1x1x8x16xbf16> to vector<8x16xbf16>
    %cst_45 = arith.constant dense<0.000000e+00> : vector<64x16xf32>
    %72 = tpu.matmul %0, %71, %cst_45 {dimension_numbers = #tpu.dot_dimension_numbers<[1], [0], [0], [1], [0, 0, 1, 1], [], []>} : vector<64x8xbf16>, vector<8x16xbf16>, vector<64x16xf32> -> vector<64x16xf32>
    %73 = vector.broadcast %1 : vector<64x1xf32> to vector<64x16xf32>
    %74 = arith.addf %72, %73 : vector<64x16xf32>
    %cst_46 = arith.constant 2.000000e-01 : f32
    %75 = vector.broadcast %cst_46 : f32 to vector<64x16xf32>
    %76 = arith.mulf %75, %74 : vector<64x16xf32>
    %77 = arith.maximumf %74, %76 : vector<64x16xf32>
    %78 = arith.truncf %77 : vector<64x16xf32> to vector<64x16xbf16>
    %cst_47 = arith.constant dense<0.000000e+00> : vector<128x16xf32>
    %79 = tpu.matmul %2, %78, %cst_47 {dimension_numbers = #tpu.dot_dimension_numbers<[1], [0], [0], [1], [0, 0, 1, 1], [], []>} : vector<128x64xbf16>, vector<64x16xbf16>, vector<128x16xf32> -> vector<128x16xf32>
    %80 = arith.maximumf %69, %79 : vector<128x16xf32>
    %c0_48 = arith.constant 0 : index
    %c7 = arith.constant 7 : index
    %c0_49 = arith.constant 0 : index
    %c0_50 = arith.constant 0 : index
    %81 = vector.load %arg2[%c0_48, %c7, %c0_49, %c0_50] : memref<1x8x8x16xbf16, #tpu.memory_space<vmem>>, vector<1x1x8x16xbf16>
    %82 = vector.shape_cast %81 : vector<1x1x8x16xbf16> to vector<8x16xbf16>
    %cst_51 = arith.constant dense<0.000000e+00> : vector<64x16xf32>
    %83 = tpu.matmul %0, %82, %cst_51 {dimension_numbers = #tpu.dot_dimension_numbers<[1], [0], [0], [1], [0, 0, 1, 1], [], []>} : vector<64x8xbf16>, vector<8x16xbf16>, vector<64x16xf32> -> vector<64x16xf32>
    %84 = vector.broadcast %1 : vector<64x1xf32> to vector<64x16xf32>
    %85 = arith.addf %83, %84 : vector<64x16xf32>
    %cst_52 = arith.constant 2.000000e-01 : f32
    %86 = vector.broadcast %cst_52 : f32 to vector<64x16xf32>
    %87 = arith.mulf %86, %85 : vector<64x16xf32>
    %88 = arith.maximumf %85, %87 : vector<64x16xf32>
    %89 = arith.truncf %88 : vector<64x16xf32> to vector<64x16xbf16>
    %cst_53 = arith.constant dense<0.000000e+00> : vector<128x16xf32>
    %90 = tpu.matmul %2, %89, %cst_53 {dimension_numbers = #tpu.dot_dimension_numbers<[1], [0], [0], [1], [0, 0, 1, 1], [], []>} : vector<128x64xbf16>, vector<64x16xbf16>, vector<128x16xf32> -> vector<128x16xf32>
    %91 = arith.maximumf %80, %90 : vector<128x16xf32>
    %c0_54 = arith.constant 0 : index
    %c0_55 = arith.constant 0 : index
    %92 = vector.load %arg6[%c0_54, %c0_55] : memref<128x1xf32, #tpu.memory_space<vmem>>, vector<128x1xf32>
    %93 = vector.broadcast %92 : vector<128x1xf32> to vector<128x16xf32>
    %94 = arith.addf %91, %93 : vector<128x16xf32>
    %cst_56 = arith.constant 2.000000e-01 : f32
    %95 = vector.broadcast %cst_56 : f32 to vector<128x16xf32>
    %96 = arith.mulf %95, %94 : vector<128x16xf32>
    %97 = arith.maximumf %94, %96 : vector<128x16xf32>
    %c0_57 = arith.constant 0 : index
    %c0_58 = arith.constant 0 : index
    %98 = vector.load %arg7[%c0_57, %c0_58] : memref<1024x128xbf16, #tpu.memory_space<vmem>>, vector<1024x128xbf16>
    %99 = arith.truncf %97 : vector<128x16xf32> to vector<128x16xbf16>
    %cst_59 = arith.constant dense<0.000000e+00> : vector<1024x16xf32>
    %100 = tpu.matmul %98, %99, %cst_59 {dimension_numbers = #tpu.dot_dimension_numbers<[1], [0], [0], [1], [0, 0, 1, 1], [], []>} : vector<1024x128xbf16>, vector<128x16xbf16>, vector<1024x16xf32> -> vector<1024x16xf32>
    %c0_60 = arith.constant 0 : index
    %c0_61 = arith.constant 0 : index
    %101 = vector.load %arg8[%c0_60, %c0_61] : memref<1024x1xf32, #tpu.memory_space<vmem>>, vector<1024x1xf32>
    %102 = vector.broadcast %101 : vector<1024x1xf32> to vector<1024x16xf32>
    %103 = arith.addf %100, %102 : vector<1024x16xf32>
    %cst_62 = arith.constant 2.000000e-01 : f32
    %104 = vector.broadcast %cst_62 : f32 to vector<1024x16xf32>
    %105 = arith.mulf %104, %103 : vector<1024x16xf32>
    %106 = arith.maximumf %103, %105 : vector<1024x16xf32>
    %c0_i32 = arith.constant 0 : i32
    %107 = arith.cmpi eq, %arg1, %c0_i32 : i32
    %108 = arith.extui %107 : i1 to i32
    %c0_i32_63 = arith.constant 0 : i32
    %109 = arith.cmpi ne, %108, %c0_i32_63 : i32
    scf.if %109 {
      %cst_70 = arith.constant 0xFF800000 : f32
      %116 = vector.broadcast %cst_70 : f32 to vector<1024x16xf32>
      %c0_71 = arith.constant 0 : index
      %c0_72 = arith.constant 0 : index
      %117 = vector.load %arg16[%c0_71, %c0_72] : memref<1024x16xf32, #tpu.memory_space<vmem>>, vector<1024x16xf32>
      tpu.vector_store %arg16[%c0_71, %c0_72], %116 {strides = array<i32>} : memref<1024x16xf32, #tpu.memory_space<vmem>>, vector<1024x16xf32>,
    } else {
    }
    %c0_64 = arith.constant 0 : index
    %c0_65 = arith.constant 0 : index
    %110 = vector.load %arg16[%c0_64, %c0_65] : memref<1024x16xf32, #tpu.memory_space<vmem>>, vector<1024x16xf32>
    %111 = arith.maximumf %110, %106 : vector<1024x16xf32>
    %c0_66 = arith.constant 0 : index
    %c0_67 = arith.constant 0 : index
    %112 = vector.load %arg16[%c0_66, %c0_67] : memref<1024x16xf32, #tpu.memory_space<vmem>>, vector<1024x16xf32>
    tpu.vector_store %arg16[%c0_66, %c0_67], %111 {strides = array<i32>} : memref<1024x16xf32, #tpu.memory_space<vmem>>, vector<1024x16xf32>,
    %c0_i32_68 = arith.constant 0 : i32
    %113 = arith.cmpi eq, %arg1, %c0_i32_68 : i32
    %114 = arith.extui %113 : i1 to i32
    %c0_i32_69 = arith.constant 0 : i32
    %115 = arith.cmpi ne, %114, %c0_i32_69 : i32
    scf.if %115 {
      %c0_70 = arith.constant 0 : index
      %c0_71 = arith.constant 0 : index
      %116 = vector.load %arg16[%c0_70, %c0_71] : memref<1024x16xf32, #tpu.memory_space<vmem>>, vector<1024x16xf32>
      %cst_72 = arith.constant dense<0xFF800000> : vector<1024xf32>
      %117 = vector.multi_reduction <maximumf>, %116, %cst_72 [1] : vector<1024x16xf32> to vector<1024xf32>
      %118 = vector.shape_cast %117 : vector<1024xf32> to vector<1024x1xf32>
      %c0_73 = arith.constant 0 : index
      %c0_74 = arith.constant 0 : index
      %119 = vector.load %arg9[%c0_73, %c0_74] : memref<512x1024xbf16, #tpu.memory_space<vmem>>, vector<512x1024xbf16>
      %120 = arith.truncf %118 : vector<1024x1xf32> to vector<1024x1xbf16>
      %cst_75 = arith.constant dense<0.000000e+00> : vector<512x1xf32>
      %121 = tpu.matmul %119, %120, %cst_75 {dimension_numbers = #tpu.dot_dimension_numbers<[1], [0], [0], [1], [0, 0, 1, 1], [], []>} : vector<512x1024xbf16>, vector<1024x1xbf16>, vector<512x1xf32> -> vector<512x1xf32>
      %c0_76 = arith.constant 0 : index
      %c0_77 = arith.constant 0 : index
      %122 = vector.load %arg10[%c0_76, %c0_77] : memref<512x1xf32, #tpu.memory_space<vmem>>, vector<512x1xf32>
      %123 = arith.addf %121, %122 : vector<512x1xf32>
      %cst_78 = arith.constant 2.000000e-01 : f32
      %124 = vector.broadcast %cst_78 : f32 to vector<512x1xf32>
      %125 = arith.mulf %124, %123 : vector<512x1xf32>
      %126 = arith.maximumf %123, %125 : vector<512x1xf32>
      %c0_79 = arith.constant 0 : index
      %c0_80 = arith.constant 0 : index
      %127 = vector.load %arg11[%c0_79, %c0_80] : memref<256x512xbf16, #tpu.memory_space<vmem>>, vector<256x512xbf16>
      %128 = arith.truncf %126 : vector<512x1xf32> to vector<512x1xbf16>
      %cst_81 = arith.constant dense<0.000000e+00> : vector<256x1xf32>
      %129 = tpu.matmul %127, %128, %cst_81 {dimension_numbers = #tpu.dot_dimension_numbers<[1], [0], [0], [1], [0, 0, 1, 1], [], []>} : vector<256x512xbf16>, vector<512x1xbf16>, vector<256x1xf32> -> vector<256x1xf32>
      %c0_82 = arith.constant 0 : index
      %c0_83 = arith.constant 0 : index
      %130 = vector.load %arg12[%c0_82, %c0_83] : memref<256x1xf32, #tpu.memory_space<vmem>>, vector<256x1xf32>
      %131 = arith.addf %129, %130 : vector<256x1xf32>
      %cst_84 = arith.constant 2.000000e-01 : f32
      %132 = vector.broadcast %cst_84 : f32 to vector<256x1xf32>
      %133 = arith.mulf %132, %131 : vector<256x1xf32>
      %134 = arith.maximumf %131, %133 : vector<256x1xf32>
      %c0_85 = arith.constant 0 : index
      %c0_86 = arith.constant 0 : index
      %135 = vector.load %arg13[%c0_85, %c0_86] : memref<9x256xbf16, #tpu.memory_space<vmem>>, vector<9x256xbf16>
      %136 = arith.truncf %134 : vector<256x1xf32> to vector<256x1xbf16>
      %cst_87 = arith.constant dense<0.000000e+00> : vector<9x1xf32>
      %137 = tpu.matmul %135, %136, %cst_87 {dimension_numbers = #tpu.dot_dimension_numbers<[1], [0], [0], [1], [0, 0, 1, 1], [], []>} : vector<9x256xbf16>, vector<256x1xbf16>, vector<9x1xf32> -> vector<9x1xf32>
      %c0_88 = arith.constant 0 : index
      %c0_89 = arith.constant 0 : index
      %138 = vector.load %arg14[%c0_88, %c0_89] : memref<9x1xf32, #tpu.memory_space<vmem>>, vector<9x1xf32>
      %139 = arith.addf %137, %138 : vector<9x1xf32>
      %c0_90 = arith.constant 0 : index
      %c0_91 = arith.constant 0 : index
      %c0_92 = arith.constant 0 : index
      %140 = vector.load %arg15[%c0_90, %c0_91, %c0_92] : memref<1x9x1xf32, #tpu.memory_space<vmem>>, vector<1x9x1xf32>
      %141 = vector.shape_cast %140 : vector<1x9x1xf32> to vector<9x1xf32>
      %142 = vector.shape_cast %139 : vector<9x1xf32> to vector<1x9x1xf32>
      tpu.vector_store %arg15[%c0_90, %c0_91, %c0_92], %142 {strides = array<i32>} : memref<1x9x1xf32, #tpu.memory_space<vmem>>, vector<1x9x1xf32>,
    } else {
    }
    return
  }
  func.func @transform_0(%arg0: i32, %arg1: i32) -> (i32, i32, i32, i32) {
    %c0_i32 = arith.constant 0 : i32
    %c0_i32_0 = arith.constant 0 : i32
    %c0_i32_1 = arith.constant 0 : i32
    return %arg0, %c0_i32, %c0_i32_0, %arg1 : i32, i32, i32, i32
  }
  func.func @transform_1(%arg0: i32, %arg1: i32) -> (i32, i32) {
    %c0_i32 = arith.constant 0 : i32
    %c0_i32_0 = arith.constant 0 : i32
    %c0_i32_1 = arith.constant 0 : i32
    return %c0_i32, %c0_i32_0 : i32, i32
  }
  func.func @transform_2(%arg0: i32, %arg1: i32) -> (i32, i32) {
    %c0_i32 = arith.constant 0 : i32
    %c0_i32_0 = arith.constant 0 : i32
    %c0_i32_1 = arith.constant 0 : i32
    return %c0_i32, %c0_i32_0 : i32, i32
  }
  func.func @transform_3(%arg0: i32, %arg1: i32) -> (i32, i32) {
    %c0_i32 = arith.constant 0 : i32
    %c0_i32_0 = arith.constant 0 : i32
    %c0_i32_1 = arith.constant 0 : i32
    return %c0_i32, %c0_i32_0 : i32, i32
  }
  func.func @transform_4(%arg0: i32, %arg1: i32) -> (i32, i32) {
    %c0_i32 = arith.constant 0 : i32
    %c0_i32_0 = arith.constant 0 : i32
    %c0_i32_1 = arith.constant 0 : i32
    return %c0_i32, %c0_i32_0 : i32, i32
  }
  func.func @transform_5(%arg0: i32, %arg1: i32) -> (i32, i32) {
    %c0_i32 = arith.constant 0 : i32
    %c0_i32_0 = arith.constant 0 : i32
    %c0_i32_1 = arith.constant 0 : i32
    return %c0_i32, %c0_i32_0 : i32, i32
  }
  func.func @transform_6(%arg0: i32, %arg1: i32) -> (i32, i32) {
    %c0_i32 = arith.constant 0 : i32
    %c0_i32_0 = arith.constant 0 : i32
    %c0_i32_1 = arith.constant 0 : i32
    return %c0_i32, %c0_i32_0 : i32, i32
  }
  func.func @transform_7(%arg0: i32, %arg1: i32) -> (i32, i32) {
    %c0_i32 = arith.constant 0 : i32
    %c0_i32_0 = arith.constant 0 : i32
    %c0_i32_1 = arith.constant 0 : i32
    return %c0_i32, %c0_i32_0 : i32, i32
  }
  func.func @transform_8(%arg0: i32, %arg1: i32) -> (i32, i32) {
    %c0_i32 = arith.constant 0 : i32
    %c0_i32_0 = arith.constant 0 : i32
    %c0_i32_1 = arith.constant 0 : i32
    return %c0_i32, %c0_i32_0 : i32, i32
  }
  func.func @transform_9(%arg0: i32, %arg1: i32) -> (i32, i32) {
    %c0_i32 = arith.constant 0 : i32
    %c0_i32_0 = arith.constant 0 : i32
    %c0_i32_1 = arith.constant 0 : i32
    return %c0_i32, %c0_i32_0 : i32, i32
  }
  func.func @transform_10(%arg0: i32, %arg1: i32) -> (i32, i32) {
    %c0_i32 = arith.constant 0 : i32
    %c0_i32_0 = arith.constant 0 : i32
    %c0_i32_1 = arith.constant 0 : i32
    return %c0_i32, %c0_i32_0 : i32, i32
  }
  func.func @transform_11(%arg0: i32, %arg1: i32) -> (i32, i32) {
    %c0_i32 = arith.constant 0 : i32
    %c0_i32_0 = arith.constant 0 : i32
    %c0_i32_1 = arith.constant 0 : i32
    return %c0_i32, %c0_i32_0 : i32, i32
  }
  func.func @transform_12(%arg0: i32, %arg1: i32) -> (i32, i32) {
    %c0_i32 = arith.constant 0 : i32
    %c0_i32_0 = arith.constant 0 : i32
    %c0_i32_1 = arith.constant 0 : i32
    return %c0_i32, %c0_i32_0 : i32, i32
  }
  func.func @transform_13(%arg0: i32, %arg1: i32) -> (i32, i32, i32) {
    %c0_i32 = arith.constant 0 : i32
    %c0_i32_0 = arith.constant 0 : i32
    %c0_i32_1 = arith.constant 0 : i32
    return %arg0, %c0_i32, %c0_i32_0 : i32, i32, i32
  }
}

</mosaic_0001>

<bundles_post_ra>
// kernel: tpu_custom_call.1
= control target key start
LH: loop header
LB: loop body
LE: loop exit
PB: predicated region body
PF: predicated region fallthrough
CT: control target
= control target key end

     0   :  { %18 = vsyncpa [#allocation4], 0  ;;  %s15343_s0 = inlined_call_operand.vmem [shape: bf16[2,8,8,16], index: 0, kind: input, shape index: {}]   ;;  %s15344_s1 = inlined_call_operand.vmem [shape: bf16[64,8], index: 1, kind: input, shape index: {}]   ;;  %s15345_s2 = inlined_call_operand.vmem [shape: f32[64,1], index: 2, kind: input, shape index: {}]   ;;  %s15346_s3 = inlined_call_operand.vmem [shape: bf16[128,64], index: 3, kind: input, shape index: {}]   ;;  %s15347_s4 = inlined_call_operand.vmem [shape: f32[128,1], index: 4, kind: input, shape index: {}]   ;;  %s15348_s5 = inlined_call_operand.hbm [shape: bf16[1024,128], index: 5, kind: input, shape index: {}]   ;;  %s15349_s6 = inlined_call_operand.vmem [shape: f32[1024,1], index: 6, kind: input, shape index: {}]   ;;  %s15350_s7 = inlined_call_operand.vmem [shape: bf16[512,1024], index: 7, kind: input, shape index: {}]   ;;  %s15351_s8 = inlined_call_operand.vmem [shape: f32[512,1], index: 8, kind: input, shape index: {}]   ;;  %s15352_s9 = inlined_call_operand.hbm [shape: bf16[256,512], index: 9, kind: input, shape index: {}]   ;;  %s15353_s10 = inlined_call_operand.vmem [shape: f32[256,1], index: 10, kind: input, shape index: {}]   ;;  %s15354_s11 = inlined_call_operand.vmem [shape: bf16[9,256], index: 11, kind: input, shape index: {}]   ;;  %s15355_s12 = inlined_call_operand.vmem [shape: f32[9,1], index: 12, kind: input, shape index: {}]   ;;  %s15356_s13 = inlined_call_operand.vmem [shape: f32[2,9,1], index: 13, kind: output, shape index: {}]  }
   0x1   :  { %19 = vsyncpa [#allocation6], 0  ;;  %s11681_s25 = smov 0   ;;  %s11683_s26 = smov 0  }
   0x2   :  { %s11685_s27 = smov 0  }
   0x3 LB: > { %15407 = sst [smem:[#allocation9_spill]] %s11597_s26  ;;  %s9488_s28 = sadd.s32 4294967295, %s11601_s27   ;;  %s11601_s27 = sphi %s11685_s27, %s25_s27   ;;  %s11597_s26 = sphi %s11683_s26, %s15608_s26   ;;  %s11593_s25 = sphi %s11681_s25, %s15607_s25  }
   0x4   : > { %15408 = sst [smem:[#allocation10_spill]] %s11601_s27  ;;  %s37_s29 = sadd.s32 1, %s11597_s26 }
   0x5   : > { %p39_p0 = scmp.ge.s32.totalorder %s37_s29, 2  ;;  %p9490_p1 = scmp.ge.s32.totalorder %s11601_s27, 1 }
   0x6   : > { %p348_p2 = scmp.lt.s32.totalorder %s11601_s27, 3  ;;  %p11706_p4 = scmp.eq.s32.totalorder %s9488_s28, 0 }
   0x7   : > { %s15610_s29 = smov (%p39_p0, %s37_s29), 0  ;;  %s11603_s15 = smov [#allocation3]  }
   0x8   : > { %15409 = sst [smem:[#allocation11_spill]] %s15610_s29  ;;  %p11702_p3 = pnand %p9490_p1, %p348_p2 }
   0x9   : > { %s15411_s14 = scalar_select %p11706_p4, 1, 0 }
   0xa   : > { %s15410_s30 = scalar_select %p11702_p3, 1, 0 }
   0xb   : > { %p11284_p5 = pneg %p11702_p3  ;;  %s372_s16 = sshll.u32 %s11603_s15, 4  ;;  %s373_s16 = int_to_ptr.vmem [resolvable:$true] %s372_s16 }
   0xc   : > { %s11604_s18 = smov [#allocation5]   ;;  %s11515_s22 = scalar_lea.hbm %s15348_s5, 8192 }
   0xd   : > { %p11714_p6 = pnand %p11706_p4, %p11284_p5  ;;  %s394_s19 = sshll.u32 %s11604_s18, 4  ;;  %s11718_s19 = int_to_ptr.vmem [resolvable:$true] %s394_s19 }
   0xe   : > { %p11516_p7 = scmp.ne.s32.totalorder %s15348_s5, %s11515_s22  ;;  %p11522_p11 = scmp.lt.u32.totalorder %s11515_s22, %s15348_s5 }
   0xf   : > { %p11517_p8 = pneg %p11714_p6 }
  0x11   : > { %p11518_p9 = pnand %p11517_p8, %p11516_p7 }
  0x13   : > { %p11519_p10 = pneg %p11518_p9 }
  0x15   : > { %p11524_p12 = pnand %p11522_p11, %p11519_p10 }
  0x17   : > { %11527 = shalt.err (!%p11524_p12)
}
  0x18   : > { %s11528_s18 = scalar_lea.vmem %s373_s16, 8192  ;;  %p11536_p2 = scmp.lt.s32.totalorder %s373_s16, %s373_s16 }
  0x19   : > { %p11529_p13 = scmp.ne.s32.totalorder %s373_s16, %s11528_s18  ;;  %p11537_p5 = scmp.lt.s32.totalorder %s11528_s18, %s11528_s18 }
  0x1b   : > { %p11531_p0 = pnand %p11529_p13, %p11517_p8  ;;  %p11538_p4 = por %p11537_p5, %p11536_p2 }
  0x1d   : > { %p11532_p1 = pneg %p11531_p0 }
  0x1f   : > { %p11539_p3 = pnand %p11538_p4, %p11532_p1 }
  0x21   : > { %11542 = shalt.err (!%p11539_p3)
}
  0x22   : > { %s11605_s20 = smov 64   ;;  %s11606_s21 = smov 4  }
  0x23   : > { %11287 = dma.hbm_to_vmem [thread:$0]  (!%p11714_p6), %s15348_s5, 8192, %s373_s16, [#allocation4], %s11605_s20, %s11605_s20, %s11606_s21  }
  0x24   : > { %s11543_s15 = scalar_lea.hbm %s15352_s9, 8192 }
  0x25   : > { %p11544_p7 = scmp.ne.s32.totalorder %s15352_s9, %s11543_s15  ;;  %p11550_p9 = scmp.lt.u32.totalorder %s11543_s15, %s15352_s9 }
  0x27   : > { %p11546_p3 = pnand %p11544_p7, %p11517_p8 }
  0x29   : > { %p11547_p4 = pneg %p11546_p3 }
  0x2b   : > { %p11552_p10 = pnand %p11550_p9, %p11547_p4 }
  0x2d   : > { %11555 = shalt.err (!%p11552_p10)
}
  0x2e   : > { %s11556_s16 = scalar_lea.vmem %s11718_s19, 8192  ;;  %p11564_p0 = scmp.lt.s32.totalorder %s11718_s19, %s11718_s19 }
  0x2f   : > { %p11557_p11 = scmp.ne.s32.totalorder %s11718_s19, %s11556_s16  ;;  %p11565_p1 = scmp.lt.s32.totalorder %s11556_s16, %s11556_s16 }
  0x31   : > { %p11559_p12 = pnand %p11557_p11, %p11517_p8  ;;  %p11566_p2 = por %p11565_p1, %p11564_p0 }
  0x33   : > { %p11560_p13 = pneg %p11559_p12 }
  0x35   : > { %p11567_p5 = pnand %p11566_p2, %p11560_p13 }
  0x37   : > { %11570 = shalt.err (!%p11567_p5)
}
  0x38   : > { %s11607_s26 = smov 256   ;;  %s11608_s27 = smov 16  }
  0x39   : > { %11290 = dma.hbm_to_vmem [thread:$0]  (!%p11714_p6), %s15352_s9, 8192, %s11718_s19, [#allocation6], %s11607_s26, %s11607_s26, %s11608_s27  }
  0x3a   : > { %p15413_p7 = scmp.ne.s32.totalorder %s15410_s30, 0 }
  0x3c   : > { %430 = sbr.rel (%p15413_p7) target bundleno = 3567 (0xdef), region = 72 }
  0x43   : > { %p15414_p8 = scmp.ne.s32.totalorder %s15411_s14, 0 }
  0x45   : > { %11584 = dma.done.wait (%p15414_p8), [#allocation4], 8192  }
  0x46   : > { %11586 = vsyncadd (%p15414_p8), [#allocation4], 4294959104 }
  0x47   : > { %11588 = dma.done.wait (%p15414_p8), [#allocation6], 8192  }
  0x48   : > { %11590 = vsyncadd (%p15414_p8), [#allocation6], 4294959104  ;;  %p481_p3 = scmp.lt.s32.totalorder %s11593_s25, 1  ;;  %v15362_v0 = vmov 0   ;;  %vm601_vm0 = vcmask 1043456   ;;  %v505_v2 = vld [vmem:[%s15345_s2 + $0x10] sm:$0xff] }
  0x49   : > { %11328 = vset.pattern.permute.xlu1 %v15362_v0  ;;  %11327 = vset.pattern.permute.xlu0 %v15362_v0  ;;  %v503_v3 = vld [vmem:[%s15345_s2] sm:$0xff]  ;;  %vm588_vm1 = vcmask 64512   ;;  %v506_v6 = vld [vmem:[%s15345_s2 + $0x18] sm:$0xff]  ;;  %v504_v7 = vld [vmem:[%s15345_s2 + $0x8] sm:$0xff]  ;;  %vm730_vm2 = vcmask 523264   ;;  %vm4510_vm3 = vcmask 130048  }
  0x4a   : > { %s15612_s25 = smov (!%p481_p3, %s11593_s25), 1  ;;  %540 = vperm.xlu1 %11328, %v505_v2   ;;  %v11801_v5 = vld [vmem:[%s15344_s1] sm:$0xff]   ;;  %530 = vperm.xlu0 %11327, %v503_v3   ;;  %v11814_v8 = vld [vmem:[%s15344_s1 + $0x8] sm:$0xff]   ;;  %v11821_v9 = vld [vmem:[%s15344_s1 + $0x10] sm:$0xff]   ;;  %vm9392_vm4 = vcmask 7168   ;;  %vm9394_vm5 = vcmask 0  }
  0x4b   : > { %s10004_s30 = sshll.u32 %s15612_s25, 5  ;;  %10462 = vmatprep.mubr.msk.bf16.mxu0 %vm588_vm1, %v11801_v5  ;;  %v508_v10 = vld [vmem:[%s15345_s2 + $0x28] sm:$0xff]  ;;  %v507_v11 = vld [vmem:[%s15345_s2 + $0x20] sm:$0xff]  ;;  %v11837_v14 = vld [vmem:[%s15344_s1 + $0x18] sm:$0xff]   ;;  %s10005_s29 = sshll.u32 %s15612_s25, 4 }
  0x4c   : > { %s11787_s21 = scalar_lea.vmem %s15343_s0, %s10004_s30  ;;  %v510_v15 = vld [vmem:[%s15345_s2 + $0x38] sm:$0xff]  ;;  %v509_v16 = vld [vmem:[%s15345_s2 + $0x30] sm:$0xff]  ;;  %v2274_v17 = vld [vmem:[%s15347_s4 + $0x8] sm:$0xff]  ;;  %s493_s14 = scalar_lea.vmem %s15356_s13, %s10005_s29 }
  0x4d   : > { %v527_v1 = vld [vmem:[%s11787_s21] sm:$0xf]  ;;  %v9525_v12 = vld [vmem:[%s11787_s21 + $0x4] sm:$0xf]  ;;  %v2276_v19 = vld [vmem:[%s15347_s4 + $0x18] sm:$0xff] }
  0x4e   : > { %11268 = vmatprep.subr.msk.bf16.mxu0 %vm601_vm0, %v527_v1  ;;  %v603_v4 = vsel %vm601_vm0, %v527_v1, 0  ;;  %545 = vperm.xlu1 %11328, %v506_v6   ;;  %v855_v13 = vsel %vm601_vm0, %v9525_v12, 0  ;;  %v2273_v18 = vld [vmem:[%s15347_s4] sm:$0xff]  ;;  %v2275_v20 = vld [vmem:[%s15347_s4 + $0x10] sm:$0xff]  ;;  %v2278_v21 = vld [vmem:[%s15347_s4 + $0x28] sm:$0xff] }
  0x4f   : > { %10461 = vmatpush3.bf16.msra.mxu0 %v603_v4  ;;  %535 = vperm.xlu0 %11327, %v504_v7   ;;  %v2277_v22 = vld [vmem:[%s15347_s4 + $0x20] sm:$0xff]  ;;  %v2280_v23 = vld [vmem:[%s15347_s4 + $0x38] sm:$0xff]  ;;  %v2279_v24 = vld [vmem:[%s15347_s4 + $0x30] sm:$0xff] }
  0x50   : > { %11269 = vmatprep.subr.msk.bf16.mxu0 %vm601_vm0, %v9525_v12  ;;  %v2282_v25 = vld [vmem:[%s15347_s4 + $0x48] sm:$0xff]  ;;  %v2281_v26 = vld [vmem:[%s15347_s4 + $0x40] sm:$0xff]  ;;  %v2284_v27 = vld [vmem:[%s15347_s4 + $0x58] sm:$0xff] }
  0x51   : > { %v2283_v28 = vld [vmem:[%s15347_s4 + $0x50] sm:$0xff]  ;;  %v2286_v29 = vld [vmem:[%s15347_s4 + $0x68] sm:$0xff]  ;;  %v2285_v30 = vld [vmem:[%s15347_s4 + $0x60] sm:$0xff] }
  0x52   : > { %10463 = vmatmul.mubr.msk.bf16.vlgmr.msra.gmra.mrb[0].mxu0 %vm588_vm1, %v11814_v8  ;;  %555 = vperm.xlu1 %11328, %v508_v10   ;;  %v2288_v31 = vld [vmem:[%s15347_s4 + $0x78] sm:$0xff]  ;;  %v2287_v32 = vld [vmem:[%s15347_s4 + $0x70] sm:$0xff]  ;;  %v2586_v33 = vld [vmem:[%s15349_s6 + $0x108] sm:$0xff] }
  0x53   : > { %10466 = vmatprep.mubr.msk.bf16.mxu0 %vm588_vm1, %v11821_v9  ;;  %10495 = vmatpush3.bf16.msra.mxu0 %v855_v13  ;;  %v2585_v34 = vld [vmem:[%s15349_s6 + $0x100] sm:$0xff]  ;;  %v2588_v35 = vld [vmem:[%s15349_s6 + $0x118] sm:$0xff]  ;;  %v2587_v36 = vld [vmem:[%s15349_s6 + $0x110] sm:$0xff] }
  0x54   : > { %550 = vperm.xlu0 %11327, %v507_v11   ;;  %v2590_v37 = vld [vmem:[%s15349_s6 + $0x128] sm:$0xff]  ;;  %v2589_v38 = vld [vmem:[%s15349_s6 + $0x120] sm:$0xff]  ;;  %v2592_v39 = vld [vmem:[%s15349_s6 + $0x138] sm:$0xff] }
  0x55   : > { %v2591_v40 = vld [vmem:[%s15349_s6 + $0x130] sm:$0xff]  ;;  %v2594_v41 = vld [vmem:[%s15349_s6 + $0x148] sm:$0xff]  ;;  %v2593_v42 = vld [vmem:[%s15349_s6 + $0x140] sm:$0xff] }
  0x56   : > { %565 = vperm.xlu1 %11328, %v510_v15   ;;  %v2596_v43 = vld [vmem:[%s15349_s6 + $0x158] sm:$0xff]  ;;  %v2595_v44 = vld [vmem:[%s15349_s6 + $0x150] sm:$0xff]  ;;  %v2598_v45 = vld [vmem:[%s15349_s6 + $0x168] sm:$0xff] }
  0x57   : > { %v2597_v46 = vld [vmem:[%s15349_s6 + $0x160] sm:$0xff]  ;;  %v2600_v47 = vld [vmem:[%s15349_s6 + $0x178] sm:$0xff]  ;;  %v2599_v48 = vld [vmem:[%s15349_s6 + $0x170] sm:$0xff] }
  0x58   : > { %560 = vperm.xlu0 %11327, %v509_v16   ;;  %v2602_v49 = vld [vmem:[%s15349_s6 + $0x188] sm:$0xff]  ;;  %v2601_v50 = vld [vmem:[%s15349_s6 + $0x180] sm:$0xff]  ;;  %v2604_v51 = vld [vmem:[%s15349_s6 + $0x198] sm:$0xff] }
  0x59   : > { %v2603_v52 = vld [vmem:[%s15349_s6 + $0x190] sm:$0xff]  ;;  %v2606_v53 = vld [vmem:[%s15349_s6 + $0x1a8] sm:$0xff]  ;;  %v2605_v54 = vld [vmem:[%s15349_s6 + $0x1a0] sm:$0xff] }
  0x5a   : > { %10467 = vmatmul.mubr.msk.bf16.gmra.mrb[4].mxu0 %vm588_vm1, %v11837_v14  ;;  %2296 = vperm.xlu1 %11328, %v2274_v17   ;;  %v2608_v55 = vld [vmem:[%s15349_s6 + $0x1b8] sm:$0xff]  ;;  %v2607_v56 = vld [vmem:[%s15349_s6 + $0x1b0] sm:$0xff]  ;;  %v2610_v57 = vld [vmem:[%s15349_s6 + $0x1c8] sm:$0xff] }
  0x5b   : > { %10496 = vmatprep.mubr.msk.bf16.mxu0 %vm588_vm1, %v11801_v5  ;;  %v2609_v58 = vld [vmem:[%s15349_s6 + $0x1c0] sm:$0xff]  ;;  %v2612_v59 = vld [vmem:[%s15349_s6 + $0x1d8] sm:$0xff]  ;;  %v2611_v60 = vld [vmem:[%s15349_s6 + $0x1d0] sm:$0xff] }
  0x5c   : > { %2291 = vperm.xlu0 %11327, %v2273_v18   ;;  %v2614_v61 = vld [vmem:[%s15349_s6 + $0x1e8] sm:$0xff]  ;;  %v2613_v62 = vld [vmem:[%s15349_s6 + $0x1e0] sm:$0xff]  ;;  %v2616_v63 = vld [vmem:[%s15349_s6 + $0x1f8] sm:$0xff] }
  0x5d   : > { %v2615_v1 = vld [vmem:[%s15349_s6 + $0x1f0] sm:$0xff]  ;;  %v12002_v2 = vld [vmem:[%s15346_s3] sm:$0xff]  }
  0x5e   : > { %2306 = vperm.xlu1 %11328, %v2276_v19   ;;  %15415 = vst [vmem:[#allocation12_spill] sm:$0xff] %v12002_v2  ;;  %10478 = vmatprep.mubr.msk.bf16.mxu1 %vm730_vm2, %v12002_v2 }
  0x60   : > { %2301 = vperm.xlu0 %11327, %v2275_v20  }
  0x62   : > { %10497 = vmatmul.mubr.msk.bf16.vlgmr.msra.gmra.mrb[8].mxu0 %vm588_vm1, %v11814_v8  ;;  %2316 = vperm.xlu1 %11328, %v2278_v21  }
  0x63   : > { %10500 = vmatprep.mubr.msk.bf16.mxu0 %vm588_vm1, %v11821_v9 }
  0x64   : > { %2311 = vperm.xlu0 %11327, %v2277_v22  }
  0x66   : > { %2326 = vperm.xlu1 %11328, %v2280_v23  }
  0x68   : > { %2321 = vperm.xlu0 %11327, %v2279_v24  }
  0x6a   : > { %10501 = vmatmul.mubr.msk.bf16.gmra.mrb[12].mxu0 %vm588_vm1, %v11837_v14  ;;  %2336 = vperm.xlu1 %11328, %v2282_v25  }
  0x6b   : > { %10512 = vmatprep.mubr.msk.bf16.mxu0 %vm730_vm2, %v12002_v2 }
  0x6c   : > { %2331 = vperm.xlu0 %11327, %v2281_v26  }
  0x6e   : > { %2346 = vperm.xlu1 %11328, %v2284_v27  }
  0x70   : > { %2341 = vperm.xlu0 %11327, %v2283_v28  }
  0x72   : > { %2356 = vperm.xlu1 %11328, %v2286_v29  }
  0x74   : > { %2351 = vperm.xlu0 %11327, %v2285_v30  }
  0x76   : > { %2366 = vperm.xlu1 %11328, %v2288_v31  }
  0x78   : > { %2361 = vperm.xlu0 %11327, %v2287_v32  }
  0x7a   : > { %2848 = vperm.xlu1 %11328, %v2586_v33  }
  0x7c   : > { %2843 = vperm.xlu0 %11327, %v2585_v34  }
  0x7e   : > { %2858 = vperm.xlu1 %11328, %v2588_v35  }
  0x80   : > { %2853 = vperm.xlu0 %11327, %v2587_v36  }
  0x82   : > { %2868 = vperm.xlu1 %11328, %v2590_v37  }
  0x84   : > { %2863 = vperm.xlu0 %11327, %v2589_v38  }
  0x86   : > { %2878 = vperm.xlu1 %11328, %v2592_v39  }
  0x88   : > { %2873 = vperm.xlu0 %11327, %v2591_v40  }
  0x8a   : > { %2888 = vperm.xlu1 %11328, %v2594_v41  }
  0x8c   : > { %2883 = vperm.xlu0 %11327, %v2593_v42  }
  0x8e   : > { %2898 = vperm.xlu1 %11328, %v2596_v43  }
  0x90   : > { %2893 = vperm.xlu0 %11327, %v2595_v44  }
  0x92   : > { %2908 = vperm.xlu1 %11328, %v2598_v45  }
  0x94   : > { %2903 = vperm.xlu0 %11327, %v2597_v46  }
  0x96   : > { %2918 = vperm.xlu1 %11328, %v2600_v47  }
  0x98   : > { %2913 = vperm.xlu0 %11327, %v2599_v48  }
  0x9a   : > { %2928 = vperm.xlu1 %11328, %v2602_v49  }
  0x9c   : > { %2923 = vperm.xlu0 %11327, %v2601_v50  }
  0x9e   : > { %2938 = vperm.xlu1 %11328, %v2604_v51  }
  0xa0   : > { %2933 = vperm.xlu0 %11327, %v2603_v52  }
  0xa2   : > { %2948 = vperm.xlu1 %11328, %v2606_v53  }
  0xa4   : > { %2943 = vperm.xlu0 %11327, %v2605_v54  }
  0xa6   : > { %2958 = vperm.xlu1 %11328, %v2608_v55  }
  0xa8   : > { %2953 = vperm.xlu0 %11327, %v2607_v56  }
  0xaa   : > { %2968 = vperm.xlu1 %11328, %v2610_v57  }
  0xac   : > { %2963 = vperm.xlu0 %11327, %v2609_v58  }
  0xae   : > { %2978 = vperm.xlu1 %11328, %v2612_v59  }
  0xb0   : > { %2973 = vperm.xlu0 %11327, %v2611_v60  }
  0xb2   : > { %2988 = vperm.xlu1 %11328, %v2614_v61  }
  0xb4   : > { %2983 = vperm.xlu0 %11327, %v2613_v62  }
  0xb6   : > { %2998 = vperm.xlu1 %11328, %v2616_v63  }
  0xb8   : > { %2993 = vperm.xlu0 %11327, %v2615_v1  }
  0xc9   : > { %v12008_v3 = vpop.permute.xlu0 %530  ;;  %v12010_v4 = vpop.permute.xlu1 %540 }
  0xcd   : > { %v12014_v7 = vpop.permute.xlu1 %545 }
  0xce   : > { %v12012_v6 = vpop.permute.xlu0 %535 }
  0xd1   : > { %v12021_v20 = vpop.permute.xlu1 %555 }
  0xd3   : > { %v12017_v13 = vpop.permute.xlu0 %550 }
  0xd5   : > { %v12027_v34 = vpop.permute.xlu1 %565 }
  0xd7   : > { %v12024_v27 = vpop.permute.xlu0 %560 }
 0x125   : > { %v10464_v10 = vpop.f32.mrb[0].mxu0 }
 0x126   : > { %v648_v11 = vadd.f32 %v10464_v10, %v12010_v4  ;;  %v639_v12 = vpop.f32.mrb[1].mxu0 }
 0x127   : > { %v640_v15 = vadd.f32 %v639_v12, %v12008_v3  ;;  %v10465_v16 = vpop.f32.mrb[2].mxu0 }
 0x128   : > { %v672_v17 = vmul.f32 0.2, %v648_v11  ;;  %v651_v18 = vadd.f32 %v10465_v16, %v12014_v7  ;;  %v642_v19 = vpop.f32.mrb[3].mxu0 }
 0x129   : > { %v670_v21 = vmul.f32 0.2, %v640_v15  ;;  %v643_v22 = vadd.f32 %v642_v19, %v12012_v6 }
 0x12a   : > { %v673_v23 = vmul.f32 0.2, %v651_v18  ;;  %v680_v25 = vmax.f32 %v648_v11, %v672_v17 }
 0x12b   : > { %v671_v24 = vmul.f32 0.2, %v643_v22  ;;  %v678_v28 = vmax.f32 %v640_v15, %v670_v21  ;;  %v12039_v15 = vld [vmem:[%s15346_s3 + $0x8] sm:$0xff]  }
 0x12c   : > { %v681_v26 = vmax.f32 %v651_v18, %v673_v23 }
 0x12d   : > { %v679_v29 = vmax.f32 %v643_v22, %v671_v24  ;;  %v10468_v30 = vpop.f32.mrb[4].mxu0 }
 0x12e   : > { %v664_v31 = vadd.f32 %v10468_v30, %v12024_v27  ;;  %v655_v32 = vpop.f32.mrb[5].mxu0  ;;  %v687_v33 = vpack.c.bf16 %v681_v26, %v680_v25  ;;  %v12047_v26 = vld [vmem:[%s15346_s3 + $0x10] sm:$0xff]  }
 0x12f   : > { %v656_v35 = vadd.f32 %v655_v32, %v12017_v13  ;;  %v10469_v36 = vpop.f32.mrb[6].mxu0  ;;  %v686_v37 = vpack.c.bf16 %v679_v29, %v678_v28 }
 0x130   : > { %v676_v38 = vmul.f32 0.2, %v664_v31  ;;  %v667_v39 = vadd.f32 %v10469_v36, %v12027_v34  ;;  %v658_v40 = vpop.f32.mrb[7].mxu0 }
 0x131   : > { %v674_v41 = vmul.f32 0.2, %v656_v35  ;;  %v659_v42 = vadd.f32 %v658_v40, %v12021_v20  ;;  %10470 = vmatprep.subr.bf16.mxu1 %v686_v37  ;;  %v12062_v40 = vld [vmem:[%s15346_s3 + $0x20] sm:$0xff]  }
 0x132   : > { %v677_v43 = vmul.f32 0.2, %v667_v39  ;;  %10471 = vmatpush3.bf16.msra.mxu1 %v686_v37  ;;  %v684_v45 = vmax.f32 %v664_v31, %v676_v38  ;;  %v12057_v37 = vld [vmem:[%s15346_s3 + $0x18] sm:$0xff]   ;;  %15417 = vst [vmem:[#allocation14_spill] sm:$0xff] %v12062_v40 }
 0x133   : > { %v675_v44 = vmul.f32 0.2, %v659_v42  ;;  %10472 = vmatprep.subr.bf16.mxu1 %v687_v33  ;;  %v682_v47 = vmax.f32 %v656_v35, %v674_v41  ;;  %15416 = vst [vmem:[#allocation13_spill] sm:$0xff] %v12057_v37  ;;  %v9551_v41 = vld [vmem:[%s11787_s21 + $0xc] sm:$0xf] }
 0x134   : > { %v685_v46 = vmax.f32 %v667_v39, %v677_v43  ;;  %v9538_v43 = vld [vmem:[%s11787_s21 + $0x8] sm:$0xf] }
 0x135   : > { %v683_v48 = vmax.f32 %v659_v42, %v675_v44  ;;  %v10498_v49 = vpop.f32.mrb[8].mxu0  ;;  %v12072_v42 = vld [vmem:[%s15346_s3 + $0x28] sm:$0xff]   ;;  %v12078_v44 = vld [vmem:[%s15346_s3 + $0x30] sm:$0xff]  }
 0x136   : > { %v900_v50 = vadd.f32 %v10498_v49, %v12010_v4  ;;  %10473 = vmatpush3.bf16.msra.mxu1 %v687_v33  ;;  %v891_v51 = vpop.f32.mrb[9].mxu0  ;;  %v689_v52 = vpack.c.bf16 %v685_v46, %v684_v45  ;;  %15418 = vst [vmem:[#allocation15_spill] sm:$0xff] %v12072_v42  ;;  %15419 = vst [vmem:[#allocation16_spill] sm:$0xff] %v12078_v44  ;;  %v1261_v45 = vsel %vm601_vm0, %v9551_v41, 0  ;;  %v12094_v46 = vld [vmem:[%s15346_s3 + $0x38] sm:$0xff]  }
 0x137   : > { %v892_v53 = vadd.f32 %v891_v51, %v12008_v3  ;;  %v10499_v54 = vpop.f32.mrb[10].mxu0  ;;  %v688_v55 = vpack.c.bf16 %v683_v48, %v682_v47  ;;  %15420 = vst [vmem:[#allocation17_spill] sm:$0xff] %v12094_v46  ;;  %v1058_v47 = vsel %vm601_vm0, %v9538_v43, 0 }
 0x138   : > { %v924_v56 = vmul.f32 0.2, %v900_v50  ;;  %v903_v57 = vadd.f32 %v10499_v54, %v12014_v7  ;;  %v894_v58 = vpop.f32.mrb[11].mxu0 }
 0x139   : > { %v922_v59 = vmul.f32 0.2, %v892_v53  ;;  %v895_v60 = vadd.f32 %v894_v58, %v12012_v6  ;;  %10474 = vmatprep.subr.bf16.mxu1 %v688_v55 }
 0x13a   : > { %v925_v61 = vmul.f32 0.2, %v903_v57  ;;  %10475 = vmatpush3.bf16.msra.mxu1 %v688_v55  ;;  %v932_v63 = vmax.f32 %v900_v50, %v924_v56 }
 0x13b   : > { %v923_v62 = vmul.f32 0.2, %v895_v60  ;;  %10476 = vmatprep.subr.bf16.mxu1 %v689_v52  ;;  %v930_v10 = vmax.f32 %v892_v53, %v922_v59 }
 0x13c   : > { %v933_v1 = vmax.f32 %v903_v57, %v925_v61 }
 0x13d   : > { %v931_v11 = vmax.f32 %v895_v60, %v923_v62  ;;  %v10502_v12 = vpop.f32.mrb[12].mxu0 }
 0x13e   : > { %v939_v16 = vpack.c.bf16 %v933_v1, %v932_v63  ;;  %v916_v17 = vadd.f32 %v10502_v12, %v12024_v27  ;;  %10477 = vmatpush3.bf16.msra.mxu1 %v689_v52  ;;  %v907_v18 = vpop.f32.mrb[13].mxu0 }
 0x13f   : > { %v938_v19 = vpack.c.bf16 %v931_v11, %v930_v10  ;;  %v908_v21 = vadd.f32 %v907_v18, %v12017_v13  ;;  %v10503_v22 = vpop.f32.mrb[14].mxu0 }
 0x140   : > { %v928_v23 = vmul.f32 0.2, %v916_v17  ;;  %v919_v24 = vadd.f32 %v10503_v22, %v12027_v34  ;;  %v910_v25 = vpop.f32.mrb[15].mxu0 }
 0x141   : > { %v926_v28 = vmul.f32 0.2, %v908_v21  ;;  %v911_v29 = vadd.f32 %v910_v25, %v12021_v20  ;;  %10479 = vmatmul.mubr.msk.bf16.vlgmr.msra.gmra.mrb[0].mxu1 %vm730_vm2, %v12039_v15  ;;  %10504 = vmatprep.subr.bf16.mxu0 %v938_v19 }
 0x142   : > { %v929_v30 = vmul.f32 0.2, %v919_v24  ;;  %10876 = vmatprep.subr.bf16.mxu1 %v938_v19  ;;  %10505 = vmatpush3.bf16.msra.mxu0 %v938_v19  ;;  %v936_v32 = vmax.f32 %v916_v17, %v928_v23 }
 0x143   : > { %v927_v31 = vmul.f32 0.2, %v911_v29  ;;  %10880 = vmatpush3.bf16.msra.mxu1 %v938_v19  ;;  %10506 = vmatprep.subr.bf16.mxu0 %v939_v16  ;;  %v934_v35 = vmax.f32 %v908_v21, %v926_v28 }
 0x144   : > { %v937_v33 = vmax.f32 %v919_v24, %v929_v30  ;;  %10877 = vmatprep.subr.bf16.mxu1 %v939_v16  ;;  %10482 = vmatprep.mubr.msk.bf16.mxu1 %vm730_vm2, %v12047_v26 }
 0x145   : > { %v935_v36 = vmax.f32 %v911_v29, %v927_v31 }
 0x146   : > { %v941_v38 = vpack.c.bf16 %v937_v33, %v936_v32  ;;  %10507 = vmatpush3.bf16.msra.mxu0 %v939_v16 }
 0x147   : > { %v940_v39 = vpack.c.bf16 %v935_v36, %v934_v35  ;;  %10881 = vmatpush3.bf16.msra.mxu1 %v939_v16 }
 0x149   : > { %10483 = vmatmul.mubr.msk.bf16.gmra.mrb[4].mxu1 %vm730_vm2, %v12057_v37  ;;  %10508 = vmatprep.subr.bf16.mxu0 %v940_v39 }
 0x14a   : > { %10878 = vmatprep.subr.bf16.mxu1 %v940_v39  ;;  %10509 = vmatpush3.bf16.msra.mxu0 %v940_v39 }
 0x14b   : > { %10882 = vmatpush3.bf16.msra.mxu1 %v940_v39  ;;  %10510 = vmatprep.subr.bf16.mxu0 %v941_v38 }
 0x14c   : > { %10879 = vmatprep.subr.bf16.mxu1 %v941_v38  ;;  %10486 = vmatprep.mubr.msk.bf16.mxu1 %vm730_vm2, %v12062_v40 }
 0x14e   : > { %10511 = vmatpush3.bf16.msra.mxu0 %v941_v38 }
 0x14f   : > { %10883 = vmatpush3.bf16.msra.mxu1 %v941_v38  ;;  %11271 = vmatprep.subr.msk.bf16.mxu0 %vm601_vm0, %v9551_v41 }
 0x150   : > { %11270 = vmatprep.subr.msk.bf16.mxu1 %vm601_vm0, %v9538_v43 }
 0x151   : > { %10487 = vmatmul.mubr.msk.bf16.gmra.mrb[8].mxu1 %vm730_vm2, %v12072_v42  ;;  %10513 = vmatmul.mubr.msk.bf16.vlgmr.msra.gmra.mrb[16].mxu0 %vm730_vm2, %v12039_v15 }
 0x152   : > { %10563 = vmatpush3.bf16.msra.mxu0 %v1261_v45  ;;  %10490 = vmatprep.mubr.msk.bf16.mxu1 %vm730_vm2, %v12078_v44 }
 0x153   : > { %10564 = vmatprep.mubr.msk.bf16.mxu0 %vm588_vm1, %v11801_v5 }
 0x159   : > { %10491 = vmatmul.mubr.msk.bf16.gmra.mrb[12].mxu1 %vm730_vm2, %v12094_v46  ;;  %10565 = vmatmul.mubr.msk.bf16.vlgmr.msra.gmra.mrb[20].mxu0 %vm588_vm1, %v11814_v8 }
 0x15a   : > { %10516 = vmatprep.mubr.msk.bf16.mxu1 %vm730_vm2, %v12047_v26  ;;  %10568 = vmatprep.mubr.msk.bf16.mxu0 %vm588_vm1, %v11821_v9 }
 0x161   : > { %10517 = vmatmul.mubr.msk.bf16.vlgmr.msra.gmra.mrb[16].mxu1 %vm730_vm2, %v12057_v37  ;;  %10569 = vmatmul.mubr.msk.bf16.gmra.mrb[24].mxu0 %vm588_vm1, %v11837_v14 }
 0x162   : > { %10520 = vmatprep.mubr.msk.bf16.mxu1 %vm730_vm2, %v12062_v40  ;;  %10529 = vmatpush3.bf16.msra.mxu1 %v1058_v47 }
 0x163   : > { %10580 = vmatprep.mubr.msk.bf16.mxu0 %vm730_vm2, %v12002_v2 }
 0x169   : > { %10521 = vmatmul.mubr.msk.bf16.gmra.mrb[20].mxu1 %vm730_vm2, %v12072_v42 }
 0x16a   : > { %10524 = vmatprep.mubr.msk.bf16.mxu1 %vm730_vm2, %v12078_v44 }
 0x171   : > { %10525 = vmatmul.mubr.msk.bf16.gmra.mrb[24].mxu1 %vm730_vm2, %v12094_v46 }
 0x172   : > { %10530 = vmatprep.mubr.msk.bf16.mxu1 %vm588_vm1, %v11801_v5 }
 0x179   : > { %10531 = vmatmul.mubr.msk.bf16.vlgmr.msra.gmra.mrb[28].mxu1 %vm588_vm1, %v11814_v8 }
 0x17a   : > { %10534 = vmatprep.mubr.msk.bf16.mxu1 %vm588_vm1, %v11821_v9 }
 0x181   : > { %10535 = vmatmul.mubr.msk.bf16.gmra.mrb[32].mxu1 %vm588_vm1, %v11837_v14 }
 0x182   : > { %10546 = vmatprep.mubr.msk.bf16.mxu1 %vm730_vm2, %v12002_v2 }
 0x214   : > { %v12129_v48 = vpop.f32.mrb[0].mxu1 }
 0x215   : > { %v12131_v49 = vpop.f32.mrb[1].mxu1 }
 0x216   : > { %v12133_v50 = vpop.f32.mrb[2].mxu1 }
 0x217   : > { %v12135_v51 = vpop.f32.mrb[3].mxu1 }
 0x21c   : > { %v12137_v5 = vpop.f32.mrb[4].mxu1 }
 0x21d   : > { %v12139_v8 = vpop.f32.mrb[5].mxu1 }
 0x21e   : > { %v12141_v52 = vpop.f32.mrb[6].mxu1 }
 0x21f   : > { %v12143_v9 = vpop.f32.mrb[7].mxu1 }
 0x224   : > { %v12145_v14 = vpop.f32.mrb[8].mxu1  ;;  %v12147_v53 = vpop.f32.mrb[16].mxu0 }
 0x225   : > { %v12151_v55 = vpop.f32.mrb[9].mxu1  ;;  %v12153_v56 = vpop.f32.mrb[17].mxu0 }
 0x226   : > { %v12157_v58 = vpop.f32.mrb[10].mxu1  ;;  %v12159_v59 = vpop.f32.mrb[18].mxu0 }
 0x227   : > { %v12163_v61 = vpop.f32.mrb[11].mxu1  ;;  %v12165_v62 = vpop.f32.mrb[19].mxu0 }
 0x22c   : > { %v12169_v1 = vpop.f32.mrb[12].mxu1  ;;  %v10566_v10 = vpop.f32.mrb[20].mxu0 }
 0x22d   : > { %15421 = vst [vmem:[#allocation18_spill] sm:$0xff] %v12169_v1  ;;  %v1306_v11 = vadd.f32 %v10566_v10, %v12010_v4  ;;  %v12172_v12 = vpop.f32.mrb[13].mxu1  ;;  %v1297_v16 = vpop.f32.mrb[21].mxu0 }
 0x22e   : > { %15422 = vst [vmem:[#allocation19_spill] sm:$0xff] %v12172_v12  ;;  %v1298_v17 = vadd.f32 %v1297_v16, %v12008_v3  ;;  %v12175_v18 = vpop.f32.mrb[14].mxu1  ;;  %v10567_v19 = vpop.f32.mrb[22].mxu0 }
 0x22f   : > { %15423 = vst [vmem:[#allocation20_spill] sm:$0xff] %v12175_v18  ;;  %v1330_v21 = vmul.f32 0.2, %v1306_v11  ;;  %v1309_v22 = vadd.f32 %v10567_v19, %v12014_v7  ;;  %v12178_v23 = vpop.f32.mrb[15].mxu1  ;;  %v1300_v24 = vpop.f32.mrb[23].mxu0 }
 0x230   : > { %15424 = vst [vmem:[#allocation21_spill] sm:$0xff] %v12178_v23  ;;  %v1328_v25 = vmul.f32 0.2, %v1298_v17  ;;  %v1301_v28 = vadd.f32 %v1300_v24, %v12012_v6 }
 0x231   : > { %v1331_v29 = vmul.f32 0.2, %v1309_v22  ;;  %v1338_v31 = vmax.f32 %v1306_v11, %v1330_v21 }
 0x232   : > { %v1329_v30 = vmul.f32 0.2, %v1301_v28  ;;  %v1336_v33 = vmax.f32 %v1298_v17, %v1328_v25 }
 0x233   : > { %v1339_v32 = vmax.f32 %v1309_v22, %v1331_v29 }
 0x234   : > { %v1337_v35 = vmax.f32 %v1301_v28, %v1329_v30  ;;  %v12181_v36 = vpop.f32.mrb[16].mxu1  ;;  %v10570_v38 = vpop.f32.mrb[24].mxu0 }
 0x235   : > { %v1322_v41 = vadd.f32 %v10570_v38, %v12024_v27  ;;  %v12186_v43 = vpop.f32.mrb[17].mxu1  ;;  %v1313_v45 = vpop.f32.mrb[25].mxu0  ;;  %v1345_v47 = vpack.c.bf16 %v1339_v32, %v1338_v31 }
 0x236   : > { %v1314_v11 = vadd.f32 %v1313_v45, %v12017_v13  ;;  %v12191_v16 = vpop.f32.mrb[18].mxu1  ;;  %v10571_v17 = vpop.f32.mrb[26].mxu0  ;;  %v1344_v19 = vpack.c.bf16 %v1337_v35, %v1336_v33 }
 0x237   : > { %v1334_v21 = vmul.f32 0.2, %v1322_v41  ;;  %v1325_v24 = vadd.f32 %v10571_v17, %v12027_v34  ;;  %v12196_v25 = vpop.f32.mrb[19].mxu1  ;;  %v1316_v28 = vpop.f32.mrb[27].mxu0 }
 0x238   : > { %v1332_v29 = vmul.f32 0.2, %v1314_v11  ;;  %v1317_v31 = vadd.f32 %v1316_v28, %v12021_v20  ;;  %10572 = vmatprep.subr.bf16.mxu0 %v1344_v19 }
 0x239   : > { %v1335_v32 = vmul.f32 0.2, %v1325_v24  ;;  %10573 = vmatpush3.bf16.msra.mxu0 %v1344_v19  ;;  %v1342_v33 = vmax.f32 %v1322_v41, %v1334_v21 }
 0x23a   : > { %v1333_v38 = vmul.f32 0.2, %v1317_v31  ;;  %10574 = vmatprep.subr.bf16.mxu0 %v1345_v47  ;;  %v1340_v45 = vmax.f32 %v1314_v11, %v1332_v29 }
 0x23b   : > { %v1343_v35 = vmax.f32 %v1325_v24, %v1335_v32  ;;  %v9577_v24 = vld [vmem:[%s11787_s21 + $0x14] sm:$0xf] }
 0x23c   : > { %v1341_v0 = vmax.f32 %v1317_v31, %v1333_v38  ;;  %v12201_v17 = vpop.f32.mrb[20].mxu1  ;;  %v1667_v38 = vsel %vm601_vm0, %v9577_v24, 0 }
 0x23d   : > { %v12205_v10 = vpop.f32.mrb[21].mxu1  ;;  %10575 = vmatpush3.bf16.msra.mxu0 %v1345_v47  ;;  %v1347_v30 = vpack.c.bf16 %v1343_v35, %v1342_v33 }
 0x23e   : > { %v12209_v19 = vpop.f32.mrb[22].mxu1  ;;  %v1346_v39 = vpack.c.bf16 %v1341_v0, %v1340_v45 }
 0x23f   : > { %v12213_v11 = vpop.f32.mrb[23].mxu1 }
 0x240   : > { %10576 = vmatprep.subr.bf16.mxu0 %v1346_v39 }
 0x241   : > { %10577 = vmatpush3.bf16.msra.mxu0 %v1346_v39 }
 0x242   : > { %10578 = vmatprep.subr.bf16.mxu0 %v1347_v30 }
 0x244   : > { %v12218_v47 = vpop.f32.mrb[24].mxu1 }
 0x245   : > { %15425 = vst [vmem:[#allocation22_spill] sm:$0xff] %v12218_v47  ;;  %v12222_v31 = vpop.f32.mrb[25].mxu1  ;;  %10579 = vmatpush3.bf16.msra.mxu0 %v1347_v30 }
 0x246   : > { %15426 = vst [vmem:[#allocation23_spill] sm:$0xff] %v12222_v31  ;;  %v12226_v32 = vpop.f32.mrb[26].mxu1  ;;  %11273 = vmatprep.subr.msk.bf16.mxu0 %vm601_vm0, %v9577_v24 }
 0x247   : > { %15427 = vst [vmem:[#allocation24_spill] sm:$0xff] %v12226_v32  ;;  %v12232_v33 = vpop.f32.mrb[27].mxu1 }
 0x248   : > { %15428 = vst [vmem:[#allocation25_spill] sm:$0xff] %v12232_v33  ;;  %10581 = vmatmul.mubr.msk.bf16.vlgmr.msra.gmra.mrb[28].mxu0 %vm730_vm2, %v12039_v15 }
 0x249   : > { %10584 = vmatprep.mubr.msk.bf16.mxu0 %vm730_vm2, %v12047_v26  ;;  %10631 = vmatpush3.bf16.msra.mxu0 %v1667_v38 }
 0x24c   : > { %v10532_v30 = vpop.f32.mrb[28].mxu1 }
 0x24d   : > { %v1103_v45 = vadd.f32 %v10532_v30, %v12010_v4  ;;  %v1094_v0 = vpop.f32.mrb[29].mxu1 }
 0x24e   : > { %v1095_v24 = vadd.f32 %v1094_v0, %v12008_v3  ;;  %v10533_v29 = vpop.f32.mrb[30].mxu1 }
 0x24f   : > { %v1127_v39 = vmul.f32 0.2, %v1103_v45  ;;  %v1106_v21 = vadd.f32 %v10533_v29, %v12014_v7  ;;  %v1097_v41 = vpop.f32.mrb[31].mxu1 }
 0x250   : > { %v1125_v28 = vmul.f32 0.2, %v1095_v24  ;;  %v1098_v35 = vadd.f32 %v1097_v41, %v12012_v6  ;;  %10585 = vmatmul.mubr.msk.bf16.gmra.mrb[32].mxu0 %vm730_vm2, %v12057_v37 }
 0x251   : > { %v1128_v22 = vmul.f32 0.2, %v1106_v21  ;;  %10588 = vmatprep.mubr.msk.bf16.mxu0 %vm730_vm2, %v12062_v40  ;;  %v1135_v30 = vmax.f32 %v1103_v45, %v1127_v39 }
 0x252   : > { %v1126_v38 = vmul.f32 0.2, %v1098_v35  ;;  %v1133_v60 = vmax.f32 %v1095_v24, %v1125_v28 }
 0x253   : > { %v1136_v63 = vmax.f32 %v1106_v21, %v1128_v22 }
 0x254   : > { %v1134_v0 = vmax.f32 %v1098_v35, %v1126_v38  ;;  %v10536_v57 = vpop.f32.mrb[32].mxu1 }
 0x255   : > { %v1119_v54 = vadd.f32 %v10536_v57, %v12024_v27  ;;  %v1110_v29 = vpop.f32.mrb[33].mxu1  ;;  %v1142_v33 = vpack.c.bf16 %v1136_v63, %v1135_v30 }
 0x256   : > { %v1111_v23 = vadd.f32 %v1110_v29, %v12017_v13  ;;  %v10537_v41 = vpop.f32.mrb[34].mxu1  ;;  %v1141_v32 = vpack.c.bf16 %v1134_v0, %v1133_v60 }
 0x257   : > { %v1131_v18 = vmul.f32 0.2, %v1119_v54  ;;  %v1122_v31 = vadd.f32 %v10537_v41, %v12027_v34  ;;  %v1113_v12 = vpop.f32.mrb[35].mxu1 }
 0x258   : > { %v1129_v47 = vmul.f32 0.2, %v1111_v23  ;;  %v1114_v1 = vadd.f32 %v1113_v12, %v12021_v20  ;;  %10538 = vmatprep.subr.bf16.mxu1 %v1141_v32  ;;  %10589 = vmatmul.mubr.msk.bf16.gmra.mrb[36].mxu0 %vm730_vm2, %v12072_v42  ;;  %v12261_v12 = vld [vmem:[%s15344_s1] sm:$0xff]  }
 0x259   : > { %v1132_v22 = vmul.f32 0.2, %v1122_v31  ;;  %10539 = vmatpush3.bf16.msra.mxu1 %v1141_v32  ;;  %10592 = vmatprep.mubr.msk.bf16.mxu0 %vm730_vm2, %v12078_v44  ;;  %v1139_v60 = vmax.f32 %v1119_v54, %v1131_v18  ;;  %15429 = vst [vmem:[#allocation26_spill] sm:$0xff] %v12261_v12  ;;  %v9564_v54 = vld [vmem:[%s11787_s21 + $0x10] sm:$0xf]  ;;  %v12273_v18 = vld [vmem:[%s15344_s1 + $0x8] sm:$0xff]  }
 0x25a   : > { %v1130_v57 = vmul.f32 0.2, %v1114_v1  ;;  %10540 = vmatprep.subr.bf16.mxu1 %v1142_v33  ;;  %v1137_v28 = vmax.f32 %v1111_v23, %v1129_v47  ;;  %15430 = vst [vmem:[#allocation27_spill] sm:$0xff] %v12273_v18  ;;  %v12282_v23 = vld [vmem:[%s15344_s1 + $0x10] sm:$0xff]   ;;  %v12291_v47 = vld [vmem:[%s15344_s1 + $0x18] sm:$0xff]  }
 0x25b   : > { %v1140_v63 = vmax.f32 %v1122_v31, %v1132_v22  ;;  %15431 = vst [vmem:[#allocation28_spill] sm:$0xff] %v12282_v23  ;;  %15432 = vst [vmem:[#allocation29_spill] sm:$0xff] %v12291_v47 }
 0x25c   : > { %v1138_v21 = vmax.f32 %v1114_v1, %v1130_v57  ;;  %v1464_v1 = vsel %vm601_vm0, %v9564_v54, 0 }
 0x25d   : > { %10541 = vmatpush3.bf16.msra.mxu1 %v1142_v33  ;;  %v1144_v39 = vpack.c.bf16 %v1140_v63, %v1139_v60 }
 0x25e   : > { %v1143_v35 = vpack.c.bf16 %v1138_v21, %v1137_v28 }
 0x260   : > { %10542 = vmatprep.subr.bf16.mxu1 %v1143_v35  ;;  %10593 = vmatmul.mubr.msk.bf16.gmra.mrb[40].mxu0 %vm730_vm2, %v12094_v46 }
 0x261   : > { %10543 = vmatpush3.bf16.msra.mxu1 %v1143_v35  ;;  %10632 = vmatprep.mubr.msk.bf16.mxu0 %vm588_vm1, %v12261_v12 }
 0x262   : > { %10544 = vmatprep.subr.bf16.mxu1 %v1144_v39 }
 0x265   : > { %10545 = vmatpush3.bf16.msra.mxu1 %v1144_v39 }
 0x266   : > { %11272 = vmatprep.subr.msk.bf16.mxu1 %vm601_vm0, %v9564_v54  ;;  %v15437_v54 = vmax.f32 %v12129_v48, %v12147_v53 }
 0x268   : > { %10547 = vmatmul.mubr.msk.bf16.vlgmr.msra.gmra.mrb[36].mxu1 %vm730_vm2, %v12039_v15  ;;  %10633 = vmatmul.mubr.msk.bf16.vlgmr.msra.gmra.mrb[44].mxu0 %vm588_vm1, %v12273_v18 }
 0x269   : > { %10550 = vmatprep.mubr.msk.bf16.mxu1 %vm730_vm2, %v12047_v26  ;;  %10636 = vmatprep.mubr.msk.bf16.mxu0 %vm588_vm1, %v12282_v23 }
 0x26a   : > { %10597 = vmatpush3.bf16.msra.mxu1 %v1464_v1 }
 0x270   : > { %10551 = vmatmul.mubr.msk.bf16.gmra.mrb[40].mxu1 %vm730_vm2, %v12057_v37  ;;  %10637 = vmatmul.mubr.msk.bf16.gmra.mrb[48].mxu0 %vm588_vm1, %v12291_v47  ;;  %v15440_v37 = vmax.f32 %v12133_v50, %v12159_v59 }
 0x271   : > { %10554 = vmatprep.mubr.msk.bf16.mxu1 %vm730_vm2, %v12062_v40  ;;  %10648 = vmatprep.mubr.msk.bf16.mxu0 %vm730_vm2, %v12002_v2 }
 0x278   : > { %10555 = vmatmul.mubr.msk.bf16.gmra.mrb[44].mxu1 %vm730_vm2, %v12072_v42 }
 0x279   : > { %10558 = vmatprep.mubr.msk.bf16.mxu1 %vm730_vm2, %v12078_v44 }
 0x280   : > { %10559 = vmatmul.mubr.msk.bf16.gmra.mrb[48].mxu1 %vm730_vm2, %v12094_v46 }
 0x281   : > { %10598 = vmatprep.mubr.msk.bf16.mxu1 %vm588_vm1, %v12261_v12 }
 0x288   : > { %10599 = vmatmul.mubr.msk.bf16.vlgmr.msra.gmra.mrb[52].mxu1 %vm588_vm1, %v12273_v18  ;;  %v15439_v18 = vmax.f32 %v12131_v49, %v12153_v56  ;;  %v15441_v56 = vmax.f32 %v12135_v51, %v12165_v62 }
 0x289   : > { %10602 = vmatprep.mubr.msk.bf16.mxu1 %vm588_vm1, %v12282_v23 }
 0x290   : > { %10603 = vmatmul.mubr.msk.bf16.gmra.mrb[56].mxu1 %vm588_vm1, %v12291_v47 }
 0x291   : > { %10614 = vmatprep.mubr.msk.bf16.mxu1 %vm730_vm2, %v12002_v2 }
 0x31b   : > { %v12315_v31 = vpop.f32.mrb[28].mxu0 }
 0x31c   : > { %15433 = vst [vmem:[#allocation30_spill] sm:$0xff] %v12315_v31  ;;  %v12317_v32 = vpop.f32.mrb[29].mxu0 }
 0x31d   : > { %15434 = vst [vmem:[#allocation31_spill] sm:$0xff] %v12317_v32  ;;  %v12319_v33 = vpop.f32.mrb[30].mxu0 }
 0x31e   : > { %15435 = vst [vmem:[#allocation32_spill] sm:$0xff] %v12319_v33  ;;  %v12321_v45 = vpop.f32.mrb[31].mxu0  ;;  %v15443_v33 = vmax.f32 %v12139_v8, %v12186_v43 }
 0x323   : > { %v12323_v24 = vpop.f32.mrb[32].mxu0 }
 0x324   : > { %v12325_v38 = vpop.f32.mrb[33].mxu0 }
 0x325   : > { %v12327_v30 = vpop.f32.mrb[34].mxu0 }
 0x326   : > { %v12329_v0 = vpop.f32.mrb[35].mxu0 }
 0x32b   : > { %v12331_v29 = vpop.f32.mrb[36].mxu0 }
 0x32c   : > { %v12333_v41 = vpop.f32.mrb[37].mxu0 }
 0x32d   : > { %v12335_v22 = vpop.f32.mrb[38].mxu0 }
 0x32e   : > { %v12337_v57 = vpop.f32.mrb[39].mxu0 }
 0x333   : > { %v12339_v60 = vpop.f32.mrb[40].mxu0 }
 0x334   : > { %v12341_v63 = vpop.f32.mrb[41].mxu0 }
 0x335   : > { %v12343_v28 = vpop.f32.mrb[42].mxu0 }
 0x336   : > { %v12345_v21 = vpop.f32.mrb[43].mxu0 }
 0x337   : > { %15436 = vst [vmem:[#allocation33_spill] sm:$0xff] %v12345_v21 }
 0x33b   : > { %v10548_v39 = vpop.f32.mrb[36].mxu1  ;;  %v10634_v35 = vpop.f32.mrb[44].mxu0 }
 0x33c   : > { %v12350_v1 = vmax.f32 %v15437_v54, %v10548_v39  ;;  %v1712_v2 = vadd.f32 %v10634_v35, %v12010_v4  ;;  %v1179_v47 = vpop.f32.mrb[37].mxu1  ;;  %v1703_v23 = vpop.f32.mrb[45].mxu0 }
 0x33d   : > { %v12356_v12 = vmax.f32 %v15439_v18, %v1179_v47  ;;  %v1704_v46 = vadd.f32 %v1703_v23, %v12008_v3  ;;  %v10549_v44 = vpop.f32.mrb[38].mxu1  ;;  %v10635_v42 = vpop.f32.mrb[46].mxu0 }
 0x33e   : > { %15438 = vst [vmem:[#allocation34_spill] sm:$0xff] %v12350_v1  ;;  %v1736_v40 = vmul.f32 0.2, %v1712_v2  ;;  %v12362_v48 = vmax.f32 %v15440_v37, %v10549_v44  ;;  %v1715_v53 = vadd.f32 %v10635_v42, %v12014_v7  ;;  %v1182_v39 = vpop.f32.mrb[39].mxu1  ;;  %v1706_v35 = vpop.f32.mrb[47].mxu0 }
 0x33f   : > { %v1734_v49 = vmul.f32 0.2, %v1704_v46  ;;  %v12370_v18 = vmax.f32 %v15441_v56, %v1182_v39  ;;  %v1707_v23 = vadd.f32 %v1706_v35, %v12012_v6  ;;  %v15442_v39 = vmax.f32 %v12137_v5, %v12181_v36 }
 0x340   : > { %v1737_v37 = vmul.f32 0.2, %v1715_v53  ;;  %v1744_v47 = vmax.f32 %v1712_v2, %v1736_v40  ;;  %v15444_v5 = vmax.f32 %v12141_v52, %v12191_v16 }
 0x341   : > { %v1735_v44 = vmul.f32 0.2, %v1707_v23  ;;  %v1742_v31 = vmax.f32 %v1704_v46, %v1734_v49 }
 0x342   : > { %v1745_v54 = vmax.f32 %v1715_v53, %v1737_v37 }
 0x343   : > { %v1743_v1 = vmax.f32 %v1707_v23, %v1735_v44  ;;  %v10552_v51 = vpop.f32.mrb[40].mxu1  ;;  %v10638_v62 = vpop.f32.mrb[48].mxu0 }
 0x344   : > { %v12382_v35 = vmax.f32 %v15442_v39, %v10552_v51  ;;  %v1728_v56 = vadd.f32 %v10638_v62, %v12024_v27  ;;  %v1195_v50 = vpop.f32.mrb[41].mxu1  ;;  %v1719_v32 = vpop.f32.mrb[49].mxu0  ;;  %v1751_v42 = vpack.c.bf16 %v1745_v54, %v1744_v47  ;;  %v15446_v39 = vmax.f32 %v12145_v14, %v12201_v17 }
 0x345   : > { %v12388_v59 = vmax.f32 %v15443_v33, %v1195_v50  ;;  %v1720_v2 = vadd.f32 %v1719_v32, %v12017_v13  ;;  %v10553_v40 = vpop.f32.mrb[42].mxu1  ;;  %v10639_v46 = vpop.f32.mrb[50].mxu0  ;;  %v1750_v53 = vpack.c.bf16 %v1743_v1, %v1742_v31  ;;  %v15445_v32 = vmax.f32 %v12143_v9, %v12196_v25 }
 0x346   : > { %v1740_v49 = vmul.f32 0.2, %v1728_v56  ;;  %v12394_v36 = vmax.f32 %v15444_v5, %v10553_v40  ;;  %v1731_v23 = vadd.f32 %v10639_v46, %v12027_v34  ;;  %v1198_v37 = vpop.f32.mrb[43].mxu1  ;;  %v1722_v54 = vpop.f32.mrb[51].mxu0  ;;  %v15447_v5 = vmax.f32 %v12151_v55, %v12205_v10 }
 0x347   : > { %v1738_v43 = vmul.f32 0.2, %v1720_v2  ;;  %v12402_v33 = vmax.f32 %v15445_v32, %v1198_v37  ;;  %v1723_v31 = vadd.f32 %v1722_v54, %v12021_v20  ;;  %10640 = vmatprep.subr.bf16.mxu0 %v1750_v53  ;;  %v15449_v17 = vmax.f32 %v12163_v61, %v12213_v11  ;;  %v15450_v32 = vld [vmem:[#allocation18_spill] sm:$0xff] }
 0x348   : > { %v1741_v16 = vmul.f32 0.2, %v1731_v23  ;;  %10641 = vmatpush3.bf16.msra.mxu0 %v1750_v53  ;;  %v1748_v47 = vmax.f32 %v1728_v56, %v1740_v49 }
 0x349   : > { %v1739_v50 = vmul.f32 0.2, %v1723_v31  ;;  %10642 = vmatprep.subr.bf16.mxu0 %v1751_v42  ;;  %v1746_v25 = vmax.f32 %v1720_v2, %v1738_v43  ;;  %v15448_v2 = vmax.f32 %v12157_v58, %v12209_v19  ;;  %v9603_v19 = vld [vmem:[%s11787_s21 + $0x1c] sm:$0xf] }
 0x34a   : > { %v1749_v9 = vmax.f32 %v1731_v23, %v1741_v16 }
 0x34b   : > { %v1747_v51 = vmax.f32 %v1723_v31, %v1739_v50  ;;  %v10556_v62 = vpop.f32.mrb[44].mxu1  ;;  %v15451_v31 = vld [vmem:[#allocation22_spill] sm:$0xff]  ;;  %v15453_v50 = vld [vmem:[#allocation19_spill] sm:$0xff] }
 0x34c   : > { %v12414_v40 = vmax.f32 %v15446_v39, %v10556_v62  ;;  %v1211_v46 = vpop.f32.mrb[45].mxu1  ;;  %10643 = vmatpush3.bf16.msra.mxu0 %v1751_v42  ;;  %v1753_v53 = vpack.c.bf16 %v1749_v9, %v1748_v47  ;;  %v15452_v16 = vmax.f32 %v15450_v32, %v15451_v31  ;;  %v15454_v47 = vld [vmem:[#allocation23_spill] sm:$0xff]  ;;  %v2073_v62 = vsel %vm601_vm0, %v9603_v19, 0  ;;  %v15456_v39 = vld [vmem:[#allocation20_spill] sm:$0xff] }
 0x34d   : > { %v12419_v37 = vmax.f32 %v15447_v5, %v1211_v46  ;;  %v10557_v54 = vpop.f32.mrb[46].mxu1  ;;  %v1752_v56 = vpack.c.bf16 %v1747_v51, %v1746_v25  ;;  %v15455_v9 = vmax.f32 %v15453_v50, %v15454_v47  ;;  %v15457_v46 = vld [vmem:[#allocation24_spill] sm:$0xff] }
 0x34e   : > { %v12424_v49 = vmax.f32 %v15448_v2, %v10557_v54  ;;  %v1214_v23 = vpop.f32.mrb[47].mxu1  ;;  %v15458_v5 = vmax.f32 %v15456_v39, %v15457_v46 }
 0x34f   : > { %v12431_v42 = vmax.f32 %v15449_v17, %v1214_v23  ;;  %10644 = vmatprep.subr.bf16.mxu0 %v1752_v56  ;;  %v15460_v23 = vld [vmem:[#allocation25_spill] sm:$0xff] }
 0x350   : > { %10645 = vmatpush3.bf16.msra.mxu0 %v1752_v56 }
 0x351   : > { %10646 = vmatprep.subr.bf16.mxu0 %v1753_v53 }
 0x353   : > { %v10560_v43 = vpop.f32.mrb[48].mxu1 }
 0x354   : > { %v12443_v61 = vmax.f32 %v15452_v16, %v10560_v43  ;;  %v1227_v11 = vpop.f32.mrb[49].mxu1  ;;  %10647 = vmatpush3.bf16.msra.mxu0 %v1753_v53  ;;  %v15459_v53 = vld [vmem:[#allocation21_spill] sm:$0xff] }
 0x355   : > { %v12448_v25 = vmax.f32 %v15455_v9, %v1227_v11  ;;  %v10561_v51 = vpop.f32.mrb[50].mxu1  ;;  %11275 = vmatprep.subr.msk.bf16.mxu0 %vm601_vm0, %v9603_v19  ;;  %v15461_v17 = vmax.f32 %v15459_v53, %v15460_v23  ;;  %v15464_v23 = vld [vmem:[#allocation14_spill] sm:$0xff] }
 0x356   : > { %v12455_v54 = vmax.f32 %v15458_v5, %v10561_v51  ;;  %v1230_v56 = vpop.f32.mrb[51].mxu1 }
 0x357   : > { %v12462_v43 = vmax.f32 %v15461_v17, %v1230_v56  ;;  %10649 = vmatmul.mubr.msk.bf16.vlgmr.msra.gmra.mrb[52].mxu0 %vm730_vm2, %v12039_v15  ;;  %v15463_v56 = vld [vmem:[#allocation13_spill] sm:$0xff] }
 0x358   : > { %10652 = vmatprep.mubr.msk.bf16.mxu0 %vm730_vm2, %v12047_v26  ;;  %10699 = vmatpush3.bf16.msra.mxu0 %v2073_v62 }
 0x359   : > { %15462 = vst [vmem:[#allocation18_spill] sm:$0xff] %v12462_v43  ;;  %v15486_v43 = vld [vmem:[#allocation32_spill] sm:$0xff] }
 0x35b   : > { %v10600_v16 = vpop.f32.mrb[52].mxu1 }
 0x35c   : > { %v1509_v11 = vadd.f32 %v10600_v16, %v12010_v4  ;;  %v1500_v50 = vpop.f32.mrb[53].mxu1 }
 0x35d   : > { %v1501_v47 = vadd.f32 %v1500_v50, %v12008_v3  ;;  %v10601_v9 = vpop.f32.mrb[54].mxu1 }
 0x35e   : > { %v1533_v51 = vmul.f32 0.2, %v1509_v11  ;;  %v1512_v39 = vadd.f32 %v10601_v9, %v12014_v7  ;;  %v1503_v46 = vpop.f32.mrb[55].mxu1 }
 0x35f   : > { %v1531_v5 = vmul.f32 0.2, %v1501_v47  ;;  %v1504_v62 = vadd.f32 %v1503_v46, %v12012_v6  ;;  %10653 = vmatmul.mubr.msk.bf16.gmra.mrb[56].mxu0 %vm730_vm2, %v15463_v56 }
 0x360   : > { %v1534_v53 = vmul.f32 0.2, %v1512_v39  ;;  %10656 = vmatprep.mubr.msk.bf16.mxu0 %vm730_vm2, %v15464_v23  ;;  %v1541_v16 = vmax.f32 %v1509_v11, %v1533_v51  ;;  %v15465_v11 = vld [vmem:[#allocation15_spill] sm:$0xff] }
 0x361   : > { %v1532_v17 = vmul.f32 0.2, %v1504_v62  ;;  %v1539_v32 = vmax.f32 %v1501_v47, %v1531_v5 }
 0x362   : > { %v1542_v31 = vmax.f32 %v1512_v39, %v1534_v53 }
 0x363   : > { %v1540_v50 = vmax.f32 %v1504_v62, %v1532_v17  ;;  %v10604_v19 = vpop.f32.mrb[56].mxu1  ;;  %v15468_v17 = vld [vmem:[#allocation26_spill] sm:$0xff] }
 0x364   : > { %v1525_v2 = vadd.f32 %v10604_v19, %v12024_v27  ;;  %v1516_v9 = vpop.f32.mrb[57].mxu1  ;;  %v1548_v58 = vpack.c.bf16 %v1542_v31, %v1541_v16  ;;  %v15466_v19 = vld [vmem:[#allocation16_spill] sm:$0xff] }
 0x365   : > { %v1517_v10 = vadd.f32 %v1516_v9, %v12017_v13  ;;  %v10605_v46 = vpop.f32.mrb[58].mxu1  ;;  %v1547_v55 = vpack.c.bf16 %v1540_v50, %v1539_v32 }
 0x366   : > { %v1537_v14 = vmul.f32 0.2, %v1525_v2  ;;  %v1528_v44 = vadd.f32 %v10605_v46, %v12027_v34  ;;  %v1519_v1 = vpop.f32.mrb[59].mxu1 }
 0x367   : > { %v1535_v52 = vmul.f32 0.2, %v1517_v10  ;;  %v1520_v8 = vadd.f32 %v1519_v1, %v12021_v20  ;;  %10606 = vmatprep.subr.bf16.mxu1 %v1547_v55  ;;  %10657 = vmatmul.mubr.msk.bf16.gmra.mrb[60].mxu0 %vm730_vm2, %v15465_v11  ;;  %v15467_v1 = vld [vmem:[#allocation17_spill] sm:$0xff] }
 0x368   : > { %v1538_v47 = vmul.f32 0.2, %v1528_v44  ;;  %10607 = vmatpush3.bf16.msra.mxu1 %v1547_v55  ;;  %10660 = vmatprep.mubr.msk.bf16.mxu0 %vm730_vm2, %v15466_v19  ;;  %v1545_v32 = vmax.f32 %v1525_v2, %v1537_v14  ;;  %v9590_v55 = vld [vmem:[%s11787_s21 + $0x18] sm:$0xf]  ;;  %v15471_v14 = vld [vmem:[#allocation29_spill] sm:$0xff] }
 0x369   : > { %v1536_v31 = vmul.f32 0.2, %v1520_v8  ;;  %10608 = vmatprep.subr.bf16.mxu1 %v1548_v58  ;;  %v1543_v39 = vmax.f32 %v1517_v10, %v1535_v52  ;;  %v15470_v52 = vld [vmem:[#allocation28_spill] sm:$0xff] }
 0x36a   : > { %v1546_v51 = vmax.f32 %v1528_v44, %v1538_v47  ;;  %v1870_v44 = vsel %vm601_vm0, %v9590_v55, 0 }
 0x36b   : > { %v1544_v5 = vmax.f32 %v1520_v8, %v1536_v31  ;;  %v15469_v8 = vld [vmem:[#allocation27_spill] sm:$0xff] }
 0x36c   : > { %10609 = vmatpush3.bf16.msra.mxu1 %v1548_v58  ;;  %v1550_v62 = vpack.c.bf16 %v1546_v51, %v1545_v32 }
 0x36d   : > { %v1549_v53 = vpack.c.bf16 %v1544_v5, %v1543_v39 }
 0x36f   : > { %10610 = vmatprep.subr.bf16.mxu1 %v1549_v53  ;;  %10661 = vmatmul.mubr.msk.bf16.gmra.mrb[64].mxu0 %vm730_vm2, %v15467_v1 }
 0x370   : > { %10611 = vmatpush3.bf16.msra.mxu1 %v1549_v53  ;;  %10700 = vmatprep.mubr.msk.bf16.mxu0 %vm588_vm1, %v15468_v17  ;;  %v15481_v53 = vld [vmem:[#allocation30_spill] sm:$0xff] }
 0x371   : > { %10612 = vmatprep.subr.bf16.mxu1 %v1550_v62 }
 0x374   : > { %10613 = vmatpush3.bf16.msra.mxu1 %v1550_v62  ;;  %v15480_v62 = vld [vmem:[#allocation34_spill] sm:$0xff] }
 0x375   : > { %11274 = vmatprep.subr.msk.bf16.mxu1 %vm601_vm0, %v9590_v55 }
 0x377   : > { %10615 = vmatmul.mubr.msk.bf16.vlgmr.msra.gmra.mrb[60].mxu1 %vm730_vm2, %v12039_v15  ;;  %10701 = vmatmul.mubr.msk.bf16.vlgmr.msra.gmra.mrb[68].mxu0 %vm588_vm1, %v15469_v8  ;;  %v15472_v15 = vld [vmem:[#allocation12_spill] sm:$0xff] }
 0x378   : > { %10618 = vmatprep.mubr.msk.bf16.mxu1 %vm730_vm2, %v12047_v26  ;;  %10704 = vmatprep.mubr.msk.bf16.mxu0 %vm588_vm1, %v15470_v52 }
 0x379   : > { %10665 = vmatpush3.bf16.msra.mxu1 %v1870_v44 }
 0x37f   : > { %10619 = vmatmul.mubr.msk.bf16.gmra.mrb[64].mxu1 %vm730_vm2, %v15463_v56  ;;  %10705 = vmatmul.mubr.msk.bf16.gmra.mrb[72].mxu0 %vm588_vm1, %v15471_v14 }
 0x380   : > { %10622 = vmatprep.mubr.msk.bf16.mxu1 %vm730_vm2, %v15464_v23  ;;  %10716 = vmatprep.mubr.msk.bf16.mxu0 %vm730_vm2, %v15472_v15 }
 0x387   : > { %10623 = vmatmul.mubr.msk.bf16.gmra.mrb[68].mxu1 %vm730_vm2, %v15465_v11 }
 0x388   : > { %10626 = vmatprep.mubr.msk.bf16.mxu1 %vm730_vm2, %v15466_v19 }
 0x38f   : > { %10627 = vmatmul.mubr.msk.bf16.gmra.mrb[72].mxu1 %vm730_vm2, %v15467_v1  ;;  %v15482_v1 = vmax.f32 %v15480_v62, %v15481_v53 }
 0x390   : > { %10666 = vmatprep.mubr.msk.bf16.mxu1 %vm588_vm1, %v15468_v17 }
 0x397   : > { %10667 = vmatmul.mubr.msk.bf16.vlgmr.msra.gmra.mrb[76].mxu1 %vm588_vm1, %v15469_v8 }
 0x398   : > { %10670 = vmatprep.mubr.msk.bf16.mxu1 %vm588_vm1, %v15470_v52  ;;  %v15484_v52 = vld [vmem:[#allocation31_spill] sm:$0xff] }
 0x39f   : > { %10671 = vmatmul.mubr.msk.bf16.gmra.mrb[80].mxu1 %vm588_vm1, %v15471_v14  ;;  %v15485_v14 = vmax.f32 %v12356_v12, %v15484_v52 }
 0x3a0   : > { %10682 = vmatprep.mubr.msk.bf16.mxu1 %vm730_vm2, %v15472_v15 }
 0x42a   : > { %v12529_v26 = vpop.f32.mrb[52].mxu0 }
 0x42b   : > { %15473 = vst [vmem:[#allocation22_spill] sm:$0xff] %v12529_v26  ;;  %v12531_v10 = vpop.f32.mrb[53].mxu0 }
 0x42c   : > { %15474 = vst [vmem:[#allocation19_spill] sm:$0xff] %v12531_v10  ;;  %v12533_v58 = vpop.f32.mrb[54].mxu0 }
 0x42d   : > { %15475 = vst [vmem:[#allocation23_spill] sm:$0xff] %v12533_v58  ;;  %v12535_v2 = vpop.f32.mrb[55].mxu0  ;;  %v15490_v58 = vmax.f32 %v12388_v59, %v12325_v38 }
 0x432   : > { %v12537_v56 = vpop.f32.mrb[56].mxu0 }
 0x433   : > { %v12539_v23 = vpop.f32.mrb[57].mxu0 }
 0x434   : > { %v12541_v16 = vpop.f32.mrb[58].mxu0 }
 0x435   : > { %v12543_v50 = vpop.f32.mrb[59].mxu0 }
 0x43a   : > { %v12545_v9 = vpop.f32.mrb[60].mxu0 }
 0x43b   : > { %v12547_v46 = vpop.f32.mrb[61].mxu0 }
 0x43c   : > { %v12549_v11 = vpop.f32.mrb[62].mxu0 }
 0x43d   : > { %v12551_v47 = vpop.f32.mrb[63].mxu0 }
 0x442   : > { %v12553_v19 = vpop.f32.mrb[64].mxu0 }
 0x443   : > { %15476 = vst [vmem:[#allocation20_spill] sm:$0xff] %v12553_v19  ;;  %v12555_v31 = vpop.f32.mrb[65].mxu0  ;;  %v15487_v19 = vmax.f32 %v12362_v48, %v15486_v43 }
 0x444   : > { %15477 = vst [vmem:[#allocation24_spill] sm:$0xff] %v12555_v31  ;;  %v12557_v32 = vpop.f32.mrb[66].mxu0 }
 0x445   : > { %15478 = vst [vmem:[#allocation21_spill] sm:$0xff] %v12557_v32  ;;  %v12559_v51 = vpop.f32.mrb[67].mxu0 }
 0x446   : > { %15479 = vst [vmem:[#allocation25_spill] sm:$0xff] %v12559_v51 }
 0x44a   : > { %v10616_v39 = vpop.f32.mrb[60].mxu1  ;;  %v10702_v5 = vpop.f32.mrb[68].mxu0 }
 0x44b   : > { %v12564_v17 = vmax.f32 %v15482_v1, %v10616_v39  ;;  %v2118_v55 = vadd.f32 %v10702_v5, %v12010_v4  ;;  %v1585_v44 = vpop.f32.mrb[61].mxu1  ;;  %v2109_v8 = vpop.f32.mrb[69].mxu0 }
 0x44c   : > { %v12570_v15 = vmax.f32 %v15485_v14, %v1585_v44  ;;  %v2110_v32 = vadd.f32 %v2109_v8, %v12008_v3  ;;  %v10617_v31 = vpop.f32.mrb[62].mxu1  ;;  %v10703_v51 = vpop.f32.mrb[70].mxu0  ;;  %v15488_v44 = vmax.f32 %v12370_v18, %v12321_v45 }
 0x44d   : > { %15483 = vst [vmem:[#allocation13_spill] sm:$0xff] %v12564_v17  ;;  %v2142_v21 = vmul.f32 0.2, %v2118_v55  ;;  %v12576_v62 = vmax.f32 %v15487_v19, %v10617_v31  ;;  %v2121_v39 = vadd.f32 %v10703_v51, %v12014_v7  ;;  %v1588_v5 = vpop.f32.mrb[63].mxu1  ;;  %v2112_v53 = vpop.f32.mrb[71].mxu0 }
 0x44e   : > { %v2140_v12 = vmul.f32 0.2, %v2110_v32  ;;  %v12584_v8 = vmax.f32 %v15488_v44, %v1588_v5  ;;  %v2113_v52 = vadd.f32 %v2112_v53, %v12012_v6  ;;  %v15489_v5 = vmax.f32 %v12382_v35, %v12323_v24 }
 0x44f   : > { %v2143_v43 = vmul.f32 0.2, %v2121_v39  ;;  %v2150_v14 = vmax.f32 %v2118_v55, %v2142_v21  ;;  %v15491_v24 = vmax.f32 %v12394_v36, %v12327_v30  ;;  %v15517_v30 = vld [vmem:[#allocation23_spill] sm:$0xff] }
 0x450   : > { %v2141_v31 = vmul.f32 0.2, %v2113_v52  ;;  %v2148_v26 = vmax.f32 %v2110_v32, %v2140_v12  ;;  %v15518_v38 = vmax.f32 %v12576_v62, %v15517_v30 }
 0x451   : > { %v2151_v1 = vmax.f32 %v2121_v39, %v2143_v43 }
 0x452   : > { %v2149_v17 = vmax.f32 %v2113_v52, %v2141_v31  ;;  %v10620_v45 = vpop.f32.mrb[64].mxu1  ;;  %v10706_v18 = vpop.f32.mrb[72].mxu0 }
 0x453   : > { %v12596_v53 = vmax.f32 %v15489_v5, %v10620_v45  ;;  %v2134_v44 = vadd.f32 %v10706_v18, %v12024_v27  ;;  %v1601_v48 = vpop.f32.mrb[65].mxu1  ;;  %v2125_v10 = vpop.f32.mrb[73].mxu0  ;;  %v2157_v19 = vpack.c.bf16 %v2151_v1, %v2150_v14  ;;  %v15493_v5 = vmax.f32 %v12414_v40, %v12331_v29 }
 0x454   : > { %v12602_v51 = vmax.f32 %v15490_v58, %v1601_v48  ;;  %v2126_v21 = vadd.f32 %v2125_v10, %v12017_v13  ;;  %v10621_v32 = vpop.f32.mrb[66].mxu1  ;;  %v10707_v55 = vpop.f32.mrb[74].mxu0  ;;  %v2156_v39 = vpack.c.bf16 %v2149_v17, %v2148_v26  ;;  %v15492_v10 = vmax.f32 %v12402_v33, %v12329_v0 }
 0x455   : > { %v2146_v12 = vmul.f32 0.2, %v2134_v44  ;;  %v12608_v35 = vmax.f32 %v15491_v24, %v10621_v32  ;;  %v2137_v52 = vadd.f32 %v10707_v55, %v12027_v34  ;;  %v1604_v43 = vpop.f32.mrb[67].mxu1  ;;  %v2128_v1 = vpop.f32.mrb[75].mxu0  ;;  %v15494_v24 = vmax.f32 %v12419_v37, %v12333_v41 }
 0x456   : > { %v2144_v59 = vmul.f32 0.2, %v2126_v21  ;;  %v12616_v58 = vmax.f32 %v15492_v10, %v1604_v43  ;;  %v2129_v26 = vadd.f32 %v2128_v1, %v12021_v20  ;;  %10708 = vmatprep.subr.bf16.mxu0 %v2156_v39  ;;  %v15496_v40 = vmax.f32 %v12431_v42, %v12337_v57 }
 0x457   : > { %v2147_v36 = vmul.f32 0.2, %v2137_v52  ;;  %10709 = vmatpush3.bf16.msra.mxu0 %v2156_v39  ;;  %v2154_v14 = vmax.f32 %v2134_v44, %v2146_v12  ;;  %v15495_v44 = vmax.f32 %v12424_v49, %v12335_v22  ;;  %v15498_v42 = vmax.f32 %v12448_v25, %v12341_v63  ;;  %v11508_v63 = vld [vmem:[%s15346_s3 + $0x8] sm:$0xff]   ;;  %v15506_v25 = vld [vmem:[#allocation24_spill] sm:$0xff] }
 0x458   : > { %v2145_v48 = vmul.f32 0.2, %v2129_v26  ;;  %10710 = vmatprep.subr.bf16.mxu0 %v2157_v19  ;;  %v2152_v33 = vmax.f32 %v2126_v21, %v2144_v59  ;;  %v15520_v62 = vmax.f32 %v12596_v53, %v12537_v56  ;;  %v15523_v53 = vmax.f32 %v12616_v58, %v12543_v50 }
 0x459   : > { %v2155_v0 = vmax.f32 %v2137_v52, %v2147_v36  ;;  %v15497_v52 = vmax.f32 %v12443_v61, %v12339_v60  ;;  %v15502_v61 = vld [vmem:[#allocation18_spill] sm:$0xff] }
 0x45a   : > { %v2153_v45 = vmax.f32 %v2129_v26, %v2145_v48  ;;  %v10624_v18 = vpop.f32.mrb[68].mxu1  ;;  %v15499_v48 = vmov 0  }
 0x45b   : > { %v12628_v32 = vmax.f32 %v15493_v5, %v10624_v18  ;;  %v1617_v55 = vpop.f32.mrb[69].mxu1  ;;  %10711 = vmatpush3.bf16.msra.mxu0 %v2157_v19  ;;  %v2159_v39 = vpack.c.bf16 %v2155_v0, %v2154_v14  ;;  %v15500_v14 = vmax.f32 %v12455_v54, %v12343_v28  ;;  %v15503_v18 = vld [vmem:[#allocation33_spill] sm:$0xff]  ;;  %v11509_v54 = vld [vmem:[%s15346_s3 + $0x10] sm:$0xff]  }
 0x45c   : > { %v12633_v43 = vmax.f32 %v15494_v24, %v1617_v55  ;;  %v10625_v1 = vpop.f32.mrb[70].mxu1  ;;  %v2158_v10 = vpack.c.bf16 %v2153_v45, %v2152_v33  ;;  %v15501_v45 = vld [vmem:[#allocation20_spill] sm:$0xff]  ;;  %v15504_v5 = vmax.f32 %v15502_v61, %v15503_v18  ;;  %v11510_v61 = vld [vmem:[%s15346_s3 + $0x18] sm:$0xff]  }
 0x45d   : > { %v12638_v21 = vmax.f32 %v15495_v44, %v10625_v1  ;;  %v1620_v12 = vpop.f32.mrb[71].mxu1  ;;  %v15524_v50 = vmax.f32 %v12628_v32, %v12545_v9 }
 0x45e   : > { %v12645_v19 = vmax.f32 %v15496_v40, %v1620_v12  ;;  %10712 = vmatprep.subr.bf16.mxu0 %v2158_v10 }
 0x45f   : > { %10713 = vmatpush3.bf16.msra.mxu0 %v2158_v10 }
 0x460   : > { %10714 = vmatprep.subr.bf16.mxu0 %v2159_v39 }
 0x462   : > { %v10628_v49 = vpop.f32.mrb[72].mxu1 }
 0x463   : > { %v12656_v59 = vmax.f32 %v15497_v52, %v10628_v49  ;;  %v1633_v57 = vpop.f32.mrb[73].mxu1  ;;  %10715 = vmatpush3.bf16.msra.mxu0 %v2159_v39 }
 0x464   : > { %v12661_v26 = vmax.f32 %v15498_v42, %v1633_v57  ;;  %v10629_v36 = vpop.f32.mrb[74].mxu1  ;;  %7492 = vmatprep.subr.bf16.mxu0 %v15499_v48 }
 0x465   : > { %v12667_v0 = vmax.f32 %v15500_v14, %v10629_v36  ;;  %v1636_v33 = vpop.f32.mrb[75].mxu1 }
 0x466   : > { %v12674_v55 = vmax.f32 %v15504_v5, %v1636_v33  ;;  %10717 = vmatmul.mubr.msk.bf16.vlgmr.msra.gmra.mrb[76].mxu0 %vm730_vm2, %v11508_v63 }
 0x467   : > { %10720 = vmatprep.mubr.msk.bf16.mxu0 %vm730_vm2, %v11509_v54 }
 0x468   : > { %15505 = vst [vmem:[#allocation14_spill] sm:$0xff] %v12674_v55  ;;  %v15519_v55 = vmax.f32 %v12584_v8, %v12535_v2  ;;  %v15521_v2 = vmax.f32 %v12602_v51, %v12539_v23 }
 0x46a   : > { %v10668_v44 = vpop.f32.mrb[76].mxu1 }
 0x46b   : > { %v1915_v12 = vadd.f32 %v10668_v44, %v12010_v4  ;;  %v1906_v40 = vpop.f32.mrb[77].mxu1  ;;  %v11511_v4 = vld [vmem:[%s15346_s3 + $0x20] sm:$0xff]  }
 0x46c   : > { %v1907_v49 = vadd.f32 %v1906_v40, %v12008_v3  ;;  %v10669_v52 = vpop.f32.mrb[78].mxu1 }
 0x46d   : > { %v1939_v57 = vmul.f32 0.2, %v1915_v12  ;;  %v1918_v42 = vadd.f32 %v10669_v52, %v12014_v7  ;;  %v1909_v36 = vpop.f32.mrb[79].mxu1 }
 0x46e   : > { %v1937_v14 = vmul.f32 0.2, %v1907_v49  ;;  %v1910_v33 = vadd.f32 %v1909_v36, %v12012_v6  ;;  %10721 = vmatmul.mubr.msk.bf16.gmra.mrb[80].mxu0 %vm730_vm2, %v11510_v61 }
 0x46f   : > { %v1940_v18 = vmul.f32 0.2, %v1918_v42  ;;  %10724 = vmatprep.mubr.msk.bf16.mxu0 %vm730_vm2, %v11511_v4  ;;  %v1947_v5 = vmax.f32 %v1915_v12, %v1939_v57  ;;  %v11512_v12 = vld [vmem:[%s15346_s3 + $0x28] sm:$0xff]  }
 0x470   : > { %v1938_v3 = vmul.f32 0.2, %v1910_v33  ;;  %v1945_v44 = vmax.f32 %v1907_v49, %v1937_v14 }
 0x471   : > { %v1948_v7 = vmax.f32 %v1918_v42, %v1940_v18  ;;  %v2292_v18 = vpop.permute.xlu0 %2291 }
 0x472   : > { %v1946_v40 = vmax.f32 %v1910_v33, %v1938_v3  ;;  %v10672_v52 = vpop.f32.mrb[80].mxu1 }
 0x473   : > { %v1931_v6 = vadd.f32 %v10672_v52, %v12024_v27  ;;  %v1922_v36 = vpop.f32.mrb[81].mxu1  ;;  %v1954_v10 = vpack.c.bf16 %v1948_v7, %v1947_v5  ;;  %v2297_v5 = vpop.permute.xlu1 %2296 }
 0x474   : > { %v1923_v24 = vadd.f32 %v1922_v36, %v12017_v13  ;;  %v10673_v28 = vpop.f32.mrb[82].mxu1  ;;  %v1953_v60 = vpack.c.bf16 %v1946_v40, %v1945_v44  ;;  %v11513_v13 = vld [vmem:[%s15346_s3 + $0x30] sm:$0xff]  }
 0x475   : > { %v1943_v22 = vmul.f32 0.2, %v1931_v6  ;;  %v1934_v37 = vadd.f32 %v10673_v28, %v12027_v34  ;;  %v1925_v41 = vpop.f32.mrb[83].mxu1  ;;  %v2302_v7 = vpop.permute.xlu0 %2301 }
 0x476   : > { %v1941_v29 = vmul.f32 0.2, %v1923_v24  ;;  %v1926_v31 = vadd.f32 %v1925_v41, %v12021_v20  ;;  %10674 = vmatprep.subr.bf16.mxu1 %v1953_v60  ;;  %10725 = vmatmul.mubr.msk.bf16.gmra.mrb[84].mxu0 %vm730_vm2, %v11512_v12 }
 0x477   : > { %v1944_v27 = vmul.f32 0.2, %v1934_v37  ;;  %10675 = vmatpush3.bf16.msra.mxu1 %v1953_v60  ;;  %10728 = vmatprep.mubr.msk.bf16.mxu0 %vm730_vm2, %v11513_v13  ;;  %v1951_v28 = vmax.f32 %v1931_v6, %v1943_v22  ;;  %v11514_v60 = vld [vmem:[%s15346_s3 + $0x38] sm:$0xff]   ;;  %v2307_v52 = vpop.permute.xlu1 %2306 }
 0x478   : > { %v1942_v34 = vmul.f32 0.2, %v1926_v31  ;;  %10676 = vmatprep.subr.bf16.mxu1 %v1954_v10  ;;  %v1949_v20 = vmax.f32 %v1923_v24, %v1941_v29 }
 0x479   : > { %v1952_v49 = vmax.f32 %v1934_v37, %v1944_v27 }
 0x47a   : > { %v1950_v41 = vmax.f32 %v1926_v31, %v1942_v34  ;;  %v11341_v31 = vld [vmem:[#allocation3] sm:$0xff]   ;;  %v15512_v34 = vld [vmem:[#allocation13_spill] sm:$0xff] }
 0x47b   : > { %10677 = vmatpush3.bf16.msra.mxu1 %v1954_v10  ;;  %v1956_v57 = vpack.c.bf16 %v1952_v49, %v1951_v28  ;;  %v2317_v27 = vpop.permute.xlu1 %2316  ;;  %v15513_v28 = vld [vmem:[#allocation22_spill] sm:$0xff] }
 0x47c   : > { %v1955_v42 = vpack.c.bf16 %v1950_v41, %v1949_v20  ;;  %v15514_v49 = vmax.f32 %v15512_v34, %v15513_v28 }
 0x47e   : > { %10678 = vmatprep.subr.bf16.mxu1 %v1955_v42  ;;  %10729 = vmatmul.mubr.msk.bf16.gmra.mrb[88].mxu0 %vm730_vm2, %v11514_v60 }
 0x47f   : > { %10679 = vmatpush3.bf16.msra.mxu1 %v1955_v42  ;;  %v2327_v28 = vpop.permute.xlu1 %2326 }
 0x480   : > { %10680 = vmatprep.subr.bf16.mxu1 %v1956_v57 }
 0x483   : > { %10681 = vmatpush3.bf16.msra.mxu1 %v1956_v57  ;;  %v15515_v57 = vld [vmem:[#allocation19_spill] sm:$0xff] }
 0x484   : > { %v15516_v42 = vmax.f32 %v12570_v15, %v15515_v57 }
 0x486   : > { %10683 = vmatmul.mubr.msk.bf16.vlgmr.msra.gmra.mrb[84].mxu1 %vm730_vm2, %v11508_v63 }
 0x487   : > { %10686 = vmatprep.mubr.msk.bf16.mxu1 %vm730_vm2, %v11509_v54 }
 0x48e   : > { %10687 = vmatmul.mubr.msk.bf16.gmra.mrb[88].mxu1 %vm730_vm2, %v11510_v61 }
 0x48f   : > { %10690 = vmatprep.mubr.msk.bf16.mxu1 %vm730_vm2, %v11511_v4 }
 0x496   : > { %10691 = vmatmul.mubr.msk.bf16.gmra.mrb[92].mxu1 %vm730_vm2, %v11512_v12  ;;  %v2312_v12 = vpop.permute.xlu0 %2311 }
 0x497   : > { %10694 = vmatprep.mubr.msk.bf16.mxu1 %vm730_vm2, %v11513_v13 }
 0x49e   : > { %10695 = vmatmul.mubr.msk.bf16.gmra.mrb[96].mxu1 %vm730_vm2, %v11514_v60 }
 0x49f   : > { %10748 = vmatprep.mubr.bf16.mxu1 %v11341_v31 }
 0x539   : > { %v10718_v29 = vpop.f32.mrb[76].mxu0 }
 0x53a   : > { %v2194_v37 = vpop.f32.mrb[77].mxu0 }
 0x53b   : > { %v10719_v22 = vpop.f32.mrb[78].mxu0 }
 0x53c   : > { %v2197_v24 = vpop.f32.mrb[79].mxu0 }
 0x541   : > { %v10722_v10 = vpop.f32.mrb[80].mxu0 }
 0x542   : > { %v2210_v63 = vpop.f32.mrb[81].mxu0 }
 0x543   : > { %v10723_v14 = vpop.f32.mrb[82].mxu0 }
 0x544   : > { %v12725_v54 = vpop.f32.mrb[83].mxu0 }
 0x549   : > { %v12727_v33 = vpop.f32.mrb[84].mxu0 }
 0x54a   : > { %v12729_v61 = vpop.f32.mrb[85].mxu0 }
 0x54b   : > { %v12731_v4 = vpop.f32.mrb[86].mxu0 }
 0x54c   : > { %v12733_v3 = vpop.f32.mrb[87].mxu0 }
 0x551   : > { %v12735_v44 = vpop.f32.mrb[88].mxu0 }
 0x552   : > { %v12737_v40 = vpop.f32.mrb[89].mxu0 }
 0x553   : > { %15509 = vst [vmem:[#allocation15_spill] sm:$0xff] %v12737_v40  ;;  %v12739_v6 = vpop.f32.mrb[90].mxu0 }
 0x554   : > { %15510 = vst [vmem:[#allocation16_spill] sm:$0xff] %v12739_v6  ;;  %v12741_v36 = vpop.f32.mrb[91].mxu0 }
 0x555   : > { %15511 = vst [vmem:[#allocation17_spill] sm:$0xff] %v12741_v36  ;;  %v2322_v36 = vpop.permute.xlu0 %2321 }
 0x559   : > { %v10684_v13 = vpop.f32.mrb[84].mxu1 }
 0x55a   : > { %v2056_v20 = vmax.f32 %v15514_v49, %v10684_v13  ;;  %v1991_v41 = vpop.f32.mrb[85].mxu1 }
 0x55b   : > { %v2054_v60 = vmax.f32 %v15516_v42, %v1991_v41  ;;  %v10685_v31 = vpop.f32.mrb[86].mxu1  ;;  %v2332_v42 = vpop.permute.xlu0 %2331 }
 0x55c   : > { %v2259_v17 = vmax.f32 %v2056_v20, %v10718_v29  ;;  %v2057_v48 = vmax.f32 %v15518_v38, %v10685_v31  ;;  %v1994_v6 = vpop.f32.mrb[87].mxu1 }
 0x55d   : > { %v2257_v1 = vmax.f32 %v2054_v60, %v2194_v37  ;;  %v2055_v40 = vmax.f32 %v15519_v55, %v1994_v6 }
 0x55e   : > { %v2371_v34 = vadd.f32 %v2302_v7, %v2259_v17  ;;  %v2260_v13 = vmax.f32 %v2057_v48, %v10719_v22 }
 0x55f   : > { %v2369_v49 = vadd.f32 %v2292_v18, %v2257_v1  ;;  %v2258_v39 = vmax.f32 %v2055_v40, %v2197_v24  ;;  %v15522_v1 = vmax.f32 %v12608_v35, %v12541_v16 }
 0x560   : > { %v2372_v15 = vadd.f32 %v2307_v52, %v2260_v13  ;;  %v2387_v41 = vmul.f32 0.2, %v2371_v34  ;;  %v2342_v13 = vpop.permute.xlu0 %2341 }
 0x561   : > { %v2370_v57 = vadd.f32 %v2297_v5, %v2258_v39  ;;  %v10688_v29 = vpop.f32.mrb[88].mxu1  ;;  %v2385_v20 = vmul.f32 0.2, %v2369_v49  ;;  %v2337_v5 = vpop.permute.xlu1 %2336 }
 0x562   : > { %v2060_v38 = vmax.f32 %v15520_v62, %v10688_v29  ;;  %v2007_v30 = vpop.f32.mrb[89].mxu1  ;;  %v2388_v37 = vmul.f32 0.2, %v2372_v15  ;;  %v2403_v24 = vmax.f32 %v2371_v34, %v2387_v41 }
 0x563   : > { %v2058_v8 = vmax.f32 %v15521_v2, %v2007_v30  ;;  %v10689_v17 = vpop.f32.mrb[90].mxu1  ;;  %v2386_v48 = vmul.f32 0.2, %v2370_v57  ;;  %v2401_v40 = vmax.f32 %v2369_v49, %v2385_v20 }
 0x564   : > { %v2263_v55 = vmax.f32 %v2060_v38, %v10722_v10  ;;  %v2061_v39 = vmax.f32 %v15522_v1, %v10689_v17  ;;  %v2010_v22 = vpop.f32.mrb[91].mxu1  ;;  %v2404_v18 = vmax.f32 %v2372_v15, %v2388_v37  ;;  %v15527_v38 = vmax.f32 %v12645_v19, %v12551_v47 }
 0x565   : > { %v2261_v56 = vmax.f32 %v2058_v8, %v2210_v63  ;;  %v2059_v7 = vmax.f32 %v15523_v53, %v2010_v22  ;;  %v2402_v52 = vmax.f32 %v2370_v57, %v2386_v48  ;;  %v15526_v57 = vmax.f32 %v12638_v21, %v12549_v11  ;;  %v2352_v8 = vpop.permute.xlu0 %2351 }
 0x566   : > { %v2375_v23 = vadd.f32 %v2322_v36, %v2263_v55  ;;  %v2264_v51 = vmax.f32 %v2061_v39, %v10723_v14  ;;  %v2546_v6 = vpack.c.bf16 %v2404_v18, %v2403_v24  ;;  %v2347_v14 = vpop.permute.xlu1 %2346  ;;  %v15528_v19 = vmax.f32 %v12656_v59, %v15501_v45 }
 0x567   : > { %v2373_v60 = vadd.f32 %v2312_v12, %v2261_v56  ;;  %v2262_v10 = vmax.f32 %v2059_v7, %v12725_v54  ;;  %v2545_v31 = vpack.c.bf16 %v2402_v52, %v2401_v40  ;;  %v15525_v12 = vmax.f32 %v12633_v43, %v12547_v46 }
 0x568   : > { %v2376_v16 = vadd.f32 %v2327_v28, %v2264_v51  ;;  %v2391_v35 = vmul.f32 0.2, %v2375_v23  ;;  %v15532_v51 = vld [vmem:[#allocation15_spill] sm:$0xff] }
 0x569   : > { %v2374_v34 = vadd.f32 %v2317_v27, %v2262_v10  ;;  %v10692_v15 = vpop.f32.mrb[92].mxu1  ;;  %10732 = vmatprep.subr.bf16.mxu1 %v2545_v31  ;;  %v2389_v63 = vmul.f32 0.2, %v2373_v60  ;;  %v2362_v45 = vpop.permute.xlu0 %2361  ;;  %v15534_v10 = vld [vmem:[#allocation25_spill] sm:$0xff] }
 0x56a   : > { %v2064_v58 = vmax.f32 %v15524_v50, %v10692_v15  ;;  %v2023_v49 = vpop.f32.mrb[93].mxu1  ;;  %10733 = vmatpush3.bf16.msra.mxu1 %v2545_v31  ;;  %v2392_v36 = vmul.f32 0.2, %v2376_v16  ;;  %v2407_v9 = vmax.f32 %v2375_v23, %v2391_v35  ;;  %v2357_v1 = vpop.permute.xlu1 %2356 }
 0x56b   : > { %v2062_v54 = vmax.f32 %v15525_v12, %v2023_v49  ;;  %v10693_v41 = vpop.f32.mrb[94].mxu1  ;;  %10734 = vmatprep.subr.bf16.mxu1 %v2546_v6  ;;  %v2390_v28 = vmul.f32 0.2, %v2374_v34  ;;  %v2405_v46 = vmax.f32 %v2373_v60, %v2389_v63  ;;  %v15533_v60 = vld [vmem:[#allocation14_spill] sm:$0xff]  ;;  %v15537_v63 = vld [vmem:[#allocation17_spill] sm:$0xff] }
 0x56c   : > { %v2267_v27 = vmax.f32 %v2064_v58, %v12727_v33  ;;  %v2065_v29 = vmax.f32 %v15526_v57, %v10693_v41  ;;  %v2026_v20 = vpop.f32.mrb[95].mxu1  ;;  %v2408_v32 = vmax.f32 %v2376_v16, %v2392_v36  ;;  %v15535_v31 = vmax.f32 %v15533_v60, %v15534_v10  ;;  %v11377_v60 = vld [vmem:[#allocation3 + $0x120] sm:$0xff]   ;;  %v11378_v10 = vld [vmem:[#allocation3 + $0x128] sm:$0xff]  }
 0x56d   : > { %v2265_v62 = vmax.f32 %v2062_v54, %v12729_v61  ;;  %v2063_v30 = vmax.f32 %v15527_v38, %v2026_v20  ;;  %v2406_v43 = vmax.f32 %v2374_v34, %v2390_v28  ;;  %v15538_v38 = vmov 0  }
 0x56e   : > { %v2379_v37 = vadd.f32 %v2342_v13, %v2267_v27  ;;  %v2268_v2 = vmax.f32 %v2065_v29, %v12731_v4  ;;  %10735 = vmatpush3.bf16.msra.mxu1 %v2546_v6  ;;  %v2548_v33 = vpack.c.bf16 %v2408_v32, %v2407_v9  ;;  %v15536_v13 = vld [vmem:[#allocation16_spill] sm:$0xff]  ;;  %v2367_v15 = vpop.permute.xlu1 %2366  ;;  %v11342_v32 = vld [vmem:[#allocation3 + $0x8] sm:$0xff]  }
 0x56f   : > { %v2377_v17 = vadd.f32 %v2332_v42, %v2265_v62  ;;  %v2266_v11 = vmax.f32 %v2063_v30, %v12733_v3  ;;  %v2547_v21 = vpack.c.bf16 %v2406_v43, %v2405_v46  ;;  %v15529_v42 = vmax.f32 %v12661_v26, %v15506_v25  ;;  %v11343_v62 = vld [vmem:[#allocation3 + $0x10] sm:$0xff]   ;;  %v11344_v30 = vld [vmem:[#allocation3 + $0x18] sm:$0xff]   ;;  %v11345_v46 = vld [vmem:[#allocation3 + $0x20] sm:$0xff]  }
 0x570   : > { %v2380_v48 = vadd.f32 %v2347_v14, %v2268_v2  ;;  %v2395_v55 = vmul.f32 0.2, %v2379_v37  ;;  %v11346_v43 = vld [vmem:[#allocation3 + $0x28] sm:$0xff]   ;;  %v11348_v2 = vld [vmem:[#allocation3 + $0x38] sm:$0xff]  }
 0x571   : > { %v2378_v61 = vadd.f32 %v2337_v5, %v2266_v11  ;;  %v10696_v39 = vpop.f32.mrb[96].mxu1  ;;  %10736 = vmatprep.subr.bf16.mxu1 %v2547_v21  ;;  %v2393_v47 = vmul.f32 0.2, %v2377_v17  ;;  %v15530_v5 = vld [vmem:[#allocation21_spill] sm:$0xff]  ;;  %v11352_v11 = vld [vmem:[#allocation3 + $0x58] sm:$0xff]  }
 0x572   : > { %v2068_v22 = vmax.f32 %v15528_v19, %v10696_v39  ;;  %v2039_v24 = vpop.f32.mrb[97].mxu1  ;;  %10737 = vmatpush3.bf16.msra.mxu1 %v2547_v21  ;;  %v2396_v4 = vmul.f32 0.2, %v2380_v48  ;;  %v15531_v7 = vmax.f32 %v12667_v0, %v15530_v5  ;;  %v2411_v23 = vmax.f32 %v2379_v37, %v2395_v55  ;;  %v11347_v37 = vld [vmem:[#allocation3 + $0x30] sm:$0xff]   ;;  %v11353_v21 = vld [vmem:[#allocation3 + $0x60] sm:$0xff]   ;;  %v11358_v39 = vld [vmem:[#allocation3 + $0x88] sm:$0xff]  }
 0x573   : > { %v2066_v18 = vmax.f32 %v15529_v42, %v2039_v24  ;;  %v10697_v3 = vpop.f32.mrb[98].mxu1  ;;  %10738 = vmatprep.subr.bf16.mxu1 %v2548_v33  ;;  %v2394_v56 = vmul.f32 0.2, %v2378_v61  ;;  %v2409_v25 = vmax.f32 %v2377_v17, %v2393_v47  ;;  %v11351_v17 = vld [vmem:[#allocation3 + $0x50] sm:$0xff]   ;;  %v11360_v19 = vld [vmem:[#allocation3 + $0x98] sm:$0xff]   ;;  %v11362_v24 = vld [vmem:[#allocation3 + $0xa8] sm:$0xff]  }
 0x574   : > { %v2271_v53 = vmax.f32 %v2068_v22, %v12735_v44  ;;  %v2069_v40 = vmax.f32 %v15531_v7, %v10697_v3  ;;  %v2042_v52 = vpop.f32.mrb[99].mxu1  ;;  %v2412_v59 = vmax.f32 %v2380_v48, %v2396_v4  ;;  %v11354_v48 = vld [vmem:[#allocation3 + $0x68] sm:$0xff]   ;;  %v11355_v55 = vld [vmem:[#allocation3 + $0x70] sm:$0xff]   ;;  %v11361_v22 = vld [vmem:[#allocation3 + $0xa0] sm:$0xff]  }
 0x575   : > { %v2269_v6 = vmax.f32 %v2066_v18, %v15532_v51  ;;  %v2067_v26 = vmax.f32 %v15535_v31, %v2042_v52  ;;  %v2410_v16 = vmax.f32 %v2378_v61, %v2394_v56  ;;  %v11357_v61 = vld [vmem:[#allocation3 + $0x80] sm:$0xff]   ;;  %v11359_v47 = vld [vmem:[#allocation3 + $0x90] sm:$0xff]   ;;  %v11364_v42 = vld [vmem:[#allocation3 + $0xb8] sm:$0xff]  }
 0x576   : > { %v2383_v35 = vadd.f32 %v2362_v45, %v2271_v53  ;;  %v2272_v34 = vmax.f32 %v2069_v40, %v15536_v13  ;;  %10739 = vmatpush3.bf16.msra.mxu1 %v2548_v33  ;;  %v2550_v44 = vpack.c.bf16 %v2412_v59, %v2411_v23  ;;  %v11349_v33 = vld [vmem:[#allocation3 + $0x40] sm:$0xff]   ;;  %v11363_v4 = vld [vmem:[#allocation3 + $0xb0] sm:$0xff]   ;;  %v11366_v3 = vld [vmem:[#allocation3 + $0xc8] sm:$0xff]   ;;  %v11610_v23 = vmov -inf  }
 0x577   : > { %v2381_v0 = vadd.f32 %v2352_v8, %v2269_v6  ;;  %v2270_v50 = vmax.f32 %v2067_v26, %v15537_v63  ;;  %v2549_v58 = vpack.c.bf16 %v2410_v16, %v2409_v25  ;;  %v11350_v8 = vld [vmem:[#allocation3 + $0x48] sm:$0xff]   ;;  %v11365_v18 = vld [vmem:[#allocation3 + $0xc0] sm:$0xff]   ;;  %v11367_v56 = vld [vmem:[#allocation3 + $0xd0] sm:$0xff]   ;;  %4545 = vst.msk [vmem:[#allocation2 + $0x110] sm:$0xff] %vm4510_vm3, %v11610_v23 }
 0x578   : > { %v2384_v49 = vadd.f32 %v2367_v15, %v2272_v34  ;;  %v2399_v36 = vmul.f32 0.2, %v2383_v35  ;;  %v11368_v53 = vld [vmem:[#allocation3 + $0xd8] sm:$0xff]   ;;  %v11369_v5 = vld [vmem:[#allocation3 + $0xe0] sm:$0xff]   ;;  %v11370_v7 = vld [vmem:[#allocation3 + $0xe8] sm:$0xff]   ;;  %4511 = vst.msk [vmem:[#allocation2] sm:$0xff] %vm4510_vm3, %v11610_v23 }
 0x579   : > { %v2382_v14 = vadd.f32 %v2357_v1, %v2270_v50  ;;  %10740 = vmatprep.subr.bf16.mxu1 %v2549_v58  ;;  %v2397_v12 = vmul.f32 0.2, %v2381_v0  ;;  %v11356_v1 = vld [vmem:[#allocation3 + $0x78] sm:$0xff]   ;;  %v11371_v40 = vld [vmem:[#allocation3 + $0xf0] sm:$0xff]   ;;  %4512 = vst.msk [vmem:[#allocation2 + $0x8] sm:$0xff] %vm4510_vm3, %v11610_v23  ;;  %4513 = vst.msk [vmem:[#allocation2 + $0x10] sm:$0xff] %vm4510_vm3, %v11610_v23 }
 0x57a   : > { %10741 = vmatpush3.bf16.msra.mxu1 %v2549_v58  ;;  %v2400_v54 = vmul.f32 0.2, %v2384_v49  ;;  %v2415_v28 = vmax.f32 %v2383_v35, %v2399_v36  ;;  %v11372_v52 = vld [vmem:[#allocation3 + $0xf8] sm:$0xff]   ;;  %4514 = vst.msk [vmem:[#allocation2 + $0x18] sm:$0xff] %vm4510_vm3, %v11610_v23  ;;  %4515 = vst.msk [vmem:[#allocation2 + $0x20] sm:$0xff] %vm4510_vm3, %v11610_v23  ;;  %v11373_v59 = vld [vmem:[#allocation3 + $0x100] sm:$0xff]  }
 0x57b   : > { %10742 = vmatprep.subr.bf16.mxu1 %v2550_v44  ;;  %v2398_v41 = vmul.f32 0.2, %v2382_v14  ;;  %v2413_v57 = vmax.f32 %v2381_v0, %v2397_v12  ;;  %4516 = vst.msk [vmem:[#allocation2 + $0x28] sm:$0xff] %vm4510_vm3, %v11610_v23  ;;  %4517 = vst.msk [vmem:[#allocation2 + $0x30] sm:$0xff] %vm4510_vm3, %v11610_v23  ;;  %v11374_v45 = vld [vmem:[#allocation3 + $0x108] sm:$0xff]   ;;  %v11375_v51 = vld [vmem:[#allocation3 + $0x110] sm:$0xff]  }
 0x57c   : > { %v2416_v27 = vmax.f32 %v2384_v49, %v2400_v54  ;;  %4518 = vst.msk [vmem:[#allocation2 + $0x38] sm:$0xff] %vm4510_vm3, %v11610_v23  ;;  %4519 = vst.msk [vmem:[#allocation2 + $0x40] sm:$0xff] %vm4510_vm3, %v11610_v23  ;;  %v11376_v6 = vld [vmem:[#allocation3 + $0x118] sm:$0xff]   ;;  %v11379_v31 = vld [vmem:[#allocation3 + $0x130] sm:$0xff]  }
 0x57d   : > { %v2414_v29 = vmax.f32 %v2382_v14, %v2398_v41  ;;  %4520 = vst.msk [vmem:[#allocation2 + $0x48] sm:$0xff] %vm4510_vm3, %v11610_v23  ;;  %4521 = vst.msk [vmem:[#allocation2 + $0x50] sm:$0xff] %vm4510_vm3, %v11610_v23  ;;  %v11380_v26 = vld [vmem:[#allocation3 + $0x138] sm:$0xff]   ;;  %v11381_v25 = vld [vmem:[#allocation3 + $0x140] sm:$0xff]  }
 0x57e   : > { %10743 = vmatpush3.bf16.msra.mxu1 %v2550_v44  ;;  %v2552_v20 = vpack.c.bf16 %v2416_v27, %v2415_v28  ;;  %4522 = vst.msk [vmem:[#allocation2 + $0x58] sm:$0xff] %vm4510_vm3, %v11610_v23  ;;  %4523 = vst.msk [vmem:[#allocation2 + $0x60] sm:$0xff] %vm4510_vm3, %v11610_v23  ;;  %v11382_v16 = vld [vmem:[#allocation3 + $0x148] sm:$0xff]   ;;  %v11383_v35 = vld [vmem:[#allocation3 + $0x150] sm:$0xff]  }
 0x57f   : > { %v2551_v9 = vpack.c.bf16 %v2414_v29, %v2413_v57  ;;  %4524 = vst.msk [vmem:[#allocation2 + $0x68] sm:$0xff] %vm4510_vm3, %v11610_v23  ;;  %4525 = vst.msk [vmem:[#allocation2 + $0x70] sm:$0xff] %vm4510_vm3, %v11610_v23  ;;  %v11384_v13 = vld [vmem:[#allocation3 + $0x158] sm:$0xff]   ;;  %v11385_v34 = vld [vmem:[#allocation3 + $0x160] sm:$0xff]  }
 0x580   : > { %4526 = vst.msk [vmem:[#allocation2 + $0x78] sm:$0xff] %vm4510_vm3, %v11610_v23  ;;  %4527 = vst.msk [vmem:[#allocation2 + $0x80] sm:$0xff] %vm4510_vm3, %v11610_v23  ;;  %v11386_v44 = vld [vmem:[#allocation3 + $0x168] sm:$0xff]   ;;  %v11387_v58 = vld [vmem:[#allocation3 + $0x170] sm:$0xff]  }
 0x581   : > { %10744 = vmatprep.subr.bf16.mxu1 %v2551_v9  ;;  %4528 = vst.msk [vmem:[#allocation2 + $0x88] sm:$0xff] %vm4510_vm3, %v11610_v23  ;;  %4529 = vst.msk [vmem:[#allocation2 + $0x90] sm:$0xff] %vm4510_vm3, %v11610_v23  ;;  %v11388_v49 = vld [vmem:[#allocation3 + $0x178] sm:$0xff]   ;;  %v11389_v41 = vld [vmem:[#allocation3 + $0x180] sm:$0xff]  }
 0x582   : > { %10745 = vmatpush3.bf16.msra.mxu1 %v2551_v9  ;;  %4530 = vst.msk [vmem:[#allocation2 + $0x98] sm:$0xff] %vm4510_vm3, %v11610_v23  ;;  %4531 = vst.msk [vmem:[#allocation2 + $0xa0] sm:$0xff] %vm4510_vm3, %v11610_v23  ;;  %v11390_v28 = vld [vmem:[#allocation3 + $0x188] sm:$0xff]  }
 0x583   : > { %10746 = vmatprep.subr.bf16.mxu1 %v2552_v20  ;;  %4532 = vst.msk [vmem:[#allocation2 + $0xa8] sm:$0xff] %vm4510_vm3, %v11610_v23  ;;  %4533 = vst.msk [vmem:[#allocation2 + $0xb0] sm:$0xff] %vm4510_vm3, %v11610_v23 }
 0x584   : > { %4534 = vst.msk [vmem:[#allocation2 + $0xb8] sm:$0xff] %vm4510_vm3, %v11610_v23  ;;  %4535 = vst.msk [vmem:[#allocation2 + $0xc0] sm:$0xff] %vm4510_vm3, %v11610_v23 }
 0x585   : > { %4536 = vst.msk [vmem:[#allocation2 + $0xc8] sm:$0xff] %vm4510_vm3, %v11610_v23  ;;  %4537 = vst.msk [vmem:[#allocation2 + $0xd0] sm:$0xff] %vm4510_vm3, %v11610_v23 }
 0x586   : > { %10747 = vmatpush3.bf16.msra.mxu1 %v2552_v20  ;;  %4538 = vst.msk [vmem:[#allocation2 + $0xd8] sm:$0xff] %vm4510_vm3, %v11610_v23  ;;  %4539 = vst.msk [vmem:[#allocation2 + $0xe0] sm:$0xff] %vm4510_vm3, %v11610_v23 }
 0x587   : > { %7203 = vmatprep.subr.bf16.mxu1 %v15538_v38  ;;  %4540 = vst.msk [vmem:[#allocation2 + $0xe8] sm:$0xff] %vm4510_vm3, %v11610_v23  ;;  %4541 = vst.msk [vmem:[#allocation2 + $0xf0] sm:$0xff] %vm4510_vm3, %v11610_v23 }
 0x588   : > { %4542 = vst.msk [vmem:[#allocation2 + $0xf8] sm:$0xff] %vm4510_vm3, %v11610_v23  ;;  %4543 = vst.msk [vmem:[#allocation2 + $0x100] sm:$0xff] %vm4510_vm3, %v11610_v23 }
 0x589   : > { %10749 = vmatmul.mubr.bf16.vlgmr.msra.gmra.mrb[100].mxu1 %v11342_v32  ;;  %4544 = vst.msk [vmem:[#allocation2 + $0x108] sm:$0xff] %vm4510_vm3, %v11610_v23  ;;  %4546 = vst.msk [vmem:[#allocation2 + $0x118] sm:$0xff] %vm4510_vm3, %v11610_v23 }
 0x58a   : > { %10752 = vmatprep.mubr.bf16.mxu1 %v11343_v62  ;;  %4547 = vst.msk [vmem:[#allocation2 + $0x120] sm:$0xff] %vm4510_vm3, %v11610_v23  ;;  %4548 = vst.msk [vmem:[#allocation2 + $0x128] sm:$0xff] %vm4510_vm3, %v11610_v23 }
 0x58b   : > { %4549 = vst.msk [vmem:[#allocation2 + $0x130] sm:$0xff] %vm4510_vm3, %v11610_v23  ;;  %4550 = vst.msk [vmem:[#allocation2 + $0x138] sm:$0xff] %vm4510_vm3, %v11610_v23 }
 0x58c   : > { %4551 = vst.msk [vmem:[#allocation2 + $0x140] sm:$0xff] %vm4510_vm3, %v11610_v23  ;;  %4552 = vst.msk [vmem:[#allocation2 + $0x148] sm:$0xff] %vm4510_vm3, %v11610_v23 }
 0x58d   : > { %4553 = vst.msk [vmem:[#allocation2 + $0x150] sm:$0xff] %vm4510_vm3, %v11610_v23  ;;  %4554 = vst.msk [vmem:[#allocation2 + $0x158] sm:$0xff] %vm4510_vm3, %v11610_v23 }
 0x58e   : > { %4555 = vst.msk [vmem:[#allocation2 + $0x160] sm:$0xff] %vm4510_vm3, %v11610_v23  ;;  %4556 = vst.msk [vmem:[#allocation2 + $0x168] sm:$0xff] %vm4510_vm3, %v11610_v23 }
 0x58f   : > { %4557 = vst.msk [vmem:[#allocation2 + $0x170] sm:$0xff] %vm4510_vm3, %v11610_v23  ;;  %4558 = vst.msk [vmem:[#allocation2 + $0x178] sm:$0xff] %vm4510_vm3, %v11610_v23 }
 0x590   : > { %4559 = vst.msk [vmem:[#allocation2 + $0x180] sm:$0xff] %vm4510_vm3, %v11610_v23  ;;  %4560 = vst.msk [vmem:[#allocation2 + $0x188] sm:$0xff] %vm4510_vm3, %v11610_v23 }
 0x591   : > { %10753 = vmatmul.mubr.bf16.gmra.mrb[104].mxu1 %v11344_v30  ;;  %4561 = vst.msk [vmem:[#allocation2 + $0x190] sm:$0xff] %vm4510_vm3, %v11610_v23  ;;  %4562 = vst.msk [vmem:[#allocation2 + $0x198] sm:$0xff] %vm4510_vm3, %v11610_v23 }
 0x592   : > { %10756 = vmatprep.mubr.bf16.mxu1 %v11345_v46  ;;  %4563 = vst.msk [vmem:[#allocation2 + $0x1a0] sm:$0xff] %vm4510_vm3, %v11610_v23  ;;  %4564 = vst.msk [vmem:[#allocation2 + $0x1a8] sm:$0xff] %vm4510_vm3, %v11610_v23  ;;  %v2844_v46 = vpop.permute.xlu0 %2843 }
 0x593   : > { %4565 = vst.msk [vmem:[#allocation2 + $0x1b0] sm:$0xff] %vm4510_vm3, %v11610_v23  ;;  %4566 = vst.msk [vmem:[#allocation2 + $0x1b8] sm:$0xff] %vm4510_vm3, %v11610_v23 }
 0x594   : > { %4567 = vst.msk [vmem:[#allocation2 + $0x1c0] sm:$0xff] %vm4510_vm3, %v11610_v23  ;;  %4568 = vst.msk [vmem:[#allocation2 + $0x1c8] sm:$0xff] %vm4510_vm3, %v11610_v23 }
 0x595   : > { %4569 = vst.msk [vmem:[#allocation2 + $0x1d0] sm:$0xff] %vm4510_vm3, %v11610_v23  ;;  %4570 = vst.msk [vmem:[#allocation2 + $0x1d8] sm:$0xff] %vm4510_vm3, %v11610_v23 }
 0x596   : > { %4571 = vst.msk [vmem:[#allocation2 + $0x1e0] sm:$0xff] %vm4510_vm3, %v11610_v23  ;;  %4572 = vst.msk [vmem:[#allocation2 + $0x1e8] sm:$0xff] %vm4510_vm3, %v11610_v23 }
 0x597   : > { %4573 = vst.msk [vmem:[#allocation2 + $0x1f0] sm:$0xff] %vm4510_vm3, %v11610_v23  ;;  %4574 = vst.msk [vmem:[#allocation2 + $0x1f8] sm:$0xff] %vm4510_vm3, %v11610_v23 }
 0x598   : > { %4575 = vst.msk [vmem:[#allocation2 + $0x200] sm:$0xff] %vm4510_vm3, %v11610_v23  ;;  %4576 = vst.msk [vmem:[#allocation2 + $0x208] sm:$0xff] %vm4510_vm3, %v11610_v23 }
 0x599   : > { %10757 = vmatmul.mubr.bf16.gmra.mrb[108].mxu1 %v11346_v43  ;;  %4577 = vst.msk [vmem:[#allocation2 + $0x210] sm:$0xff] %vm4510_vm3, %v11610_v23  ;;  %4578 = vst.msk [vmem:[#allocation2 + $0x218] sm:$0xff] %vm4510_vm3, %v11610_v23  ;;  %v2849_v43 = vpop.permute.xlu1 %2848 }
 0x59a   : > { %10760 = vmatprep.mubr.bf16.mxu1 %v11347_v37  ;;  %4579 = vst.msk [vmem:[#allocation2 + $0x220] sm:$0xff] %vm4510_vm3, %v11610_v23  ;;  %4580 = vst.msk [vmem:[#allocation2 + $0x228] sm:$0xff] %vm4510_vm3, %v11610_v23 }
 0x59b   : > { %4581 = vst.msk [vmem:[#allocation2 + $0x230] sm:$0xff] %vm4510_vm3, %v11610_v23  ;;  %4582 = vst.msk [vmem:[#allocation2 + $0x238] sm:$0xff] %vm4510_vm3, %v11610_v23 }
 0x59c   : > { %4583 = vst.msk [vmem:[#allocation2 + $0x240] sm:$0xff] %vm4510_vm3, %v11610_v23  ;;  %4584 = vst.msk [vmem:[#allocation2 + $0x248] sm:$0xff] %vm4510_vm3, %v11610_v23 }
 0x59d   : > { %4585 = vst.msk [vmem:[#allocation2 + $0x250] sm:$0xff] %vm4510_vm3, %v11610_v23  ;;  %4586 = vst.msk [vmem:[#allocation2 + $0x258] sm:$0xff] %vm4510_vm3, %v11610_v23 }
 0x59e   : > { %4587 = vst.msk [vmem:[#allocation2 + $0x260] sm:$0xff] %vm4510_vm3, %v11610_v23  ;;  %4588 = vst.msk [vmem:[#allocation2 + $0x268] sm:$0xff] %vm4510_vm3, %v11610_v23 }
 0x59f   : > { %4589 = vst.msk [vmem:[#allocation2 + $0x270] sm:$0xff] %vm4510_vm3, %v11610_v23  ;;  %4590 = vst.msk [vmem:[#allocation2 + $0x278] sm:$0xff] %vm4510_vm3, %v11610_v23 }
 0x5a0   : > { %4591 = vst.msk [vmem:[#allocation2 + $0x280] sm:$0xff] %vm4510_vm3, %v11610_v23  ;;  %4592 = vst.msk [vmem:[#allocation2 + $0x288] sm:$0xff] %vm4510_vm3, %v11610_v23 }
 0x5a1   : > { %10761 = vmatmul.mubr.bf16.gmra.mrb[112].mxu1 %v11348_v2  ;;  %4593 = vst.msk [vmem:[#allocation2 + $0x290] sm:$0xff] %vm4510_vm3, %v11610_v23  ;;  %4594 = vst.msk [vmem:[#allocation2 + $0x298] sm:$0xff] %vm4510_vm3, %v11610_v23 }
 0x5a2   : > { %10764 = vmatprep.mubr.bf16.mxu1 %v11349_v33  ;;  %4595 = vst.msk [vmem:[#allocation2 + $0x2a0] sm:$0xff] %vm4510_vm3, %v11610_v23  ;;  %4596 = vst.msk [vmem:[#allocation2 + $0x2a8] sm:$0xff] %vm4510_vm3, %v11610_v23 }
 0x5a3   : > { %4597 = vst.msk [vmem:[#allocation2 + $0x2b0] sm:$0xff] %vm4510_vm3, %v11610_v23  ;;  %4598 = vst.msk [vmem:[#allocation2 + $0x2b8] sm:$0xff] %vm4510_vm3, %v11610_v23 }
 0x5a4   : > { %4599 = vst.msk [vmem:[#allocation2 + $0x2c0] sm:$0xff] %vm4510_vm3, %v11610_v23  ;;  %4600 = vst.msk [vmem:[#allocation2 + $0x2c8] sm:$0xff] %vm4510_vm3, %v11610_v23 }
 0x5a5   : > { %4601 = vst.msk [vmem:[#allocation2 + $0x2d0] sm:$0xff] %vm4510_vm3, %v11610_v23  ;;  %4602 = vst.msk [vmem:[#allocation2 + $0x2d8] sm:$0xff] %vm4510_vm3, %v11610_v23 }
 0x5a6   : > { %4603 = vst.msk [vmem:[#allocation2 + $0x2e0] sm:$0xff] %vm4510_vm3, %v11610_v23  ;;  %4604 = vst.msk [vmem:[#allocation2 + $0x2e8] sm:$0xff] %vm4510_vm3, %v11610_v23 }
 0x5a7   : > { %4605 = vst.msk [vmem:[#allocation2 + $0x2f0] sm:$0xff] %vm4510_vm3, %v11610_v23  ;;  %4606 = vst.msk [vmem:[#allocation2 + $0x2f8] sm:$0xff] %vm4510_vm3, %v11610_v23 }
 0x5a8   : > { %4607 = vst.msk [vmem:[#allocation2 + $0x300] sm:$0xff] %vm4510_vm3, %v11610_v23  ;;  %4608 = vst.msk [vmem:[#allocation2 + $0x308] sm:$0xff] %vm4510_vm3, %v11610_v23 }
 0x5a9   : > { %10765 = vmatmul.mubr.bf16.gmra.mrb[116].mxu1 %v11350_v8  ;;  %4609 = vst.msk [vmem:[#allocation2 + $0x310] sm:$0xff] %vm4510_vm3, %v11610_v23  ;;  %4610 = vst.msk [vmem:[#allocation2 + $0x318] sm:$0xff] %vm4510_vm3, %v11610_v23 }
 0x5aa   : > { %10768 = vmatprep.mubr.bf16.mxu1 %v11351_v17  ;;  %4611 = vst.msk [vmem:[#allocation2 + $0x320] sm:$0xff] %vm4510_vm3, %v11610_v23  ;;  %4612 = vst.msk [vmem:[#allocation2 + $0x328] sm:$0xff] %vm4510_vm3, %v11610_v23  ;;  %v2854_v17 = vpop.permute.xlu0 %2853 }
 0x5ab   : > { %4613 = vst.msk [vmem:[#allocation2 + $0x330] sm:$0xff] %vm4510_vm3, %v11610_v23  ;;  %4614 = vst.msk [vmem:[#allocation2 + $0x338] sm:$0xff] %vm4510_vm3, %v11610_v23 }
 0x5ac   : > { %4615 = vst.msk [vmem:[#allocation2 + $0x340] sm:$0xff] %vm4510_vm3, %v11610_v23  ;;  %4616 = vst.msk [vmem:[#allocation2 + $0x348] sm:$0xff] %vm4510_vm3, %v11610_v23 }
 0x5ad   : > { %4617 = vst.msk [vmem:[#allocation2 + $0x350] sm:$0xff] %vm4510_vm3, %v11610_v23  ;;  %4618 = vst.msk [vmem:[#allocation2 + $0x358] sm:$0xff] %vm4510_vm3, %v11610_v23 }
 0x5ae   : > { %4619 = vst.msk [vmem:[#allocation2 + $0x360] sm:$0xff] %vm4510_vm3, %v11610_v23  ;;  %4620 = vst.msk [vmem:[#allocation2 + $0x368] sm:$0xff] %vm4510_vm3, %v11610_v23 }
 0x5af   : > { %4621 = vst.msk [vmem:[#allocation2 + $0x370] sm:$0xff] %vm4510_vm3, %v11610_v23  ;;  %4622 = vst.msk [vmem:[#allocation2 + $0x378] sm:$0xff] %vm4510_vm3, %v11610_v23 }
 0x5b0   : > { %4623 = vst.msk [vmem:[#allocation2 + $0x380] sm:$0xff] %vm4510_vm3, %v11610_v23  ;;  %4624 = vst.msk [vmem:[#allocation2 + $0x388] sm:$0xff] %vm4510_vm3, %v11610_v23 }
 0x5b1   : > { %10769 = vmatmul.mubr.bf16.gmra.mrb[120].mxu1 %v11352_v11  ;;  %4625 = vst.msk [vmem:[#allocation2 + $0x390] sm:$0xff] %vm4510_vm3, %v11610_v23  ;;  %4626 = vst.msk [vmem:[#allocation2 + $0x398] sm:$0xff] %vm4510_vm3, %v11610_v23  ;;  %v11391_v11 = vld [vmem:[#allocation3 + $0x190] sm:$0xff]  }
 0x5b2   : > { %10772 = vmatprep.mubr.bf16.mxu1 %v11353_v21  ;;  %4627 = vst.msk [vmem:[#allocation2 + $0x3a0] sm:$0xff] %vm4510_vm3, %v11610_v23  ;;  %4628 = vst.msk [vmem:[#allocation2 + $0x3a8] sm:$0xff] %vm4510_vm3, %v11610_v23  ;;  %v11392_v21 = vld [vmem:[#allocation3 + $0x198] sm:$0xff]  }
 0x5b3   : > { %4629 = vst.msk [vmem:[#allocation2 + $0x3b0] sm:$0xff] %vm4510_vm3, %v11610_v23  ;;  %4630 = vst.msk [vmem:[#allocation2 + $0x3b8] sm:$0xff] %vm4510_vm3, %v11610_v23 }
 0x5b4   : > { %4631 = vst.msk [vmem:[#allocation2 + $0x3c0] sm:$0xff] %vm4510_vm3, %v11610_v23  ;;  %4632 = vst.msk [vmem:[#allocation2 + $0x3c8] sm:$0xff] %vm4510_vm3, %v11610_v23 }
 0x5b5   : > { %4633 = vst.msk [vmem:[#allocation2 + $0x3d0] sm:$0xff] %vm4510_vm3, %v11610_v23  ;;  %4634 = vst.msk [vmem:[#allocation2 + $0x3d8] sm:$0xff] %vm4510_vm3, %v11610_v23 }
 0x5b6   : > { %4635 = vst.msk [vmem:[#allocation2 + $0x3e0] sm:$0xff] %vm4510_vm3, %v11610_v23  ;;  %4636 = vst.msk [vmem:[#allocation2 + $0x3e8] sm:$0xff] %vm4510_vm3, %v11610_v23 }
 0x5b7   : > { %4637 = vst.msk [vmem:[#allocation2 + $0x3f0] sm:$0xff] %vm4510_vm3, %v11610_v23  ;;  %4638 = vst.msk [vmem:[#allocation2 + $0x3f8] sm:$0xff] %vm4510_vm3, %v11610_v23 }
 0x5b9   : > { %10773 = vmatmul.mubr.bf16.gmra.mrb[124].mxu1 %v11354_v48  ;;  %v2859_v48 = vpop.permute.xlu1 %2858 }
 0x5ba   : > { %10776 = vmatprep.mubr.bf16.mxu1 %v11355_v55 }
 0x5c1   : > { %10777 = vmatmul.mubr.bf16.gmra.mrb[128].mxu1 %v11356_v1 }
 0x5c2   : > { %10780 = vmatprep.mubr.bf16.mxu1 %v11357_v61  ;;  %v2864_v61 = vpop.permute.xlu0 %2863 }
 0x5c9   : > { %10781 = vmatmul.mubr.bf16.gmra.mrb[132].mxu1 %v11358_v39 }
 0x5ca   : > { %10784 = vmatprep.mubr.bf16.mxu1 %v11359_v47 }
 0x5d1   : > { %10785 = vmatmul.mubr.bf16.gmra.mrb[136].mxu1 %v11360_v19  ;;  %v2869_v19 = vpop.permute.xlu1 %2868 }
 0x5d2   : > { %10788 = vmatprep.mubr.bf16.mxu1 %v11361_v22  ;;  %v2874_v22 = vpop.permute.xlu0 %2873 }
 0x5d9   : > { %10789 = vmatmul.mubr.bf16.gmra.mrb[140].mxu1 %v11362_v24 }
 0x5da   : > { %10792 = vmatprep.mubr.bf16.mxu1 %v11363_v4 }
 0x5e1   : > { %10793 = vmatmul.mubr.bf16.gmra.mrb[144].mxu1 %v11364_v42  ;;  %v2879_v42 = vpop.permute.xlu1 %2878 }
 0x5e2   : > { %10796 = vmatprep.mubr.bf16.mxu1 %v11365_v18 }
 0x5e9   : > { %10797 = vmatmul.mubr.bf16.gmra.mrb[148].mxu1 %v11366_v3 }
 0x5ea   : > { %10800 = vmatprep.mubr.bf16.mxu1 %v11367_v56  ;;  %v13113_v56 = vpop.permute.xlu0 %2883 }
 0x5ee   : > { %v2894_v23 = vpop.permute.xlu0 %2893 }
 0x5f1   : > { %10801 = vmatmul.mubr.bf16.gmra.mrb[152].mxu1 %v11368_v53  ;;  %v13115_v53 = vpop.permute.xlu1 %2888 }
 0x5f2   : > { %10804 = vmatprep.mubr.bf16.mxu1 %v11369_v5 }
 0x5f9   : > { %10805 = vmatmul.mubr.bf16.gmra.mrb[156].mxu1 %v11370_v7 }
 0x5fa   : > { %10808 = vmatprep.mubr.bf16.mxu1 %v11371_v40 }
 0x601   : > { %10809 = vmatmul.mubr.bf16.gmra.mrb[160].mxu1 %v11372_v52 }
 0x602   : > { %10812 = vmatprep.mubr.bf16.mxu1 %v11373_v59  ;;  %v13125_v59 = vpop.permute.xlu1 %2898 }
 0x609   : > { %10813 = vmatmul.mubr.bf16.gmra.mrb[164].mxu1 %v11374_v45 }
 0x60a   : > { %10816 = vmatprep.mubr.bf16.mxu1 %v11375_v51 }
 0x611   : > { %10817 = vmatmul.mubr.bf16.gmra.mrb[168].mxu1 %v11376_v6 }
 0x612   : > { %10820 = vmatprep.mubr.bf16.mxu1 %v11377_v60  ;;  %v13127_v60 = vpop.permute.xlu0 %2903 }
 0x619   : > { %10821 = vmatmul.mubr.bf16.gmra.mrb[172].mxu1 %v11378_v10 }
 0x61a   : > { %10824 = vmatprep.mubr.bf16.mxu1 %v11379_v31 }
 0x621   : > { %10825 = vmatmul.mubr.bf16.gmra.mrb[176].mxu1 %v11380_v26 }
 0x622   : > { %10828 = vmatprep.mubr.bf16.mxu1 %v11381_v25 }
 0x629   : > { %10829 = vmatmul.mubr.bf16.gmra.mrb[180].mxu1 %v11382_v16 }
 0x62a   : > { %10832 = vmatprep.mubr.bf16.mxu1 %v11383_v35  ;;  %v13129_v35 = vpop.permute.xlu1 %2908 }
 0x631   : > { %10833 = vmatmul.mubr.bf16.gmra.mrb[184].mxu1 %v11384_v13  ;;  %v4673_v13 = vld [vmem:[#allocation2 + $0x110] sm:$0xff] }
 0x632   : > { %10836 = vmatprep.mubr.bf16.mxu1 %v11385_v34 }
 0x639   : > { %10837 = vmatmul.mubr.bf16.gmra.mrb[188].mxu1 %v11386_v44 }
 0x63a   : > { %10840 = vmatprep.mubr.bf16.mxu1 %v11387_v58 }
 0x641   : > { %10841 = vmatmul.mubr.bf16.gmra.mrb[192].mxu1 %v11388_v49  ;;  %v4671_v49 = vld [vmem:[#allocation2 + $0x100] sm:$0xff] }
 0x642   : > { %10844 = vmatprep.mubr.bf16.mxu1 %v11389_v41 }
 0x649   : > { %10845 = vmatmul.mubr.bf16.gmra.mrb[196].mxu1 %v11390_v28 }
 0x64a   : > { %10848 = vmatprep.mubr.bf16.mxu1 %v11391_v11  ;;  %v4674_v11 = vld [vmem:[#allocation2 + $0x118] sm:$0xff] }
 0x651   : > { %10849 = vmatmul.mubr.bf16.gmra.mrb[200].mxu1 %v11392_v21 }
 0x65c   : > { %v13057_v15 = vpop.f32.mrb[100].mxu1 }
 0x65d   : > { %15539 = vst [vmem:[#allocation26_spill] sm:$0xff] %v13057_v15  ;;  %v13059_v0 = vpop.f32.mrb[101].mxu1 }
 0x65e   : > { %v13061_v63 = vpop.f32.mrb[102].mxu1 }
 0x65f   : > { %v13063_v50 = vpop.f32.mrb[103].mxu1 }
 0x660   : > { %15540 = vst [vmem:[#allocation27_spill] sm:$0xff] %v13063_v50  ;;  %v4705_v50 = vld [vmem:[#allocation2 + $0x210] sm:$0xff] }
 0x664   : > { %v13065_v36 = vpop.f32.mrb[104].mxu1 }
 0x665   : > { %15541 = vst [vmem:[#allocation28_spill] sm:$0xff] %v13065_v36  ;;  %v13067_v14 = vpop.f32.mrb[105].mxu1  ;;  %v11400_v36 = vld [vmem:[#allocation3 + $0x1d8] sm:$0xff]  }
 0x666   : > { %15542 = vst [vmem:[#allocation29_spill] sm:$0xff] %v13067_v14  ;;  %v13069_v12 = vpop.f32.mrb[106].mxu1 }
 0x667   : > { %v13071_v54 = vpop.f32.mrb[107].mxu1 }
 0x66c   : > { %v13073_v27 = vpop.f32.mrb[108].mxu1 }
 0x66d   : > { %15543 = vst [vmem:[#allocation12_spill] sm:$0xff] %v13073_v27  ;;  %v13075_v57 = vpop.f32.mrb[109].mxu1 }
 0x66e   : > { %15544 = vst [vmem:[#allocation34_spill] sm:$0xff] %v13075_v57  ;;  %v13077_v29 = vpop.f32.mrb[110].mxu1 }
 0x66f   : > { %15545 = vst [vmem:[#allocation30_spill] sm:$0xff] %v13077_v29  ;;  %v13079_v20 = vpop.f32.mrb[111].mxu1 }
 0x670   : > { %15546 = vst [vmem:[#allocation31_spill] sm:$0xff] %v13079_v20 }
 0x674   : > { %v13081_v9 = vpop.f32.mrb[112].mxu1 }
 0x675   : > { %15547 = vst [vmem:[#allocation32_spill] sm:$0xff] %v13081_v9  ;;  %v13083_v32 = vpop.f32.mrb[113].mxu1  ;;  %v13424_v9 = vld [vmem:[%s15350_s7 + $0x8] sm:$0xff] }
 0x676   : > { %15548 = vst [vmem:[#allocation20_spill] sm:$0xff] %v13083_v32  ;;  %v13085_v62 = vpop.f32.mrb[114].mxu1 }
 0x677   : > { %15549 = vst [vmem:[#allocation18_spill] sm:$0xff] %v13085_v62  ;;  %v13087_v30 = vpop.f32.mrb[115].mxu1 }
 0x678   : > { %15550 = vst [vmem:[#allocation33_spill] sm:$0xff] %v13087_v30 }
 0x67c   : > { %v13089_v37 = vpop.f32.mrb[116].mxu1 }
 0x67d   : > { %15551 = vst [vmem:[#allocation24_spill] sm:$0xff] %v13089_v37  ;;  %v13091_v2 = vpop.f32.mrb[117].mxu1 }
 0x67e   : > { %15552 = vst [vmem:[#allocation13_spill] sm:$0xff] %v13091_v2  ;;  %v13093_v33 = vpop.f32.mrb[118].mxu1 }
 0x67f   : > { %15553 = vst [vmem:[#allocation22_spill] sm:$0xff] %v13093_v33  ;;  %v13095_v8 = vpop.f32.mrb[119].mxu1  ;;  %v2652_v33 = vld [vmem:[%s15349_s6 + $0x318] sm:$0xff] }
 0x680   : > { %15554 = vst [vmem:[#allocation19_spill] sm:$0xff] %v13095_v8 }
 0x684   : > { %v13097_v55 = vpop.f32.mrb[120].mxu1 }
 0x685   : > { %15555 = vst [vmem:[#allocation23_spill] sm:$0xff] %v13097_v55  ;;  %v13099_v1 = vpop.f32.mrb[121].mxu1 }
 0x686   : > { %15556 = vst [vmem:[#allocation21_spill] sm:$0xff] %v13099_v1  ;;  %v13101_v39 = vpop.f32.mrb[122].mxu1 }
 0x687   : > { %15557 = vst [vmem:[#allocation15_spill] sm:$0xff] %v13101_v39  ;;  %v13103_v47 = vpop.f32.mrb[123].mxu1 }
 0x688   : > { %15558 = vst [vmem:[#allocation14_spill] sm:$0xff] %v13103_v47 }
 0x68c   : > { %v13105_v24 = vpop.f32.mrb[124].mxu1 }
 0x68d   : > { %15559 = vst [vmem:[#allocation25_spill] sm:$0xff] %v13105_v24  ;;  %v13107_v4 = vpop.f32.mrb[125].mxu1 }
 0x68e   : > { %15560 = vst [vmem:[#allocation16_spill] sm:$0xff] %v13107_v4  ;;  %v13109_v18 = vpop.f32.mrb[126].mxu1 }
 0x68f   : > { %15561 = vst [vmem:[#allocation17_spill] sm:$0xff] %v13109_v18  ;;  %v13111_v3 = vpop.f32.mrb[127].mxu1 }
 0x690   : > { %15562 = vst [vmem:[#allocation35_spill] sm:$0xff] %v13111_v3  ;;  %v2650_v3 = vld [vmem:[%s15349_s6 + $0x308] sm:$0xff] }
 0x694   : > { %v13117_v5 = vpop.f32.mrb[128].mxu1 }
 0x695   : > { %15563 = vst [vmem:[#allocation36_spill] sm:$0xff] %v13117_v5  ;;  %v13119_v7 = vpop.f32.mrb[129].mxu1  ;;  %v4672_v5 = vld [vmem:[#allocation2 + $0x108] sm:$0xff] }
 0x696   : > { %15564 = vst [vmem:[#allocation37_spill] sm:$0xff] %v13119_v7  ;;  %v13121_v40 = vpop.f32.mrb[130].mxu1  ;;  %v13131_v7 = vpop.permute.xlu0 %2913 }
 0x697   : > { %15565 = vst [vmem:[#allocation38_spill] sm:$0xff] %v13121_v40  ;;  %v13123_v52 = vpop.f32.mrb[131].mxu1 }
 0x698   : > { %15566 = vst [vmem:[#allocation39_spill] sm:$0xff] %v13123_v52 }
 0x69c   : > { %v10782_v45 = vpop.f32.mrb[132].mxu1 }
 0x69d   : > { %v3876_v51 = vadd.f32 %v10782_v45, %v2854_v17  ;;  %v3867_v6 = vpop.f32.mrb[133].mxu1 }
 0x69e   : > { %v3868_v10 = vadd.f32 %v3867_v6, %v2844_v46  ;;  %v10783_v31 = vpop.f32.mrb[134].mxu1 }
 0x69f   : > { %v4284_v26 = vmul.f32 0.2, %v3876_v51  ;;  %v3879_v25 = vadd.f32 %v10783_v31, %v2859_v48  ;;  %v3870_v16 = vpop.f32.mrb[135].mxu1 }
 0x6a0   : > { %v4282_v34 = vmul.f32 0.2, %v3868_v10  ;;  %v3871_v44 = vadd.f32 %v3870_v16, %v2849_v43  ;;  %v13134_v43 = vpop.permute.xlu1 %2918 }
 0x6a1   : > { %v4412_v58 = vmax.f32 %v3876_v51, %v4284_v26  ;;  %v4285_v41 = vmul.f32 0.2, %v3879_v25 }
 0x6a2   : > { %v4410_v28 = vmax.f32 %v3868_v10, %v4282_v34  ;;  %v4283_v21 = vmul.f32 0.2, %v3871_v44  ;;  %v4677_v34 = vld [vmem:[#allocation2 + $0x130] sm:$0xff] }
 0x6a3   : > { %v4801_v17 = vmax.f32 %v4673_v13, %v4412_v58  ;;  %v4413_v45 = vmax.f32 %v3879_v25, %v4285_v41 }
 0x6a4   : > { %v4799_v46 = vmax.f32 %v4671_v49, %v4410_v28  ;;  %v4411_v6 = vmax.f32 %v3871_v44, %v4283_v21  ;;  %v10786_v48 = vpop.f32.mrb[136].mxu1  ;;  %v13139_v28 = vpop.permute.xlu0 %2923  ;;  %v4678_v21 = vld [vmem:[#allocation2 + $0x138] sm:$0xff] }
 0x6a5   : > { %4930 = vst.msk [vmem:[#allocation2 + $0x110] sm:$0xff] %vm4510_vm3, %v4801_v17  ;;  %v4802_v31 = vmax.f32 %v4674_v11, %v4413_v45  ;;  %v3892_v24 = vadd.f32 %v10786_v48, %v2874_v22  ;;  %v3883_v4 = vpop.f32.mrb[137].mxu1  ;;  %v4675_v22 = vld [vmem:[#allocation2 + $0x120] sm:$0xff]  ;;  %v4676_v17 = vld [vmem:[#allocation2 + $0x128] sm:$0xff]  ;;  %v13141_v45 = vpop.permute.xlu1 %2928 }
 0x6a6   : > { %4928 = vst.msk [vmem:[#allocation2 + $0x100] sm:$0xff] %vm4510_vm3, %v4799_v46  ;;  %v4800_v51 = vmax.f32 %v4672_v5, %v4411_v6  ;;  %v3884_v10 = vadd.f32 %v3883_v4, %v2864_v61  ;;  %v10787_v26 = vpop.f32.mrb[138].mxu1 }
 0x6a7   : > { %4931 = vst.msk [vmem:[#allocation2 + $0x118] sm:$0xff] %vm4510_vm3, %v4802_v31  ;;  %v4288_v25 = vmul.f32 0.2, %v3892_v24  ;;  %v3895_v16 = vadd.f32 %v10787_v26, %v2879_v42  ;;  %v3886_v13 = vpop.f32.mrb[139].mxu1 }
 0x6a8   : > { %4929 = vst.msk [vmem:[#allocation2 + $0x108] sm:$0xff] %vm4510_vm3, %v4800_v51  ;;  %v4286_v44 = vmul.f32 0.2, %v3884_v10  ;;  %v3887_v58 = vadd.f32 %v3886_v13, %v2869_v19 }
 0x6a9   : > { %v4416_v49 = vmax.f32 %v3892_v24, %v4288_v25  ;;  %v4289_v41 = vmul.f32 0.2, %v3895_v16 }
 0x6aa   : > { %v4414_v11 = vmax.f32 %v3884_v10, %v4286_v44  ;;  %v4287_v5 = vmul.f32 0.2, %v3887_v58 }
 0x6ab   : > { %v4805_v61 = vmax.f32 %v4677_v34, %v4416_v49  ;;  %v4417_v4 = vmax.f32 %v3895_v16, %v4289_v41  ;;  %v4681_v49 = vld [vmem:[#allocation2 + $0x150] sm:$0xff] }
 0x6ac   : > { %v4803_v42 = vmax.f32 %v4675_v22, %v4414_v11  ;;  %v4415_v46 = vmax.f32 %v3887_v58, %v4287_v5  ;;  %v10790_v6 = vpop.f32.mrb[140].mxu1  ;;  %v5061_v58 = vld [vmem:[#allocation2 + $0x110] sm:$0xff] }
 0x6ad   : > { %4934 = vst.msk [vmem:[#allocation2 + $0x130] sm:$0xff] %vm4510_vm3, %v4805_v61  ;;  %v4806_v48 = vmax.f32 %v4678_v21, %v4417_v4  ;;  %v3908_v19 = vadd.f32 %v10790_v6, %v2894_v23  ;;  %v3899_v24 = vpop.f32.mrb[141].mxu1  ;;  %v5059_v31 = vld [vmem:[#allocation2 + $0x100] sm:$0xff]  ;;  %v13149_v23 = vpop.permute.xlu0 %2933  ;;  %v4682_v4 = vld [vmem:[#allocation2 + $0x158] sm:$0xff] }
 0x6ae   : > { %4932 = vst.msk [vmem:[#allocation2 + $0x120] sm:$0xff] %vm4510_vm3, %v4803_v42  ;;  %v4804_v51 = vmax.f32 %v4676_v17, %v4415_v46  ;;  %v3900_v10 = vadd.f32 %v3899_v24, %v13113_v56  ;;  %v10791_v26 = vpop.f32.mrb[142].mxu1  ;;  %v5251_v25 = vsel %vm4510_vm3, %v5059_v31, -inf  ;;  %v4679_v21 = vld [vmem:[#allocation2 + $0x140] sm:$0xff]  ;;  %v13154_v61 = vpop.permute.xlu1 %2938  ;;  %v5257_v42 = vsel %vm4510_vm3, %v5061_v58, -inf  ;;  %v5062_v24 = vld [vmem:[#allocation2 + $0x118] sm:$0xff] }
 0x6af   : > { %4935 = vst.msk [vmem:[#allocation2 + $0x138] sm:$0xff] %vm4510_vm3, %v4806_v48  ;;  %v4292_v16 = vmul.f32 0.2, %v3908_v19  ;;  %v3911_v13 = vadd.f32 %v10791_v26, %v13125_v59  ;;  %v3902_v34 = vpop.f32.mrb[143].mxu1  ;;  %5252 = vmax.xlane.f32.xlu0 %v5251_v25  ;;  %v5060_v44 = vld [vmem:[#allocation2 + $0x108] sm:$0xff]  ;;  %v11393_v26 = vld [vmem:[#allocation3 + $0x1a0] sm:$0xff]  }
 0x6b0   : > { %4933 = vst.msk [vmem:[#allocation2 + $0x128] sm:$0xff] %vm4510_vm3, %v4804_v51  ;;  %v4290_v22 = vmul.f32 0.2, %v3900_v10  ;;  %v3903_v56 = vadd.f32 %v3902_v34, %v13115_v53  ;;  %v5254_v41 = vsel %vm4510_vm3, %v5060_v44, -inf  ;;  %v4680_v48 = vld [vmem:[#allocation2 + $0x148] sm:$0xff]  ;;  %10852 = vmatprep.mubr.bf16.mxu1 %v11393_v26 }
 0x6b1   : > { %v4420_v11 = vmax.f32 %v3908_v19, %v4292_v16  ;;  %v4293_v5 = vmul.f32 0.2, %v3911_v13  ;;  %5255 = vmax.xlane.f32.xlu1 %v5254_v41  ;;  %v13159_v34 = vpop.permute.xlu0 %2943 }
 0x6b2   : > { %v4418_v59 = vmax.f32 %v3900_v10, %v4290_v22  ;;  %v4291_v17 = vmul.f32 0.2, %v3903_v56  ;;  %v5260_v22 = vsel %vm4510_vm3, %v5062_v24, -inf  ;;  %v4686_v24 = vld [vmem:[#allocation2 + $0x178] sm:$0xff] }
 0x6b3   : > { %v4809_v46 = vmax.f32 %v4681_v49, %v4420_v11  ;;  %v4421_v6 = vmax.f32 %v3911_v13, %v4293_v5  ;;  %5258 = vmax.xlane.f32.xlu0 %v5257_v42  ;;  %v13167_v5 = vpop.permute.xlu1 %2948 }
 0x6b4   : > { %v4807_v31 = vmax.f32 %v4679_v21, %v4418_v59  ;;  %v4419_v53 = vmax.f32 %v3903_v56, %v4291_v17  ;;  %v10794_v51 = vpop.f32.mrb[144].mxu1  ;;  %v5065_v11 = vld [vmem:[#allocation2 + $0x130] sm:$0xff]  ;;  %v11394_v17 = vld [vmem:[#allocation3 + $0x1a8] sm:$0xff]  }
 0x6b5   : > { %4938 = vst.msk [vmem:[#allocation2 + $0x150] sm:$0xff] %vm4510_vm3, %v4809_v46  ;;  %v4810_v19 = vmax.f32 %v4682_v4, %v4421_v6  ;;  %v3924_v25 = vadd.f32 %v10794_v51, %v13131_v7  ;;  %v3915_v16 = vpop.f32.mrb[145].mxu1  ;;  %v5063_v10 = vld [vmem:[#allocation2 + $0x120] sm:$0xff]  ;;  %10853 = vmatmul.mubr.bf16.gmra.mrb[204].mxu1 %v11394_v17 }
 0x6b6   : > { %4936 = vst.msk [vmem:[#allocation2 + $0x140] sm:$0xff] %vm4510_vm3, %v4807_v31  ;;  %v4808_v44 = vmax.f32 %v4680_v48, %v4419_v53  ;;  %v3916_v13 = vadd.f32 %v3915_v16, %v13127_v60  ;;  %v10795_v58 = vpop.f32.mrb[146].mxu1  ;;  %v5263_v49 = vsel %vm4510_vm3, %v5063_v10, -inf  ;;  %v5066_v21 = vld [vmem:[#allocation2 + $0x138] sm:$0xff]  ;;  %v4685_v60 = vld [vmem:[#allocation2 + $0x170] sm:$0xff]  ;;  %v4683_v46 = vld [vmem:[#allocation2 + $0x160] sm:$0xff]  ;;  %v2954_v10 = vpop.permute.xlu0 %2953 }
 0x6b7   : > { %4939 = vst.msk [vmem:[#allocation2 + $0x158] sm:$0xff] %vm4510_vm3, %v4810_v19  ;;  %v4296_v56 = vmul.f32 0.2, %v3924_v25  ;;  %v3927_v7 = vadd.f32 %v10795_v58, %v13134_v43  ;;  %v3918_v41 = vpop.f32.mrb[147].mxu1  ;;  %5264 = vmax.xlane.f32.xlu1 %v5263_v49  ;;  %5261 = vmax.xlane.f32.xlu0 %v5260_v22  ;;  %v5269_v31 = vsel %vm4510_vm3, %v5065_v11, -inf  ;;  %v5272_v53 = vsel %vm4510_vm3, %v5066_v21, -inf }
 0x6b8   : > { %4937 = vst.msk [vmem:[#allocation2 + $0x148] sm:$0xff] %vm4510_vm3, %v4808_v44  ;;  %v4294_v59 = vmul.f32 0.2, %v3916_v13  ;;  %v3919_v4 = vadd.f32 %v3918_v41, %v13129_v35  ;;  %v4684_v19 = vld [vmem:[#allocation2 + $0x168] sm:$0xff] }
 0x6b9   : > { %v4424_v42 = vmax.f32 %v3924_v25, %v4296_v56  ;;  %v4297_v6 = vmul.f32 0.2, %v3927_v7  ;;  %v5064_v16 = vld [vmem:[#allocation2 + $0x128] sm:$0xff]  ;;  %v2959_v56 = vpop.permute.xlu1 %2958 }
 0x6ba   : > { %v4422_v48 = vmax.f32 %v3916_v13, %v4294_v59  ;;  %v4295_v43 = vmul.f32 0.2, %v3919_v4 }
 0x6bb   : > { %v4813_v51 = vmax.f32 %v4685_v60, %v4424_v42  ;;  %v4425_v26 = vmax.f32 %v3927_v7, %v4297_v6  ;;  %5270 = vmax.xlane.f32.xlu1 %v5269_v31  ;;  %5273 = vmax.xlane.f32.xlu0 %v5272_v53  ;;  %v5266_v60 = vsel %vm4510_vm3, %v5064_v16, -inf  ;;  %v13183_v31 = vpop.permute.xlu0 %2963 }
 0x6bc   : > { %v4811_v35 = vmax.f32 %v4683_v46, %v4422_v48  ;;  %v4423_v44 = vmax.f32 %v3919_v4, %v4295_v43  ;;  %v10798_v25 = vpop.f32.mrb[148].mxu1  ;;  %v4689_v46 = vld [vmem:[#allocation2 + $0x190] sm:$0xff] }
 0x6bd   : > { %4942 = vst.msk [vmem:[#allocation2 + $0x170] sm:$0xff] %vm4510_vm3, %v4813_v51  ;;  %v4814_v13 = vmax.f32 %v4686_v24, %v4425_v26  ;;  %v3940_v58 = vadd.f32 %v10798_v25, %v13149_v23  ;;  %v3931_v49 = vpop.f32.mrb[149].mxu1  ;;  %v5067_v22 = vld [vmem:[#allocation2 + $0x140] sm:$0xff]  ;;  %v5069_v23 = vld [vmem:[#allocation2 + $0x150] sm:$0xff]  ;;  %v4690_v51 = vld [vmem:[#allocation2 + $0x198] sm:$0xff] }
 0x6be   : > { %4940 = vst.msk [vmem:[#allocation2 + $0x160] sm:$0xff] %vm4510_vm3, %v4811_v35  ;;  %v4812_v41 = vmax.f32 %v4684_v19, %v4423_v44  ;;  %v3932_v7 = vadd.f32 %v3931_v49, %v13139_v28  ;;  %v10799_v11 = vpop.f32.mrb[150].mxu1  ;;  %v5275_v21 = vsel %vm4510_vm3, %v5067_v22, -inf  ;;  %v5070_v42 = vld [vmem:[#allocation2 + $0x158] sm:$0xff]  ;;  %v4687_v24 = vld [vmem:[#allocation2 + $0x180] sm:$0xff]  ;;  %v4688_v44 = vld [vmem:[#allocation2 + $0x188] sm:$0xff] }
 0x6bf   : > { %4943 = vst.msk [vmem:[#allocation2 + $0x178] sm:$0xff] %vm4510_vm3, %v4814_v13  ;;  %v4300_v59 = vmul.f32 0.2, %v3940_v58  ;;  %v3943_v4 = vadd.f32 %v10799_v11, %v13154_v61  ;;  %v3934_v17 = vpop.f32.mrb[151].mxu1  ;;  %5276 = vmax.xlane.f32.xlu1 %v5275_v21  ;;  %5267 = vmax.xlane.f32.xlu0 %v5266_v60  ;;  %v5281_v61 = vsel %vm4510_vm3, %v5069_v23, -inf  ;;  %v5284_v19 = vsel %vm4510_vm3, %v5070_v42, -inf  ;;  %v13187_v13 = vpop.permute.xlu1 %2968 }
 0x6c0   : > { %4941 = vst.msk [vmem:[#allocation2 + $0x168] sm:$0xff] %vm4510_vm3, %v4812_v41  ;;  %v4298_v6 = vmul.f32 0.2, %v3932_v7  ;;  %v3935_v28 = vadd.f32 %v3934_v17, %v13141_v45  ;;  %v5068_v25 = vld [vmem:[#allocation2 + $0x148] sm:$0xff] }
 0x6c1   : > { %v4428_v48 = vmax.f32 %v3940_v58, %v4300_v59  ;;  %v4301_v43 = vmul.f32 0.2, %v3943_v4  ;;  %v5278_v17 = vsel %vm4510_vm3, %v5068_v25, -inf }
 0x6c2   : > { %v4426_v53 = vmax.f32 %v3932_v7, %v4298_v6  ;;  %v4299_v26 = vmul.f32 0.2, %v3935_v28 }
 0x6c3   : > { %v4817_v16 = vmax.f32 %v4689_v46, %v4428_v48  ;;  %v4429_v35 = vmax.f32 %v3943_v4, %v4301_v43  ;;  %5282 = vmax.xlane.f32.xlu1 %v5281_v61  ;;  %5285 = vmax.xlane.f32.xlu0 %v5284_v19  ;;  %v4693_v48 = vld [vmem:[#allocation2 + $0x1b0] sm:$0xff]  ;;  %v4694_v19 = vld [vmem:[#allocation2 + $0x1b8] sm:$0xff] }
 0x6c4   : > { %v4815_v45 = vmax.f32 %v4687_v24, %v4426_v53  ;;  %v4427_v58 = vmax.f32 %v3935_v28, %v4299_v26  ;;  %v10802_v49 = vpop.f32.mrb[152].mxu1  ;;  %v2974_v28 = vpop.permute.xlu0 %2973  ;;  %v4691_v53 = vld [vmem:[#allocation2 + $0x1a0] sm:$0xff] }
 0x6c5   : > { %4946 = vst.msk [vmem:[#allocation2 + $0x190] sm:$0xff] %vm4510_vm3, %v4817_v16  ;;  %v4818_v22 = vmax.f32 %v4690_v51, %v4429_v35  ;;  %v3956_v41 = vadd.f32 %v10802_v49, %v2954_v10  ;;  %v3947_v7 = vpop.f32.mrb[153].mxu1  ;;  %v5071_v11 = vld [vmem:[#allocation2 + $0x160] sm:$0xff]  ;;  %v5073_v10 = vld [vmem:[#allocation2 + $0x170] sm:$0xff]  ;;  %v2979_v26 = vpop.permute.xlu1 %2978 }
 0x6c6   : > { %4944 = vst.msk [vmem:[#allocation2 + $0x180] sm:$0xff] %vm4510_vm3, %v4815_v45  ;;  %v4816_v21 = vmax.f32 %v4688_v44, %v4427_v58  ;;  %v3948_v60 = vadd.f32 %v3947_v7, %v13159_v34  ;;  %v10803_v59 = vpop.f32.mrb[154].mxu1  ;;  %v5287_v4 = vsel %vm4510_vm3, %v5071_v11, -inf  ;;  %v5074_v6 = vld [vmem:[#allocation2 + $0x178] sm:$0xff]  ;;  %v4692_v45 = vld [vmem:[#allocation2 + $0x1a8] sm:$0xff] }
 0x6c7   : > { %4947 = vst.msk [vmem:[#allocation2 + $0x198] sm:$0xff] %vm4510_vm3, %v4818_v22  ;;  %v4304_v23 = vmul.f32 0.2, %v3956_v41  ;;  %v3959_v42 = vadd.f32 %v10803_v59, %v2959_v56  ;;  %v3950_v46 = vpop.f32.mrb[155].mxu1  ;;  %5288 = vmax.xlane.f32.xlu1 %v5287_v4  ;;  %5279 = vmax.xlane.f32.xlu0 %v5278_v17  ;;  %v5293_v56 = vsel %vm4510_vm3, %v5073_v10, -inf  ;;  %v5296_v35 = vsel %vm4510_vm3, %v5074_v6, -inf }
 0x6c8   : > { %4945 = vst.msk [vmem:[#allocation2 + $0x188] sm:$0xff] %vm4510_vm3, %v4816_v21  ;;  %v4302_v24 = vmul.f32 0.2, %v3948_v60  ;;  %v3951_v34 = vadd.f32 %v3950_v46, %v13167_v5  ;;  %v5072_v58 = vld [vmem:[#allocation2 + $0x168] sm:$0xff] }
 0x6c9   : > { %v4432_v43 = vmax.f32 %v3956_v41, %v4304_v23  ;;  %v4305_v51 = vmul.f32 0.2, %v3959_v42 }
 0x6ca   : > { %v4430_v61 = vmax.f32 %v3948_v60, %v4302_v24  ;;  %v4303_v16 = vmul.f32 0.2, %v3951_v34  ;;  %v2984_v60 = vpop.permute.xlu0 %2983  ;;  %v2989_v24 = vpop.permute.xlu1 %2988 }
 0x6cb   : > { %v4821_v44 = vmax.f32 %v4693_v48, %v4432_v43  ;;  %v4433_v25 = vmax.f32 %v3959_v42, %v4305_v51  ;;  %5294 = vmax.xlane.f32.xlu1 %v5293_v56  ;;  %5297 = vmax.xlane.f32.xlu0 %v5296_v35  ;;  %v5290_v42 = vsel %vm4510_vm3, %v5072_v58, -inf  ;;  %v4695_v51 = vld [vmem:[#allocation2 + $0x1c0] sm:$0xff] }
 0x6cc   : > { %v4819_v49 = vmax.f32 %v4691_v53, %v4430_v61  ;;  %v4431_v22 = vmax.f32 %v3951_v34, %v4303_v16  ;;  %v10806_v5 = vpop.f32.mrb[156].mxu1  ;;  %v4697_v34 = vld [vmem:[#allocation2 + $0x1d0] sm:$0xff]  ;;  %v4698_v16 = vld [vmem:[#allocation2 + $0x1d8] sm:$0xff] }
 0x6cd   : > { %4950 = vst.msk [vmem:[#allocation2 + $0x1b0] sm:$0xff] %vm4510_vm3, %v4821_v44  ;;  %v4822_v41 = vmax.f32 %v4694_v19, %v4433_v25  ;;  %v3972_v7 = vadd.f32 %v10806_v5, %v2974_v28  ;;  %v3963_v11 = vpop.f32.mrb[157].mxu1  ;;  %v5075_v21 = vld [vmem:[#allocation2 + $0x180] sm:$0xff]  ;;  %v5077_v28 = vld [vmem:[#allocation2 + $0x190] sm:$0xff] }
 0x6ce   : > { %4948 = vst.msk [vmem:[#allocation2 + $0x1a0] sm:$0xff] %vm4510_vm3, %v4819_v49  ;;  %v4820_v59 = vmax.f32 %v4692_v45, %v4431_v22  ;;  %v3964_v4 = vadd.f32 %v3963_v11, %v13183_v31  ;;  %v10807_v17 = vpop.f32.mrb[158].mxu1  ;;  %v5299_v23 = vsel %vm4510_vm3, %v5075_v21, -inf  ;;  %v5078_v48 = vld [vmem:[#allocation2 + $0x198] sm:$0xff]  ;;  %v4696_v45 = vld [vmem:[#allocation2 + $0x1c8] sm:$0xff]  ;;  %v2994_v49 = vpop.permute.xlu0 %2993 }
 0x6cf   : > { %4951 = vst.msk [vmem:[#allocation2 + $0x1b8] sm:$0xff] %vm4510_vm3, %v4822_v41  ;;  %v4308_v46 = vmul.f32 0.2, %v3972_v7  ;;  %v3975_v10 = vadd.f32 %v10807_v17, %v2979_v26  ;;  %v3966_v6 = vpop.f32.mrb[159].mxu1  ;;  %5300 = vmax.xlane.f32.xlu1 %v5299_v23  ;;  %5291 = vmax.xlane.f32.xlu0 %v5290_v42  ;;  %v5305_v26 = vsel %vm4510_vm3, %v5077_v28, -inf  ;;  %v5308_v35 = vsel %vm4510_vm3, %v5078_v48, -inf }
 0x6d0   : > { %4949 = vst.msk [vmem:[#allocation2 + $0x1a8] sm:$0xff] %vm4510_vm3, %v4820_v59  ;;  %v4306_v43 = vmul.f32 0.2, %v3964_v4  ;;  %v3967_v31 = vadd.f32 %v3966_v6, %v13187_v13  ;;  %v5076_v58 = vld [vmem:[#allocation2 + $0x188] sm:$0xff]  ;;  %v2999_v59 = vpop.permute.xlu1 %2998 }
 0x6d1   : > { %v4436_v53 = vmax.f32 %v3972_v7, %v4308_v46  ;;  %v4309_v61 = vmul.f32 0.2, %v3975_v10  ;;  %v5302_v46 = vsel %vm4510_vm3, %v5076_v58, -inf }
 0x6d2   : > { %v4434_v19 = vmax.f32 %v3964_v4, %v4306_v43  ;;  %v4307_v56 = vmul.f32 0.2, %v3967_v31  ;;  %v4701_v43 = vld [vmem:[#allocation2 + $0x1f0] sm:$0xff] }
 0x6d3   : > { %v4825_v44 = vmax.f32 %v4697_v34, %v4436_v53  ;;  %v4437_v25 = vmax.f32 %v3975_v10, %v4309_v61  ;;  %5306 = vmax.xlane.f32.xlu1 %v5305_v26  ;;  %5309 = vmax.xlane.f32.xlu0 %v5308_v35 }
 0x6d4   : > { %v4823_v22 = vmax.f32 %v4695_v51, %v4434_v19  ;;  %v4435_v5 = vmax.f32 %v3967_v31, %v4307_v56  ;;  %v10810_v13 = vpop.f32.mrb[160].mxu1  ;;  %v5081_v48 = vld [vmem:[#allocation2 + $0x1b0] sm:$0xff]  ;;  %v4699_v51 = vld [vmem:[#allocation2 + $0x1e0] sm:$0xff] }
 0x6d5   : > { %4954 = vst.msk [vmem:[#allocation2 + $0x1d0] sm:$0xff] %vm4510_vm3, %v4825_v44  ;;  %v4826_v41 = vmax.f32 %v4698_v16, %v4437_v25  ;;  %v3988_v7 = vadd.f32 %v10810_v13, %v2994_v49  ;;  %v3979_v11 = vpop.f32.mrb[161].mxu1  ;;  %v5079_v21 = vld [vmem:[#allocation2 + $0x1a0] sm:$0xff]  ;;  %v4702_v16 = vld [vmem:[#allocation2 + $0x1f8] sm:$0xff]  ;;  %v5317_v26 = vsel %vm4510_vm3, %v5081_v48, -inf }
 0x6d6   : > { %4952 = vst.msk [vmem:[#allocation2 + $0x1c0] sm:$0xff] %vm4510_vm3, %v4823_v22  ;;  %v4824_v4 = vmax.f32 %v4696_v45, %v4435_v5  ;;  %v3980_v17 = vadd.f32 %v3979_v11, %v2984_v60  ;;  %v10811_v23 = vpop.f32.mrb[162].mxu1  ;;  %v5311_v42 = vsel %vm4510_vm3, %v5079_v21, -inf  ;;  %v5082_v34 = vld [vmem:[#allocation2 + $0x1b8] sm:$0xff]  ;;  %v4700_v45 = vld [vmem:[#allocation2 + $0x1e8] sm:$0xff]  ;;  %v2617_v48 = vld [vmem:[%s15349_s6 + $0x200] sm:$0xff] }
 0x6d7   : > { %4955 = vst.msk [vmem:[#allocation2 + $0x1d8] sm:$0xff] %vm4510_vm3, %v4826_v41  ;;  %v4312_v10 = vmul.f32 0.2, %v3988_v7  ;;  %v3991_v6 = vadd.f32 %v10811_v23, %v2999_v59  ;;  %v3982_v28 = vpop.f32.mrb[163].mxu1  ;;  %5312 = vmax.xlane.f32.xlu1 %v5311_v42  ;;  %5303 = vmax.xlane.f32.xlu0 %v5302_v46  ;;  %v5320_v35 = vsel %vm4510_vm3, %v5082_v34, -inf  ;;  %v5080_v58 = vld [vmem:[#allocation2 + $0x1a8] sm:$0xff] }
 0x6d8   : > { %4953 = vst.msk [vmem:[#allocation2 + $0x1c8] sm:$0xff] %vm4510_vm3, %v4824_v4  ;;  %v4310_v31 = vmul.f32 0.2, %v3980_v17  ;;  %v3983_v53 = vadd.f32 %v3982_v28, %v2989_v24 }
 0x6d9   : > { %v4440_v60 = vmax.f32 %v3988_v7, %v4312_v10  ;;  %v4313_v61 = vmul.f32 0.2, %v3991_v6  ;;  %v5314_v7 = vsel %vm4510_vm3, %v5080_v58, -inf  ;;  %v2624_v58 = vld [vmem:[%s15349_s6 + $0x238] sm:$0xff] }
 0x6da   : > { %v4438_v19 = vmax.f32 %v3980_v17, %v4310_v31  ;;  %v4311_v56 = vmul.f32 0.2, %v3983_v53 }
 0x6db   : > { %v4829_v44 = vmax.f32 %v4701_v43, %v4440_v60  ;;  %v4441_v25 = vmax.f32 %v3991_v6, %v4313_v61  ;;  %5318 = vmax.xlane.f32.xlu1 %v5317_v26  ;;  %5321 = vmax.xlane.f32.xlu0 %v5320_v35  ;;  %v2618_v43 = vld [vmem:[%s15349_s6 + $0x208] sm:$0xff]  ;;  %v2619_v60 = vld [vmem:[%s15349_s6 + $0x210] sm:$0xff]  ;;  %v2625_v35 = vld [vmem:[%s15349_s6 + $0x240] sm:$0xff] }
 0x6dc   : > { %v4827_v49 = vmax.f32 %v4699_v51, %v4438_v19  ;;  %v4439_v22 = vmax.f32 %v3983_v53, %v4311_v56  ;;  %v5085_v11 = vld [vmem:[#allocation2 + $0x1d0] sm:$0xff]  ;;  %v13228_v28 = vpop.f32.mrb[164].mxu1  ;;  %v2621_v51 = vld [vmem:[%s15349_s6 + $0x220] sm:$0xff]  ;;  %v2620_v19 = vld [vmem:[%s15349_s6 + $0x218] sm:$0xff] }
 0x6dd   : > { %4958 = vst.msk [vmem:[#allocation2 + $0x1f0] sm:$0xff] %vm4510_vm3, %v4829_v44  ;;  %v4830_v24 = vmax.f32 %v4702_v16, %v4441_v25  ;;  %v5083_v5 = vld [vmem:[#allocation2 + $0x1c0] sm:$0xff]  ;;  %v5329_v59 = vsel %vm4510_vm3, %v5085_v11, -inf  ;;  %v13233_v34 = vpop.f32.mrb[165].mxu1  ;;  %v2623_v56 = vld [vmem:[%s15349_s6 + $0x230] sm:$0xff]  ;;  %v2622_v26 = vld [vmem:[%s15349_s6 + $0x228] sm:$0xff] }
 0x6de   : > { %4956 = vst.msk [vmem:[#allocation2 + $0x1e0] sm:$0xff] %vm4510_vm3, %v4827_v49  ;;  %v4828_v13 = vmax.f32 %v4700_v45, %v4439_v22  ;;  %v5323_v41 = vsel %vm4510_vm3, %v5083_v5, -inf  ;;  %v5086_v21 = vld [vmem:[#allocation2 + $0x1d8] sm:$0xff]  ;;  %v13238_v31 = vpop.f32.mrb[166].mxu1  ;;  %v2627_v22 = vld [vmem:[%s15349_s6 + $0x250] sm:$0xff]  ;;  %v2629_v5 = vld [vmem:[%s15349_s6 + $0x260] sm:$0xff] }
 0x6df   : > { %4959 = vst.msk [vmem:[#allocation2 + $0x1f8] sm:$0xff] %vm4510_vm3, %v4830_v24  ;;  %5324 = vmax.xlane.f32.xlu1 %v5323_v41  ;;  %5315 = vmax.xlane.f32.xlu0 %v5314_v7  ;;  %v5332_v4 = vsel %vm4510_vm3, %v5086_v21, -inf  ;;  %v5084_v17 = vld [vmem:[#allocation2 + $0x1c8] sm:$0xff]  ;;  %v13240_v53 = vpop.f32.mrb[167].mxu1  ;;  %v2628_v11 = vld [vmem:[%s15349_s6 + $0x258] sm:$0xff] }
 0x6e0   : > { %4957 = vst.msk [vmem:[#allocation2 + $0x1e8] sm:$0xff] %vm4510_vm3, %v4828_v13  ;;  %v5326_v46 = vsel %vm4510_vm3, %v5084_v17, -inf  ;;  %v2626_v24 = vld [vmem:[%s15349_s6 + $0x248] sm:$0xff]  ;;  %v2632_v17 = vld [vmem:[%s15349_s6 + $0x278] sm:$0xff] }
 0x6e3   : > { %5330 = vmax.xlane.f32.xlu1 %v5329_v59  ;;  %5333 = vmax.xlane.f32.xlu0 %v5332_v4  ;;  %v2630_v59 = vld [vmem:[%s15349_s6 + $0x268] sm:$0xff] }
 0x6e4   : > { %v5089_v10 = vld [vmem:[#allocation2 + $0x1f0] sm:$0xff]  ;;  %v13248_v61 = vpop.f32.mrb[168].mxu1 }
 0x6e5   : > { %v5087_v23 = vld [vmem:[#allocation2 + $0x1e0] sm:$0xff]  ;;  %v5341_v6 = vsel %vm4510_vm3, %v5089_v10, -inf  ;;  %v13253_v16 = vpop.f32.mrb[169].mxu1 }
 0x6e6   : > { %v5335_v42 = vsel %vm4510_vm3, %v5087_v23, -inf  ;;  %v13264_v44 = vpop.f32.mrb[170].mxu1 }
 0x6e7   : > { %5336 = vmax.xlane.f32.xlu1 %v5335_v42  ;;  %5327 = vmax.xlane.f32.xlu0 %v5326_v46  ;;  %v13266_v25 = vpop.f32.mrb[171].mxu1  ;;  %v2634_v42 = vld [vmem:[%s15349_s6 + $0x288] sm:$0xff] }
 0x6eb   : > { %5342 = vmax.xlane.f32.xlu1 %v5341_v6 }
 0x6ec   : > { %v13268_v45 = vpop.f32.mrb[172].mxu1 }
 0x6ed   : > { %v13273_v49 = vpop.f32.mrb[173].mxu1 }
 0x6ee   : > { %v13284_v13 = vpop.f32.mrb[174].mxu1 }
 0x6ef   : > { %v13286_v41 = vpop.f32.mrb[175].mxu1 }
 0x6f4   : > { %v13288_v7 = vpop.f32.mrb[176].mxu1 }
 0x6f5   : > { %v13293_v21 = vpop.f32.mrb[177].mxu1 }
 0x6f6   : > { %v13298_v4 = vpop.f32.mrb[178].mxu1 }
 0x6f7   : > { %v13303_v23 = vpop.f32.mrb[179].mxu1 }
 0x6fc   : > { %3003 = vperm.xlu1 %11328, %v2617_v48   ;;  %v13308_v46 = vpop.f32.mrb[180].mxu1  ;;  %v2636_v48 = vld [vmem:[%s15349_s6 + $0x298] sm:$0xff] }
 0x6fd   : > { %3008 = vperm.xlu0 %11327, %v2618_v43   ;;  %v13310_v10 = vpop.f32.mrb[181].mxu1 }
 0x6fe   : > { %v13312_v6 = vpop.f32.mrb[182].mxu1 }
 0x6ff   : > { %v13317_v43 = vpop.f32.mrb[183].mxu1 }
 0x700   : > { %3013 = vperm.xlu1 %11328, %v2619_v60   ;;  %v2638_v60 = vld [vmem:[%s15349_s6 + $0x2a8] sm:$0xff] }
 0x701   : > { %3023 = vperm.xlu0 %11327, %v2621_v51  }
 0x704   : > { %3018 = vperm.xlu1 %11328, %v2620_v19   ;;  %v13322_v51 = vpop.f32.mrb[184].mxu1 }
 0x705   : > { %3033 = vperm.xlu0 %11327, %v2623_v56   ;;  %v13324_v19 = vpop.f32.mrb[185].mxu1 }
 0x706   : > { %v13326_v56 = vpop.f32.mrb[186].mxu1 }
 0x708   : > { %3028 = vperm.xlu1 %11328, %v2622_v26   ;;  %v2640_v26 = vld [vmem:[%s15349_s6 + $0x2b8] sm:$0xff] }
 0x709   : > { %3043 = vperm.xlu0 %11327, %v2625_v35   ;;  %v13331_v35 = vpop.f32.mrb[187].mxu1 }
 0x70c   : > { %3038 = vperm.xlu1 %11328, %v2624_v58   ;;  %v5090_v58 = vld [vmem:[#allocation2 + $0x1f8] sm:$0xff] }
 0x70d   : > { %3053 = vperm.xlu0 %11327, %v2627_v22   ;;  %v2642_v22 = vld [vmem:[%s15349_s6 + $0x2c8] sm:$0xff] }
 0x710   : > { %3048 = vperm.xlu1 %11328, %v2626_v24   ;;  %v13336_v24 = vpop.f32.mrb[188].mxu1 }
 0x711   : > { %3063 = vperm.xlu0 %11327, %v2629_v5   ;;  %v5344_v5 = vsel %vm4510_vm3, %v5090_v58, -inf  ;;  %v2646_v58 = vld [vmem:[%s15349_s6 + $0x2e8] sm:$0xff] }
 0x714   : > { %3058 = vperm.xlu1 %11328, %v2628_v11   ;;  %v13339_v11 = vpop.f32.mrb[189].mxu1 }
 0x718   : > { %3068 = vperm.xlu1 %11328, %v2630_v59   ;;  %v5088_v59 = vld [vmem:[#allocation2 + $0x1e8] sm:$0xff] }
 0x719   : > { %v5338_v40 = vsel %vm4510_vm3, %v5088_v59, -inf }
 0x71c   : > { %3078 = vperm.xlu1 %11328, %v2632_v17   ;;  %v13341_v17 = vpop.f32.mrb[190].mxu1 }
 0x720   : > { %3088 = vperm.xlu1 %11328, %v2634_v42   ;;  %v11395_v42 = vld [vmem:[#allocation3 + $0x1b0] sm:$0xff]  }
 0x721   : > { %10856 = vmatprep.mubr.bf16.mxu1 %v11395_v42  ;;  %v2648_v42 = vld [vmem:[%s15349_s6 + $0x2f8] sm:$0xff] }
 0x724   : > { %3098 = vperm.xlu1 %11328, %v2636_v48   ;;  %v2644_v48 = vld [vmem:[%s15349_s6 + $0x2d8] sm:$0xff] }
 0x728   : > { %3108 = vperm.xlu1 %11328, %v2638_v60   ;;  %v13346_v60 = vpop.f32.mrb[191].mxu1 }
 0x72c   : > { %3118 = vperm.xlu1 %11328, %v2640_v26   ;;  %v11396_v26 = vld [vmem:[#allocation3 + $0x1b8] sm:$0xff]  }
 0x72d   : > { %10857 = vmatmul.mubr.bf16.gmra.mrb[208].mxu1 %v11396_v26 }
 0x730   : > { %3128 = vperm.xlu1 %11328, %v2642_v22   ;;  %5345 = vmax.xlane.f32.xlu0 %v5344_v5  ;;  %v13352_v22 = vpop.f32.mrb[192].mxu1 }
 0x731   : > { %15567 = vst [vmem:[#allocation40_spill] sm:$0xff] %v13352_v22  ;;  %v13354_v5 = vpop.f32.mrb[193].mxu1  ;;  %v4707_v22 = vld [vmem:[#allocation2 + $0x220] sm:$0xff] }
 0x732   : > { %15568 = vst [vmem:[#allocation41_spill] sm:$0xff] %v13354_v5  ;;  %v13356_v55 = vpop.f32.mrb[194].mxu1 }
 0x733   : > { %v13361_v52 = vpop.f32.mrb[195].mxu1 }
 0x734   : > { %3138 = vperm.xlu1 %11328, %v2644_v48   ;;  %5339 = vmax.xlane.f32.xlu0 %v5338_v40  ;;  %v2553_v40 = vld [vmem:[%s15349_s6] sm:$0xff]  ;;  %v13373_v2 = vpop.f32.mrb[196].mxu1 }
 0x735   : > { %15569 = vst [vmem:[#allocation42_spill] sm:$0xff] %v13373_v2 }
 0x738   : > { %3148 = vperm.xlu1 %11328, %v2646_v58   ;;  %v2649_v58 = vld [vmem:[%s15349_s6 + $0x300] sm:$0xff] }
 0x73c   : > { %3158 = vperm.xlu1 %11328, %v2648_v42   ;;  %v5253_v59 = vpop.xlane.xlu0 %5252 }
 0x73e   : > { %v5256_v48 = vpop.xlane.xlu1 %5255 }
 0x73f   : > { %v5811_v26 = vpack.c.bf16 %v5256_v48, %v5253_v59  ;;  %v13375_v59 = vpop.f32.mrb[197].mxu1 }
 0x740   : > { %2683 = vperm.xlu1 %11328, %v2553_v40   ;;  %v5259_v1 = vpop.xlane.xlu0 %5258  ;;  %v2631_v40 = vld [vmem:[%s15349_s6 + $0x270] sm:$0xff] }
 0x741   : > { %7493 = vmatpush1.bf16.msra.mxu0 %v5811_v26 }
 0x742   : > { %7494 = vmatprep.subr.bf16.mxu0 %v15538_v38 }
 0x744   : > { %3163 = vperm.xlu1 %11328, %v2649_v58   ;;  %v5265_v18 = vpop.xlane.xlu1 %5264  ;;  %v5262_v37 = vpop.xlane.xlu0 %5261 }
 0x745   : > { %v5812_v42 = vpack.c.bf16 %v5262_v37, %v5259_v1  ;;  %v2556_v37 = vld [vmem:[%s15349_s6 + $0x18] sm:$0xff]  ;;  %v13384_v1 = vpop.f32.mrb[198].mxu1 }
 0x746   : > { %v13386_v58 = vpop.f32.mrb[199].mxu1 }
 0x747   : > { %7495 = vmatpush1.bf16.msra.mxu0 %v5812_v42  ;;  %v2633_v42 = vld [vmem:[%s15349_s6 + $0x280] sm:$0xff] }
 0x748   : > { %3168 = vperm.xlu1 %11328, %v2650_v3   ;;  %v5271_v48 = vpop.xlane.xlu1 %5270  ;;  %v5274_v26 = vpop.xlane.xlu0 %5273  ;;  %7496 = vmatprep.subr.bf16.mxu0 %v15538_v38 }
 0x749   : > { %v5814_v30 = vpack.c.bf16 %v5274_v26, %v5271_v48  ;;  %v2654_v48 = vld [vmem:[%s15349_s6 + $0x328] sm:$0xff]  ;;  %v13408_v26 = vpop.f32.mrb[200].mxu1 }
 0x74a   : > { %3073 = vperm.xlu0 %11327, %v2631_v40   ;;  %v2635_v40 = vld [vmem:[%s15349_s6 + $0x290] sm:$0xff]  ;;  %15570 = vst [vmem:[#allocation43_spill] sm:$0xff] %v13408_v26 }
 0x74c   : > { %2698 = vperm.xlu1 %11328, %v2556_v37   ;;  %v5277_v39 = vpop.xlane.xlu1 %5276  ;;  %v5268_v3 = vpop.xlane.xlu0 %5267 }
 0x74d   : > { %v5813_v47 = vpack.c.bf16 %v5268_v3, %v5265_v18  ;;  %v2558_v18 = vld [vmem:[%s15349_s6 + $0x28] sm:$0xff]  ;;  %v13413_v3 = vpop.f32.mrb[201].mxu1 }
 0x74e   : > { %3083 = vperm.xlu0 %11327, %v2633_v42   ;;  %15571 = vst [vmem:[#allocation44_spill] sm:$0xff] %v13413_v3  ;;  %v13419_v29 = vpop.f32.mrb[202].mxu1 }
 0x74f   : > { %7497 = vmatpush1.bf16.msra.mxu0 %v5813_v47  ;;  %v2637_v47 = vld [vmem:[%s15349_s6 + $0x2a0] sm:$0xff]  ;;  %v13431_v32 = vpop.f32.mrb[203].mxu1 }
 0x750   : > { %3178 = vperm.xlu1 %11328, %v2652_v33   ;;  %v5283_v8 = vpop.xlane.xlu1 %5282  ;;  %v5286_v62 = vpop.xlane.xlu0 %5285  ;;  %7498 = vmatprep.subr.bf16.mxu0 %v15538_v38 }
 0x752   : > { %3093 = vperm.xlu0 %11327, %v2635_v40  }
 0x753   : > { %7499 = vmatpush1.bf16.msra.mxu0 %v5814_v30  ;;  %v2639_v30 = vld [vmem:[%s15349_s6 + $0x2b0] sm:$0xff] }
 0x754   : > { %2708 = vperm.xlu1 %11328, %v2558_v18   ;;  %v5289_v37 = vpop.xlane.xlu1 %5288  ;;  %v5280_v42 = vpop.xlane.xlu0 %5279  ;;  %7500 = vmatprep.subr.bf16.mxu0 %v15538_v38 }
 0x755   : > { %v5815_v33 = vpack.c.bf16 %v5280_v42, %v5277_v39  ;;  %v2560_v39 = vld [vmem:[%s15349_s6 + $0x38] sm:$0xff]  ;;  %v11397_v42 = vld [vmem:[#allocation3 + $0x1c0] sm:$0xff]  }
 0x756   : > { %3103 = vperm.xlu0 %11327, %v2637_v47   ;;  %v5816_v47 = vpack.c.bf16 %v5286_v62, %v5283_v8  ;;  %10860 = vmatprep.mubr.bf16.mxu1 %v11397_v42  ;;  %v2641_v8 = vld [vmem:[%s15349_s6 + $0x2c0] sm:$0xff]  ;;  %v2656_v42 = vld [vmem:[%s15349_s6 + $0x338] sm:$0xff] }
 0x757   : > { %7501 = vmatpush1.bf16.msra.mxu0 %v5815_v33  ;;  %v11398_v33 = vld [vmem:[#allocation3 + $0x1c8] sm:$0xff]  }
 0x758   : > { %3188 = vperm.xlu1 %11328, %v2654_v48   ;;  %v5295_v40 = vpop.xlane.xlu1 %5294  ;;  %v5298_v18 = vpop.xlane.xlu0 %5297  ;;  %7502 = vmatprep.subr.bf16.mxu0 %v15538_v38  ;;  %v13429_v48 = vld [vmem:[%s15350_s7 + $0x28] sm:$0xff] }
 0x759   : > { %v9683_v62 = vcombine.high %v13424_v9, %v13429_v48  ;;  %10861 = vmatmul.mubr.bf16.gmra.mrb[212].mxu1 %v11398_v33 }
 0x75a   : > { %3113 = vperm.xlu0 %11327, %v2639_v30  }
 0x75b   : > { %7503 = vmatpush1.bf16.msra.mxu0 %v5816_v47  ;;  %7524 = vmatprep.mubr.bf16.mxu0 %v9683_v62  ;;  %v2643_v47 = vld [vmem:[%s15349_s6 + $0x2d0] sm:$0xff] }
 0x75c   : > { %2718 = vperm.xlu1 %11328, %v2560_v39   ;;  %v5301_v57 = vpop.xlane.xlu1 %5300  ;;  %v5292_v26 = vpop.xlane.xlu0 %5291  ;;  %7504 = vmatprep.subr.bf16.mxu0 %v15538_v38  ;;  %v5818_v39 = vpack.c.bf16 %v5298_v18, %v5295_v40  ;;  %v2647_v40 = vld [vmem:[%s15349_s6 + $0x2f0] sm:$0xff] }
 0x75d   : > { %v5817_v30 = vpack.c.bf16 %v5292_v26, %v5289_v37  ;;  %v2562_v37 = vld [vmem:[%s15349_s6 + $0x48] sm:$0xff]  ;;  %v2645_v26 = vld [vmem:[%s15349_s6 + $0x2e0] sm:$0xff] }
 0x75e   : > { %3123 = vperm.xlu0 %11327, %v2641_v8  }
 0x75f   : > { %7505 = vmatpush1.bf16.msra.mxu0 %v5817_v30 }
 0x760   : > { %3198 = vperm.xlu1 %11328, %v2656_v42   ;;  %v5307_v33 = vpop.xlane.xlu1 %5306  ;;  %v5310_v27 = vpop.xlane.xlu0 %5309  ;;  %7506 = vmatprep.subr.bf16.mxu0 %v15538_v38 }
 0x762   : > { %3133 = vperm.xlu0 %11327, %v2643_v47   ;;  %v11399_v47 = vld [vmem:[#allocation3 + $0x1d0] sm:$0xff]  }
 0x763   : > { %7507 = vmatpush1.bf16.msra.mxu0 %v5818_v39  ;;  %v5820_v39 = vpack.c.bf16 %v5310_v27, %v5307_v33  ;;  %10864 = vmatprep.mubr.bf16.mxu1 %v11399_v47  ;;  %v2555_v27 = vld [vmem:[%s15349_s6 + $0x10] sm:$0xff] }
 0x764   : > { %2728 = vperm.xlu1 %11328, %v2562_v37   ;;  %v5313_v62 = vpop.xlane.xlu1 %5312  ;;  %v5304_v8 = vpop.xlane.xlu0 %5303  ;;  %7508 = vmatprep.subr.bf16.mxu0 %v15538_v38 }
 0x765   : > { %v5819_v30 = vpack.c.bf16 %v5304_v8, %v5301_v57  ;;  %v2554_v57 = vld [vmem:[%s15349_s6 + $0x8] sm:$0xff]  ;;  %10865 = vmatmul.mubr.bf16.gmra.mrb[216].mxu1 %v11400_v36  ;;  %v2651_v36 = vld [vmem:[%s15349_s6 + $0x310] sm:$0xff] }
 0x766   : > { %3143 = vperm.xlu0 %11327, %v2645_v26  }
 0x767   : > { %7509 = vmatpush1.bf16.msra.mxu0 %v5819_v30 }
 0x768   : > { %v5319_v18 = vpop.xlane.xlu1 %5318  ;;  %v5322_v42 = vpop.xlane.xlu0 %5321  ;;  %7510 = vmatprep.subr.bf16.mxu0 %v15538_v38 }
 0x76a   : > { %3153 = vperm.xlu0 %11327, %v2647_v40   ;;  %v5822_v40 = vpack.c.bf16 %v5322_v42, %v5319_v18  ;;  %v11401_v18 = vld [vmem:[#allocation3 + $0x1e0] sm:$0xff]  }
 0x76b   : > { %7511 = vmatpush1.bf16.msra.mxu0 %v5820_v39  ;;  %10868 = vmatprep.mubr.bf16.mxu1 %v11401_v18  ;;  %v4704_v18 = vld [vmem:[#allocation2 + $0x208] sm:$0xff] }
 0x76c   : > { %v5325_v37 = vpop.xlane.xlu1 %5324  ;;  %v5316_v26 = vpop.xlane.xlu0 %5315  ;;  %7512 = vmatprep.subr.bf16.mxu0 %v15538_v38 }
 0x76d   : > { %v5821_v8 = vpack.c.bf16 %v5316_v26, %v5313_v62 }
 0x76e   : > { %2688 = vperm.xlu0 %11327, %v2554_v57   ;;  %v2557_v57 = vld [vmem:[%s15349_s6 + $0x20] sm:$0xff] }
 0x76f   : > { %7513 = vmatpush1.bf16.msra.mxu0 %v5821_v8  ;;  %v11402_v8 = vld [vmem:[#allocation3 + $0x1e8] sm:$0xff]  }
 0x770   : > { %v5331_v33 = vpop.xlane.xlu1 %5330  ;;  %v5334_v30 = vpop.xlane.xlu0 %5333  ;;  %7514 = vmatprep.subr.bf16.mxu0 %v15538_v38  ;;  %10869 = vmatmul.mubr.bf16.gmra.mrb[220].mxu1 %v11402_v8 }
 0x771   : > { %v5824_v42 = vpack.c.bf16 %v5334_v30, %v5331_v33  ;;  %v2559_v30 = vld [vmem:[%s15349_s6 + $0x30] sm:$0xff] }
 0x772   : > { %2693 = vperm.xlu0 %11327, %v2555_v27  }
 0x773   : > { %7515 = vmatpush1.bf16.msra.mxu0 %v5822_v40 }
 0x774   : > { %v13470_v47 = vpop.xlane.xlu1 %5336  ;;  %v5328_v62 = vpop.xlane.xlu0 %5327  ;;  %7516 = vmatprep.subr.bf16.mxu0 %v15538_v38 }
 0x775   : > { %v5823_v39 = vpack.c.bf16 %v5328_v62, %v5325_v37  ;;  %v2653_v37 = vld [vmem:[%s15349_s6 + $0x320] sm:$0xff] }
 0x776   : > { %3173 = vperm.xlu0 %11327, %v2651_v36  }
 0x777   : > { %7517 = vmatpush1.bf16.msra.mxu0 %v5823_v39 }
 0x778   : > { %v13476_v26 = vpop.xlane.xlu1 %5342  ;;  %7518 = vmatprep.subr.bf16.mxu0 %v15538_v38 }
 0x77a   : > { %2703 = vperm.xlu0 %11327, %v2557_v57   ;;  %v4703_v57 = vld [vmem:[#allocation2 + $0x200] sm:$0xff] }
 0x77b   : > { %7519 = vmatpush1.bf16.msra.mxu0 %v5824_v42 }
 0x77c   : > { %v3004_v27 = vpop.permute.xlu1 %3003  ;;  %v3009_v40 = vpop.permute.xlu0 %3008  ;;  %7520 = vmatprep.subr.bf16.mxu0 %v15538_v38 }
 0x77d   : > { %v3996_v36 = vadd.f32 %v13233_v34, %v3004_v27  ;;  %v3999_v62 = vadd.f32 %v13240_v53, %v3009_v40  ;;  %v2655_v40 = vld [vmem:[%s15349_s6 + $0x330] sm:$0xff] }
 0x77e   : > { %3183 = vperm.xlu0 %11327, %v2653_v37  }
 0x77f   : > { %v4314_v39 = vmul.f32 0.2, %v3996_v36  ;;  %v4315_v33 = vmul.f32 0.2, %v3999_v62 }
 0x780   : > { %v3014_v42 = vpop.permute.xlu1 %3013  ;;  %v3024_v3 = vpop.permute.xlu0 %3023 }
 0x781   : > { %v4442_v8 = vmax.f32 %v3996_v36, %v4314_v39  ;;  %v4443_v14 = vmax.f32 %v3999_v62, %v4315_v33  ;;  %v4004_v2 = vadd.f32 %v13228_v28, %v3014_v42  ;;  %v4012_v15 = vadd.f32 %v13253_v16, %v3024_v3 }
 0x782   : > { %2713 = vperm.xlu0 %11327, %v2559_v30   ;;  %v2561_v30 = vld [vmem:[%s15349_s6 + $0x40] sm:$0xff] }
 0x783   : > { %v4831_v34 = vmax.f32 %v4703_v57, %v4442_v8  ;;  %v4832_v53 = vmax.f32 %v4704_v18, %v4443_v14  ;;  %v4316_v37 = vmul.f32 0.2, %v4004_v2  ;;  %v4318_v27 = vmul.f32 0.2, %v4012_v15  ;;  %v4706_v57 = vld [vmem:[#allocation2 + $0x218] sm:$0xff]  ;;  %v4709_v18 = vld [vmem:[#allocation2 + $0x230] sm:$0xff] }
 0x784   : > { %v3019_v5 = vpop.permute.xlu1 %3018  ;;  %v3034_v20 = vpop.permute.xlu0 %3033 }
 0x785   : > { %4960 = vst.msk [vmem:[#allocation2 + $0x200] sm:$0xff] %vm4510_vm3, %v4831_v34  ;;  %4961 = vst.msk [vmem:[#allocation2 + $0x208] sm:$0xff] %vm4510_vm3, %v4832_v53  ;;  %v4444_v28 = vmax.f32 %v4004_v2, %v4316_v37  ;;  %v4446_v36 = vmax.f32 %v4012_v15, %v4318_v27  ;;  %v4007_v16 = vadd.f32 %v13238_v31, %v3019_v5  ;;  %v11403_v34 = vld [vmem:[#allocation3 + $0x1f0] sm:$0xff]   ;;  %v11404_v31 = vld [vmem:[#allocation3 + $0x1f8] sm:$0xff]  }
 0x786   : > { %v4020_v14 = vadd.f32 %v13248_v61, %v3034_v20  ;;  %3193 = vperm.xlu0 %11327, %v2655_v40   ;;  %10872 = vmatprep.mubr.bf16.mxu1 %v11403_v34  ;;  %v2657_v37 = vld [vmem:[%s15349_s6 + $0x340] sm:$0xff]  ;;  %v4708_v27 = vld [vmem:[#allocation2 + $0x228] sm:$0xff]  ;;  %v4713_v34 = vld [vmem:[#allocation2 + $0x250] sm:$0xff] }
 0x787   : > { %v4833_v3 = vmax.f32 %v4705_v50, %v4444_v28  ;;  %v4835_v62 = vmax.f32 %v4707_v22, %v4446_v36  ;;  %v4317_v39 = vmul.f32 0.2, %v4007_v16  ;;  %10873 = vmatmul.mubr.bf16.gmra.mrb[224].mxu1 %v11404_v31  ;;  %v4711_v40 = vld [vmem:[#allocation2 + $0x240] sm:$0xff] }
 0x788   : > { %v4320_v33 = vmul.f32 0.2, %v4020_v14  ;;  %v3029_v42 = vpop.permute.xlu1 %3028  ;;  %v3044_v8 = vpop.permute.xlu0 %3043 }
 0x789   : > { %4962 = vst.msk [vmem:[#allocation2 + $0x210] sm:$0xff] %vm4510_vm3, %v4833_v3  ;;  %4964 = vst.msk [vmem:[#allocation2 + $0x220] sm:$0xff] %vm4510_vm3, %v4835_v62  ;;  %v4445_v15 = vmax.f32 %v4007_v16, %v4317_v39  ;;  %v4015_v50 = vadd.f32 %v13266_v25, %v3029_v42  ;;  %v4028_v2 = vadd.f32 %v13273_v49, %v3044_v8  ;;  %v13511_v62 = vpop.f32.mrb[204].mxu1  ;;  %v4710_v8 = vld [vmem:[#allocation2 + $0x238] sm:$0xff] }
 0x78a   : > { %v4448_v20 = vmax.f32 %v4020_v14, %v4320_v33  ;;  %2723 = vperm.xlu0 %11327, %v2561_v30   ;;  %v13514_v33 = vpop.f32.mrb[205].mxu1 }
 0x78b   : > { %v4834_v61 = vmax.f32 %v4706_v57, %v4445_v15  ;;  %v4319_v5 = vmul.f32 0.2, %v4015_v50  ;;  %v4322_v53 = vmul.f32 0.2, %v4028_v2 }
 0x78c   : > { %v4837_v22 = vmax.f32 %v4709_v18, %v4448_v20  ;;  %v3039_v28 = vpop.permute.xlu1 %3038  ;;  %v3054_v36 = vpop.permute.xlu0 %3053  ;;  %v5092_v16 = vld [vmem:[#allocation2 + $0x208] sm:$0xff] }
 0x78d   : > { %4963 = vst.msk [vmem:[#allocation2 + $0x218] sm:$0xff] %vm4510_vm3, %v4834_v61  ;;  %v4447_v25 = vmax.f32 %v4015_v50, %v4319_v5  ;;  %v4450_v49 = vmax.f32 %v4028_v2, %v4322_v53  ;;  %v4023_v14 = vadd.f32 %v13264_v44, %v3039_v28  ;;  %v4036_v3 = vadd.f32 %v13268_v45, %v3054_v36  ;;  %v4712_v53 = vld [vmem:[#allocation2 + $0x248] sm:$0xff] }
 0x78e   : > { %4966 = vst.msk [vmem:[#allocation2 + $0x230] sm:$0xff] %vm4510_vm3, %v4837_v22  ;;  %3203 = vperm.xlu0 %11327, %v2657_v37   ;;  %v5350_v39 = vsel %vm4510_vm3, %v5092_v16, -inf  ;;  %v4715_v37 = vld [vmem:[#allocation2 + $0x260] sm:$0xff] }
 0x78f   : > { %v4836_v30 = vmax.f32 %v4708_v27, %v4447_v25  ;;  %v4839_v57 = vmax.f32 %v4711_v40, %v4450_v49  ;;  %v4321_v18 = vmul.f32 0.2, %v4023_v14  ;;  %v4324_v42 = vmul.f32 0.2, %v4036_v3  ;;  %5351 = vmax.xlane.f32.xlu1 %v5350_v39 }
 0x790   : > { %v3049_v15 = vpop.permute.xlu1 %3048  ;;  %v3064_v20 = vpop.permute.xlu0 %3063 }
 0x791   : > { %4965 = vst.msk [vmem:[#allocation2 + $0x228] sm:$0xff] %vm4510_vm3, %v4836_v30  ;;  %4968 = vst.msk [vmem:[#allocation2 + $0x240] sm:$0xff] %vm4510_vm3, %v4839_v57  ;;  %v4449_v44 = vmax.f32 %v4023_v14, %v4321_v18  ;;  %v4452_v45 = vmax.f32 %v4036_v3, %v4324_v42  ;;  %v4031_v50 = vadd.f32 %v13286_v41, %v3049_v15  ;;  %v4714_v3 = vld [vmem:[#allocation2 + $0x258] sm:$0xff] }
 0x792   : > { %v4044_v2 = vadd.f32 %v13293_v21, %v3064_v20  ;;  %v5095_v21 = vld [vmem:[#allocation2 + $0x220] sm:$0xff] }
 0x793   : > { %v4838_v31 = vmax.f32 %v4710_v8, %v4449_v44  ;;  %v4841_v61 = vmax.f32 %v4713_v34, %v4452_v45  ;;  %v4323_v22 = vmul.f32 0.2, %v4031_v50  ;;  %v5359_v18 = vsel %vm4510_vm3, %v5095_v21, -inf  ;;  %v4716_v8 = vld [vmem:[#allocation2 + $0x268] sm:$0xff]  ;;  %v4722_v21 = vld [vmem:[#allocation2 + $0x298] sm:$0xff] }
 0x794   : > { %v4326_v5 = vmul.f32 0.2, %v4044_v2  ;;  %v3059_v27 = vpop.permute.xlu1 %3058 }
 0x795   : > { %v5097_v40 = vld [vmem:[#allocation2 + $0x230] sm:$0xff]  ;;  %4967 = vst.msk [vmem:[#allocation2 + $0x238] sm:$0xff] %vm4510_vm3, %v4838_v31  ;;  %4970 = vst.msk [vmem:[#allocation2 + $0x250] sm:$0xff] %vm4510_vm3, %v4841_v61  ;;  %v4451_v28 = vmax.f32 %v4031_v50, %v4323_v22  ;;  %v4039_v16 = vadd.f32 %v13284_v13, %v3059_v27 }
 0x796   : > { %v4454_v36 = vmax.f32 %v4044_v2, %v4326_v5  ;;  %v5365_v41 = vsel %vm4510_vm3, %v5097_v40, -inf  ;;  %v4720_v40 = vld [vmem:[#allocation2 + $0x288] sm:$0xff] }
 0x797   : > { %5366 = vmax.xlane.f32.xlu1 %v5365_v41  ;;  %v4840_v25 = vmax.f32 %v4712_v53, %v4451_v28  ;;  %v4325_v14 = vmul.f32 0.2, %v4039_v16 }
 0x798   : > { %v4843_v49 = vmax.f32 %v4715_v37, %v4454_v36  ;;  %v3069_v39 = vpop.permute.xlu1 %3068  ;;  %v5099_v50 = vld [vmem:[#allocation2 + $0x240] sm:$0xff] }
 0x799   : > { %4969 = vst.msk [vmem:[#allocation2 + $0x248] sm:$0xff] %vm4510_vm3, %v4840_v25  ;;  %v4453_v30 = vmax.f32 %v4039_v16, %v4325_v14  ;;  %v4047_v57 = vadd.f32 %v13303_v23, %v3069_v39  ;;  %v4718_v23 = vld [vmem:[#allocation2 + $0x278] sm:$0xff]  ;;  %v5371_v53 = vsel %vm4510_vm3, %v5099_v50, -inf  ;;  %v5093_v14 = vld [vmem:[#allocation2 + $0x210] sm:$0xff] }
 0x79a   : > { %4972 = vst.msk [vmem:[#allocation2 + $0x260] sm:$0xff] %vm4510_vm3, %v4843_v49  ;;  %v5094_v50 = vld [vmem:[#allocation2 + $0x218] sm:$0xff] }
 0x79b   : > { %5360 = vmax.xlane.f32.xlu1 %v5359_v18  ;;  %v4842_v13 = vmax.f32 %v4714_v3, %v4453_v30  ;;  %v4327_v42 = vmul.f32 0.2, %v4047_v57  ;;  %v4724_v30 = vld [vmem:[#allocation2 + $0x2a8] sm:$0xff]  ;;  %v5353_v18 = vsel %vm4510_vm3, %v5093_v14, -inf }
 0x79c   : > { %v3079_v34 = vpop.permute.xlu1 %3078  ;;  %v5101_v15 = vld [vmem:[#allocation2 + $0x250] sm:$0xff] }
 0x79d   : > { %4971 = vst.msk [vmem:[#allocation2 + $0x258] sm:$0xff] %vm4510_vm3, %v4842_v13  ;;  %v4455_v20 = vmax.f32 %v4047_v57, %v4327_v42  ;;  %v4055_v44 = vadd.f32 %v13298_v4, %v3079_v34  ;;  %v5377_v45 = vsel %vm4510_vm3, %v5101_v15, -inf  ;;  %v5091_v42 = vld [vmem:[#allocation2 + $0x200] sm:$0xff]  ;;  %v4726_v15 = vld [vmem:[#allocation2 + $0x2b8] sm:$0xff] }
 0x79f   : > { %5378 = vmax.xlane.f32.xlu1 %v5377_v45  ;;  %v4844_v2 = vmax.f32 %v4716_v8, %v4455_v20  ;;  %v4329_v31 = vmul.f32 0.2, %v4055_v44 }
 0x7a0   : > { %v3089_v61 = vpop.permute.xlu1 %3088 }
 0x7a1   : > { %4973 = vst.msk [vmem:[#allocation2 + $0x268] sm:$0xff] %vm4510_vm3, %v4844_v2  ;;  %v4457_v22 = vmax.f32 %v4055_v44, %v4329_v31  ;;  %v4063_v5 = vadd.f32 %v13317_v43, %v3089_v61 }
 0x7a3   : > { %5372 = vmax.xlane.f32.xlu1 %v5371_v53  ;;  %v4846_v37 = vmax.f32 %v4718_v23, %v4457_v22  ;;  %v4331_v27 = vmul.f32 0.2, %v4063_v5  ;;  %v4728_v23 = vld [vmem:[#allocation2 + $0x2c8] sm:$0xff]  ;;  %v5098_v53 = vld [vmem:[#allocation2 + $0x238] sm:$0xff] }
 0x7a4   : > { %v3099_v4 = vpop.permute.xlu1 %3098 }
 0x7a5   : > { %4975 = vst.msk [vmem:[#allocation2 + $0x278] sm:$0xff] %vm4510_vm3, %v4846_v37  ;;  %v4459_v28 = vmax.f32 %v4063_v5, %v4331_v27  ;;  %v4071_v36 = vadd.f32 %v13312_v6, %v3099_v4 }
 0x7a7   : > { %v4848_v16 = vmax.f32 %v4720_v40, %v4459_v28  ;;  %v4333_v41 = vmul.f32 0.2, %v4071_v36  ;;  %v4730_v40 = vld [vmem:[#allocation2 + $0x2d8] sm:$0xff] }
 0x7a8   : > { %v3109_v25 = vpop.permute.xlu1 %3108 }
 0x7a9   : > { %4977 = vst.msk [vmem:[#allocation2 + $0x288] sm:$0xff] %vm4510_vm3, %v4848_v16  ;;  %v4461_v49 = vmax.f32 %v4071_v36, %v4333_v41  ;;  %v4079_v43 = vadd.f32 %v13331_v35, %v3109_v25  ;;  %v5347_v35 = vsel %vm4510_vm3, %v5091_v42, -inf  ;;  %v5096_v16 = vld [vmem:[#allocation2 + $0x228] sm:$0xff] }
 0x7aa   : > { %v4732_v25 = vld [vmem:[#allocation2 + $0x2e8] sm:$0xff] }
 0x7ab   : > { %v4850_v3 = vmax.f32 %v4722_v21, %v4461_v49  ;;  %v4335_v39 = vmul.f32 0.2, %v4079_v43 }
 0x7ac   : > { %v3119_v57 = vpop.permute.xlu1 %3118 }
 0x7ad   : > { %4979 = vst.msk [vmem:[#allocation2 + $0x298] sm:$0xff] %vm4510_vm3, %v4850_v3  ;;  %v4463_v13 = vmax.f32 %v4079_v43, %v4335_v39  ;;  %v4087_v6 = vadd.f32 %v13326_v56, %v3119_v57  ;;  %5354 = vmax.xlane.f32.xlu0 %v5353_v18  ;;  %v5356_v56 = vsel %vm4510_vm3, %v5094_v50, -inf  ;;  %v5102_v39 = vld [vmem:[#allocation2 + $0x258] sm:$0xff] }
 0x7ae   : > { %v4734_v18 = vld [vmem:[#allocation2 + $0x2f8] sm:$0xff] }
 0x7af   : > { %v4852_v8 = vmax.f32 %v4724_v30, %v4463_v13  ;;  %v4337_v34 = vmul.f32 0.2, %v4087_v6  ;;  %v5380_v13 = vsel %vm4510_vm3, %v5102_v39, -inf }
 0x7b0   : > { %v3129_v20 = vpop.permute.xlu1 %3128 }
 0x7b1   : > { %4981 = vst.msk [vmem:[#allocation2 + $0x2a8] sm:$0xff] %vm4510_vm3, %v4852_v8  ;;  %v4465_v44 = vmax.f32 %v4087_v6, %v4337_v34  ;;  %v4095_v45 = vadd.f32 %v13346_v60, %v3129_v20  ;;  %5348 = vmax.xlane.f32.xlu0 %v5347_v35  ;;  %v5368_v60 = vsel %vm4510_vm3, %v5098_v53, -inf  ;;  %v5100_v34 = vld [vmem:[#allocation2 + $0x248] sm:$0xff]  ;;  %v4639_v35 = vld [vmem:[#allocation2] sm:$0xff] }
 0x7b3   : > { %v4854_v2 = vmax.f32 %v4726_v15, %v4465_v44  ;;  %v4339_v31 = vmul.f32 0.2, %v4095_v45 }
 0x7b4   : > { %v3139_v61 = vpop.permute.xlu1 %3138 }
 0x7b5   : > { %4983 = vst.msk [vmem:[#allocation2 + $0x2b8] sm:$0xff] %vm4510_vm3, %v4854_v2  ;;  %v4467_v22 = vmax.f32 %v4095_v45, %v4339_v31  ;;  %v4103_v5 = vadd.f32 %v13341_v17, %v3139_v61  ;;  %5357 = vmax.xlane.f32.xlu0 %v5356_v56  ;;  %v5362_v17 = vsel %vm4510_vm3, %v5096_v16, -inf  ;;  %v5374_v45 = vsel %vm4510_vm3, %v5100_v34, -inf  ;;  %v5552_v31 = vld [vmem:[%s15350_s7 + $0x68] sm:$0xff]  ;;  %v4719_v34 = vld [vmem:[#allocation2 + $0x280] sm:$0xff] }
 0x7b6   : > { %v4736_v16 = vld [vmem:[#allocation2 + $0x308] sm:$0xff] }
 0x7b7   : > { %v4856_v37 = vmax.f32 %v4728_v23, %v4467_v22  ;;  %v4341_v27 = vmul.f32 0.2, %v4103_v5  ;;  %v4735_v22 = vld [vmem:[#allocation2 + $0x300] sm:$0xff] }
 0x7b8   : > { %v3149_v4 = vpop.permute.xlu1 %3148 }
 0x7b9   : > { %4985 = vst.msk [vmem:[#allocation2 + $0x2c8] sm:$0xff] %vm4510_vm3, %v4856_v37  ;;  %v4469_v28 = vmax.f32 %v4103_v5, %v4341_v27  ;;  %v4111_v36 = vadd.f32 %v13361_v52, %v3149_v4  ;;  %5369 = vmax.xlane.f32.xlu0 %v5368_v60  ;;  %v5104_v4 = vld [vmem:[#allocation2 + $0x268] sm:$0xff] }
 0x7bb   : > { %v4858_v41 = vmax.f32 %v4730_v40, %v4469_v28  ;;  %v4343_v21 = vmul.f32 0.2, %v4111_v36 }
 0x7bc   : > { %v3159_v49 = vpop.permute.xlu1 %3158 }
 0x7bd   : > { %4987 = vst.msk [vmem:[#allocation2 + $0x2d8] sm:$0xff] %vm4510_vm3, %v4858_v41  ;;  %v4471_v43 = vmax.f32 %v4111_v36, %v4343_v21  ;;  %v4119_v14 = vadd.f32 %v13356_v55, %v3159_v49  ;;  %5363 = vmax.xlane.f32.xlu0 %v5362_v17  ;;  %v5346_v3 = vpop.xlane.xlu0 %5345  ;;  %v15572_v36 = vcombine.low %v13424_v9, %v13429_v48  ;;  %v4717_v41 = vld [vmem:[#allocation2 + $0x270] sm:$0xff]  ;;  %v5386_v49 = vsel %vm4510_vm3, %v5104_v4, -inf  ;;  %v13582_v9 = vld [vmem:[%s15350_s7 + $0x88] sm:$0xff] }
 0x7be   : > { %v5826_v23 = vpack.c.bf16 %v5346_v3, %v13476_v26  ;;  %v13587_v48 = vld [vmem:[%s15350_s7 + $0xa8] sm:$0xff] }
 0x7bf   : > { %v4860_v30 = vmax.f32 %v4732_v25, %v4471_v43  ;;  %v4345_v57 = vmul.f32 0.2, %v4119_v14  ;;  %v5110_v43 = vld [vmem:[#allocation2 + $0x298] sm:$0xff]  ;;  %v4644_v4 = vld [vmem:[#allocation2 + $0x28] sm:$0xff] }
 0x7c0   : > { %v2684_v52 = vpop.permute.xlu1 %2683 }
 0x7c1   : > { %4989 = vst.msk [vmem:[#allocation2 + $0x2e8] sm:$0xff] %vm4510_vm3, %v4860_v30  ;;  %v4473_v6 = vmax.f32 %v4119_v14, %v4345_v57  ;;  %v3740_v42 = vadd.f32 %v13059_v0, %v2684_v52  ;;  %5381 = vmax.xlane.f32.xlu0 %v5380_v13  ;;  %v5340_v8 = vpop.xlane.xlu0 %5339  ;;  %v5106_v0 = vld [vmem:[#allocation2 + $0x278] sm:$0xff] }
 0x7c2   : > { %v5825_v15 = vpack.c.bf16 %v5340_v8, %v13470_v47  ;;  %v5548_v47 = vld [vmem:[%s15350_s7 + $0x48] sm:$0xff] }
 0x7c3   : > { %v4862_v55 = vmax.f32 %v4734_v18, %v4473_v6  ;;  %v4250_v20 = vmul.f32 0.2, %v3740_v42  ;;  %v9691_v53 = vcombine.high %v5548_v47, %v5552_v31  ;;  %v9690_v57 = vcombine.low %v5548_v47, %v5552_v31  ;;  %v4642_v18 = vld [vmem:[#allocation2 + $0x18] sm:$0xff] }
 0x7c4   : > { %v3164_v44 = vpop.permute.xlu1 %3163  ;;  %7521 = vmatpush1.bf16.msra.mxu0 %v5825_v15  ;;  %v5404_v6 = vsel %vm4510_vm3, %v5110_v43, -inf }
 0x7c5   : > { %4991 = vst.msk [vmem:[#allocation2 + $0x2f8] sm:$0xff] %vm4510_vm3, %v4862_v55  ;;  %v4378_v50 = vmax.f32 %v3740_v42, %v4250_v20  ;;  %v4124_v2 = vadd.f32 %v13375_v59, %v3164_v44  ;;  %5375 = vmax.xlane.f32.xlu0 %v5374_v45  ;;  %7522 = vmatprep.subr.bf16.mxu0 %v15538_v38  ;;  %v5392_v59 = vsel %vm4510_vm3, %v5106_v0, -inf  ;;  %v5108_v55 = vld [vmem:[#allocation2 + $0x288] sm:$0xff]  ;;  %v4721_v0 = vld [vmem:[#allocation2 + $0x290] sm:$0xff] }
 0x7c6   : > { %v9699_v42 = vcombine.high %v13582_v9, %v13587_v48 }
 0x7c7   : > { %v4767_v61 = vmax.f32 %v4639_v35, %v4378_v50  ;;  %v4346_v56 = vmul.f32 0.2, %v4124_v2 }
 0x7c8   : > { %v3169_v5 = vpop.permute.xlu1 %3168  ;;  %7523 = vmatpush1.bf16.msra.mxu0 %v5826_v23  ;;  %v5398_v23 = vsel %vm4510_vm3, %v5108_v55, -inf }
 0x7c9   : > { %4896 = vst.msk [vmem:[#allocation2] sm:$0xff] %vm4510_vm3, %v4767_v61  ;;  %v4474_v37 = vmax.f32 %v4124_v2, %v4346_v56  ;;  %v4127_v27 = vadd.f32 %v13386_v58, %v3169_v5  ;;  %5393 = vmax.xlane.f32.xlu0 %v5392_v59  ;;  %v3074_v40 = vpop.permute.xlu0 %3073  ;;  %7781 = vmatprep.subr.bf16.mxu0 %v15538_v38  ;;  %v4738_v2 = vld [vmem:[#allocation2 + $0x318] sm:$0xff]  ;;  %v13608_v5 = vld [vmem:[%s15350_s7 + $0xe8] sm:$0xff] }
 0x7ca   : > { %v4052_v26 = vadd.f32 %v13288_v7, %v3074_v40 }
 0x7cb   : > { %v4863_v60 = vmax.f32 %v4735_v22, %v4474_v37  ;;  %v4347_v28 = vmul.f32 0.2, %v4127_v27  ;;  %7525 = vmatmul.mubr.bf16.vlgmr.msra.gmra.mrb[92].mxu0 %v15572_v36  ;;  %v5114_v22 = vld [vmem:[#allocation2 + $0x2b8] sm:$0xff] }
 0x7cc   : > { %v4328_v21 = vmul.f32 0.2, %v4052_v26  ;;  %v2699_v25 = vpop.permute.xlu1 %2698  ;;  %7532 = vmatprep.mubr.bf16.mxu0 %v9691_v53 }
 0x7cd   : > { %4992 = vst.msk [vmem:[#allocation2 + $0x300] sm:$0xff] %vm4510_vm3, %v4863_v60  ;;  %v4475_v58 = vmax.f32 %v4127_v27, %v4347_v28  ;;  %v3751_v17 = vadd.f32 %v13061_v63, %v2699_v25  ;;  %5387 = vmax.xlane.f32.xlu0 %v5386_v49  ;;  %v3084_v7 = vpop.permute.xlu0 %3083  ;;  %v9698_v27 = vcombine.low %v13582_v9, %v13587_v48  ;;  %v5416_v28 = vsel %vm4510_vm3, %v5114_v22, -inf  ;;  %v5112_v49 = vld [vmem:[#allocation2 + $0x2a8] sm:$0xff]  ;;  %v5103_v48 = vld [vmem:[#allocation2 + $0x260] sm:$0xff] }
 0x7ce   : > { %v4456_v14 = vmax.f32 %v4052_v26, %v4328_v21  ;;  %v4060_v3 = vadd.f32 %v13310_v10, %v3084_v7 }
 0x7cf   : > { %v4864_v39 = vmax.f32 %v4736_v16, %v4475_v58  ;;  %v4253_v30 = vmul.f32 0.2, %v3751_v17 }
 0x7d0   : > { %v4845_v63 = vmax.f32 %v4717_v41, %v4456_v14  ;;  %v4330_v52 = vmul.f32 0.2, %v4060_v3  ;;  %v3179_v13 = vpop.permute.xlu1 %3178  ;;  %v4723_v41 = vld [vmem:[#allocation2 + $0x2a0] sm:$0xff] }
 0x7d1   : > { %4993 = vst.msk [vmem:[#allocation2 + $0x308] sm:$0xff] %vm4510_vm3, %v4864_v39  ;;  %v4381_v8 = vmax.f32 %v3751_v17, %v4253_v30  ;;  %v4135_v15 = vadd.f32 %v13384_v1, %v3179_v13  ;;  %5405 = vmax.xlane.f32.xlu0 %v5404_v6  ;;  %v3094_v10 = vpop.permute.xlu0 %3093  ;;  %v4725_v39 = vld [vmem:[#allocation2 + $0x2b0] sm:$0xff]  ;;  %v13628_v13 = vld [vmem:[%s15350_s7 + $0x108] sm:$0xff] }
 0x7d2   : > { %4974 = vst.msk [vmem:[#allocation2 + $0x270] sm:$0xff] %vm4510_vm3, %v4845_v63  ;;  %v4458_v20 = vmax.f32 %v4060_v3, %v4330_v52  ;;  %v4068_v35 = vadd.f32 %v13308_v46, %v3094_v10  ;;  %v13603_v46 = vld [vmem:[%s15350_s7 + $0xc8] sm:$0xff]  ;;  %v5118_v52 = vld [vmem:[#allocation2 + $0x2d8] sm:$0xff] }
 0x7d3   : > { %v4770_v44 = vmax.f32 %v4642_v18, %v4381_v8  ;;  %v4349_v45 = vmul.f32 0.2, %v4135_v15  ;;  %7533 = vmatmul.mubr.bf16.gmra.mrb[96].mxu0 %v9690_v57  ;;  %v9707_v36 = vcombine.high %v13603_v46, %v13608_v5  ;;  %v4740_v3 = vld [vmem:[#allocation2 + $0x328] sm:$0xff]  ;;  %v5410_v57 = vsel %vm4510_vm3, %v5112_v49, -inf }
 0x7d4   : > { %v4847_v50 = vmax.f32 %v4719_v34, %v4458_v20  ;;  %v4332_v47 = vmul.f32 0.2, %v4068_v35  ;;  %v2709_v31 = vpop.permute.xlu1 %2708  ;;  %7540 = vmatprep.mubr.bf16.mxu0 %v9699_v42  ;;  %v13633_v6 = vld [vmem:[%s15350_s7 + $0x128] sm:$0xff]  ;;  %v9706_v10 = vcombine.low %v13603_v46, %v13608_v5  ;;  %v4646_v20 = vld [vmem:[#allocation2 + $0x38] sm:$0xff] }
 0x7d5   : > { %4899 = vst.msk [vmem:[#allocation2 + $0x18] sm:$0xff] %vm4510_vm3, %v4770_v44  ;;  %v4477_v1 = vmax.f32 %v4135_v15, %v4349_v45  ;;  %v3759_v61 = vadd.f32 %v13071_v54, %v2709_v31  ;;  %5399 = vmax.xlane.f32.xlu0 %v5398_v23  ;;  %v3104_v56 = vpop.permute.xlu0 %3103  ;;  %v5428_v45 = vsel %vm4510_vm3, %v5118_v52, -inf  ;;  %v5116_v23 = vld [vmem:[#allocation2 + $0x2c8] sm:$0xff]  ;;  %v9714_v49 = vcombine.low %v13628_v13, %v13633_v6 }
 0x7d6   : > { %4976 = vst.msk [vmem:[#allocation2 + $0x280] sm:$0xff] %vm4510_vm3, %v4847_v50  ;;  %v4460_v59 = vmax.f32 %v4068_v35, %v4332_v47  ;;  %v4076_v53 = vadd.f32 %v13324_v19, %v3104_v56  ;;  %v9715_v50 = vcombine.high %v13628_v13, %v13633_v6  ;;  %v4733_v13 = vld [vmem:[#allocation2 + $0x2f0] sm:$0xff] }
 0x7d7   : > { %v4866_v37 = vmax.f32 %v4738_v2, %v4477_v1  ;;  %v4255_v54 = vmul.f32 0.2, %v3759_v61  ;;  %v4727_v2 = vld [vmem:[#allocation2 + $0x2c0] sm:$0xff] }
 0x7d8   : > { %v4849_v40 = vmax.f32 %v4721_v0, %v4460_v59  ;;  %v4334_v26 = vmul.f32 0.2, %v4076_v53  ;;  %v3189_v60 = vpop.permute.xlu1 %3188 }
 0x7d9   : > { %4995 = vst.msk [vmem:[#allocation2 + $0x318] sm:$0xff] %vm4510_vm3, %v4866_v37  ;;  %v4383_v16 = vmax.f32 %v3759_v61, %v4255_v54  ;;  %v4143_v19 = vadd.f32 %v13431_v32, %v3189_v60  ;;  %5417 = vmax.xlane.f32.xlu0 %v5416_v28  ;;  %v3114_v21 = vpop.permute.xlu0 %3113  ;;  %v5105_v25 = vld [vmem:[#allocation2 + $0x270] sm:$0xff]  ;;  %v5422_v54 = vsel %vm4510_vm3, %v5116_v23, -inf  ;;  %v5580_v60 = vld [vmem:[%s15350_s7 + $0x148] sm:$0xff] }
 0x7da   : > { %4978 = vst.msk [vmem:[#allocation2 + $0x290] sm:$0xff] %vm4510_vm3, %v4849_v40  ;;  %v4462_v58 = vmax.f32 %v4076_v53, %v4334_v26  ;;  %v4084_v17 = vadd.f32 %v13322_v51, %v3114_v21  ;;  %v5389_v7 = vsel %vm4510_vm3, %v5105_v25, -inf  ;;  %v4742_v53 = vld [vmem:[#allocation2 + $0x338] sm:$0xff]  ;;  %v4729_v40 = vld [vmem:[#allocation2 + $0x2d0] sm:$0xff]  ;;  %v5584_v28 = vld [vmem:[%s15350_s7 + $0x168] sm:$0xff] }
 0x7db   : > { %v4772_v43 = vmax.f32 %v4644_v4, %v4383_v16  ;;  %v4351_v9 = vmul.f32 0.2, %v4143_v19  ;;  %5390 = vmax.xlane.f32.xlu1 %v5389_v7  ;;  %7541 = vmatmul.mubr.bf16.gmra.mrb[100].mxu0 %v9698_v27  ;;  %v15573_v4 = vld [vmem:[#allocation31_spill] sm:$0xff]  ;;  %v15574_v16 = vld [vmem:[#allocation41_spill] sm:$0xff] }
 0x7dc   : > { %v4851_v14 = vmax.f32 %v4723_v41, %v4462_v58  ;;  %v4336_v32 = vmul.f32 0.2, %v4084_v17  ;;  %v2719_v30 = vpop.permute.xlu1 %2718  ;;  %7548 = vmatprep.mubr.bf16.mxu0 %v9707_v36 }
 0x7dd   : > { %4901 = vst.msk [vmem:[#allocation2 + $0x28] sm:$0xff] %vm4510_vm3, %v4772_v43  ;;  %v4479_v63 = vmax.f32 %v4143_v19, %v4351_v9  ;;  %v3767_v51 = vadd.f32 %v13069_v12, %v2719_v30  ;;  %5411 = vmax.xlane.f32.xlu0 %v5410_v57  ;;  %v3124_v18 = vpop.permute.xlu0 %3123  ;;  %v5383_v12 = vsel %vm4510_vm3, %v5103_v48, -inf  ;;  %v5107_v5 = vld [vmem:[#allocation2 + $0x280] sm:$0xff]  ;;  %v9723_v43 = vcombine.high %v5580_v60, %v5584_v28 }
 0x7de   : > { %4980 = vst.msk [vmem:[#allocation2 + $0x2a0] sm:$0xff] %vm4510_vm3, %v4851_v14  ;;  %v4464_v42 = vmax.f32 %v4084_v17, %v4336_v32  ;;  %v4092_v8 = vadd.f32 %v13339_v11, %v3124_v18  ;;  %v5395_v19 = vsel %vm4510_vm3, %v5107_v5, -inf  ;;  %v4648_v17 = vld [vmem:[#allocation2 + $0x48] sm:$0xff]  ;;  %v4731_v48 = vld [vmem:[#allocation2 + $0x2e0] sm:$0xff]  ;;  %v15578_v5 = vld [vmem:[#allocation42_spill] sm:$0xff] }
 0x7df   : > { %v4868_v34 = vmax.f32 %v4740_v3, %v4479_v63  ;;  %v4257_v15 = vmul.f32 0.2, %v3767_v51  ;;  %5384 = vmax.xlane.f32.xlu1 %v5383_v12  ;;  %v15575_v32 = vld [vmem:[#allocation40_spill] sm:$0xff] }
 0x7e0   : > { %v4853_v55 = vmax.f32 %v4725_v39, %v4464_v42  ;;  %v4338_v35 = vmul.f32 0.2, %v4092_v8  ;;  %v3199_v44 = vpop.permute.xlu1 %3198  ;;  %v5588_v42 = vld [vmem:[%s15350_s7 + $0x188] sm:$0xff] }
 0x7e1   : > { %4997 = vst.msk [vmem:[#allocation2 + $0x328] sm:$0xff] %vm4510_vm3, %v4868_v34  ;;  %v4385_v11 = vmax.f32 %v3767_v51, %v4257_v15  ;;  %v4151_v0 = vadd.f32 %v13419_v29, %v3199_v44  ;;  %5429 = vmax.xlane.f32.xlu0 %v5428_v45  ;;  %v3134_v47 = vpop.permute.xlu0 %3133  ;;  %v5109_v31 = vld [vmem:[#allocation2 + $0x290] sm:$0xff]  ;;  %v15576_v34 = vld [vmem:[#allocation27_spill] sm:$0xff]  ;;  %v4640_v45 = vld [vmem:[#allocation2 + $0x8] sm:$0xff] }
 0x7e2   : > { %4982 = vst.msk [vmem:[#allocation2 + $0x2b0] sm:$0xff] %vm4510_vm3, %v4853_v55  ;;  %v4466_v1 = vmax.f32 %v4092_v8, %v4338_v35  ;;  %v4100_v61 = vadd.f32 %v13336_v24, %v3134_v47  ;;  %v5401_v56 = vsel %vm4510_vm3, %v5109_v31, -inf  ;;  %v5592_v8 = vld [vmem:[%s15350_s7 + $0x1a8] sm:$0xff]  ;;  %v9722_v55 = vcombine.low %v5580_v60, %v5584_v28 }
 0x7e3   : > { %v4774_v22 = vmax.f32 %v4646_v20, %v4385_v11  ;;  %v4353_v46 = vmul.f32 0.2, %v4151_v0  ;;  %5402 = vmax.xlane.f32.xlu1 %v5401_v56  ;;  %7549 = vmatmul.mubr.bf16.gmra.mrb[104].mxu0 %v9706_v10  ;;  %v9731_v44 = vcombine.high %v5588_v42, %v5592_v8  ;;  %v4641_v56 = vld [vmem:[#allocation2 + $0x10] sm:$0xff] }
 0x7e4   : > { %v4855_v59 = vmax.f32 %v4727_v2, %v4466_v1  ;;  %v4340_v37 = vmul.f32 0.2, %v4100_v61  ;;  %v2729_v29 = vpop.permute.xlu1 %2728  ;;  %7556 = vmatprep.mubr.bf16.mxu0 %v9715_v50 }
 0x7e5   : > { %4903 = vst.msk [vmem:[#allocation2 + $0x38] sm:$0xff] %vm4510_vm3, %v4774_v22  ;;  %v4481_v27 = vmax.f32 %v4151_v0, %v4353_v46  ;;  %v3775_v24 = vadd.f32 %v15573_v4, %v2729_v29  ;;  %5423 = vmax.xlane.f32.xlu0 %v5422_v54  ;;  %v3144_v26 = vpop.permute.xlu0 %3143  ;;  %v5111_v51 = vld [vmem:[#allocation2 + $0x2a0] sm:$0xff]  ;;  %v15577_v0 = vld [vmem:[#allocation26_spill] sm:$0xff]  ;;  %v5600_v29 = vld [vmem:[%s15350_s7 + $0x1e8] sm:$0xff]  ;;  %v9730_v4 = vcombine.low %v5588_v42, %v5592_v8 }
 0x7e6   : > { %4984 = vst.msk [vmem:[#allocation2 + $0x2c0] sm:$0xff] %vm4510_vm3, %v4855_v59  ;;  %v4468_v36 = vmax.f32 %v4100_v61, %v4340_v37  ;;  %v4108_v41 = vadd.f32 %v15574_v16, %v3144_v26  ;;  %v5407_v10 = vsel %vm4510_vm3, %v5111_v51, -inf  ;;  %v5596_v37 = vld [vmem:[%s15350_s7 + $0x1c8] sm:$0xff]  ;;  %v4739_v51 = vld [vmem:[#allocation2 + $0x320] sm:$0xff] }
 0x7e7   : > { %v4870_v21 = vmax.f32 %v4742_v53, %v4481_v27  ;;  %v4259_v25 = vmul.f32 0.2, %v3775_v24  ;;  %5396 = vmax.xlane.f32.xlu1 %v5395_v19  ;;  %v9739_v28 = vcombine.high %v5596_v37, %v5600_v29  ;;  %v15579_v16 = vld [vmem:[#allocation29_spill] sm:$0xff] }
 0x7e8   : > { %v4857_v58 = vmax.f32 %v4729_v40, %v4468_v36  ;;  %v4342_v7 = vmul.f32 0.2, %v4108_v41  ;;  %v2563_v40 = vld [vmem:[%s15349_s6 + $0x50] sm:$0xff] }
 0x7e9   : > { %4999 = vst.msk [vmem:[#allocation2 + $0x338] sm:$0xff] %vm4510_vm3, %v4870_v21  ;;  %v4387_v9 = vmax.f32 %v3775_v24, %v4259_v25  ;;  %v3154_v14 = vpop.permute.xlu0 %3153  ;;  %v5113_v3 = vld [vmem:[#allocation2 + $0x2b0] sm:$0xff] }
 0x7ea   : > { %4986 = vst.msk [vmem:[#allocation2 + $0x2d0] sm:$0xff] %vm4510_vm3, %v4857_v58  ;;  %v4470_v39 = vmax.f32 %v4108_v41, %v4342_v7  ;;  %v4116_v30 = vadd.f32 %v15575_v32, %v3154_v14  ;;  %v5413_v57 = vsel %vm4510_vm3, %v5113_v3, -inf  ;;  %v4737_v24 = vld [vmem:[#allocation2 + $0x310] sm:$0xff]  ;;  %v5604_v3 = vld [vmem:[%s15350_s7 + $0x208] sm:$0xff] }
 0x7eb   : > { %v4776_v63 = vmax.f32 %v4648_v17, %v4387_v9  ;;  %5414 = vmax.xlane.f32.xlu1 %v5413_v57  ;;  %7557 = vmatmul.mubr.bf16.gmra.mrb[108].mxu0 %v9714_v49  ;;  %v2659_v58 = vld [vmem:[%s15349_s6 + $0x350] sm:$0xff]  ;;  %v4643_v17 = vld [vmem:[#allocation2 + $0x20] sm:$0xff] }
 0x7ec   : > { %v4859_v18 = vmax.f32 %v4731_v48, %v4470_v39  ;;  %v4344_v52 = vmul.f32 0.2, %v4116_v30  ;;  %7564 = vmatprep.mubr.bf16.mxu0 %v9723_v43  ;;  %v15580_v9 = vld [vmem:[#allocation44_spill] sm:$0xff]  ;;  %v5608_v39 = vld [vmem:[%s15350_s7 + $0x228] sm:$0xff] }
 0x7ed   : > { %4905 = vst.msk [vmem:[#allocation2 + $0x48] sm:$0xff] %vm4510_vm3, %v4776_v63  ;;  %v2689_v6 = vpop.permute.xlu0 %2688  ;;  %v5115_v23 = vld [vmem:[#allocation2 + $0x2c0] sm:$0xff]  ;;  %v9738_v63 = vcombine.low %v5596_v37, %v5600_v29  ;;  %v2663_v29 = vld [vmem:[%s15349_s6 + $0x370] sm:$0xff] }
 0x7ee   : > { %4988 = vst.msk [vmem:[#allocation2 + $0x2e0] sm:$0xff] %vm4510_vm3, %v4859_v18  ;;  %v4472_v12 = vmax.f32 %v4116_v30, %v4344_v52  ;;  %v3743_v15 = vadd.f32 %v15576_v34, %v2689_v6  ;;  %v5419_v53 = vsel %vm4510_vm3, %v5115_v23, -inf  ;;  %v2565_v57 = vld [vmem:[%s15349_s6 + $0x60] sm:$0xff]  ;;  %v9747_v52 = vcombine.high %v5604_v3, %v5608_v39  ;;  %v2567_v23 = vld [vmem:[%s15349_s6 + $0x70] sm:$0xff] }
 0x7ef   : > { %5408 = vmax.xlane.f32.xlu1 %v5407_v10  ;;  %v15581_v6 = vld [vmem:[#allocation28_spill] sm:$0xff]  ;;  %v4645_v10 = vld [vmem:[#allocation2 + $0x30] sm:$0xff] }
 0x7f0   : > { %v4861_v20 = vmax.f32 %v4733_v13, %v4472_v12  ;;  %v4251_v35 = vmul.f32 0.2, %v3743_v15  ;;  %v2661_v34 = vld [vmem:[%s15349_s6 + $0x360] sm:$0xff] }
 0x7f1   : > { %v2694_v50 = vpop.permute.xlu0 %2693  ;;  %v5117_v11 = vld [vmem:[#allocation2 + $0x2d0] sm:$0xff] }
 0x7f2   : > { %4990 = vst.msk [vmem:[#allocation2 + $0x2f0] sm:$0xff] %vm4510_vm3, %v4861_v20  ;;  %v4379_v2 = vmax.f32 %v3743_v15, %v4251_v35  ;;  %v3748_v47 = vadd.f32 %v15577_v0, %v2694_v50  ;;  %v5425_v31 = vsel %vm4510_vm3, %v5117_v11, -inf  ;;  %v13714_v15 = vpop.f32.mrb[206].mxu1  ;;  %v5612_v50 = vld [vmem:[%s15350_s7 + $0x248] sm:$0xff] }
 0x7f3   : > { %5426 = vmax.xlane.f32.xlu1 %v5425_v31  ;;  %7565 = vmatmul.mubr.bf16.gmra.mrb[112].mxu0 %v9722_v55  ;;  %v13716_v20 = vpop.f32.mrb[207].mxu1  ;;  %v5616_v11 = vld [vmem:[%s15350_s7 + $0x268] sm:$0xff] }
 0x7f4   : > { %v4768_v1 = vmax.f32 %v4640_v45, %v4379_v2  ;;  %v4252_v61 = vmul.f32 0.2, %v3748_v47  ;;  %7572 = vmatprep.mubr.bf16.mxu0 %v9731_v44  ;;  %v15582_v44 = vld [vmem:[#allocation43_spill] sm:$0xff] }
 0x7f5   : > { %v3174_v22 = vpop.permute.xlu0 %3173  ;;  %v5119_v21 = vld [vmem:[#allocation2 + $0x2e0] sm:$0xff] }
 0x7f6   : > { %4897 = vst.msk [vmem:[#allocation2 + $0x8] sm:$0xff] %vm4510_vm3, %v4768_v1  ;;  %v4380_v46 = vmax.f32 %v3748_v47, %v4252_v61  ;;  %v4132_v59 = vadd.f32 %v15578_v5, %v3174_v22  ;;  %v5431_v14 = vsel %vm4510_vm3, %v5119_v21, -inf  ;;  %v9746_v1 = vcombine.low %v5604_v3, %v5608_v39  ;;  %v4741_v61 = vld [vmem:[#allocation2 + $0x330] sm:$0xff]  ;;  %v5640_v3 = vld [vmem:[%s15350_s7 + $0x328] sm:$0xff] }
 0x7f7   : > { %5420 = vmax.xlane.f32.xlu1 %v5419_v53  ;;  %v9755_v22 = vcombine.high %v5612_v50, %v5616_v11  ;;  %v15583_v5 = vld [vmem:[#allocation34_spill] sm:$0xff] }
 0x7f8   : > { %v4769_v54 = vmax.f32 %v4641_v56, %v4380_v46  ;;  %v4348_v27 = vmul.f32 0.2, %v4132_v59 }
 0x7f9   : > { %v2704_v26 = vpop.permute.xlu0 %2703  ;;  %v5121_v60 = vld [vmem:[#allocation2 + $0x2f0] sm:$0xff] }
 0x7fa   : > { %4898 = vst.msk [vmem:[#allocation2 + $0x10] sm:$0xff] %vm4510_vm3, %v4769_v54  ;;  %v4476_v36 = vmax.f32 %v4132_v59, %v4348_v27  ;;  %v3756_v41 = vadd.f32 %v15579_v16, %v2704_v26  ;;  %v5437_v19 = vsel %vm4510_vm3, %v5121_v60, -inf  ;;  %v4647_v54 = vld [vmem:[#allocation2 + $0x40] sm:$0xff]  ;;  %v5620_v26 = vld [vmem:[%s15350_s7 + $0x288] sm:$0xff]  ;;  %v9754_v16 = vcombine.low %v5612_v50, %v5616_v11 }
 0x7fb   : > { %2733 = vperm.xlu0 %11327, %v2563_v40   ;;  %5438 = vmax.xlane.f32.xlu1 %v5437_v19  ;;  %v2658_v40 = vld [vmem:[%s15349_s6 + $0x348] sm:$0xff]  ;;  %v2564_v19 = vld [vmem:[%s15349_s6 + $0x58] sm:$0xff] }
 0x7fc   : > { %v4865_v25 = vmax.f32 %v4737_v24, %v4476_v36  ;;  %v4254_v49 = vmul.f32 0.2, %v3756_v41  ;;  %7573 = vmatmul.mubr.bf16.gmra.mrb[116].mxu0 %v9730_v4  ;;  %v5624_v60 = vld [vmem:[%s15350_s7 + $0x2a8] sm:$0xff] }
 0x7fd   : > { %v3184_v7 = vpop.permute.xlu0 %3183  ;;  %7580 = vmatprep.mubr.bf16.mxu0 %v9739_v28  ;;  %v9763_v21 = vcombine.high %v5620_v26, %v5624_v60 }
 0x7fe   : > { %4994 = vst.msk [vmem:[#allocation2 + $0x310] sm:$0xff] %vm4510_vm3, %v4865_v25  ;;  %v4382_v43 = vmax.f32 %v3756_v41, %v4254_v49  ;;  %v4140_v48 = vadd.f32 %v15580_v9, %v3184_v7  ;;  %v4743_v41 = vld [vmem:[#allocation2 + $0x340] sm:$0xff]  ;;  %v2660_v49 = vld [vmem:[%s15349_s6 + $0x358] sm:$0xff]  ;;  %v9762_v7 = vcombine.low %v5620_v26, %v5624_v60 }
 0x7ff   : > { %3213 = vperm.xlu0 %11327, %v2659_v58   ;;  %5432 = vmax.xlane.f32.xlu1 %v5431_v14  ;;  %v5628_v58 = vld [vmem:[%s15350_s7 + $0x2c8] sm:$0xff] }
 0x800   : > { %v4771_v32 = vmax.f32 %v4643_v17, %v4382_v43  ;;  %v4350_v30 = vmul.f32 0.2, %v4140_v48  ;;  %v13726_v2 = vpop.f32.mrb[208].mxu1  ;;  %v5632_v17 = vld [vmem:[%s15350_s7 + $0x2e8] sm:$0xff] }
 0x801   : > { %v2714_v18 = vpop.permute.xlu0 %2713  ;;  %v13728_v0 = vpop.f32.mrb[209].mxu1  ;;  %v2566_v43 = vld [vmem:[%s15349_s6 + $0x68] sm:$0xff]  ;;  %v9771_v9 = vcombine.high %v5628_v58, %v5632_v17  ;;  %v9770_v39 = vcombine.low %v5628_v58, %v5632_v17 }
 0x802   : > { %4900 = vst.msk [vmem:[#allocation2 + $0x20] sm:$0xff] %vm4510_vm3, %v4771_v32  ;;  %v4478_v13 = vmax.f32 %v4140_v48, %v4350_v30  ;;  %v3764_v42 = vadd.f32 %v15581_v6, %v2714_v18  ;;  %v2662_v48 = vld [vmem:[%s15349_s6 + $0x368] sm:$0xff]  ;;  %v13775_v32 = vpop.f32.mrb[210].mxu1  ;;  %v2568_v30 = vld [vmem:[%s15349_s6 + $0x78] sm:$0xff] }
 0x803   : > { %2743 = vperm.xlu0 %11327, %v2565_v57   ;;  %v5636_v14 = vld [vmem:[%s15350_s7 + $0x308] sm:$0xff] }
 0x804   : > { %v4867_v8 = vmax.f32 %v4739_v51, %v4478_v13  ;;  %v4256_v12 = vmul.f32 0.2, %v3764_v42  ;;  %7581 = vmatmul.mubr.bf16.gmra.mrb[120].mxu0 %v9738_v63  ;;  %v9779_v57 = vcombine.high %v5636_v14, %v5640_v3  ;;  %v13780_v63 = vpop.f32.mrb[211].mxu1  ;;  %v2664_v51 = vld [vmem:[%s15349_s6 + $0x378] sm:$0xff]  ;;  %v5644_v18 = vld [vmem:[%s15350_s7 + $0x348] sm:$0xff]  ;;  %v9778_v13 = vcombine.low %v5636_v14, %v5640_v3 }
 0x805   : > { %v3194_v55 = vpop.permute.xlu0 %3193  ;;  %7588 = vmatprep.mubr.bf16.mxu0 %v9747_v52  ;;  %v5648_v52 = vld [vmem:[%s15350_s7 + $0x368] sm:$0xff] }
 0x806   : > { %4996 = vst.msk [vmem:[#allocation2 + $0x320] sm:$0xff] %vm4510_vm3, %v4867_v8  ;;  %v4384_v35 = vmax.f32 %v3764_v42, %v4256_v12  ;;  %v4148_v45 = vadd.f32 %v15582_v44, %v3194_v55  ;;  %v2570_v6 = vld [vmem:[%s15349_s6 + $0x88] sm:$0xff]  ;;  %v9787_v42 = vcombine.high %v5644_v18, %v5648_v52  ;;  %v5122_v8 = vld [vmem:[#allocation2 + $0x2f8] sm:$0xff]  ;;  %v9786_v50 = vcombine.low %v5644_v18, %v5648_v52 }
 0x807   : > { %3223 = vperm.xlu0 %11327, %v2661_v34   ;;  %v5440_v12 = vsel %vm4510_vm3, %v5122_v8, -inf  ;;  %v2666_v34 = vld [vmem:[%s15349_s6 + $0x388] sm:$0xff] }
 0x808   : > { %v4773_v47 = vmax.f32 %v4645_v10, %v4384_v35  ;;  %v4352_v31 = vmul.f32 0.2, %v4148_v45  ;;  %v5120_v10 = vld [vmem:[#allocation2 + $0x2e8] sm:$0xff] }
 0x809   : > { %v2724_v56 = vpop.permute.xlu0 %2723  ;;  %v5652_v55 = vld [vmem:[%s15350_s7 + $0x388] sm:$0xff] }
 0x80a   : > { %4902 = vst.msk [vmem:[#allocation2 + $0x30] sm:$0xff] %vm4510_vm3, %v4773_v47  ;;  %v4480_v46 = vmax.f32 %v4148_v45, %v4352_v31  ;;  %v3772_v59 = vadd.f32 %v15583_v5, %v2724_v56  ;;  %v5656_v35 = vld [vmem:[%s15350_s7 + $0x3a8] sm:$0xff]  ;;  %v5434_v47 = vsel %vm4510_vm3, %v5120_v10, -inf  ;;  %v2572_v31 = vld [vmem:[%s15349_s6 + $0x98] sm:$0xff]  ;;  %v2667_v10 = vld [vmem:[%s15349_s6 + $0x390] sm:$0xff] }
 0x80b   : > { %2753 = vperm.xlu0 %11327, %v2567_v23   ;;  %v9795_v23 = vcombine.high %v5652_v55, %v5656_v35  ;;  %v5660_v56 = vld [vmem:[%s15350_s7 + $0x3c8] sm:$0xff] }
 0x80c   : > { %v4869_v53 = vmax.f32 %v4741_v61, %v4480_v46  ;;  %v4258_v37 = vmul.f32 0.2, %v3772_v59  ;;  %7589 = vmatmul.mubr.bf16.gmra.mrb[124].mxu0 %v9746_v1  ;;  %v2668_v61 = vld [vmem:[%s15349_s6 + $0x398] sm:$0xff]  ;;  %v9794_v46 = vcombine.low %v5652_v55, %v5656_v35  ;;  %v2574_v5 = vld [vmem:[%s15349_s6 + $0xa8] sm:$0xff] }
 0x80d   : > { %v3204_v27 = vpop.permute.xlu0 %3203  ;;  %7596 = vmatprep.mubr.bf16.mxu0 %v9755_v22  ;;  %v5664_v22 = vld [vmem:[%s15350_s7 + $0x3e8] sm:$0xff]  ;;  %v2580_v55 = vld [vmem:[%s15349_s6 + $0xd8] sm:$0xff] }
 0x80e   : > { %4998 = vst.msk [vmem:[#allocation2 + $0x330] sm:$0xff] %vm4510_vm3, %v4869_v53  ;;  %v4386_v4 = vmax.f32 %v3772_v59, %v4258_v37  ;;  %v4156_v24 = vadd.f32 %v13514_v33, %v3204_v27  ;;  %v9803_v59 = vcombine.high %v5660_v56, %v5664_v22  ;;  %v5668_v27 = vld [vmem:[%s15350_s7 + $0x408] sm:$0xff] }
 0x80f   : > { %3233 = vperm.xlu0 %11327, %v2663_v29   ;;  %v2670_v29 = vld [vmem:[%s15349_s6 + $0x3a8] sm:$0xff] }
 0x810   : > { %v4775_v28 = vmax.f32 %v4647_v54, %v4386_v4  ;;  %v4354_v36 = vmul.f32 0.2, %v4156_v24  ;;  %3208 = vperm.xlu1 %11328, %v2658_v40   ;;  %v5672_v40 = vld [vmem:[%s15350_s7 + $0x428] sm:$0xff] }
 0x811   : > { %v9810_v3 = vcombine.low %v5668_v27, %v5672_v40  ;;  %v2674_v18 = vld [vmem:[%s15349_s6 + $0x3c8] sm:$0xff] }
 0x812   : > { %4904 = vst.msk [vmem:[#allocation2 + $0x40] sm:$0xff] %vm4510_vm3, %v4775_v28  ;;  %v4482_v33 = vmax.f32 %v4156_v24, %v4354_v36  ;;  %v9802_v28 = vcombine.low %v5660_v56, %v5664_v22  ;;  %v5684_v8 = vld [vmem:[%s15350_s7 + $0x488] sm:$0xff]  ;;  %v2573_v56 = vld [vmem:[%s15349_s6 + $0xa0] sm:$0xff]  ;;  %v2676_v22 = vld [vmem:[%s15349_s6 + $0x3d8] sm:$0xff] }
 0x814   : > { %v4871_v25 = vmax.f32 %v4743_v41, %v4482_v33  ;;  %2738 = vperm.xlu1 %11328, %v2564_v19   ;;  %7597 = vmatmul.mubr.bf16.gmra.mrb[128].mxu0 %v9754_v16  ;;  %v2576_v16 = vld [vmem:[%s15349_s6 + $0xb8] sm:$0xff]  ;;  %v9811_v41 = vcombine.high %v5668_v27, %v5672_v40 }
 0x815   : > { %7604 = vmatprep.mubr.bf16.mxu0 %v9763_v21 }
 0x816   : > { %5000 = vst.msk [vmem:[#allocation2 + $0x340] sm:$0xff] %vm4510_vm3, %v4871_v25  ;;  %v2569_v25 = vld [vmem:[%s15349_s6 + $0x80] sm:$0xff] }
 0x818   : > { %3218 = vperm.xlu1 %11328, %v2660_v49   ;;  %v2672_v49 = vld [vmem:[%s15349_s6 + $0x3b8] sm:$0xff] }
 0x81c   : > { %2748 = vperm.xlu1 %11328, %v2566_v43   ;;  %7605 = vmatmul.mubr.bf16.gmra.mrb[132].mxu0 %v9762_v7  ;;  %v5352_v37 = vpop.xlane.xlu1 %5351  ;;  %v5676_v7 = vld [vmem:[%s15350_s7 + $0x448] sm:$0xff] }
 0x81d   : > { %7612 = vmatprep.mubr.bf16.mxu0 %v9771_v9  ;;  %v5680_v43 = vld [vmem:[%s15350_s7 + $0x468] sm:$0xff]  ;;  %v2665_v9 = vld [vmem:[%s15349_s6 + $0x380] sm:$0xff] }
 0x820   : > { %3228 = vperm.xlu1 %11328, %v2662_v48   ;;  %v2578_v48 = vld [vmem:[%s15349_s6 + $0xc8] sm:$0xff] }
 0x824   : > { %2758 = vperm.xlu1 %11328, %v2568_v30   ;;  %7613 = vmatmul.mubr.bf16.gmra.mrb[136].mxu0 %v9770_v39  ;;  %v5367_v60 = vpop.xlane.xlu1 %5366  ;;  %v9819_v30 = vcombine.high %v5676_v7, %v5680_v43 }
 0x825   : > { %7620 = vmatprep.mubr.bf16.mxu0 %v9779_v57 }
 0x828   : > { %3238 = vperm.xlu1 %11328, %v2664_v51   ;;  %v5361_v58 = vpop.xlane.xlu1 %5360  ;;  %v2571_v51 = vld [vmem:[%s15349_s6 + $0x90] sm:$0xff] }
 0x82c   : > { %2768 = vperm.xlu1 %11328, %v2570_v6   ;;  %7621 = vmatmul.mubr.bf16.gmra.mrb[140].mxu0 %v9778_v13  ;;  %v13804_v44 = vpop.f32.mrb[212].mxu1  ;;  %v5379_v57 = vpop.xlane.xlu1 %5378 }
 0x82d   : > { %7628 = vmatprep.mubr.bf16.mxu0 %v9787_v42  ;;  %v13806_v45 = vpop.f32.mrb[213].mxu1 }
 0x82e   : > { %5441 = vmax.xlane.f32.xlu0 %v5440_v12  ;;  %v13808_v11 = vpop.f32.mrb[214].mxu1  ;;  %v5688_v12 = vld [vmem:[%s15350_s7 + $0x4a8] sm:$0xff] }
 0x82f   : > { %v13814_v1 = vpop.f32.mrb[215].mxu1  ;;  %v9826_v27 = vcombine.low %v5684_v8, %v5688_v12 }
 0x830   : > { %3248 = vperm.xlu1 %11328, %v2666_v34  }
 0x832   : > { %5435 = vmax.xlane.f32.xlu0 %v5434_v47 }
 0x834   : > { %2778 = vperm.xlu1 %11328, %v2572_v31   ;;  %7629 = vmatmul.mubr.bf16.gmra.mrb[144].mxu0 %v9786_v50  ;;  %v5373_v50 = vpop.xlane.xlu1 %5372  ;;  %v9818_v31 = vcombine.low %v5676_v7, %v5680_v43 }
 0x835   : > { %7636 = vmatprep.mubr.bf16.mxu0 %v9795_v23 }
 0x838   : > { %3258 = vperm.xlu1 %11328, %v2668_v61   ;;  %v13837_v4 = vpop.f32.mrb[216].mxu1  ;;  %v9827_v61 = vcombine.high %v5684_v8, %v5688_v12 }
 0x839   : > { %v13839_v26 = vpop.f32.mrb[217].mxu1 }
 0x83a   : > { %v5355_v53 = vpop.xlane.xlu0 %5354  ;;  %v13841_v36 = vpop.f32.mrb[218].mxu1 }
 0x83b   : > { %v13846_v19 = vpop.f32.mrb[219].mxu1 }
 0x83c   : > { %2788 = vperm.xlu1 %11328, %v2574_v5   ;;  %7637 = vmatmul.mubr.bf16.gmra.mrb[148].mxu0 %v9794_v46 }
 0x83d   : > { %7644 = vmatprep.mubr.bf16.mxu0 %v9803_v59  ;;  %v5692_v59 = vld [vmem:[%s15350_s7 + $0x4c8] sm:$0xff] }
 0x83e   : > { %v5349_v54 = vpop.xlane.xlu0 %5348 }
 0x83f   : > { %v5827_v24 = vpack.c.bf16 %v5352_v37, %v5349_v54  ;;  %v2669_v37 = vld [vmem:[%s15349_s6 + $0x3a0] sm:$0xff] }
 0x840   : > { %3268 = vperm.xlu1 %11328, %v2670_v29   ;;  %v2582_v29 = vld [vmem:[%s15349_s6 + $0xe8] sm:$0xff] }
 0x841   : > { %7782 = vmatpush1.bf16.msra.mxu0 %v5827_v24  ;;  %v2575_v24 = vld [vmem:[%s15349_s6 + $0xb0] sm:$0xff] }
 0x842   : > { %v5358_v21 = vpop.xlane.xlu0 %5357  ;;  %7783 = vmatprep.subr.bf16.mxu0 %v15538_v38 }
 0x843   : > { %v5828_v33 = vpack.c.bf16 %v5358_v21, %v5355_v53  ;;  %v13875_v13 = vpop.f32.mrb[220].mxu1  ;;  %v5696_v53 = vld [vmem:[%s15350_s7 + $0x4e8] sm:$0xff] }
 0x844   : > { %2798 = vperm.xlu1 %11328, %v2576_v16   ;;  %7645 = vmatmul.mubr.bf16.gmra.mrb[152].mxu0 %v9802_v28  ;;  %v13877_v42 = vpop.f32.mrb[221].mxu1  ;;  %v9835_v40 = vcombine.high %v5692_v59, %v5696_v53  ;;  %v5700_v21 = vld [vmem:[%s15350_s7 + $0x508] sm:$0xff]  ;;  %v9834_v43 = vcombine.low %v5692_v59, %v5696_v53  ;;  %v2581_v53 = vld [vmem:[%s15349_s6 + $0xe0] sm:$0xff] }
 0x845   : > { %7784 = vmatpush1.bf16.msra.mxu0 %v5828_v33  ;;  %7652 = vmatprep.mubr.bf16.mxu0 %v9811_v41  ;;  %v13885_v34 = vpop.f32.mrb[222].mxu1  ;;  %v5704_v33 = vld [vmem:[%s15350_s7 + $0x528] sm:$0xff] }
 0x846   : > { %v5370_v17 = vpop.xlane.xlu0 %5369  ;;  %7785 = vmatprep.subr.bf16.mxu0 %v15538_v38  ;;  %v13893_v35 = vpop.f32.mrb[223].mxu1 }
 0x847   : > { %v5830_v6 = vpack.c.bf16 %v5370_v17, %v5367_v60  ;;  %v2678_v60 = vld [vmem:[%s15349_s6 + $0x3e8] sm:$0xff] }
 0x848   : > { %2763 = vperm.xlu0 %11327, %v2569_v25   ;;  %3278 = vperm.xlu1 %11328, %v2672_v49   ;;  %v2671_v49 = vld [vmem:[%s15349_s6 + $0x3b0] sm:$0xff] }
 0x84a   : > { %v5364_v14 = vpop.xlane.xlu0 %5363 }
 0x84b   : > { %v5829_v39 = vpack.c.bf16 %v5364_v14, %v5361_v58  ;;  %v2584_v58 = vld [vmem:[%s15349_s6 + $0xf8] sm:$0xff] }
 0x84c   : > { %3243 = vperm.xlu0 %11327, %v2665_v9   ;;  %2808 = vperm.xlu1 %11328, %v2578_v48   ;;  %v9843_v9 = vcombine.high %v5700_v21, %v5704_v33  ;;  %v2577_v48 = vld [vmem:[%s15349_s6 + $0xc0] sm:$0xff]  ;;  %v2680_v14 = vld [vmem:[%s15349_s6 + $0x3f8] sm:$0xff] }
 0x84d   : > { %7786 = vmatpush1.bf16.msra.mxu0 %v5829_v39 }
 0x84e   : > { %v5382_v52 = vpop.xlane.xlu0 %5381  ;;  %7787 = vmatprep.subr.bf16.mxu0 %v15538_v38  ;;  %7653 = vmatmul.mubr.bf16.gmra.mrb[156].mxu0 %v9810_v3 }
 0x84f   : > { %7660 = vmatprep.mubr.bf16.mxu0 %v9819_v30  ;;  %v5832_v5 = vpack.c.bf16 %v5382_v52, %v5379_v57  ;;  %v5708_v30 = vld [vmem:[%s15350_s7 + $0x548] sm:$0xff]  ;;  %v9842_v52 = vcombine.low %v5700_v21, %v5704_v33  ;;  %v15584_v21 = vld [vmem:[#allocation12_spill] sm:$0xff] }
 0x850   : > { %2773 = vperm.xlu0 %11327, %v2571_v51   ;;  %3288 = vperm.xlu1 %11328, %v2674_v18   ;;  %v5712_v57 = vld [vmem:[%s15350_s7 + $0x568] sm:$0xff]  ;;  %v2673_v51 = vld [vmem:[%s15349_s6 + $0x3c0] sm:$0xff] }
 0x851   : > { %7788 = vmatpush1.bf16.msra.mxu0 %v5830_v6  ;;  %v9851_v6 = vcombine.high %v5708_v30, %v5712_v57 }
 0x852   : > { %v5376_v47 = vpop.xlane.xlu0 %5375  ;;  %7789 = vmatprep.subr.bf16.mxu0 %v15538_v38 }
 0x853   : > { %v5831_v23 = vpack.c.bf16 %v5376_v47, %v5373_v50  ;;  %v5716_v47 = vld [vmem:[%s15350_s7 + $0x588] sm:$0xff] }
 0x854   : > { %3253 = vperm.xlu0 %11327, %v2667_v10   ;;  %2818 = vperm.xlu1 %11328, %v2580_v55   ;;  %v2579_v10 = vld [vmem:[%s15349_s6 + $0xd0] sm:$0xff] }
 0x855   : > { %7790 = vmatpush1.bf16.msra.mxu0 %v5831_v23 }
 0x856   : > { %v13902_v46 = vpop.xlane.xlu0 %5393  ;;  %7791 = vmatprep.subr.bf16.mxu0 %v15538_v38  ;;  %7661 = vmatmul.mubr.bf16.gmra.mrb[160].mxu0 %v9818_v31  ;;  %v5720_v31 = vld [vmem:[%s15350_s7 + $0x5a8] sm:$0xff] }
 0x857   : > { %7668 = vmatprep.mubr.bf16.mxu0 %v9827_v61  ;;  %v2675_v61 = vld [vmem:[%s15349_s6 + $0x3d0] sm:$0xff] }
 0x858   : > { %2783 = vperm.xlu0 %11327, %v2573_v56   ;;  %3298 = vperm.xlu1 %11328, %v2676_v22   ;;  %v9850_v56 = vcombine.low %v5708_v30, %v5712_v57  ;;  %v9859_v22 = vcombine.high %v5716_v47, %v5720_v31  ;;  %v5732_v57 = vld [vmem:[%s15350_s7 + $0x608] sm:$0xff] }
 0x859   : > { %7792 = vmatpush1.bf16.msra.mxu0 %v5832_v5 }
 0x85a   : > { %v5388_v54 = vpop.xlane.xlu0 %5387  ;;  %7793 = vmatprep.subr.bf16.mxu0 %v15538_v38  ;;  %v13926_v16 = vpop.f32.mrb[224].mxu1 }
 0x85b   : > { %v13928_v41 = vpop.f32.mrb[225].mxu1 }
 0x85c   : > { %3263 = vperm.xlu0 %11327, %v2669_v37   ;;  %2828 = vperm.xlu1 %11328, %v2582_v29   ;;  %v13936_v25 = vpop.f32.mrb[226].mxu1  ;;  %v5724_v29 = vld [vmem:[%s15350_s7 + $0x5c8] sm:$0xff] }
 0x85d   : > { %v13944_v17 = vpop.f32.mrb[227].mxu1 }
 0x85e   : > { %v13924_v28 = vpop.xlane.xlu0 %5405  ;;  %7669 = vmatmul.mubr.bf16.gmra.mrb[164].mxu0 %v9826_v27 }
 0x85f   : > { %7676 = vmatprep.mubr.bf16.mxu0 %v9835_v40  ;;  %v2677_v40 = vld [vmem:[%s15349_s6 + $0x3e0] sm:$0xff] }
 0x860   : > { %2793 = vperm.xlu0 %11327, %v2575_v24   ;;  %3308 = vperm.xlu1 %11328, %v2678_v60   ;;  %v9858_v60 = vcombine.low %v5716_v47, %v5720_v31  ;;  %v15585_v47 = vld [vmem:[#allocation20_spill] sm:$0xff] }
 0x862   : > { %v5400_v7 = vpop.xlane.xlu0 %5399 }
 0x864   : > { %3273 = vperm.xlu0 %11327, %v2671_v49   ;;  %2838 = vperm.xlu1 %11328, %v2584_v58  }
 0x866   : > { %v13952_v3 = vpop.xlane.xlu0 %5417  ;;  %7677 = vmatmul.mubr.bf16.gmra.mrb[168].mxu0 %v9834_v43 }
 0x867   : > { %7684 = vmatprep.mubr.bf16.mxu0 %v9843_v9  ;;  %v4649_v9 = vld [vmem:[#allocation2 + $0x50] sm:$0xff] }
 0x868   : > { %v5391_v39 = vpop.xlane.xlu1 %5390  ;;  %2803 = vperm.xlu0 %11327, %v2577_v48   ;;  %3318 = vperm.xlu1 %11328, %v2680_v14  }
 0x869   : > { %v5834_v23 = vpack.c.bf16 %v13902_v46, %v5391_v39 }
 0x86a   : > { %v5412_v18 = vpop.xlane.xlu0 %5411 }
 0x86c   : > { %v5385_v8 = vpop.xlane.xlu1 %5384  ;;  %3283 = vperm.xlu0 %11327, %v2673_v51   ;;  %v5736_v51 = vld [vmem:[%s15350_s7 + $0x628] sm:$0xff] }
 0x86d   : > { %v5833_v12 = vpack.c.bf16 %v5388_v54, %v5385_v8  ;;  %v5728_v54 = vld [vmem:[%s15350_s7 + $0x5e8] sm:$0xff]  ;;  %v4745_v8 = vld [vmem:[#allocation2 + $0x350] sm:$0xff] }
 0x86e   : > { %7685 = vmatmul.mubr.bf16.gmra.mrb[172].mxu0 %v9842_v52  ;;  %v13966_v55 = vpop.xlane.xlu0 %5429  ;;  %v9867_v49 = vcombine.high %v5724_v29, %v5728_v54 }
 0x86f   : > { %7794 = vmatpush1.bf16.msra.mxu0 %v5833_v12  ;;  %7692 = vmatprep.mubr.bf16.mxu0 %v9851_v6 }
 0x870   : > { %v5403_v50 = vpop.xlane.xlu1 %5402  ;;  %2813 = vperm.xlu0 %11327, %v2579_v10   ;;  %7795 = vmatprep.subr.bf16.mxu0 %v15538_v38  ;;  %v9866_v10 = vcombine.low %v5724_v29, %v5728_v54  ;;  %v5028_v54 = vld [vmem:[#allocation2 + $0x8] sm:$0xff] }
 0x871   : > { %v5836_v27 = vpack.c.bf16 %v13924_v28, %v5403_v50  ;;  %v2583_v28 = vld [vmem:[%s15349_s6 + $0xf0] sm:$0xff] }
 0x872   : > { %v5424_v37 = vpop.xlane.xlu0 %5423 }
 0x873   : > { %7796 = vmatpush1.bf16.msra.mxu0 %v5834_v23  ;;  %v9875_v23 = vcombine.high %v5732_v57, %v5736_v51 }
 0x874   : > { %v5397_v5 = vpop.xlane.xlu1 %5396  ;;  %3293 = vperm.xlu0 %11327, %v2675_v61   ;;  %7797 = vmatprep.subr.bf16.mxu0 %v15538_v38 }
 0x875   : > { %v5835_v59 = vpack.c.bf16 %v5400_v7, %v5397_v5  ;;  %v4651_v5 = vld [vmem:[#allocation2 + $0x60] sm:$0xff] }
 0x876   : > { %7693 = vmatmul.mubr.bf16.gmra.mrb[176].mxu0 %v9850_v56 }
 0x877   : > { %7798 = vmatpush1.bf16.msra.mxu0 %v5835_v59  ;;  %7700 = vmatprep.mubr.bf16.mxu0 %v9859_v22 }
 0x878   : > { %v5415_v46 = vpop.xlane.xlu1 %5414  ;;  %2823 = vperm.xlu0 %11327, %v2581_v53   ;;  %7799 = vmatprep.subr.bf16.mxu0 %v15538_v38 }
 0x87a   : > { %v2734_v24 = vpop.permute.xlu0 %2733 }
 0x87b   : > { %v3780_v33 = vadd.f32 %v15584_v21, %v2734_v24  ;;  %7800 = vmatpush1.bf16.msra.mxu0 %v5836_v27  ;;  %v5740_v27 = vld [vmem:[%s15350_s7 + $0x648] sm:$0xff] }
 0x87c   : > { %v5409_v58 = vpop.xlane.xlu1 %5408  ;;  %3303 = vperm.xlu0 %11327, %v2677_v40   ;;  %7801 = vmatprep.subr.bf16.mxu0 %v15538_v38 }
 0x87d   : > { %v4260_v7 = vmul.f32 0.2, %v3780_v33  ;;  %v5837_v43 = vpack.c.bf16 %v5412_v18, %v5409_v58  ;;  %v5838_v18 = vpack.c.bf16 %v13952_v3, %v5415_v46  ;;  %v15586_v58 = vld [vmem:[#allocation32_spill] sm:$0xff] }
 0x87e   : > { %v3214_v48 = vpop.permute.xlu0 %3213  ;;  %7701 = vmatmul.mubr.bf16.gmra.mrb[180].mxu0 %v9858_v60 }
 0x87f   : > { %v4388_v14 = vmax.f32 %v3780_v33, %v4260_v7  ;;  %v4164_v39 = vadd.f32 %v13511_v62, %v3214_v48  ;;  %7802 = vmatpush1.bf16.msra.mxu0 %v5837_v43  ;;  %7708 = vmatprep.mubr.bf16.mxu0 %v9867_v49  ;;  %v2679_v62 = vld [vmem:[%s15349_s6 + $0x3f0] sm:$0xff]  ;;  %v9874_v33 = vcombine.low %v5732_v57, %v5736_v51  ;;  %v5158_v43 = vsel %vm4510_vm3, %v5028_v54, -inf }
 0x880   : > { %v5427_v30 = vpop.xlane.xlu1 %5426  ;;  %2833 = vperm.xlu0 %11327, %v2583_v28   ;;  %7803 = vmatprep.subr.bf16.mxu0 %v15538_v38  ;;  %v5029_v48 = vld [vmem:[#allocation2 + $0x10] sm:$0xff] }
 0x881   : > { %v4777_v52 = vmax.f32 %v4649_v9, %v4388_v14  ;;  %v4356_v6 = vmul.f32 0.2, %v4164_v39  ;;  %v5840_v40 = vpack.c.bf16 %v13966_v55, %v5427_v30 }
 0x882   : > { %v2744_v12 = vpop.permute.xlu0 %2743 }
 0x883   : > { %4906 = vst.msk [vmem:[#allocation2 + $0x50] sm:$0xff] %vm4510_vm3, %v4777_v52  ;;  %v4484_v50 = vmax.f32 %v4164_v39, %v4356_v6  ;;  %v3788_v31 = vadd.f32 %v15585_v47, %v2744_v12  ;;  %7804 = vmatpush1.bf16.msra.mxu0 %v5838_v18  ;;  %v4653_v39 = vld [vmem:[#allocation2 + $0x70] sm:$0xff]  ;;  %v5161_v18 = vsel %vm4510_vm3, %v5029_v48, -inf  ;;  %v5031_v6 = vld [vmem:[#allocation2 + $0x20] sm:$0xff] }
 0x884   : > { %v5421_v61 = vpop.xlane.xlu1 %5420  ;;  %3313 = vperm.xlu0 %11327, %v2679_v62   ;;  %7805 = vmatprep.subr.bf16.mxu0 %v15538_v38  ;;  %v5748_v62 = vld [vmem:[%s15350_s7 + $0x688] sm:$0xff]  ;;  %v4749_v47 = vld [vmem:[#allocation2 + $0x370] sm:$0xff] }
 0x885   : > { %v4873_v3 = vmax.f32 %v4745_v8, %v4484_v50  ;;  %v4262_v56 = vmul.f32 0.2, %v3788_v31  ;;  %v5839_v22 = vpack.c.bf16 %v5424_v37, %v5421_v61  ;;  %v5744_v37 = vld [vmem:[%s15350_s7 + $0x668] sm:$0xff]  ;;  %v5167_v61 = vsel %vm4510_vm3, %v5031_v6, -inf }
 0x886   : > { %v3224_v59 = vpop.permute.xlu0 %3223  ;;  %7709 = vmatmul.mubr.bf16.gmra.mrb[184].mxu0 %v9866_v10  ;;  %v9883_v28 = vcombine.high %v5740_v27, %v5744_v37  ;;  %v5752_v8 = vld [vmem:[%s15350_s7 + $0x6a8] sm:$0xff] }
 0x887   : > { %5002 = vst.msk [vmem:[#allocation2 + $0x350] sm:$0xff] %vm4510_vm3, %v4873_v3  ;;  %v4390_v53 = vmax.f32 %v3788_v31, %v4262_v56  ;;  %v4172_v46 = vadd.f32 %v13728_v0, %v3224_v59  ;;  %7806 = vmatpush1.bf16.msra.mxu0 %v5839_v22  ;;  %7716 = vmatprep.mubr.bf16.mxu0 %v9875_v23  ;;  %v4747_v0 = vld [vmem:[#allocation2 + $0x360] sm:$0xff]  ;;  %v4744_v56 = vld [vmem:[#allocation2 + $0x348] sm:$0xff] }
 0x888   : > { %v14016_v29 = vpop.xlane.xlu1 %5438  ;;  %7807 = vmatprep.subr.bf16.mxu0 %v15538_v38  ;;  %v9891_v3 = vcombine.high %v5748_v62, %v5752_v8 }
 0x889   : > { %v4779_v24 = vmax.f32 %v4651_v5, %v4390_v53  ;;  %v4358_v60 = vmul.f32 0.2, %v4172_v46  ;;  %v5033_v5 = vld [vmem:[#allocation2 + $0x30] sm:$0xff] }
 0x88a   : > { %v2754_v21 = vpop.permute.xlu0 %2753 }
 0x88b   : > { %4908 = vst.msk [vmem:[#allocation2 + $0x60] sm:$0xff] %vm4510_vm3, %v4779_v24  ;;  %v4486_v49 = vmax.f32 %v4172_v46, %v4358_v60  ;;  %v3796_v7 = vadd.f32 %v15586_v58, %v2754_v21  ;;  %7808 = vmatpush1.bf16.msra.mxu0 %v5840_v40  ;;  %v15587_v46 = vld [vmem:[#allocation30_spill] sm:$0xff]  ;;  %v5173_v40 = vsel %vm4510_vm3, %v5033_v5, -inf  ;;  %v5035_v60 = vld [vmem:[#allocation2 + $0x40] sm:$0xff]  ;;  %v5760_v21 = vld [vmem:[%s15350_s7 + $0x6e8] sm:$0xff]  ;;  %v9890_v58 = vcombine.low %v5748_v62, %v5752_v8 }
 0x88c   : > { %v14029_v9 = vpop.xlane.xlu1 %5432  ;;  %5159 = vmax.xlane.f32.xlu1 %v5158_v43  ;;  %7809 = vmatprep.subr.bf16.mxu0 %v15538_v38  ;;  %v5027_v62 = vld [vmem:[#allocation2] sm:$0xff] }
 0x88d   : > { %v4875_v55 = vmax.f32 %v4747_v0, %v4486_v49  ;;  %v4264_v14 = vmul.f32 0.2, %v3796_v7  ;;  %v5756_v0 = vld [vmem:[%s15350_s7 + $0x6c8] sm:$0xff] }
 0x88e   : > { %v3234_v30 = vpop.permute.xlu0 %3233  ;;  %7717 = vmatmul.mubr.bf16.gmra.mrb[188].mxu0 %v9874_v33  ;;  %v9899_v48 = vcombine.high %v5756_v0, %v5760_v21 }
 0x88f   : > { %5004 = vst.msk [vmem:[#allocation2 + $0x360] sm:$0xff] %vm4510_vm3, %v4875_v55  ;;  %v4392_v57 = vmax.f32 %v3796_v7, %v4264_v14  ;;  %v4180_v51 = vadd.f32 %v13726_v2, %v3234_v30  ;;  %7724 = vmatprep.mubr.bf16.mxu0 %v9883_v28  ;;  %v9882_v2 = vcombine.low %v5740_v27, %v5744_v37  ;;  %v4650_v27 = vld [vmem:[#allocation2 + $0x58] sm:$0xff]  ;;  %v5179_v28 = vsel %vm4510_vm3, %v5035_v60, -inf  ;;  %v5032_v60 = vld [vmem:[#allocation2 + $0x28] sm:$0xff] }
 0x890   : > { %v3209_v52 = vpop.permute.xlu1 %3208  ;;  %5162 = vmax.xlane.f32.xlu1 %v5161_v18  ;;  %v4746_v55 = vld [vmem:[#allocation2 + $0x358] sm:$0xff] }
 0x891   : > { %v4781_v12 = vmax.f32 %v4653_v39, %v4392_v57  ;;  %v4360_v10 = vmul.f32 0.2, %v4180_v51  ;;  %v4159_v50 = vadd.f32 %v13716_v20, %v3209_v52  ;;  %v5037_v39 = vld [vmem:[#allocation2 + $0x50] sm:$0xff]  ;;  %v15588_v57 = vld [vmem:[#allocation33_spill] sm:$0xff] }
 0x892   : > { %v4652_v52 = vld [vmem:[#allocation2 + $0x68] sm:$0xff] }
 0x893   : > { %4910 = vst.msk [vmem:[#allocation2 + $0x70] sm:$0xff] %vm4510_vm3, %v4781_v12  ;;  %v4488_v31 = vmax.f32 %v4180_v51, %v4360_v10  ;;  %v4355_v23 = vmul.f32 0.2, %v4159_v50  ;;  %v5039_v12 = vld [vmem:[#allocation2 + $0x60] sm:$0xff]  ;;  %v5764_v10 = vld [vmem:[%s15350_s7 + $0x708] sm:$0xff] }
 0x894   : > { %v2739_v22 = vpop.permute.xlu1 %2738  ;;  %5168 = vmax.xlane.f32.xlu1 %v5167_v61 }
 0x895   : > { %v4877_v59 = vmax.f32 %v4749_v47, %v4488_v31  ;;  %v4483_v53 = vmax.f32 %v4159_v50, %v4355_v23  ;;  %v3783_v54 = vadd.f32 %v15587_v46, %v2739_v22  ;;  %v5768_v50 = vld [vmem:[%s15350_s7 + $0x728] sm:$0xff]  ;;  %v5155_v31 = vsel %vm4510_vm3, %v5027_v62, -inf  ;;  %v5030_v22 = vld [vmem:[#allocation2 + $0x18] sm:$0xff] }
 0x896   : > { %7725 = vmatmul.mubr.bf16.gmra.mrb[192].mxu0 %v9882_v2  ;;  %v9898_v23 = vcombine.low %v5756_v0, %v5760_v21  ;;  %v9907_v5 = vcombine.high %v5764_v10, %v5768_v50  ;;  %v4654_v0 = vld [vmem:[#allocation2 + $0x78] sm:$0xff]  ;;  %v5036_v62 = vld [vmem:[#allocation2 + $0x48] sm:$0xff] }
 0x897   : > { %5006 = vst.msk [vmem:[#allocation2 + $0x370] sm:$0xff] %vm4510_vm3, %v4877_v59  ;;  %v4872_v20 = vmax.f32 %v4744_v56, %v4483_v53  ;;  %v4261_v37 = vmul.f32 0.2, %v3783_v54  ;;  %7732 = vmatprep.mubr.bf16.mxu0 %v9891_v3  ;;  %v5191_v56 = vsel %vm4510_vm3, %v5039_v12, -inf  ;;  %v4748_v59 = vld [vmem:[#allocation2 + $0x368] sm:$0xff] }
 0x898   : > { %v3219_v24 = vpop.permute.xlu1 %3218  ;;  %5174 = vmax.xlane.f32.xlu1 %v5173_v40 }
 0x899   : > { %5001 = vst.msk [vmem:[#allocation2 + $0x348] sm:$0xff] %vm4510_vm3, %v4872_v20  ;;  %v4389_v33 = vmax.f32 %v3783_v54, %v4261_v37  ;;  %v4167_v49 = vadd.f32 %v13714_v15, %v3219_v24  ;;  %v5185_v15 = vsel %vm4510_vm3, %v5037_v39, -inf  ;;  %v15589_v20 = vld [vmem:[#allocation18_spill] sm:$0xff] }
 0x89a   : > { %v5041_v46 = vld [vmem:[#allocation2 + $0x70] sm:$0xff] }
 0x89b   : > { %v4778_v7 = vmax.f32 %v4650_v27, %v4389_v33  ;;  %v4357_v43 = vmul.f32 0.2, %v4167_v49  ;;  %v5197_v24 = vsel %vm4510_vm3, %v5041_v46, -inf  ;;  %v5772_v33 = vld [vmem:[%s15350_s7 + $0x748] sm:$0xff]  ;;  %v15591_v46 = vld [vmem:[#allocation22_spill] sm:$0xff] }
 0x89c   : > { %v2749_v14 = vpop.permute.xlu1 %2748  ;;  %5180 = vmax.xlane.f32.xlu1 %v5179_v28  ;;  %v9906_v28 = vcombine.low %v5764_v10, %v5768_v50  ;;  %v5780_v10 = vld [vmem:[%s15350_s7 + $0x788] sm:$0xff] }
 0x89d   : > { %4907 = vst.msk [vmem:[#allocation2 + $0x58] sm:$0xff] %vm4510_vm3, %v4778_v7  ;;  %v4485_v30 = vmax.f32 %v4167_v49, %v4357_v43  ;;  %v3791_v51 = vadd.f32 %v15588_v57, %v2749_v14  ;;  %v5776_v49 = vld [vmem:[%s15350_s7 + $0x768] sm:$0xff]  ;;  %v5170_v43 = vsel %vm4510_vm3, %v5032_v60, -inf  ;;  %v5034_v14 = vld [vmem:[#allocation2 + $0x38] sm:$0xff] }
 0x89e   : > { %7733 = vmatmul.mubr.bf16.gmra.mrb[196].mxu0 %v9890_v58  ;;  %v9915_v39 = vcombine.high %v5772_v33, %v5776_v49  ;;  %v5784_v50 = vld [vmem:[%s15350_s7 + $0x7a8] sm:$0xff] }
 0x89f   : > { %v4874_v18 = vmax.f32 %v4746_v55, %v4485_v30  ;;  %v4263_v6 = vmul.f32 0.2, %v3791_v51  ;;  %7740 = vmatprep.mubr.bf16.mxu0 %v9899_v48  ;;  %v4750_v30 = vld [vmem:[#allocation2 + $0x378] sm:$0xff]  ;;  %v5792_v60 = vld [vmem:[%s15350_s7 + $0x7e8] sm:$0xff] }
 0x8a0   : > { %v3229_v8 = vpop.permute.xlu1 %3228  ;;  %5186 = vmax.xlane.f32.xlu1 %v5185_v15 }
 0x8a1   : > { %5003 = vst.msk [vmem:[#allocation2 + $0x358] sm:$0xff] %vm4510_vm3, %v4874_v18  ;;  %v4391_v47 = vmax.f32 %v3791_v51, %v4263_v6  ;;  %v4175_v2 = vadd.f32 %v13780_v63, %v3229_v8  ;;  %v5164_v63 = vsel %vm4510_vm3, %v5030_v22, -inf  ;;  %v15590_v18 = vld [vmem:[#allocation19_spill] sm:$0xff]  ;;  %v5176_v6 = vsel %vm4510_vm3, %v5034_v14, -inf  ;;  %v4656_v8 = vld [vmem:[#allocation2 + $0x88] sm:$0xff] }
 0x8a2   : > { %v9923_v22 = vcombine.high %v5780_v10, %v5784_v50 }
 0x8a3   : > { %v4780_v61 = vmax.f32 %v4652_v52, %v4391_v47  ;;  %v4359_v3 = vmul.f32 0.2, %v4175_v2  ;;  %5156 = vmax.xlane.f32.xlu0 %v5155_v31  ;;  %v5182_v31 = vsel %vm4510_vm3, %v5036_v62, -inf }
 0x8a4   : > { %v2759_v53 = vpop.permute.xlu1 %2758  ;;  %5192 = vmax.xlane.f32.xlu1 %v5191_v56  ;;  %v5038_v56 = vld [vmem:[#allocation2 + $0x58] sm:$0xff] }
 0x8a5   : > { %4909 = vst.msk [vmem:[#allocation2 + $0x68] sm:$0xff] %vm4510_vm3, %v4780_v61  ;;  %v4487_v54 = vmax.f32 %v4175_v2, %v4359_v3  ;;  %v3799_v27 = vadd.f32 %v15589_v20, %v2759_v53  ;;  %v5188_v20 = vsel %vm4510_vm3, %v5038_v56, -inf }
 0x8a6   : > { %7741 = vmatmul.mubr.bf16.gmra.mrb[200].mxu0 %v9898_v23  ;;  %v9914_v23 = vcombine.low %v5772_v33, %v5776_v49  ;;  %v9922_v49 = vcombine.low %v5780_v10, %v5784_v50  ;;  %v5541_v10 = vld [vmem:[%s15350_s7 + $0x10] sm:$0xff] }
 0x8a7   : > { %v4876_v37 = vmax.f32 %v4748_v59, %v4487_v54  ;;  %v4265_v40 = vmul.f32 0.2, %v3799_v27  ;;  %5165 = vmax.xlane.f32.xlu0 %v5164_v63  ;;  %7748 = vmatprep.mubr.bf16.mxu0 %v9907_v5  ;;  %v4752_v5 = vld [vmem:[#allocation2 + $0x388] sm:$0xff]  ;;  %v5545_v50 = vld [vmem:[%s15350_s7 + $0x30] sm:$0xff] }
 0x8a8   : > { %v3239_v21 = vpop.permute.xlu1 %3238  ;;  %5198 = vmax.xlane.f32.xlu1 %v5197_v24  ;;  %v5788_v24 = vld [vmem:[%s15350_s7 + $0x7c8] sm:$0xff]  ;;  %v9685_v56 = vcombine.high %v5541_v10, %v5545_v50 }
 0x8a9   : > { %5005 = vst.msk [vmem:[#allocation2 + $0x368] sm:$0xff] %vm4510_vm3, %v4876_v37  ;;  %v4393_v58 = vmax.f32 %v3799_v27, %v4265_v40  ;;  %v4183_v7 = vadd.f32 %v13775_v32, %v3239_v21  ;;  %v4658_v37 = vld [vmem:[#allocation2 + $0x98] sm:$0xff] }
 0x8ab   : > { %v4782_v48 = vmax.f32 %v4654_v0, %v4393_v58  ;;  %v4361_v55 = vmul.f32 0.2, %v4183_v7  ;;  %5171 = vmax.xlane.f32.xlu0 %v5170_v43 }
 0x8ac   : > { %v2769_v57 = vpop.permute.xlu1 %2768  ;;  %v5040_v63 = vld [vmem:[#allocation2 + $0x68] sm:$0xff] }
 0x8ad   : > { %4911 = vst.msk [vmem:[#allocation2 + $0x78] sm:$0xff] %vm4510_vm3, %v4782_v48  ;;  %v4489_v51 = vmax.f32 %v4183_v7, %v4361_v55  ;;  %v3807_v52 = vadd.f32 %v15590_v18, %v2769_v57  ;;  %v5194_v33 = vsel %vm4510_vm3, %v5040_v63, -inf  ;;  %v9931_v48 = vcombine.high %v5788_v24, %v5792_v60  ;;  %v4754_v55 = vld [vmem:[#allocation2 + $0x398] sm:$0xff] }
 0x8ae   : > { %7749 = vmatmul.mubr.bf16.gmra.mrb[204].mxu0 %v9906_v28 }
 0x8af   : > { %v4878_v15 = vmax.f32 %v4750_v30, %v4489_v51  ;;  %v4267_v32 = vmul.f32 0.2, %v3807_v52  ;;  %5177 = vmax.xlane.f32.xlu0 %v5176_v6  ;;  %7756 = vmatprep.mubr.bf16.mxu0 %v9915_v39  ;;  %v15592_v30 = vld [vmem:[#allocation14_spill] sm:$0xff] }
 0x8b0   : > { %v3249_v12 = vpop.permute.xlu1 %3248 }
 0x8b1   : > { %5007 = vst.msk [vmem:[#allocation2 + $0x378] sm:$0xff] %vm4510_vm3, %v4878_v15  ;;  %v4395_v47 = vmax.f32 %v3807_v52, %v4267_v32  ;;  %v4191_v2 = vadd.f32 %v13814_v1, %v3249_v12  ;;  %v4660_v15 = vld [vmem:[#allocation2 + $0xa8] sm:$0xff] }
 0x8b3   : > { %v4784_v61 = vmax.f32 %v4656_v8, %v4395_v47  ;;  %v4363_v3 = vmul.f32 0.2, %v4191_v2  ;;  %5183 = vmax.xlane.f32.xlu0 %v5182_v31 }
 0x8b4   : > { %v2779_v59 = vpop.permute.xlu1 %2778  ;;  %v5042_v28 = vld [vmem:[#allocation2 + $0x78] sm:$0xff] }
 0x8b5   : > { %4913 = vst.msk [vmem:[#allocation2 + $0x88] sm:$0xff] %vm4510_vm3, %v4784_v61  ;;  %v4491_v53 = vmax.f32 %v4191_v2, %v4363_v3  ;;  %v3815_v54 = vadd.f32 %v15591_v46, %v2779_v59  ;;  %v5200_v51 = vsel %vm4510_vm3, %v5042_v28, -inf  ;;  %v4758_v28 = vld [vmem:[#allocation2 + $0x3b8] sm:$0xff] }
 0x8b6   : > { %7757 = vmatmul.mubr.bf16.gmra.mrb[208].mxu0 %v9914_v23 }
 0x8b7   : > { %v4880_v27 = vmax.f32 %v4752_v5, %v4491_v53  ;;  %v4269_v1 = vmul.f32 0.2, %v3815_v54  ;;  %5189 = vmax.xlane.f32.xlu0 %v5188_v20  ;;  %7764 = vmatprep.mubr.bf16.mxu0 %v9923_v22  ;;  %v15593_v5 = vld [vmem:[#allocation15_spill] sm:$0xff] }
 0x8b8   : > { %v3259_v40 = vpop.permute.xlu1 %3258 }
 0x8b9   : > { %5009 = vst.msk [vmem:[#allocation2 + $0x388] sm:$0xff] %vm4510_vm3, %v4880_v27  ;;  %v4397_v0 = vmax.f32 %v3815_v54, %v4269_v1  ;;  %v4199_v21 = vadd.f32 %v13808_v11, %v3259_v40  ;;  %v4662_v27 = vld [vmem:[#allocation2 + $0xb8] sm:$0xff]  ;;  %v15594_v1 = vld [vmem:[#allocation13_spill] sm:$0xff] }
 0x8bb   : > { %v4786_v58 = vmax.f32 %v4658_v37, %v4397_v0  ;;  %v4365_v7 = vmul.f32 0.2, %v4199_v21  ;;  %5195 = vmax.xlane.f32.xlu0 %v5194_v33  ;;  %v5442_v43 = vpop.xlane.xlu0 %5441  ;;  %v4655_v33 = vld [vmem:[#allocation2 + $0x80] sm:$0xff] }
 0x8bc   : > { %v2789_v14 = vpop.permute.xlu1 %2788  ;;  %v5044_v6 = vld [vmem:[#allocation2 + $0x88] sm:$0xff]  ;;  %v5842_v23 = vpack.c.bf16 %v5442_v43, %v14016_v29 }
 0x8bd   : > { %4915 = vst.msk [vmem:[#allocation2 + $0x98] sm:$0xff] %vm4510_vm3, %v4786_v58  ;;  %v4493_v39 = vmax.f32 %v4199_v21, %v4365_v7  ;;  %v3823_v57 = vadd.f32 %v15592_v30, %v2789_v14  ;;  %v5206_v47 = vsel %vm4510_vm3, %v5044_v6, -inf  ;;  %v9684_v7 = vcombine.low %v5541_v10, %v5545_v50  ;;  %v15595_v30 = vld [vmem:[#allocation35_spill] sm:$0xff]  ;;  %v4751_v6 = vld [vmem:[#allocation2 + $0x380] sm:$0xff] }
 0x8be   : > { %7765 = vmatmul.mubr.bf16.gmra.mrb[212].mxu0 %v9922_v49 }
 0x8bf   : > { %v4882_v11 = vmax.f32 %v4754_v55, %v4493_v39  ;;  %v4271_v18 = vmul.f32 0.2, %v3823_v57  ;;  %5201 = vmax.xlane.f32.xlu0 %v5200_v51  ;;  %v5436_v52 = vpop.xlane.xlu0 %5435  ;;  %7772 = vmatprep.mubr.bf16.mxu0 %v9931_v48 }
 0x8c0   : > { %v5841_v32 = vpack.c.bf16 %v5436_v52, %v14029_v9  ;;  %v3269_v62 = vpop.permute.xlu1 %3268  ;;  %v9930_v9 = vcombine.low %v5788_v24, %v5792_v60  ;;  %v14131_v24 = vld [vmem:[%s15350_s7 + $0x50] sm:$0xff] }
 0x8c1   : > { %5011 = vst.msk [vmem:[#allocation2 + $0x398] sm:$0xff] %vm4510_vm3, %v4882_v11  ;;  %v4399_v8 = vmax.f32 %v3823_v57, %v4271_v18  ;;  %v4207_v12 = vadd.f32 %v13846_v19, %v3269_v62  ;;  %v4756_v19 = vld [vmem:[#allocation2 + $0x3a8] sm:$0xff]  ;;  %v5553_v60 = vld [vmem:[%s15350_s7 + $0x70] sm:$0xff] }
 0x8c2   : > { %7810 = vmatpush1.bf16.msra.mxu0 %v5841_v32  ;;  %v9693_v14 = vcombine.high %v14131_v24, %v5553_v60  ;;  %v4664_v62 = vld [vmem:[#allocation2 + $0xc8] sm:$0xff] }
 0x8c3   : > { %v4788_v2 = vmax.f32 %v4660_v15, %v4399_v8  ;;  %v4367_v31 = vmul.f32 0.2, %v4207_v12  ;;  %5207 = vmax.xlane.f32.xlu0 %v5206_v47  ;;  %7811 = vmatprep.subr.bf16.mxu0 %v15538_v38  ;;  %v15596_v8 = vld [vmem:[#allocation24_spill] sm:$0xff] }
 0x8c4   : > { %v2799_v61 = vpop.permute.xlu1 %2798  ;;  %v5046_v3 = vld [vmem:[#allocation2 + $0x98] sm:$0xff] }
 0x8c5   : > { %4917 = vst.msk [vmem:[#allocation2 + $0xa8] sm:$0xff] %vm4510_vm3, %v4788_v2  ;;  %v4495_v22 = vmax.f32 %v4207_v12, %v4367_v31  ;;  %v3831_v59 = vadd.f32 %v15593_v5, %v2799_v61  ;;  %v5212_v53 = vsel %vm4510_vm3, %v5046_v3, -inf  ;;  %v14148_v2 = vld [vmem:[%s15350_s7 + $0x90] sm:$0xff]  ;;  %v4760_v5 = vld [vmem:[#allocation2 + $0x3c8] sm:$0xff] }
 0x8c6   : > { %7812 = vmatpush1.bf16.msra.mxu0 %v5842_v23  ;;  %v14153_v31 = vld [vmem:[%s15350_s7 + $0xb0] sm:$0xff] }
 0x8c7   : > { %v4884_v46 = vmax.f32 %v4756_v19, %v4495_v22  ;;  %v4273_v54 = vmul.f32 0.2, %v3831_v59  ;;  %5213 = vmax.xlane.f32.xlu0 %v5212_v53  ;;  %v2764_v20 = vpop.permute.xlu0 %2763  ;;  %7773 = vmatmul.mubr.bf16.gmra.mrb[216].mxu0 %v9930_v9  ;;  %v4657_v61 = vld [vmem:[#allocation2 + $0x90] sm:$0xff]  ;;  %v9692_v22 = vcombine.low %v14131_v24, %v5553_v60 }
 0x8c8   : > { %v3804_v29 = vadd.f32 %v15594_v1, %v2764_v20  ;;  %v3279_v63 = vpop.permute.xlu1 %3278  ;;  %7813 = vmatprep.mubr.bf16.mxu0 %v9685_v56  ;;  %8070 = vmatprep.subr.bf16.mxu0 %v15538_v38  ;;  %v4753_v24 = vld [vmem:[#allocation2 + $0x390] sm:$0xff] }
 0x8c9   : > { %5013 = vst.msk [vmem:[#allocation2 + $0x3a8] sm:$0xff] %vm4510_vm3, %v4884_v46  ;;  %v4401_v37 = vmax.f32 %v3831_v59, %v4273_v54  ;;  %v4215_v40 = vadd.f32 %v13841_v36, %v3279_v63  ;;  %v9701_v54 = vcombine.high %v14148_v2, %v14153_v31 }
 0x8ca   : > { %v4266_v0 = vmul.f32 0.2, %v3804_v29 }
 0x8cb   : > { %v4790_v21 = vmax.f32 %v4662_v27, %v4401_v37  ;;  %v4369_v49 = vmul.f32 0.2, %v4215_v40  ;;  %v3244_v58 = vpop.permute.xlu0 %3243  ;;  %v15597_v27 = vld [vmem:[#allocation17_spill] sm:$0xff] }
 0x8cc   : > { %v4394_v43 = vmax.f32 %v3804_v29, %v4266_v0  ;;  %v4188_v48 = vadd.f32 %v13806_v45, %v3244_v58  ;;  %v2809_v36 = vpop.permute.xlu1 %2808  ;;  %v5048_v55 = vld [vmem:[#allocation2 + $0xa8] sm:$0xff] }
 0x8cd   : > { %4919 = vst.msk [vmem:[#allocation2 + $0xb8] sm:$0xff] %vm4510_vm3, %v4790_v21  ;;  %v4497_v39 = vmax.f32 %v4215_v40, %v4369_v49  ;;  %v3839_v57 = vadd.f32 %v15595_v30, %v2809_v36  ;;  %v5218_v51 = vsel %vm4510_vm3, %v5048_v55, -inf  ;;  %v15598_v49 = vld [vmem:[#allocation21_spill] sm:$0xff]  ;;  %v14171_v36 = vld [vmem:[%s15350_s7 + $0xd0] sm:$0xff] }
 0x8ce   : > { %v4783_v11 = vmax.f32 %v4655_v33, %v4394_v43  ;;  %v4362_v18 = vmul.f32 0.2, %v4188_v48  ;;  %5219 = vmax.xlane.f32.xlu0 %v5218_v51  ;;  %v4666_v33 = vld [vmem:[#allocation2 + $0xd8] sm:$0xff]  ;;  %v14176_v55 = vld [vmem:[%s15350_s7 + $0xf0] sm:$0xff] }
 0x8cf   : > { %v4886_v52 = vmax.f32 %v4758_v28, %v4497_v39  ;;  %v4275_v15 = vmul.f32 0.2, %v3839_v57  ;;  %v2774_v32 = vpop.permute.xlu0 %2773  ;;  %7814 = vmatmul.mubr.bf16.vlgmr.msra.gmra.mrb[92].mxu0 %v9684_v7 }
 0x8d0   : > { %4912 = vst.msk [vmem:[#allocation2 + $0x80] sm:$0xff] %vm4510_vm3, %v4783_v11  ;;  %v4490_v45 = vmax.f32 %v4188_v48, %v4362_v18  ;;  %v3812_v12 = vadd.f32 %v15596_v8, %v2774_v32  ;;  %v3289_v10 = vpop.permute.xlu1 %3288  ;;  %7821 = vmatprep.mubr.bf16.mxu0 %v9693_v14  ;;  %v15599_v8 = vld [vmem:[#allocation39_spill] sm:$0xff] }
 0x8d1   : > { %5015 = vst.msk [vmem:[#allocation2 + $0x3b8] sm:$0xff] %vm4510_vm3, %v4886_v52  ;;  %v4403_v50 = vmax.f32 %v3839_v57, %v4275_v15  ;;  %v4223_v47 = vadd.f32 %v13893_v35, %v3289_v10  ;;  %v4659_v57 = vld [vmem:[#allocation2 + $0xa0] sm:$0xff]  ;;  %v4762_v52 = vld [vmem:[#allocation2 + $0x3d8] sm:$0xff] }
 0x8d2   : > { %v4879_v9 = vmax.f32 %v4751_v6, %v4490_v45  ;;  %v4268_v23 = vmul.f32 0.2, %v3812_v12  ;;  %v9709_v45 = vcombine.high %v14171_v36, %v14176_v55 }
 0x8d3   : > { %v4792_v19 = vmax.f32 %v4664_v62, %v4403_v50  ;;  %v4371_v3 = vmul.f32 0.2, %v4223_v47  ;;  %v3254_v56 = vpop.permute.xlu0 %3253 }
 0x8d4   : > { %5008 = vst.msk [vmem:[#allocation2 + $0x380] sm:$0xff] %vm4510_vm3, %v4879_v9  ;;  %v4396_v35 = vmax.f32 %v3812_v12, %v4268_v23  ;;  %v4196_v59 = vadd.f32 %v13804_v44, %v3254_v56  ;;  %v2819_v53 = vpop.permute.xlu1 %2818  ;;  %v5050_v46 = vld [vmem:[#allocation2 + $0xb8] sm:$0xff] }
 0x8d5   : > { %4921 = vst.msk [vmem:[#allocation2 + $0xc8] sm:$0xff] %vm4510_vm3, %v4792_v19  ;;  %v4499_v20 = vmax.f32 %v4223_v47, %v4371_v3  ;;  %v3847_v1 = vadd.f32 %v15597_v27, %v2819_v53  ;;  %v5224_v29 = vsel %vm4510_vm3, %v5050_v46, -inf  ;;  %v15600_v3 = vld [vmem:[#allocation23_spill] sm:$0xff]  ;;  %v14195_v53 = vld [vmem:[%s15350_s7 + $0x110] sm:$0xff] }
 0x8d6   : > { %v4785_v63 = vmax.f32 %v4657_v61, %v4396_v35  ;;  %v4364_v37 = vmul.f32 0.2, %v4196_v59  ;;  %5225 = vmax.xlane.f32.xlu0 %v5224_v29  ;;  %v4668_v61 = vld [vmem:[#allocation2 + $0xe8] sm:$0xff]  ;;  %v14200_v46 = vld [vmem:[%s15350_s7 + $0x130] sm:$0xff] }
 0x8d7   : > { %v4888_v40 = vmax.f32 %v4760_v5, %v4499_v20  ;;  %v4277_v60 = vmul.f32 0.2, %v3847_v1  ;;  %v2784_v0 = vpop.permute.xlu0 %2783  ;;  %v5043_v44 = vld [vmem:[#allocation2 + $0x80] sm:$0xff]  ;;  %7822 = vmatmul.mubr.bf16.gmra.mrb[96].mxu0 %v9692_v22 }
 0x8d8   : > { %4914 = vst.msk [vmem:[#allocation2 + $0x90] sm:$0xff] %vm4510_vm3, %v4785_v63  ;;  %v4492_v21 = vmax.f32 %v4196_v59, %v4364_v37  ;;  %v3820_v58 = vadd.f32 %v15598_v49, %v2784_v0  ;;  %v3299_v7 = vpop.permute.xlu1 %3298  ;;  %v5203_v43 = vsel %vm4510_vm3, %v5043_v44, -inf  ;;  %7829 = vmatprep.mubr.bf16.mxu0 %v9701_v54  ;;  %v9717_v44 = vcombine.high %v14195_v53, %v14200_v46 }
 0x8d9   : > { %5017 = vst.msk [vmem:[#allocation2 + $0x3c8] sm:$0xff] %vm4510_vm3, %v4888_v40  ;;  %v4405_v28 = vmax.f32 %v3847_v1, %v4277_v60  ;;  %v4231_v48 = vadd.f32 %v13885_v34, %v3299_v7  ;;  %5204 = vmax.xlane.f32.xlu1 %v5203_v43  ;;  %v9700_v34 = vcombine.low %v14148_v2, %v14153_v31  ;;  %v4755_v31 = vld [vmem:[#allocation2 + $0x3a0] sm:$0xff]  ;;  %v4661_v1 = vld [vmem:[#allocation2 + $0xb0] sm:$0xff]  ;;  %v4764_v40 = vld [vmem:[#allocation2 + $0x3e8] sm:$0xff] }
 0x8da   : > { %v4881_v14 = vmax.f32 %v4753_v24, %v4492_v21  ;;  %v4270_v39 = vmul.f32 0.2, %v3820_v58 }
 0x8db   : > { %v4794_v30 = vmax.f32 %v4666_v33, %v4405_v28  ;;  %v4373_v51 = vmul.f32 0.2, %v4231_v48  ;;  %v3264_v11 = vpop.permute.xlu0 %3263  ;;  %v15601_v33 = vld [vmem:[#allocation38_spill] sm:$0xff] }
 0x8dc   : > { %5010 = vst.msk [vmem:[#allocation2 + $0x390] sm:$0xff] %vm4510_vm3, %v4881_v14  ;;  %v4398_v18 = vmax.f32 %v3820_v58, %v4270_v39  ;;  %v4204_v6 = vadd.f32 %v13839_v26, %v3264_v11  ;;  %v2829_v15 = vpop.permute.xlu1 %2828  ;;  %v5052_v32 = vld [vmem:[#allocation2 + $0xc8] sm:$0xff]  ;;  %v4670_v39 = vld [vmem:[#allocation2 + $0xf8] sm:$0xff] }
 0x8dd   : > { %4923 = vst.msk [vmem:[#allocation2 + $0xd8] sm:$0xff] %vm4510_vm3, %v4794_v30  ;;  %v4501_v62 = vmax.f32 %v4231_v48, %v4373_v51  ;;  %v3855_v12 = vadd.f32 %v15599_v8, %v2829_v15  ;;  %v5230_v10 = vsel %vm4510_vm3, %v5052_v32, -inf  ;;  %v4757_v48 = vld [vmem:[#allocation2 + $0x3b0] sm:$0xff]  ;;  %v15602_v30 = vld [vmem:[#allocation16_spill] sm:$0xff] }
 0x8de   : > { %v4787_v50 = vmax.f32 %v4659_v57, %v4398_v18  ;;  %v4366_v47 = vmul.f32 0.2, %v4204_v6  ;;  %5231 = vmax.xlane.f32.xlu0 %v5230_v10  ;;  %v9716_v10 = vcombine.low %v14195_v53, %v14200_v46 }
 0x8df   : > { %v4890_v2 = vmax.f32 %v4762_v52, %v4501_v62  ;;  %v4279_v9 = vmul.f32 0.2, %v3855_v12  ;;  %v2794_v23 = vpop.permute.xlu0 %2793  ;;  %v5045_v26 = vld [vmem:[#allocation2 + $0x90] sm:$0xff]  ;;  %7830 = vmatmul.mubr.bf16.gmra.mrb[100].mxu0 %v9700_v34  ;;  %v4663_v62 = vld [vmem:[#allocation2 + $0xc0] sm:$0xff] }
 0x8e0   : > { %4916 = vst.msk [vmem:[#allocation2 + $0xa0] sm:$0xff] %vm4510_vm3, %v4787_v50  ;;  %v4494_v19 = vmax.f32 %v4204_v6, %v4366_v47  ;;  %v3828_v56 = vadd.f32 %v15600_v3, %v2794_v23  ;;  %v3309_v22 = vpop.permute.xlu1 %3308  ;;  %v5209_v35 = vsel %vm4510_vm3, %v5045_v26, -inf  ;;  %7837 = vmatprep.mubr.bf16.mxu0 %v9709_v45  ;;  %v5581_v52 = vld [vmem:[%s15350_s7 + $0x150] sm:$0xff]  ;;  %v4766_v50 = vld [vmem:[#allocation2 + $0x3f8] sm:$0xff] }
 0x8e1   : > { %5019 = vst.msk [vmem:[#allocation2 + $0x3d8] sm:$0xff] %vm4510_vm3, %v4890_v2  ;;  %v4407_v5 = vmax.f32 %v3855_v12, %v4279_v9  ;;  %v4239_v59 = vadd.f32 %v13944_v17, %v3309_v22  ;;  %5210 = vmax.xlane.f32.xlu1 %v5209_v35  ;;  %v9708_v17 = vcombine.low %v14171_v36, %v14176_v55  ;;  %v5585_v6 = vld [vmem:[%s15350_s7 + $0x170] sm:$0xff] }
 0x8e2   : > { %v4883_v54 = vmax.f32 %v4755_v31, %v4494_v19  ;;  %v4272_v20 = vmul.f32 0.2, %v3828_v56  ;;  %v9725_v31 = vcombine.high %v5581_v52, %v5585_v6 }
 0x8e3   : > { %v4796_v27 = vmax.f32 %v4668_v61, %v4407_v5  ;;  %v4375_v29 = vmul.f32 0.2, %v4239_v59  ;;  %v3274_v63 = vpop.permute.xlu0 %3273  ;;  %v5123_v61 = vld [vmem:[#allocation2 + $0x300] sm:$0xff] }
 0x8e4   : > { %5012 = vst.msk [vmem:[#allocation2 + $0x3a0] sm:$0xff] %vm4510_vm3, %v4883_v54  ;;  %v4400_v37 = vmax.f32 %v3828_v56, %v4272_v20  ;;  %v4212_v24 = vadd.f32 %v13837_v4, %v3274_v63  ;;  %v2839_v60 = vpop.permute.xlu1 %2838  ;;  %v5054_v0 = vld [vmem:[#allocation2 + $0xd8] sm:$0xff]  ;;  %v4759_v56 = vld [vmem:[#allocation2 + $0x3c0] sm:$0xff]  ;;  %v5443_v46 = vsel %vm4510_vm3, %v5123_v61, -inf  ;;  %v5589_v54 = vld [vmem:[%s15350_s7 + $0x190] sm:$0xff] }
 0x8e5   : > { %4925 = vst.msk [vmem:[#allocation2 + $0xe8] sm:$0xff] %vm4510_vm3, %v4796_v27  ;;  %v4503_v21 = vmax.f32 %v4239_v59, %v4375_v29  ;;  %v3863_v49 = vadd.f32 %v15601_v33, %v2839_v60  ;;  %v5236_v58 = vsel %vm4510_vm3, %v5054_v0, -inf  ;;  %v5593_v20 = vld [vmem:[%s15350_s7 + $0x1b0] sm:$0xff]  ;;  %v5126_v29 = vld [vmem:[#allocation2 + $0x318] sm:$0xff]  ;;  %v5124_v33 = vld [vmem:[#allocation2 + $0x308] sm:$0xff] }
 0x8e6   : > { %v4789_v7 = vmax.f32 %v4661_v1, %v4400_v37  ;;  %v4368_v43 = vmul.f32 0.2, %v4212_v24  ;;  %5237 = vmax.xlane.f32.xlu0 %v5236_v58  ;;  %v4665_v63 = vld [vmem:[#allocation2 + $0xd0] sm:$0xff]  ;;  %v9724_v37 = vcombine.low %v5581_v52, %v5585_v6  ;;  %v9733_v60 = vcombine.high %v5589_v54, %v5593_v20 }
 0x8e7   : > { %v4892_v28 = vmax.f32 %v4764_v40, %v4503_v21  ;;  %v4281_v36 = vmul.f32 0.2, %v3863_v49  ;;  %v2804_v55 = vpop.permute.xlu0 %2803  ;;  %v5047_v4 = vld [vmem:[#allocation2 + $0xa0] sm:$0xff]  ;;  %7838 = vmatmul.mubr.bf16.gmra.mrb[104].mxu0 %v9708_v17  ;;  %v5452_v0 = vsel %vm4510_vm3, %v5126_v29, -inf  ;;  %v5613_v29 = vld [vmem:[%s15350_s7 + $0x250] sm:$0xff] }
 0x8e8   : > { %4918 = vst.msk [vmem:[#allocation2 + $0xb0] sm:$0xff] %vm4510_vm3, %v4789_v7  ;;  %v4496_v14 = vmax.f32 %v4212_v24, %v4368_v43  ;;  %v3836_v57 = vadd.f32 %v15602_v30, %v2804_v55  ;;  %v3319_v51 = vpop.permute.xlu1 %3318  ;;  %v5215_v11 = vsel %vm4510_vm3, %v5047_v4, -inf  ;;  %7845 = vmatprep.mubr.bf16.mxu0 %v9717_v44  ;;  %v5597_v55 = vld [vmem:[%s15350_s7 + $0x1d0] sm:$0xff]  ;;  %v5130_v30 = vld [vmem:[#allocation2 + $0x338] sm:$0xff] }
 0x8e9   : > { %5021 = vst.msk [vmem:[#allocation2 + $0x3e8] sm:$0xff] %vm4510_vm3, %v4892_v28  ;;  %v4409_v34 = vmax.f32 %v3863_v49, %v4281_v36  ;;  %v4247_v18 = vadd.f32 %v13936_v25, %v3319_v51  ;;  %5216 = vmax.xlane.f32.xlu1 %v5215_v11  ;;  %v4761_v49 = vld [vmem:[#allocation2 + $0x3d0] sm:$0xff]  ;;  %v15604_v28 = vld [vmem:[#allocation37_spill] sm:$0xff]  ;;  %v9732_v11 = vcombine.low %v5589_v54, %v5593_v20  ;;  %v5464_v6 = vsel %vm4510_vm3, %v5130_v30, -inf }
 0x8ea   : > { %v4885_v15 = vmax.f32 %v4757_v48, %v4496_v14  ;;  %v4274_v32 = vmul.f32 0.2, %v3836_v57  ;;  %v5601_v4 = vld [vmem:[%s15350_s7 + $0x1f0] sm:$0xff] }
 0x8eb   : > { %v4798_v45 = vmax.f32 %v4670_v39, %v4409_v34  ;;  %v4377_v8 = vmul.f32 0.2, %v4247_v18  ;;  %v3284_v12 = vpop.permute.xlu0 %3283  ;;  %v9741_v52 = vcombine.high %v5597_v55, %v5601_v4 }
 0x8ec   : > { %5014 = vst.msk [vmem:[#allocation2 + $0x3b0] sm:$0xff] %vm4510_vm3, %v4885_v15  ;;  %v4402_v25 = vmax.f32 %v3836_v57, %v4274_v32  ;;  %v4220_v47 = vadd.f32 %v13877_v42, %v3284_v12  ;;  %v5056_v2 = vld [vmem:[#allocation2 + $0xe8] sm:$0xff]  ;;  %v4667_v57 = vld [vmem:[#allocation2 + $0xe0] sm:$0xff] }
 0x8ed   : > { %4927 = vst.msk [vmem:[#allocation2 + $0xf8] sm:$0xff] %vm4510_vm3, %v4798_v45  ;;  %v4505_v9 = vmax.f32 %v4247_v18, %v4377_v8  ;;  %v5242_v23 = vsel %vm4510_vm3, %v5056_v2, -inf  ;;  %v15603_v42 = vld [vmem:[#allocation25_spill] sm:$0xff]  ;;  %v5605_v2 = vld [vmem:[%s15350_s7 + $0x210] sm:$0xff] }
 0x8ee   : > { %v4791_v26 = vmax.f32 %v4663_v62, %v4402_v25  ;;  %v4370_v19 = vmul.f32 0.2, %v4220_v47  ;;  %5243 = vmax.xlane.f32.xlu0 %v5242_v23  ;;  %v5128_v45 = vld [vmem:[#allocation2 + $0x328] sm:$0xff]  ;;  %v4763_v62 = vld [vmem:[#allocation2 + $0x3e0] sm:$0xff] }
 0x8ef   : > { %v4894_v3 = vmax.f32 %v4766_v50, %v4505_v9  ;;  %v2814_v22 = vpop.permute.xlu0 %2813  ;;  %v5049_v35 = vld [vmem:[#allocation2 + $0xb0] sm:$0xff]  ;;  %7846 = vmatmul.mubr.bf16.gmra.mrb[108].mxu0 %v9716_v10  ;;  %v15605_v25 = vld [vmem:[#allocation36_spill] sm:$0xff] }
 0x8f0   : > { %4920 = vst.msk [vmem:[#allocation2 + $0xc0] sm:$0xff] %vm4510_vm3, %v4791_v26  ;;  %v4498_v5 = vmax.f32 %v4220_v47, %v4370_v19  ;;  %v3844_v59 = vadd.f32 %v15603_v42, %v2814_v22  ;;  %v5221_v53 = vsel %vm4510_vm3, %v5049_v35, -inf  ;;  %7853 = vmatprep.mubr.bf16.mxu0 %v9725_v31  ;;  %v5609_v31 = vld [vmem:[%s15350_s7 + $0x230] sm:$0xff]  ;;  %v5134_v26 = vld [vmem:[#allocation2 + $0x358] sm:$0xff] }
 0x8f1   : > { %5023 = vst.msk [vmem:[#allocation2 + $0x3f8] sm:$0xff] %vm4510_vm3, %v4894_v3  ;;  %5222 = vmax.xlane.f32.xlu1 %v5221_v53  ;;  %v4669_v19 = vld [vmem:[#allocation2 + $0xf0] sm:$0xff]  ;;  %v9740_v3 = vcombine.low %v5597_v55, %v5601_v4  ;;  %v9749_v35 = vcombine.high %v5605_v2, %v5609_v31  ;;  %v5132_v53 = vld [vmem:[#allocation2 + $0x348] sm:$0xff] }
 0x8f2   : > { %v4887_v27 = vmax.f32 %v4759_v56, %v4498_v5  ;;  %v4276_v1 = vmul.f32 0.2, %v3844_v59  ;;  %5444 = vmax.xlane.f32.xlu0 %v5443_v46  ;;  %v5476_v5 = vsel %vm4510_vm3, %v5134_v26, -inf  ;;  %v4765_v46 = vld [vmem:[#allocation2 + $0x3f0] sm:$0xff]  ;;  %v5148_v26 = vld [vmem:[#allocation2 + $0x3c8] sm:$0xff] }
 0x8f3   : > { %v3294_v17 = vpop.permute.xlu0 %3293  ;;  %v5133_v4 = vld [vmem:[#allocation2 + $0x350] sm:$0xff] }
 0x8f4   : > { %5016 = vst.msk [vmem:[#allocation2 + $0x3c0] sm:$0xff] %vm4510_vm3, %v4887_v27  ;;  %v4404_v40 = vmax.f32 %v3844_v59, %v4276_v1  ;;  %v4228_v24 = vadd.f32 %v13875_v13, %v3294_v17  ;;  %v5446_v13 = vsel %vm4510_vm3, %v5124_v33, -inf  ;;  %v5470_v1 = vsel %vm4510_vm3, %v5132_v53, -inf }
 0x8f6   : > { %v4793_v44 = vmax.f32 %v4665_v63, %v4404_v40  ;;  %v4372_v21 = vmul.f32 0.2, %v4228_v24  ;;  %5453 = vmax.xlane.f32.xlu0 %v5452_v0  ;;  %v5617_v63 = vld [vmem:[%s15350_s7 + $0x270] sm:$0xff]  ;;  %v9748_v40 = vcombine.low %v5605_v2, %v5609_v31 }
 0x8f7   : > { %v2824_v58 = vpop.permute.xlu0 %2823  ;;  %v5051_v7 = vld [vmem:[#allocation2 + $0xc0] sm:$0xff]  ;;  %7854 = vmatmul.mubr.bf16.gmra.mrb[112].mxu0 %v9724_v37  ;;  %v5138_v37 = vld [vmem:[#allocation2 + $0x378] sm:$0xff] }
 0x8f8   : > { %4922 = vst.msk [vmem:[#allocation2 + $0xd0] sm:$0xff] %vm4510_vm3, %v4793_v44  ;;  %v4500_v43 = vmax.f32 %v4228_v24, %v4372_v21  ;;  %v3852_v48 = vadd.f32 %v15604_v28, %v2824_v58  ;;  %v5227_v36 = vsel %vm4510_vm3, %v5051_v7, -inf  ;;  %7861 = vmatprep.mubr.bf16.mxu0 %v9733_v60  ;;  %v9757_v60 = vcombine.high %v5613_v29, %v5617_v63  ;;  %v5129_v44 = vld [vmem:[#allocation2 + $0x330] sm:$0xff]  ;;  %v5136_v21 = vld [vmem:[#allocation2 + $0x368] sm:$0xff]  ;;  %v5127_v58 = vld [vmem:[#allocation2 + $0x320] sm:$0xff] }
 0x8f9   : > { %5228 = vmax.xlane.f32.xlu1 %v5227_v36  ;;  %v5488_v0 = vsel %vm4510_vm3, %v5138_v37, -inf  ;;  %v5461_v33 = vsel %vm4510_vm3, %v5129_v44, -inf  ;;  %v5621_v7 = vld [vmem:[%s15350_s7 + $0x290] sm:$0xff]  ;;  %v5142_v28 = vld [vmem:[#allocation2 + $0x398] sm:$0xff]  ;;  %v5455_v36 = vsel %vm4510_vm3, %v5127_v58, -inf }
 0x8fa   : > { %v4889_v14 = vmax.f32 %v4761_v49, %v4500_v43  ;;  %v4278_v39 = vmul.f32 0.2, %v3852_v48  ;;  %5447 = vmax.xlane.f32.xlu0 %v5446_v13  ;;  %v5482_v49 = vsel %vm4510_vm3, %v5136_v21, -inf  ;;  %v5625_v43 = vld [vmem:[%s15350_s7 + $0x2b0] sm:$0xff]  ;;  %v5500_v55 = vsel %vm4510_vm3, %v5142_v28, -inf }
 0x8fb   : > { %v3304_v51 = vpop.permute.xlu0 %3303  ;;  %v9765_v13 = vcombine.high %v5621_v7, %v5625_v43  ;;  %v5653_v37 = vld [vmem:[%s15350_s7 + $0x390] sm:$0xff] }
 0x8fc   : > { %5018 = vst.msk [vmem:[#allocation2 + $0x3d0] sm:$0xff] %vm4510_vm3, %v4889_v14  ;;  %v4406_v34 = vmax.f32 %v3852_v48, %v4278_v39  ;;  %v4236_v18 = vadd.f32 %v13928_v41, %v3304_v51  ;;  %v5458_v41 = vsel %vm4510_vm3, %v5128_v45, -inf  ;;  %v9756_v48 = vcombine.low %v5613_v29, %v5617_v63  ;;  %v5140_v14 = vld [vmem:[#allocation2 + $0x388] sm:$0xff]  ;;  %v5629_v51 = vld [vmem:[%s15350_s7 + $0x2d0] sm:$0xff] }
 0x8fd   : > { %v5473_v39 = vsel %vm4510_vm3, %v5133_v4, -inf  ;;  %v5494_v30 = vsel %vm4510_vm3, %v5140_v14, -inf  ;;  %v5144_v45 = vld [vmem:[#allocation2 + $0x3a8] sm:$0xff] }
 0x8fe   : > { %v4795_v15 = vmax.f32 %v4667_v57, %v4406_v34  ;;  %v4374_v32 = vmul.f32 0.2, %v4236_v18  ;;  %5465 = vmax.xlane.f32.xlu0 %v5464_v6  ;;  %v5131_v57 = vld [vmem:[#allocation2 + $0x340] sm:$0xff]  ;;  %v5146_v34 = vld [vmem:[#allocation2 + $0x3b8] sm:$0xff] }
 0x8ff   : > { %v2834_v8 = vpop.permute.xlu0 %2833  ;;  %v5053_v12 = vld [vmem:[#allocation2 + $0xd0] sm:$0xff]  ;;  %7862 = vmatmul.mubr.bf16.gmra.mrb[116].mxu0 %v9732_v11 }
 0x900   : > { %4924 = vst.msk [vmem:[#allocation2 + $0xe0] sm:$0xff] %vm4510_vm3, %v4795_v15  ;;  %v4502_v10 = vmax.f32 %v4236_v18, %v4374_v32  ;;  %v3860_v50 = vadd.f32 %v15605_v25, %v2834_v8  ;;  %v5233_v47 = vsel %vm4510_vm3, %v5053_v12, -inf  ;;  %7869 = vmatprep.mubr.bf16.mxu0 %v9741_v52  ;;  %v5633_v11 = vld [vmem:[%s15350_s7 + $0x2f0] sm:$0xff]  ;;  %v9764_v18 = vcombine.low %v5621_v7, %v5625_v43  ;;  %v5135_v12 = vld [vmem:[#allocation2 + $0x360] sm:$0xff] }
 0x901   : > { %5234 = vmax.xlane.f32.xlu1 %v5233_v47  ;;  %v5467_v52 = vsel %vm4510_vm3, %v5131_v57, -inf  ;;  %v9773_v6 = vcombine.high %v5629_v51, %v5633_v11  ;;  %v5512_v15 = vsel %vm4510_vm3, %v5146_v34, -inf  ;;  %v5137_v32 = vld [vmem:[#allocation2 + $0x370] sm:$0xff]  ;;  %v5506_v8 = vsel %vm4510_vm3, %v5144_v45, -inf  ;;  %v5150_v47 = vld [vmem:[#allocation2 + $0x3d8] sm:$0xff] }
 0x902   : > { %v4891_v9 = vmax.f32 %v4763_v62, %v4502_v10  ;;  %v4280_v23 = vmul.f32 0.2, %v3860_v50  ;;  %5459 = vmax.xlane.f32.xlu0 %v5458_v41  ;;  %v5485_v62 = vsel %vm4510_vm3, %v5137_v32, -inf  ;;  %v5637_v10 = vld [vmem:[%s15350_s7 + $0x310] sm:$0xff]  ;;  %v9772_v41 = vcombine.low %v5629_v51, %v5633_v11 }
 0x903   : > { %v3314_v61 = vpop.permute.xlu0 %3313  ;;  %v5641_v25 = vld [vmem:[%s15350_s7 + $0x330] sm:$0xff]  ;;  %v5479_v2 = vsel %vm4510_vm3, %v5135_v12, -inf }
 0x904   : > { %5020 = vst.msk [vmem:[#allocation2 + $0x3e0] sm:$0xff] %vm4510_vm3, %v4891_v9  ;;  %v4408_v56 = vmax.f32 %v3860_v50, %v4280_v23  ;;  %v4244_v22 = vadd.f32 %v13926_v16, %v3314_v61  ;;  %v5125_v16 = vld [vmem:[#allocation2 + $0x310] sm:$0xff]  ;;  %v9781_v31 = vcombine.high %v5637_v10, %v5641_v25  ;;  %v5524_v9 = vsel %vm4510_vm3, %v5150_v47, -inf }
 0x905   : > { %v5449_v24 = vsel %vm4510_vm3, %v5125_v16, -inf  ;;  %v5141_v23 = vld [vmem:[#allocation2 + $0x390] sm:$0xff] }
 0x906   : > { %v4797_v42 = vmax.f32 %v4669_v19, %v4408_v56  ;;  %v4376_v59 = vmul.f32 0.2, %v4244_v22  ;;  %5477 = vmax.xlane.f32.xlu0 %v5476_v5  ;;  %v5497_v61 = vsel %vm4510_vm3, %v5141_v23, -inf  ;;  %v5139_v56 = vld [vmem:[#allocation2 + $0x380] sm:$0xff]  ;;  %v5058_v5 = vld [vmem:[#allocation2 + $0xf8] sm:$0xff]  ;;  %v5149_v7 = vld [vmem:[#allocation2 + $0x3d0] sm:$0xff] }
 0x907   : > { %v5055_v54 = vld [vmem:[#allocation2 + $0xe0] sm:$0xff]  ;;  %7870 = vmatmul.mubr.bf16.gmra.mrb[120].mxu0 %v9740_v3  ;;  %v5518_v3 = vsel %vm4510_vm3, %v5148_v26, -inf  ;;  %v5521_v28 = vsel %vm4510_vm3, %v5149_v7, -inf  ;;  %v5669_v32 = vld [vmem:[%s15350_s7 + $0x410] sm:$0xff] }
 0x908   : > { %4926 = vst.msk [vmem:[#allocation2 + $0xf0] sm:$0xff] %vm4510_vm3, %v4797_v42  ;;  %v4504_v20 = vmax.f32 %v4244_v22, %v4376_v59  ;;  %v5239_v27 = vsel %vm4510_vm3, %v5055_v54, -inf  ;;  %7877 = vmatprep.mubr.bf16.mxu0 %v9749_v35  ;;  %v5645_v22 = vld [vmem:[%s15350_s7 + $0x350] sm:$0xff]  ;;  %v9780_v42 = vcombine.low %v5637_v10, %v5641_v25  ;;  %v5491_v59 = vsel %vm4510_vm3, %v5139_v56, -inf }
 0x909   : > { %5240 = vmax.xlane.f32.xlu1 %v5239_v27  ;;  %v5649_v35 = vld [vmem:[%s15350_s7 + $0x370] sm:$0xff]  ;;  %v5152_v27 = vld [vmem:[#allocation2 + $0x3e8] sm:$0xff] }
 0x90a   : > { %v4893_v17 = vmax.f32 %v4765_v46, %v4504_v20  ;;  %5471 = vmax.xlane.f32.xlu0 %v5470_v1  ;;  %v9789_v53 = vcombine.high %v5645_v22, %v5649_v35  ;;  %v5248_v46 = vsel %vm4510_vm3, %v5058_v5, -inf  ;;  %v5145_v54 = vld [vmem:[#allocation2 + $0x3b0] sm:$0xff]  ;;  %v5530_v63 = vsel %vm4510_vm3, %v5152_v27, -inf }
 0x90b   : > { %v5509_v16 = vsel %vm4510_vm3, %v5145_v54, -inf  ;;  %v5673_v45 = vld [vmem:[%s15350_s7 + $0x430] sm:$0xff] }
 0x90c   : > { %5022 = vst.msk [vmem:[#allocation2 + $0x3f0] sm:$0xff] %vm4510_vm3, %v4893_v17  ;;  %v5143_v17 = vld [vmem:[#allocation2 + $0x3a0] sm:$0xff]  ;;  %v9813_v10 = vcombine.high %v5669_v32, %v5673_v45  ;;  %v5681_v23 = vld [vmem:[%s15350_s7 + $0x470] sm:$0xff]  ;;  %v9812_v26 = vcombine.low %v5669_v32, %v5673_v45 }
 0x90d   : > { %5450 = vmax.xlane.f32.xlu1 %v5449_v24  ;;  %v5154_v24 = vld [vmem:[#allocation2 + $0x3f8] sm:$0xff]  ;;  %v5503_v21 = vsel %vm4510_vm3, %v5143_v17, -inf  ;;  %v5697_v27 = vld [vmem:[%s15350_s7 + $0x4f0] sm:$0xff] }
 0x90e   : > { %5489 = vmax.xlane.f32.xlu0 %v5488_v0  ;;  %v5536_v58 = vsel %vm4510_vm3, %v5154_v24, -inf  ;;  %v5705_v17 = vld [vmem:[%s15350_s7 + $0x530] sm:$0xff] }
 0x90f   : > { %7878 = vmatmul.mubr.bf16.gmra.mrb[124].mxu0 %v9748_v40  ;;  %v5657_v40 = vld [vmem:[%s15350_s7 + $0x3b0] sm:$0xff] }
 0x910   : > { %7885 = vmatprep.mubr.bf16.mxu0 %v9757_v60  ;;  %v9788_v60 = vcombine.low %v5645_v22, %v5649_v35  ;;  %v9796_v14 = vcombine.low %v5653_v37, %v5657_v40  ;;  %v5057_v11 = vld [vmem:[#allocation2 + $0xf0] sm:$0xff] }
 0x911   : > { %5462 = vmax.xlane.f32.xlu1 %v5461_v33  ;;  %v9797_v33 = vcombine.high %v5653_v37, %v5657_v40  ;;  %v5685_v22 = vld [vmem:[%s15350_s7 + $0x490] sm:$0xff] }
 0x912   : > { %5483 = vmax.xlane.f32.xlu0 %v5482_v49  ;;  %v5689_v35 = vld [vmem:[%s15350_s7 + $0x4b0] sm:$0xff] }
 0x913   : > { %v5733_v32 = vld [vmem:[%s15350_s7 + $0x610] sm:$0xff] }
 0x914   : > { %v5737_v45 = vld [vmem:[%s15350_s7 + $0x630] sm:$0xff] }
 0x915   : > { %5456 = vmax.xlane.f32.xlu1 %v5455_v36  ;;  %v5147_v36 = vld [vmem:[#allocation2 + $0x3c0] sm:$0xff] }
 0x916   : > { %5501 = vmax.xlane.f32.xlu0 %v5500_v55  ;;  %v5665_v55 = vld [vmem:[%s15350_s7 + $0x3f0] sm:$0xff] }
 0x917   : > { %7886 = vmatmul.mubr.bf16.gmra.mrb[128].mxu0 %v9756_v48 }
 0x918   : > { %7893 = vmatprep.mubr.bf16.mxu0 %v9765_v13  ;;  %v5661_v13 = vld [vmem:[%s15350_s7 + $0x3d0] sm:$0xff] }
 0x919   : > { %5474 = vmax.xlane.f32.xlu1 %v5473_v39  ;;  %v5160_v50 = vpop.xlane.xlu1 %5159  ;;  %v9805_v57 = vcombine.high %v5661_v13, %v5665_v55 }
 0x91a   : > { %5495 = vmax.xlane.f32.xlu0 %v5494_v30  ;;  %v5515_v30 = vsel %vm4510_vm3, %v5147_v36, -inf  ;;  %v5721_v36 = vld [vmem:[%s15350_s7 + $0x5b0] sm:$0xff] }
 0x91d   : > { %5468 = vmax.xlane.f32.xlu1 %v5467_v52  ;;  %v5163_v19 = vpop.xlane.xlu1 %5162  ;;  %v5245_v52 = vsel %vm4510_vm3, %v5057_v11, -inf }
 0x91e   : > { %5513 = vmax.xlane.f32.xlu0 %v5512_v15  ;;  %v5151_v15 = vld [vmem:[#allocation2 + $0x3e0] sm:$0xff] }
 0x91f   : > { %7894 = vmatmul.mubr.bf16.gmra.mrb[132].mxu0 %v9764_v18  ;;  %v5527_v12 = vsel %vm4510_vm3, %v5151_v15, -inf }
 0x920   : > { %7901 = vmatprep.mubr.bf16.mxu0 %v9773_v6 }
 0x921   : > { %5486 = vmax.xlane.f32.xlu1 %v5485_v62  ;;  %v5169_v20 = vpop.xlane.xlu1 %5168  ;;  %v9804_v62 = vcombine.low %v5661_v13, %v5665_v55 }
 0x922   : > { %5507 = vmax.xlane.f32.xlu0 %v5506_v8 }
 0x925   : > { %5480 = vmax.xlane.f32.xlu1 %v5479_v2  ;;  %v5175_v0 = vpop.xlane.xlu1 %5174 }
 0x926   : > { %5525 = vmax.xlane.f32.xlu0 %v5524_v9  ;;  %v5677_v9 = vld [vmem:[%s15350_s7 + $0x450] sm:$0xff] }
 0x927   : > { %7902 = vmatmul.mubr.bf16.gmra.mrb[136].mxu0 %v9772_v41  ;;  %v9820_v5 = vcombine.low %v5677_v9, %v5681_v23 }
 0x928   : > { %7909 = vmatprep.mubr.bf16.mxu0 %v9781_v31 }
 0x929   : > { %5498 = vmax.xlane.f32.xlu1 %v5497_v61  ;;  %v5181_v4 = vpop.xlane.xlu1 %5180 }
 0x92a   : > { %5519 = vmax.xlane.f32.xlu0 %v5518_v3  ;;  %v9821_v3 = vcombine.high %v5677_v9, %v5681_v23  ;;  %v9876_v9 = vcombine.low %v5733_v32, %v5737_v45 }
 0x92d   : > { %5492 = vmax.xlane.f32.xlu1 %v5491_v59  ;;  %v5187_v34 = vpop.xlane.xlu1 %5186  ;;  %v14370_v59 = vld [vmem:[%s15350_s7] sm:$0xff] }
 0x92e   : > { %5249 = vmax.xlane.f32.xlu0 %v5248_v46 }
 0x92f   : > { %7910 = vmatmul.mubr.bf16.gmra.mrb[140].mxu0 %v9780_v42  ;;  %v9829_v42 = vcombine.high %v5685_v22, %v5689_v35 }
 0x930   : > { %v5157_v1 = vpop.xlane.xlu0 %5156  ;;  %7917 = vmatprep.mubr.bf16.mxu0 %v9789_v53  ;;  %v14375_v53 = vld [vmem:[%s15350_s7 + $0x20] sm:$0xff] }
 0x931   : > { %v5795_v29 = vpack.c.bf16 %v5160_v50, %v5157_v1  ;;  %5510 = vmax.xlane.f32.xlu1 %v5509_v16  ;;  %v5153_v50 = vld [vmem:[#allocation2 + $0x3f0] sm:$0xff]  ;;  %v5193_v47 = vpop.xlane.xlu1 %5192  ;;  %v9680_v46 = vcombine.low %v14370_v59, %v14375_v53  ;;  %v9681_v54 = vcombine.high %v14370_v59, %v14375_v53  ;;  %v9828_v1 = vcombine.low %v5685_v22, %v5689_v35  ;;  %v5559_v59 = vld [vmem:[%s15350_s7 + $0xa0] sm:$0xff] }
 0x932   : > { %5531 = vmax.xlane.f32.xlu0 %v5530_v63  ;;  %v5533_v2 = vsel %vm4510_vm3, %v5153_v50, -inf  ;;  %v5701_v63 = vld [vmem:[%s15350_s7 + $0x510] sm:$0xff] }
 0x933   : > { %7204 = vmatpush1.bf16.msra.mxu1 %v5795_v29  ;;  %7235 = vmatprep.mubr.bf16.mxu1 %v9681_v54  ;;  %v9845_v40 = vcombine.high %v5701_v63, %v5705_v17 }
 0x934   : > { %v5166_v44 = vpop.xlane.xlu0 %5165  ;;  %7205 = vmatprep.subr.bf16.mxu1 %v15538_v38 }
 0x935   : > { %v5796_v49 = vpack.c.bf16 %v5166_v44, %v5163_v19  ;;  %5504 = vmax.xlane.f32.xlu1 %v5503_v21  ;;  %v5199_v19 = vpop.xlane.xlu1 %5198  ;;  %v5709_v44 = vld [vmem:[%s15350_s7 + $0x550] sm:$0xff] }
 0x936   : > { %5537 = vmax.xlane.f32.xlu0 %v5536_v58  ;;  %v5713_v21 = vld [vmem:[%s15350_s7 + $0x570] sm:$0xff] }
 0x937   : > { %7206 = vmatpush1.bf16.msra.mxu1 %v5796_v49  ;;  %7918 = vmatmul.mubr.bf16.gmra.mrb[144].mxu0 %v9788_v60  ;;  %v9844_v49 = vcombine.low %v5701_v63, %v5705_v17  ;;  %v9853_v58 = vcombine.high %v5709_v44, %v5713_v21  ;;  %v9852_v55 = vcombine.low %v5709_v44, %v5713_v21 }
 0x938   : > { %v5172_v43 = vpop.xlane.xlu0 %5171  ;;  %7207 = vmatprep.subr.bf16.mxu1 %v15538_v38  ;;  %7925 = vmatprep.mubr.bf16.mxu0 %v9797_v33 }
 0x939   : > { %v5797_v48 = vpack.c.bf16 %v5172_v43, %v5169_v20  ;;  %5522 = vmax.xlane.f32.xlu1 %v5521_v28  ;;  %v5693_v20 = vld [vmem:[%s15350_s7 + $0x4d0] sm:$0xff] }
 0x93a   : > { %v9837_v16 = vcombine.high %v5693_v20, %v5697_v27  ;;  %v9836_v37 = vcombine.low %v5693_v20, %v5697_v27  ;;  %v5757_v27 = vld [vmem:[%s15350_s7 + $0x6d0] sm:$0xff] }
 0x93b   : > { %7208 = vmatpush1.bf16.msra.mxu1 %v5797_v48  ;;  %v5717_v48 = vld [vmem:[%s15350_s7 + $0x590] sm:$0xff] }
 0x93c   : > { %v5178_v39 = vpop.xlane.xlu0 %5177  ;;  %7209 = vmatprep.subr.bf16.mxu1 %v15538_v38 }
 0x93d   : > { %v5798_v51 = vpack.c.bf16 %v5178_v39, %v5175_v0  ;;  %5516 = vmax.xlane.f32.xlu1 %v5515_v30 }
 0x93f   : > { %7210 = vmatpush1.bf16.msra.mxu1 %v5798_v51  ;;  %7926 = vmatmul.mubr.bf16.gmra.mrb[148].mxu0 %v9796_v14  ;;  %v5729_v51 = vld [vmem:[%s15350_s7 + $0x5f0] sm:$0xff] }
 0x940   : > { %v5184_v18 = vpop.xlane.xlu0 %5183  ;;  %7211 = vmatprep.subr.bf16.mxu1 %v15538_v38  ;;  %7933 = vmatprep.mubr.bf16.mxu0 %v9805_v57  ;;  %v5725_v57 = vld [vmem:[%s15350_s7 + $0x5d0] sm:$0xff] }
 0x941   : > { %v5799_v6 = vpack.c.bf16 %v5184_v18, %v5181_v4  ;;  %5246 = vmax.xlane.f32.xlu1 %v5245_v52  ;;  %v9861_v4 = vcombine.high %v5717_v48, %v5721_v36  ;;  %v9869_v18 = vcombine.high %v5725_v57, %v5729_v51 }
 0x943   : > { %7212 = vmatpush1.bf16.msra.mxu1 %v5799_v6 }
 0x944   : > { %v5190_v8 = vpop.xlane.xlu0 %5189  ;;  %7213 = vmatprep.subr.bf16.mxu1 %v15538_v38 }
 0x945   : > { %v5800_v25 = vpack.c.bf16 %v5190_v8, %v5187_v34  ;;  %5528 = vmax.xlane.f32.xlu1 %v5527_v12  ;;  %v9860_v34 = vcombine.low %v5717_v48, %v5721_v36  ;;  %v9868_v8 = vcombine.low %v5725_v57, %v5729_v51  ;;  %v9877_v12 = vcombine.high %v5733_v32, %v5737_v45  ;;  %v5777_v48 = vld [vmem:[%s15350_s7 + $0x770] sm:$0xff] }
 0x946   : > { %v5781_v57 = vld [vmem:[%s15350_s7 + $0x790] sm:$0xff] }
 0x947   : > { %7214 = vmatpush1.bf16.msra.mxu1 %v5800_v25  ;;  %7934 = vmatmul.mubr.bf16.gmra.mrb[152].mxu0 %v9804_v62  ;;  %v5785_v51 = vld [vmem:[%s15350_s7 + $0x7b0] sm:$0xff] }
 0x948   : > { %v5196_v41 = vpop.xlane.xlu0 %5195  ;;  %7215 = vmatprep.subr.bf16.mxu1 %v15538_v38  ;;  %7941 = vmatprep.mubr.bf16.mxu0 %v9813_v10 }
 0x949   : > { %v5801_v31 = vpack.c.bf16 %v5196_v41, %v5193_v47  ;;  %5534 = vmax.xlane.f32.xlu1 %v5533_v2  ;;  %v5741_v41 = vld [vmem:[%s15350_s7 + $0x650] sm:$0xff] }
 0x94a   : > { %v5745_v2 = vld [vmem:[%s15350_s7 + $0x670] sm:$0xff] }
 0x94b   : > { %7216 = vmatpush1.bf16.msra.mxu1 %v5801_v31  ;;  %v9885_v23 = vcombine.high %v5741_v41, %v5745_v2  ;;  %v9884_v35 = vcombine.low %v5741_v41, %v5745_v2 }
 0x94c   : > { %v5202_v61 = vpop.xlane.xlu0 %5201  ;;  %7217 = vmatprep.subr.bf16.mxu1 %v15538_v38 }
 0x94d   : > { %v5802_v56 = vpack.c.bf16 %v5202_v61, %v5199_v19 }
 0x94f   : > { %7218 = vmatpush1.bf16.msra.mxu1 %v5802_v56  ;;  %7942 = vmatmul.mubr.bf16.gmra.mrb[156].mxu0 %v9812_v26  ;;  %v5753_v56 = vld [vmem:[%s15350_s7 + $0x6b0] sm:$0xff] }
 0x950   : > { %7949 = vmatprep.mubr.bf16.mxu0 %v9821_v3  ;;  %7219 = vmatprep.subr.bf16.mxu1 %v15538_v38  ;;  %v5208_v29 = vpop.xlane.xlu0 %5207  ;;  %v5749_v3 = vld [vmem:[%s15350_s7 + $0x690] sm:$0xff] }
 0x951   : > { %v9892_v17 = vcombine.low %v5749_v3, %v5753_v56 }
 0x954   : > { %v5214_v60 = vpop.xlane.xlu0 %5213 }
 0x957   : > { %7950 = vmatmul.mubr.bf16.gmra.mrb[160].mxu0 %v9820_v5  ;;  %v9893_v5 = vcombine.high %v5749_v3, %v5753_v56 }
 0x958   : > { %7957 = vmatprep.mubr.bf16.mxu0 %v9829_v42 }
 0x95b   : > { %v5220_v33 = vpop.xlane.xlu0 %5219 }
 0x95f   : > { %7958 = vmatmul.mubr.bf16.gmra.mrb[164].mxu0 %v9828_v1  ;;  %v5761_v1 = vld [vmem:[%s15350_s7 + $0x6f0] sm:$0xff] }
 0x960   : > { %7965 = vmatprep.mubr.bf16.mxu0 %v9837_v16 }
 0x963   : > { %v5226_v43 = vpop.xlane.xlu0 %5225 }
 0x966   : > { %v5205_v24 = vpop.xlane.xlu1 %5204 }
 0x967   : > { %v5803_v0 = vpack.c.bf16 %v5208_v29, %v5205_v24  ;;  %7966 = vmatmul.mubr.bf16.gmra.mrb[168].mxu0 %v9836_v37  ;;  %v9901_v37 = vcombine.high %v5757_v27, %v5761_v1 }
 0x968   : > { %7973 = vmatprep.mubr.bf16.mxu0 %v9845_v40 }
 0x969   : > { %7220 = vmatpush1.bf16.msra.mxu1 %v5803_v0  ;;  %v5769_v0 = vld [vmem:[%s15350_s7 + $0x730] sm:$0xff] }
 0x96a   : > { %7221 = vmatprep.subr.bf16.mxu1 %v15538_v38 }
 0x96b   : > { %v5232_v13 = vpop.xlane.xlu0 %5231 }
 0x96e   : > { %v5211_v7 = vpop.xlane.xlu1 %5210 }
 0x96f   : > { %v5804_v28 = vpack.c.bf16 %v5214_v60, %v5211_v7  ;;  %7974 = vmatmul.mubr.bf16.gmra.mrb[172].mxu0 %v9844_v49  ;;  %v5765_v60 = vld [vmem:[%s15350_s7 + $0x710] sm:$0xff] }
 0x970   : > { %7981 = vmatprep.mubr.bf16.mxu0 %v9853_v58  ;;  %v9909_v49 = vcombine.high %v5765_v60, %v5769_v0 }
 0x971   : > { %7222 = vmatpush1.bf16.msra.mxu1 %v5804_v28  ;;  %v5773_v28 = vld [vmem:[%s15350_s7 + $0x750] sm:$0xff] }
 0x972   : > { %7223 = vmatprep.subr.bf16.mxu1 %v15538_v38 }
 0x973   : > { %v5238_v39 = vpop.xlane.xlu0 %5237 }
 0x976   : > { %v5217_v14 = vpop.xlane.xlu1 %5216 }
 0x977   : > { %v5805_v30 = vpack.c.bf16 %v5220_v33, %v5217_v14  ;;  %7982 = vmatmul.mubr.bf16.gmra.mrb[176].mxu0 %v9852_v55  ;;  %v9900_v33 = vcombine.low %v5757_v27, %v5761_v1  ;;  %v9908_v55 = vcombine.low %v5765_v60, %v5769_v0  ;;  %v9917_v14 = vcombine.high %v5773_v28, %v5777_v48  ;;  %v5551_v27 = vld [vmem:[%s15350_s7 + $0x60] sm:$0xff]  ;;  %v5554_v0 = vld [vmem:[%s15350_s7 + $0x78] sm:$0xff] }
 0x978   : > { %7989 = vmatprep.mubr.bf16.mxu0 %v9861_v4 }
 0x979   : > { %7224 = vmatpush1.bf16.msra.mxu1 %v5805_v30 }
 0x97a   : > { %7225 = vmatprep.subr.bf16.mxu1 %v15538_v38 }
 0x97b   : > { %v5244_v11 = vpop.xlane.xlu0 %5243 }
 0x97e   : > { %v5223_v52 = vpop.xlane.xlu1 %5222 }
 0x97f   : > { %v5806_v6 = vpack.c.bf16 %v5226_v43, %v5223_v52  ;;  %v5445_v15 = vpop.xlane.xlu0 %5444  ;;  %7990 = vmatmul.mubr.bf16.gmra.mrb[180].mxu0 %v9860_v34  ;;  %v9916_v52 = vcombine.low %v5773_v28, %v5777_v48 }
 0x980   : > { %7997 = vmatprep.mubr.bf16.mxu0 %v9869_v18 }
 0x981   : > { %7226 = vmatpush1.bf16.msra.mxu1 %v5806_v6  ;;  %v9925_v6 = vcombine.high %v5781_v57, %v5785_v51 }
 0x982   : > { %7227 = vmatprep.subr.bf16.mxu1 %v15538_v38 }
 0x983   : > { %v5454_v62 = vpop.xlane.xlu0 %5453 }
 0x986   : > { %v5229_v10 = vpop.xlane.xlu1 %5228 }
 0x987   : > { %v5807_v25 = vpack.c.bf16 %v5232_v13, %v5229_v10  ;;  %v5448_v50 = vpop.xlane.xlu0 %5447  ;;  %7998 = vmatmul.mubr.bf16.gmra.mrb[184].mxu0 %v9868_v8  ;;  %v5793_v8 = vld [vmem:[%s15350_s7 + $0x7f0] sm:$0xff] }
 0x988   : > { %v5843_v47 = vpack.c.bf16 %v5448_v50, %v5445_v15  ;;  %8005 = vmatprep.mubr.bf16.mxu0 %v9877_v12 }
 0x989   : > { %7228 = vmatpush1.bf16.msra.mxu1 %v5807_v25  ;;  %v9924_v25 = vcombine.low %v5781_v57, %v5785_v51 }
 0x98a   : > { %8071 = vmatpush1.bf16.msra.mxu0 %v5843_v47  ;;  %7229 = vmatprep.subr.bf16.mxu1 %v15538_v38 }
 0x98b   : > { %v5466_v31 = vpop.xlane.xlu0 %5465  ;;  %8072 = vmatprep.subr.bf16.mxu0 %v15538_v38 }
 0x98e   : > { %v5235_v26 = vpop.xlane.xlu1 %5234 }
 0x98f   : > { %v5808_v19 = vpack.c.bf16 %v5238_v39, %v5235_v26  ;;  %v5460_v61 = vpop.xlane.xlu0 %5459  ;;  %8006 = vmatmul.mubr.bf16.gmra.mrb[188].mxu0 %v9876_v9  ;;  %v5546_v9 = vld [vmem:[%s15350_s7 + $0x38] sm:$0xff] }
 0x990   : > { %8013 = vmatprep.mubr.bf16.mxu0 %v9885_v23 }
 0x991   : > { %7230 = vmatpush1.bf16.msra.mxu1 %v5808_v19 }
 0x992   : > { %7231 = vmatprep.subr.bf16.mxu1 %v15538_v38 }
 0x993   : > { %v5478_v22 = vpop.xlane.xlu0 %5477 }
 0x996   : > { %v5241_v42 = vpop.xlane.xlu1 %5240 }
 0x997   : > { %v5809_v54 = vpack.c.bf16 %v5244_v11, %v5241_v42  ;;  %v5472_v20 = vpop.xlane.xlu0 %5471  ;;  %8014 = vmatmul.mubr.bf16.gmra.mrb[192].mxu0 %v9884_v35 }
 0x998   : > { %8021 = vmatprep.mubr.bf16.mxu0 %v9893_v5 }
 0x999   : > { %7232 = vmatpush1.bf16.msra.mxu1 %v5809_v54 }
 0x99a   : > { %v5451_v16 = vpop.xlane.xlu1 %5450  ;;  %7233 = vmatprep.subr.bf16.mxu1 %v15538_v38 }
 0x99b   : > { %v5844_v29 = vpack.c.bf16 %v5454_v62, %v5451_v16  ;;  %v5490_v63 = vpop.xlane.xlu0 %5489  ;;  %v5789_v62 = vld [vmem:[%s15350_s7 + $0x7d0] sm:$0xff] }
 0x99c   : > { %v9933_v50 = vcombine.high %v5789_v62, %v5793_v8  ;;  %v9932_v19 = vcombine.low %v5789_v62, %v5793_v8  ;;  %v5582_v8 = vld [vmem:[%s15350_s7 + $0x158] sm:$0xff] }
 0x99d   : > { %8073 = vmatpush1.bf16.msra.mxu0 %v5844_v29 }
 0x99e   : > { %v5463_v40 = vpop.xlane.xlu1 %5462  ;;  %8074 = vmatprep.subr.bf16.mxu0 %v15538_v38 }
 0x99f   : > { %8022 = vmatmul.mubr.bf16.gmra.mrb[196].mxu0 %v9892_v17  ;;  %v5484_v24 = vpop.xlane.xlu0 %5483  ;;  %v5846_v43 = vpack.c.bf16 %v5466_v31, %v5463_v40  ;;  %v5542_v31 = vld [vmem:[%s15350_s7 + $0x18] sm:$0xff] }
 0x9a0   : > { %8029 = vmatprep.mubr.bf16.mxu0 %v9901_v37  ;;  %v9687_v3 = vcombine.high %v5542_v31, %v5546_v9  ;;  %v5550_v40 = vld [vmem:[%s15350_s7 + $0x58] sm:$0xff] }
 0x9a1   : > { %v9694_v28 = vcombine.low %v5550_v40, %v5554_v0 }
 0x9a2   : > { %v5457_v44 = vpop.xlane.xlu1 %5456 }
 0x9a3   : > { %v5845_v21 = vpack.c.bf16 %v5460_v61, %v5457_v44  ;;  %v5502_v58 = vpop.xlane.xlu0 %5501  ;;  %v5555_v44 = vld [vmem:[%s15350_s7 + $0x80] sm:$0xff] }
 0x9a4   : > { %v9696_v48 = vcombine.low %v5555_v44, %v5559_v59 }
 0x9a5   : > { %8075 = vmatpush1.bf16.msra.mxu0 %v5845_v21 }
 0x9a6   : > { %v5475_v7 = vpop.xlane.xlu1 %5474  ;;  %8076 = vmatprep.subr.bf16.mxu0 %v15538_v38 }
 0x9a7   : > { %8030 = vmatmul.mubr.bf16.gmra.mrb[200].mxu0 %v9900_v33  ;;  %v5496_v4 = vpop.xlane.xlu0 %5495  ;;  %v5848_v30 = vpack.c.bf16 %v5478_v22, %v5475_v7  ;;  %v9695_v33 = vcombine.high %v5550_v40, %v5554_v0  ;;  %v5563_v7 = vld [vmem:[%s15350_s7 + $0xc0] sm:$0xff]  ;;  %v5614_v0 = vld [vmem:[%s15350_s7 + $0x258] sm:$0xff] }
 0x9a8   : > { %8037 = vmatprep.mubr.bf16.mxu0 %v9909_v49  ;;  %v9697_v49 = vcombine.high %v5555_v44, %v5559_v59  ;;  %v5618_v44 = vld [vmem:[%s15350_s7 + $0x278] sm:$0xff]  ;;  %v5619_v59 = vld [vmem:[%s15350_s7 + $0x280] sm:$0xff] }
 0x9a9   : > { %8077 = vmatpush1.bf16.msra.mxu0 %v5846_v43  ;;  %v5567_v43 = vld [vmem:[%s15350_s7 + $0xe0] sm:$0xff] }
 0x9aa   : > { %v5469_v36 = vpop.xlane.xlu1 %5468  ;;  %8078 = vmatprep.subr.bf16.mxu0 %v15538_v38  ;;  %v9704_v57 = vcombine.low %v5563_v7, %v5567_v43 }
 0x9ab   : > { %v5847_v13 = vpack.c.bf16 %v5472_v20, %v5469_v36  ;;  %v5514_v11 = vpop.xlane.xlu0 %5513  ;;  %v5547_v20 = vld [vmem:[%s15350_s7 + $0x40] sm:$0xff] }
 0x9ac   : > { %v9688_v21 = vcombine.low %v5547_v20, %v5551_v27 }
 0x9ad   : > { %8079 = vmatpush1.bf16.msra.mxu0 %v5847_v13  ;;  %v9705_v13 = vcombine.high %v5563_v7, %v5567_v43  ;;  %v5627_v7 = vld [vmem:[%s15350_s7 + $0x2c0] sm:$0xff] }
 0x9ae   : > { %v5487_v39 = vpop.xlane.xlu1 %5486  ;;  %8080 = vmatprep.subr.bf16.mxu0 %v15538_v38  ;;  %v5631_v43 = vld [vmem:[%s15350_s7 + $0x2e0] sm:$0xff] }
 0x9af   : > { %8038 = vmatmul.mubr.bf16.gmra.mrb[204].mxu0 %v9908_v55  ;;  %v5850_v32 = vpack.c.bf16 %v5490_v63, %v5487_v39  ;;  %v5508_v45 = vpop.xlane.xlu0 %5507  ;;  %v9689_v63 = vcombine.high %v5547_v20, %v5551_v27  ;;  %v5566_v55 = vld [vmem:[%s15350_s7 + $0xd8] sm:$0xff]  ;;  %v5575_v39 = vld [vmem:[%s15350_s7 + $0x120] sm:$0xff] }
 0x9b0   : > { %8045 = vmatprep.mubr.bf16.mxu0 %v9917_v14  ;;  %v5571_v14 = vld [vmem:[%s15350_s7 + $0x100] sm:$0xff] }
 0x9b1   : > { %8081 = vmatpush1.bf16.msra.mxu0 %v5848_v30 }
 0x9b2   : > { %v5481_v34 = vpop.xlane.xlu1 %5480  ;;  %8082 = vmatprep.subr.bf16.mxu0 %v15538_v38 }
 0x9b3   : > { %v5849_v18 = vpack.c.bf16 %v5484_v24, %v5481_v34  ;;  %v5526_v47 = vpop.xlane.xlu0 %5525  ;;  %v5574_v34 = vld [vmem:[%s15350_s7 + $0x118] sm:$0xff] }
 0x9b5   : > { %8083 = vmatpush1.bf16.msra.mxu0 %v5849_v18  ;;  %v5578_v18 = vld [vmem:[%s15350_s7 + $0x138] sm:$0xff] }
 0x9b6   : > { %v5499_v15 = vpop.xlane.xlu1 %5498  ;;  %8084 = vmatprep.subr.bf16.mxu0 %v15538_v38 }
 0x9b7   : > { %8046 = vmatmul.mubr.bf16.gmra.mrb[208].mxu0 %v9916_v52  ;;  %v5852_v2 = vpack.c.bf16 %v5502_v58, %v5499_v15  ;;  %v5520_v61 = vpop.xlane.xlu0 %5519  ;;  %v5562_v58 = vld [vmem:[%s15350_s7 + $0xb8] sm:$0xff]  ;;  %v5579_v52 = vld [vmem:[%s15350_s7 + $0x140] sm:$0xff] }
 0x9b8   : > { %8053 = vmatprep.mubr.bf16.mxu0 %v9925_v6  ;;  %v5583_v6 = vld [vmem:[%s15350_s7 + $0x160] sm:$0xff] }
 0x9b9   : > { %8085 = vmatpush1.bf16.msra.mxu0 %v5850_v32  ;;  %v9712_v32 = vcombine.low %v5571_v14, %v5575_v39  ;;  %v9721_v62 = vcombine.high %v5579_v52, %v5583_v6 }
 0x9ba   : > { %v5493_v12 = vpop.xlane.xlu1 %5492  ;;  %8086 = vmatprep.subr.bf16.mxu0 %v15538_v38 }
 0x9bb   : > { %v5851_v10 = vpack.c.bf16 %v5496_v4, %v5493_v12  ;;  %v5250_v35 = vpop.xlane.xlu0 %5249  ;;  %v5570_v4 = vld [vmem:[%s15350_s7 + $0xf8] sm:$0xff] }
 0x9bc   : > { %v9711_v51 = vcombine.high %v5566_v55, %v5570_v4  ;;  %v9710_v15 = vcombine.low %v5566_v55, %v5570_v4  ;;  %v5586_v12 = vld [vmem:[%s15350_s7 + $0x178] sm:$0xff] }
 0x9bd   : > { %8087 = vmatpush1.bf16.msra.mxu0 %v5851_v10  ;;  %v5587_v10 = vld [vmem:[%s15350_s7 + $0x180] sm:$0xff]  ;;  %v5630_v55 = vld [vmem:[%s15350_s7 + $0x2d8] sm:$0xff] }
 0x9be   : > { %v5511_v41 = vpop.xlane.xlu1 %5510  ;;  %8088 = vmatprep.subr.bf16.mxu0 %v15538_v38  ;;  %v5634_v4 = vld [vmem:[%s15350_s7 + $0x2f8] sm:$0xff] }
 0x9bf   : > { %8054 = vmatmul.mubr.bf16.gmra.mrb[212].mxu0 %v9924_v25  ;;  %v5854_v22 = vpack.c.bf16 %v5514_v11, %v5511_v41  ;;  %v5532_v29 = vpop.xlane.xlu0 %5531  ;;  %v9713_v11 = vcombine.high %v5571_v14, %v5575_v39  ;;  %v5591_v25 = vld [vmem:[%s15350_s7 + $0x1a0] sm:$0xff]  ;;  %v9727_v41 = vcombine.high %v5582_v8, %v5586_v12 }
 0x9c0   : > { %8061 = vmatprep.mubr.bf16.mxu0 %v9933_v50  ;;  %v9718_v50 = vcombine.low %v5574_v34, %v5578_v18  ;;  %v5635_v14 = vld [vmem:[%s15350_s7 + $0x300] sm:$0xff] }
 0x9c1   : > { %8089 = vmatpush1.bf16.msra.mxu0 %v5852_v2  ;;  %v9729_v2 = vcombine.high %v5587_v10, %v5591_v25  ;;  %v5639_v39 = vld [vmem:[%s15350_s7 + $0x320] sm:$0xff] }
 0x9c2   : > { %v5505_v23 = vpop.xlane.xlu1 %5504  ;;  %8090 = vmatprep.subr.bf16.mxu0 %v15538_v38 }
 0x9c3   : > { %v5853_v26 = vpack.c.bf16 %v5508_v45, %v5505_v23  ;;  %v5538_v24 = vpop.xlane.xlu0 %5537  ;;  %v9719_v45 = vcombine.high %v5574_v34, %v5578_v18  ;;  %v5595_v23 = vld [vmem:[%s15350_s7 + $0x1c0] sm:$0xff]  ;;  %v5638_v34 = vld [vmem:[%s15350_s7 + $0x318] sm:$0xff] }
 0x9c4   : > { %v5642_v18 = vld [vmem:[%s15350_s7 + $0x338] sm:$0xff] }
 0x9c5   : > { %8091 = vmatpush1.bf16.msra.mxu0 %v5853_v26  ;;  %v5599_v26 = vld [vmem:[%s15350_s7 + $0x1e0] sm:$0xff] }
 0x9c6   : > { %v5523_v56 = vpop.xlane.xlu1 %5522  ;;  %8092 = vmatprep.subr.bf16.mxu0 %v15538_v38  ;;  %v9736_v20 = vcombine.low %v5595_v23, %v5599_v26 }
 0x9c7   : > { %8062 = vmatmul.mubr.bf16.gmra.mrb[216].mxu0 %v9932_v19  ;;  %v5856_v1 = vpack.c.bf16 %v5526_v47, %v5523_v56  ;;  %v9720_v47 = vcombine.low %v5579_v52, %v5583_v6  ;;  %v9726_v19 = vcombine.low %v5582_v8, %v5586_v12  ;;  %v9737_v56 = vcombine.high %v5595_v23, %v5599_v26  ;;  %v5643_v52 = vld [vmem:[%s15350_s7 + $0x340] sm:$0xff]  ;;  %v5646_v8 = vld [vmem:[%s15350_s7 + $0x358] sm:$0xff] }
 0x9c8   : > { %8102 = vmatprep.mubr.bf16.mxu0 %v9687_v3  ;;  %v5647_v6 = vld [vmem:[%s15350_s7 + $0x360] sm:$0xff]  ;;  %v5650_v12 = vld [vmem:[%s15350_s7 + $0x378] sm:$0xff] }
 0x9c9   : > { %8093 = vmatpush1.bf16.msra.mxu0 %v5854_v22  ;;  %v5598_v22 = vld [vmem:[%s15350_s7 + $0x1d8] sm:$0xff]  ;;  %v5659_v23 = vld [vmem:[%s15350_s7 + $0x3c0] sm:$0xff] }
 0x9ca   : > { %v5517_v5 = vpop.xlane.xlu1 %5516  ;;  %8094 = vmatprep.subr.bf16.mxu0 %v15538_v38  ;;  %v5663_v26 = vld [vmem:[%s15350_s7 + $0x3e0] sm:$0xff] }
 0x9cb   : > { %v5855_v42 = vpack.c.bf16 %v5520_v61, %v5517_v5  ;;  %v9728_v61 = vcombine.low %v5587_v10, %v5591_v25  ;;  %v5603_v5 = vld [vmem:[%s15350_s7 + $0x200] sm:$0xff] }
 0x9cc   : > { %v5651_v10 = vld [vmem:[%s15350_s7 + $0x380] sm:$0xff] }
 0x9cd   : > { %8095 = vmatpush1.bf16.msra.mxu0 %v5855_v42  ;;  %v5607_v42 = vld [vmem:[%s15350_s7 + $0x220] sm:$0xff] }
 0x9ce   : > { %v5247_v54 = vpop.xlane.xlu1 %5246  ;;  %8096 = vmatprep.subr.bf16.mxu0 %v15538_v38  ;;  %v9744_v40 = vcombine.low %v5603_v5, %v5607_v42  ;;  %v5655_v25 = vld [vmem:[%s15350_s7 + $0x3a0] sm:$0xff] }
 0x9cf   : > { %v5810_v16 = vpack.c.bf16 %v5250_v35, %v5247_v54  ;;  %v5602_v35 = vld [vmem:[%s15350_s7 + $0x1f8] sm:$0xff] }
 0x9d0   : > { %v9743_v27 = vcombine.high %v5598_v22, %v5602_v35 }
 0x9d1   : > { %7234 = vmatpush1.bf16.msra.mxu1 %v5810_v16  ;;  %8097 = vmatpush1.bf16.msra.mxu0 %v5856_v1  ;;  %v9745_v1 = vcombine.high %v5603_v5, %v5607_v42  ;;  %v5606_v16 = vld [vmem:[%s15350_s7 + $0x218] sm:$0xff]  ;;  %v5667_v5 = vld [vmem:[%s15350_s7 + $0x400] sm:$0xff] }
 0x9d2   : > { %v5529_v17 = vpop.xlane.xlu1 %5528  ;;  %8098 = vmatprep.subr.bf16.mxu0 %v15538_v38  ;;  %v5671_v42 = vld [vmem:[%s15350_s7 + $0x420] sm:$0xff] }
 0x9d3   : > { %v5857_v37 = vpack.c.bf16 %v5532_v29, %v5529_v17  ;;  %v5610_v29 = vld [vmem:[%s15350_s7 + $0x238] sm:$0xff]  ;;  %v5615_v17 = vld [vmem:[%s15350_s7 + $0x260] sm:$0xff] }
 0x9d4   : > { %7236 = vmatmul.mubr.bf16.vlgmr.msra.gmra.mrb[228].mxu1 %v9680_v46  ;;  %v9686_v46 = vcombine.low %v5542_v31, %v5546_v9  ;;  %v5590_v31 = vld [vmem:[%s15350_s7 + $0x198] sm:$0xff] }
 0x9d5   : > { %8099 = vmatpush1.bf16.msra.mxu0 %v5857_v37  ;;  %7243 = vmatprep.mubr.bf16.mxu1 %v9689_v63  ;;  %v5594_v9 = vld [vmem:[%s15350_s7 + $0x1b8] sm:$0xff]  ;;  %v5611_v63 = vld [vmem:[%s15350_s7 + $0x240] sm:$0xff]  ;;  %v9742_v37 = vcombine.low %v5598_v22, %v5602_v35 }
 0x9d6   : > { %v5535_v60 = vpop.xlane.xlu1 %5534  ;;  %8100 = vmatprep.subr.bf16.mxu0 %v15538_v38  ;;  %v5558_v38 = vld [vmem:[%s15350_s7 + $0x98] sm:$0xff]  ;;  %v9735_v3 = vcombine.high %v5590_v31, %v5594_v9  ;;  %v9734_v54 = vcombine.low %v5590_v31, %v5594_v9 }
 0x9d7   : > { %v5858_v53 = vpack.c.bf16 %v5538_v24, %v5535_v60  ;;  %v9703_v36 = vcombine.high %v5558_v38, %v5562_v58  ;;  %v9702_v30 = vcombine.low %v5558_v38, %v5562_v58  ;;  %v9751_v24 = vcombine.high %v5606_v16, %v5610_v29  ;;  %v5622_v38 = vld [vmem:[%s15350_s7 + $0x298] sm:$0xff] }
 0x9d8   : > { %v9753_v60 = vcombine.high %v5611_v63, %v5615_v17  ;;  %v5626_v58 = vld [vmem:[%s15350_s7 + $0x2b8] sm:$0xff] }
 0x9d9   : > { %8101 = vmatpush1.bf16.msra.mxu0 %v5858_v53  ;;  %v5623_v53 = vld [vmem:[%s15350_s7 + $0x2a0] sm:$0xff]  ;;  %v5654_v31 = vld [vmem:[%s15350_s7 + $0x398] sm:$0xff] }
 0x9da   : > { %v5658_v9 = vld [vmem:[%s15350_s7 + $0x3b8] sm:$0xff] }
 0x9db   : > { %v5662_v22 = vld [vmem:[%s15350_s7 + $0x3d8] sm:$0xff] }
 0x9dc   : > { %8103 = vmatmul.mubr.bf16.vlgmr.msra.gmra.mrb[92].mxu0 %v9686_v46  ;;  %7244 = vmatmul.mubr.bf16.gmra.mrb[232].mxu1 %v9688_v21  ;;  %v9750_v46 = vcombine.low %v5606_v16, %v5610_v29  ;;  %v9752_v21 = vcombine.low %v5611_v63, %v5615_v17  ;;  %v5666_v35 = vld [vmem:[%s15350_s7 + $0x3f8] sm:$0xff]  ;;  %v5675_v63 = vld [vmem:[%s15350_s7 + $0x440] sm:$0xff] }
 0x9dd   : > { %8110 = vmatprep.mubr.bf16.mxu0 %v9695_v33  ;;  %7251 = vmatprep.mubr.bf16.mxu1 %v9697_v49  ;;  %v9759_v33 = vcombine.high %v5614_v0, %v5618_v44  ;;  %v9761_v49 = vcombine.high %v5619_v59, %v5623_v53  ;;  %v5670_v16 = vld [vmem:[%s15350_s7 + $0x418] sm:$0xff]  ;;  %v5679_v17 = vld [vmem:[%s15350_s7 + $0x460] sm:$0xff] }
 0x9de   : > { %v5674_v29 = vld [vmem:[%s15350_s7 + $0x438] sm:$0xff] }
 0x9e4   : > { %8111 = vmatmul.mubr.bf16.gmra.mrb[96].mxu0 %v9694_v28  ;;  %7252 = vmatmul.mubr.bf16.gmra.mrb[236].mxu1 %v9696_v48  ;;  %v9758_v28 = vcombine.low %v5614_v0, %v5618_v44  ;;  %v9760_v48 = vcombine.low %v5619_v59, %v5623_v53  ;;  %v5678_v0 = vld [vmem:[%s15350_s7 + $0x458] sm:$0xff]  ;;  %v5683_v59 = vld [vmem:[%s15350_s7 + $0x480] sm:$0xff] }
 0x9e5   : > { %8118 = vmatprep.mubr.bf16.mxu0 %v9703_v36  ;;  %7259 = vmatprep.mubr.bf16.mxu1 %v9705_v13  ;;  %v9767_v36 = vcombine.high %v5622_v38, %v5626_v58  ;;  %v9769_v13 = vcombine.high %v5627_v7, %v5631_v43  ;;  %v5682_v44 = vld [vmem:[%s15350_s7 + $0x478] sm:$0xff]  ;;  %v5687_v53 = vld [vmem:[%s15350_s7 + $0x4a0] sm:$0xff] }
 0x9ec   : > { %8119 = vmatmul.mubr.bf16.gmra.mrb[100].mxu0 %v9702_v30  ;;  %7260 = vmatmul.mubr.bf16.gmra.mrb[240].mxu1 %v9704_v57  ;;  %v9766_v30 = vcombine.low %v5622_v38, %v5626_v58  ;;  %v9768_v57 = vcombine.low %v5627_v7, %v5631_v43  ;;  %v5686_v38 = vld [vmem:[%s15350_s7 + $0x498] sm:$0xff]  ;;  %v5691_v7 = vld [vmem:[%s15350_s7 + $0x4c0] sm:$0xff] }
 0x9ed   : > { %8126 = vmatprep.mubr.bf16.mxu0 %v9711_v51  ;;  %7267 = vmatprep.mubr.bf16.mxu1 %v9713_v11  ;;  %v9775_v51 = vcombine.high %v5630_v55, %v5634_v4  ;;  %v9777_v11 = vcombine.high %v5635_v14, %v5639_v39  ;;  %v5690_v58 = vld [vmem:[%s15350_s7 + $0x4b8] sm:$0xff]  ;;  %v5695_v43 = vld [vmem:[%s15350_s7 + $0x4e0] sm:$0xff] }
 0x9f4   : > { %8127 = vmatmul.mubr.bf16.gmra.mrb[104].mxu0 %v9710_v15  ;;  %7268 = vmatmul.mubr.bf16.gmra.mrb[244].mxu1 %v9712_v32  ;;  %v9774_v15 = vcombine.low %v5630_v55, %v5634_v4  ;;  %v9776_v32 = vcombine.low %v5635_v14, %v5639_v39  ;;  %v5694_v55 = vld [vmem:[%s15350_s7 + $0x4d8] sm:$0xff]  ;;  %v5699_v14 = vld [vmem:[%s15350_s7 + $0x500] sm:$0xff] }
 0x9f5   : > { %8134 = vmatprep.mubr.bf16.mxu0 %v9719_v45  ;;  %7275 = vmatprep.mubr.bf16.mxu1 %v9721_v62  ;;  %v9783_v45 = vcombine.high %v5638_v34, %v5642_v18  ;;  %v9785_v62 = vcombine.high %v5643_v52, %v5647_v6  ;;  %v5698_v4 = vld [vmem:[%s15350_s7 + $0x4f8] sm:$0xff]  ;;  %v5703_v39 = vld [vmem:[%s15350_s7 + $0x520] sm:$0xff] }
 0x9fc   : > { %8135 = vmatmul.mubr.bf16.gmra.mrb[108].mxu0 %v9718_v50  ;;  %7276 = vmatmul.mubr.bf16.gmra.mrb[248].mxu1 %v9720_v47  ;;  %v9782_v50 = vcombine.low %v5638_v34, %v5642_v18  ;;  %v9784_v47 = vcombine.low %v5643_v52, %v5647_v6  ;;  %v5702_v34 = vld [vmem:[%s15350_s7 + $0x518] sm:$0xff]  ;;  %v5707_v52 = vld [vmem:[%s15350_s7 + $0x540] sm:$0xff] }
 0x9fd   : > { %8142 = vmatprep.mubr.bf16.mxu0 %v9727_v41  ;;  %7283 = vmatprep.mubr.bf16.mxu1 %v9729_v2  ;;  %v9791_v41 = vcombine.high %v5646_v8, %v5650_v12  ;;  %v9793_v2 = vcombine.high %v5651_v10, %v5655_v25  ;;  %v5706_v18 = vld [vmem:[%s15350_s7 + $0x538] sm:$0xff]  ;;  %v5711_v6 = vld [vmem:[%s15350_s7 + $0x560] sm:$0xff] }
 0xa04   : > { %8143 = vmatmul.mubr.bf16.gmra.mrb[112].mxu0 %v9726_v19  ;;  %7284 = vmatmul.mubr.bf16.gmra.mrb[252].mxu1 %v9728_v61  ;;  %v9790_v19 = vcombine.low %v5646_v8, %v5650_v12  ;;  %v9792_v61 = vcombine.low %v5651_v10, %v5655_v25  ;;  %v5710_v8 = vld [vmem:[%s15350_s7 + $0x558] sm:$0xff]  ;;  %v5715_v10 = vld [vmem:[%s15350_s7 + $0x580] sm:$0xff] }
 0xa05   : > { %8150 = vmatprep.mubr.bf16.mxu0 %v9735_v3  ;;  %7291 = vmatprep.mubr.bf16.mxu1 %v9737_v56  ;;  %v9799_v3 = vcombine.high %v5654_v31, %v5658_v9  ;;  %v9801_v56 = vcombine.high %v5659_v23, %v5663_v26  ;;  %v5714_v12 = vld [vmem:[%s15350_s7 + $0x578] sm:$0xff]  ;;  %v5719_v25 = vld [vmem:[%s15350_s7 + $0x5a0] sm:$0xff] }
 0xa0c   : > { %8151 = vmatmul.mubr.bf16.gmra.mrb[116].mxu0 %v9734_v54  ;;  %7292 = vmatmul.mubr.bf16.gmra.mrb[0].mxu1 %v9736_v20  ;;  %v9798_v54 = vcombine.low %v5654_v31, %v5658_v9  ;;  %v9800_v20 = vcombine.low %v5659_v23, %v5663_v26  ;;  %v5718_v31 = vld [vmem:[%s15350_s7 + $0x598] sm:$0xff]  ;;  %v5723_v23 = vld [vmem:[%s15350_s7 + $0x5c0] sm:$0xff] }
 0xa0d   : > { %8158 = vmatprep.mubr.bf16.mxu0 %v9743_v27  ;;  %7299 = vmatprep.mubr.bf16.mxu1 %v9745_v1  ;;  %v9807_v27 = vcombine.high %v5662_v22, %v5666_v35  ;;  %v9809_v1 = vcombine.high %v5667_v5, %v5671_v42  ;;  %v5722_v9 = vld [vmem:[%s15350_s7 + $0x5b8] sm:$0xff]  ;;  %v5727_v26 = vld [vmem:[%s15350_s7 + $0x5e0] sm:$0xff] }
 0xa14   : > { %8159 = vmatmul.mubr.bf16.gmra.mrb[120].mxu0 %v9742_v37  ;;  %7300 = vmatmul.mubr.bf16.gmra.mrb[4].mxu1 %v9744_v40  ;;  %v9806_v37 = vcombine.low %v5662_v22, %v5666_v35  ;;  %v9808_v40 = vcombine.low %v5667_v5, %v5671_v42  ;;  %v5726_v22 = vld [vmem:[%s15350_s7 + $0x5d8] sm:$0xff]  ;;  %v5731_v5 = vld [vmem:[%s15350_s7 + $0x600] sm:$0xff] }
 0xa15   : > { %8166 = vmatprep.mubr.bf16.mxu0 %v9751_v24  ;;  %7307 = vmatprep.mubr.bf16.mxu1 %v9753_v60  ;;  %v9815_v24 = vcombine.high %v5670_v16, %v5674_v29  ;;  %v9817_v60 = vcombine.high %v5675_v63, %v5679_v17  ;;  %v5730_v35 = vld [vmem:[%s15350_s7 + $0x5f8] sm:$0xff]  ;;  %v5735_v42 = vld [vmem:[%s15350_s7 + $0x620] sm:$0xff] }
 0xa1c   : > { %8167 = vmatmul.mubr.bf16.gmra.mrb[124].mxu0 %v9750_v46  ;;  %7308 = vmatmul.mubr.bf16.gmra.mrb[8].mxu1 %v9752_v21  ;;  %v9814_v46 = vcombine.low %v5670_v16, %v5674_v29  ;;  %v9816_v21 = vcombine.low %v5675_v63, %v5679_v17  ;;  %v5734_v16 = vld [vmem:[%s15350_s7 + $0x618] sm:$0xff]  ;;  %v5739_v63 = vld [vmem:[%s15350_s7 + $0x640] sm:$0xff] }
 0xa1d   : > { %8174 = vmatprep.mubr.bf16.mxu0 %v9759_v33  ;;  %7315 = vmatprep.mubr.bf16.mxu1 %v9761_v49  ;;  %v9823_v33 = vcombine.high %v5678_v0, %v5682_v44  ;;  %v9825_v49 = vcombine.high %v5683_v59, %v5687_v53  ;;  %v5738_v29 = vld [vmem:[%s15350_s7 + $0x638] sm:$0xff]  ;;  %v5743_v17 = vld [vmem:[%s15350_s7 + $0x660] sm:$0xff] }
 0xa24   : > { %8175 = vmatmul.mubr.bf16.gmra.mrb[128].mxu0 %v9758_v28  ;;  %7316 = vmatmul.mubr.bf16.gmra.mrb[12].mxu1 %v9760_v48  ;;  %v9822_v28 = vcombine.low %v5678_v0, %v5682_v44  ;;  %v9824_v48 = vcombine.low %v5683_v59, %v5687_v53  ;;  %v5742_v0 = vld [vmem:[%s15350_s7 + $0x658] sm:$0xff]  ;;  %v5747_v59 = vld [vmem:[%s15350_s7 + $0x680] sm:$0xff] }
 0xa25   : > { %8182 = vmatprep.mubr.bf16.mxu0 %v9767_v36  ;;  %7323 = vmatprep.mubr.bf16.mxu1 %v9769_v13  ;;  %v9831_v36 = vcombine.high %v5686_v38, %v5690_v58  ;;  %v9833_v13 = vcombine.high %v5691_v7, %v5695_v43  ;;  %v5746_v44 = vld [vmem:[%s15350_s7 + $0x678] sm:$0xff]  ;;  %v5751_v53 = vld [vmem:[%s15350_s7 + $0x6a0] sm:$0xff] }
 0xa2c   : > { %8183 = vmatmul.mubr.bf16.gmra.mrb[132].mxu0 %v9766_v30  ;;  %7324 = vmatmul.mubr.bf16.gmra.mrb[16].mxu1 %v9768_v57  ;;  %v9830_v30 = vcombine.low %v5686_v38, %v5690_v58  ;;  %v9832_v57 = vcombine.low %v5691_v7, %v5695_v43  ;;  %v5750_v38 = vld [vmem:[%s15350_s7 + $0x698] sm:$0xff]  ;;  %v5755_v7 = vld [vmem:[%s15350_s7 + $0x6c0] sm:$0xff] }
 0xa2d   : > { %8190 = vmatprep.mubr.bf16.mxu0 %v9775_v51  ;;  %7331 = vmatprep.mubr.bf16.mxu1 %v9777_v11  ;;  %v9839_v51 = vcombine.high %v5694_v55, %v5698_v4  ;;  %v9841_v11 = vcombine.high %v5699_v14, %v5703_v39  ;;  %v5754_v58 = vld [vmem:[%s15350_s7 + $0x6b8] sm:$0xff]  ;;  %v5759_v43 = vld [vmem:[%s15350_s7 + $0x6e0] sm:$0xff] }
 0xa34   : > { %8191 = vmatmul.mubr.bf16.gmra.mrb[136].mxu0 %v9774_v15  ;;  %7332 = vmatmul.mubr.bf16.gmra.mrb[20].mxu1 %v9776_v32  ;;  %v9838_v15 = vcombine.low %v5694_v55, %v5698_v4  ;;  %v9840_v32 = vcombine.low %v5699_v14, %v5703_v39  ;;  %v5758_v55 = vld [vmem:[%s15350_s7 + $0x6d8] sm:$0xff]  ;;  %v5763_v14 = vld [vmem:[%s15350_s7 + $0x700] sm:$0xff] }
 0xa35   : > { %8198 = vmatprep.mubr.bf16.mxu0 %v9783_v45  ;;  %7339 = vmatprep.mubr.bf16.mxu1 %v9785_v62  ;;  %v9847_v45 = vcombine.high %v5702_v34, %v5706_v18  ;;  %v9849_v62 = vcombine.high %v5707_v52, %v5711_v6  ;;  %v5762_v4 = vld [vmem:[%s15350_s7 + $0x6f8] sm:$0xff]  ;;  %v5767_v39 = vld [vmem:[%s15350_s7 + $0x720] sm:$0xff] }
 0xa3c   : > { %8199 = vmatmul.mubr.bf16.gmra.mrb[140].mxu0 %v9782_v50  ;;  %7340 = vmatmul.mubr.bf16.gmra.mrb[24].mxu1 %v9784_v47  ;;  %v9846_v50 = vcombine.low %v5702_v34, %v5706_v18  ;;  %v9848_v47 = vcombine.low %v5707_v52, %v5711_v6  ;;  %v5859_v18 = vld [vmem:[%s15351_s8] sm:$0xff]  ;;  %v9903_v52 = vcombine.high %v5758_v55, %v5762_v4 }
 0xa3d   : > { %8206 = vmatprep.mubr.bf16.mxu0 %v9791_v41  ;;  %7347 = vmatprep.mubr.bf16.mxu1 %v9793_v2  ;;  %v9855_v41 = vcombine.high %v5710_v8, %v5714_v12  ;;  %v9857_v2 = vcombine.high %v5715_v10, %v5719_v25  ;;  %v9905_v6 = vcombine.high %v5763_v14, %v5767_v39 }
 0xa44   : > { %8207 = vmatmul.mubr.bf16.gmra.mrb[144].mxu0 %v9790_v19  ;;  %7348 = vmatmul.mubr.bf16.gmra.mrb[28].mxu1 %v9792_v61  ;;  %v9854_v19 = vcombine.low %v5710_v8, %v5714_v12  ;;  %v9856_v61 = vcombine.low %v5715_v10, %v5719_v25  ;;  %v5770_v8 = vld [vmem:[%s15350_s7 + $0x738] sm:$0xff]  ;;  %v5771_v12 = vld [vmem:[%s15350_s7 + $0x740] sm:$0xff] }
 0xa45   : > { %8214 = vmatprep.mubr.bf16.mxu0 %v9799_v3  ;;  %7355 = vmatprep.mubr.bf16.mxu1 %v9801_v56  ;;  %v9863_v3 = vcombine.high %v5718_v31, %v5722_v9  ;;  %v9865_v56 = vcombine.high %v5723_v23, %v5727_v26  ;;  %v5775_v10 = vld [vmem:[%s15350_s7 + $0x760] sm:$0xff] }
 0xa4c   : > { %8215 = vmatmul.mubr.bf16.gmra.mrb[148].mxu0 %v9798_v54  ;;  %7356 = vmatmul.mubr.bf16.gmra.mrb[32].mxu1 %v9800_v20  ;;  %v9862_v54 = vcombine.low %v5718_v31, %v5722_v9  ;;  %v9864_v20 = vcombine.low %v5723_v23, %v5727_v26  ;;  %v9902_v9 = vcombine.low %v5758_v55, %v5762_v4  ;;  %v5864_v4 = vld [vmem:[%s15351_s8 + $0x28] sm:$0xff] }
 0xa4d   : > { %8222 = vmatprep.mubr.bf16.mxu0 %v9807_v27  ;;  %7363 = vmatprep.mubr.bf16.mxu1 %v9809_v1  ;;  %v9871_v27 = vcombine.high %v5726_v22, %v5730_v35  ;;  %v9873_v1 = vcombine.high %v5731_v5, %v5735_v42  ;;  %v9904_v23 = vcombine.low %v5763_v14, %v5767_v39  ;;  %v5782_v14 = vld [vmem:[%s15350_s7 + $0x798] sm:$0xff] }
 0xa54   : > { %8223 = vmatmul.mubr.bf16.gmra.mrb[152].mxu0 %v9806_v37  ;;  %7364 = vmatmul.mubr.bf16.gmra.mrb[36].mxu1 %v9808_v40  ;;  %v9870_v37 = vcombine.low %v5726_v22, %v5730_v35  ;;  %v9872_v40 = vcombine.low %v5731_v5, %v5735_v42 }
 0xa55   : > { %8230 = vmatprep.mubr.bf16.mxu0 %v9815_v24  ;;  %7371 = vmatprep.mubr.bf16.mxu1 %v9817_v60  ;;  %v9879_v24 = vcombine.high %v5734_v16, %v5738_v29  ;;  %v9881_v60 = vcombine.high %v5739_v63, %v5743_v17 }
 0xa5c   : > { %8231 = vmatmul.mubr.bf16.gmra.mrb[156].mxu0 %v9814_v46  ;;  %7372 = vmatmul.mubr.bf16.gmra.mrb[40].mxu1 %v9816_v21  ;;  %v9878_v46 = vcombine.low %v5734_v16, %v5738_v29  ;;  %v9880_v21 = vcombine.low %v5739_v63, %v5743_v17  ;;  %v5778_v63 = vld [vmem:[%s15350_s7 + $0x778] sm:$0xff]  ;;  %v5779_v17 = vld [vmem:[%s15350_s7 + $0x780] sm:$0xff] }
 0xa5d   : > { %8238 = vmatprep.mubr.bf16.mxu0 %v9823_v33  ;;  %7379 = vmatprep.mubr.bf16.mxu1 %v9825_v49  ;;  %v9887_v33 = vcombine.high %v5742_v0, %v5746_v44  ;;  %v9889_v49 = vcombine.high %v5747_v59, %v5751_v53 }
 0xa64   : > { %8239 = vmatmul.mubr.bf16.gmra.mrb[160].mxu0 %v9822_v28  ;;  %7380 = vmatmul.mubr.bf16.gmra.mrb[44].mxu1 %v9824_v48  ;;  %v9886_v28 = vcombine.low %v5742_v0, %v5746_v44  ;;  %v9888_v48 = vcombine.low %v5747_v59, %v5751_v53 }
 0xa65   : > { %8246 = vmatprep.mubr.bf16.mxu0 %v9831_v36  ;;  %7387 = vmatprep.mubr.bf16.mxu1 %v9833_v13  ;;  %v9895_v36 = vcombine.high %v5750_v38, %v5754_v58  ;;  %v9897_v13 = vcombine.high %v5755_v7, %v5759_v43 }
 0xa6c   : > { %8247 = vmatmul.mubr.bf16.gmra.mrb[164].mxu0 %v9830_v30  ;;  %7388 = vmatmul.mubr.bf16.gmra.mrb[48].mxu1 %v9832_v57 }
 0xa6d   : > { %8254 = vmatprep.mubr.bf16.mxu0 %v9839_v51  ;;  %7395 = vmatprep.mubr.bf16.mxu1 %v9841_v11  ;;  %v9894_v51 = vcombine.low %v5750_v38, %v5754_v58  ;;  %v9896_v11 = vcombine.low %v5755_v7, %v5759_v43 }
 0xa74   : > { %8255 = vmatmul.mubr.bf16.gmra.mrb[168].mxu0 %v9838_v15  ;;  %7396 = vmatmul.mubr.bf16.gmra.mrb[52].mxu1 %v9840_v32 }
 0xa75   : > { %8262 = vmatprep.mubr.bf16.mxu0 %v9847_v45  ;;  %7403 = vmatprep.mubr.bf16.mxu1 %v9849_v62  ;;  %v5860_v45 = vld [vmem:[%s15351_s8 + $0x8] sm:$0xff]  ;;  %v5766_v62 = vld [vmem:[%s15350_s7 + $0x718] sm:$0xff] }
 0xa7c   : > { %8263 = vmatmul.mubr.bf16.gmra.mrb[172].mxu0 %v9846_v50  ;;  %7404 = vmatmul.mubr.bf16.gmra.mrb[56].mxu1 %v9848_v47 }
 0xa7d   : > { %8270 = vmatprep.mubr.bf16.mxu0 %v9855_v41  ;;  %7411 = vmatprep.mubr.bf16.mxu1 %v9857_v2 }
 0xa84   : > { %8271 = vmatmul.mubr.bf16.gmra.mrb[176].mxu0 %v9854_v19  ;;  %7412 = vmatmul.mubr.bf16.gmra.mrb[60].mxu1 %v9856_v61  ;;  %v5861_v19 = vld [vmem:[%s15351_s8 + $0x10] sm:$0xff] }
 0xa85   : > { %8278 = vmatprep.mubr.bf16.mxu0 %v9863_v3  ;;  %7419 = vmatprep.mubr.bf16.mxu1 %v9865_v56  ;;  %v9911_v3 = vcombine.high %v5766_v62, %v5770_v8  ;;  %v9913_v56 = vcombine.high %v5771_v12, %v5775_v10 }
 0xa8c   : > { %8279 = vmatmul.mubr.bf16.gmra.mrb[180].mxu0 %v9862_v54  ;;  %7420 = vmatmul.mubr.bf16.gmra.mrb[64].mxu1 %v9864_v20 }
 0xa8d   : > { %8286 = vmatprep.mubr.bf16.mxu0 %v9871_v27  ;;  %7427 = vmatprep.mubr.bf16.mxu1 %v9873_v1  ;;  %v5862_v27 = vld [vmem:[%s15351_s8 + $0x18] sm:$0xff] }
 0xa8e   : > { %v5774_v1 = vld [vmem:[%s15350_s7 + $0x758] sm:$0xff] }
 0xa8f   : > { %v9919_v58 = vcombine.high %v5774_v1, %v5778_v63 }
 0xa94   : > { %8287 = vmatmul.mubr.bf16.gmra.mrb[184].mxu0 %v9870_v37  ;;  %7428 = vmatmul.mubr.bf16.gmra.mrb[68].mxu1 %v9872_v40  ;;  %v5783_v37 = vld [vmem:[%s15350_s7 + $0x7a0] sm:$0xff] }
 0xa95   : > { %8294 = vmatprep.mubr.bf16.mxu0 %v9879_v24  ;;  %7435 = vmatprep.mubr.bf16.mxu1 %v9881_v60  ;;  %v9910_v60 = vcombine.low %v5766_v62, %v5770_v8  ;;  %v9921_v7 = vcombine.high %v5779_v17, %v5783_v37  ;;  %v9920_v8 = vcombine.low %v5779_v17, %v5783_v37  ;;  %v5867_v17 = vld [vmem:[%s15351_s8 + $0x40] sm:$0xff] }
 0xa9c   : > { %8295 = vmatmul.mubr.bf16.gmra.mrb[188].mxu0 %v9878_v46  ;;  %7436 = vmatmul.mubr.bf16.gmra.mrb[72].mxu1 %v9880_v21  ;;  %v9912_v21 = vcombine.low %v5771_v12, %v5775_v10  ;;  %v5865_v10 = vld [vmem:[%s15351_s8 + $0x30] sm:$0xff] }
 0xa9d   : > { %8302 = vmatprep.mubr.bf16.mxu0 %v9887_v33  ;;  %7443 = vmatprep.mubr.bf16.mxu1 %v9889_v49  ;;  %v5863_v49 = vld [vmem:[%s15351_s8 + $0x20] sm:$0xff] }
 0xaa4   : > { %8303 = vmatmul.mubr.bf16.gmra.mrb[192].mxu0 %v9886_v28  ;;  %7444 = vmatmul.mubr.bf16.gmra.mrb[76].mxu1 %v9888_v48 }
 0xaa5   : > { %8310 = vmatprep.mubr.bf16.mxu0 %v9895_v36  ;;  %7451 = vmatprep.mubr.bf16.mxu1 %v9897_v13 }
 0xaa7   : > { %v7237_v30 = vpop.f32.mrb[228].mxu1 }
 0xaa8   : > { %v7239_v57 = vpop.f32.mrb[229].mxu1  ;;  %v7238_v32 = vadd.f32 %v7237_v30, %v5859_v18 }
 0xaa9   : > { %v7240_v34 = vpop.f32.mrb[230].mxu1  ;;  %v5786_v57 = vld [vmem:[%s15350_s7 + $0x7b8] sm:$0xff] }
 0xaaa   : > { %v7242_v15 = vpop.f32.mrb[231].mxu1  ;;  %v7241_v2 = vadd.f32 %v7240_v34, %v5860_v45 }
 0xaac   : > { %8311 = vmatmul.mubr.bf16.gmra.mrb[196].mxu0 %v9894_v51  ;;  %7452 = vmatmul.mubr.bf16.gmra.mrb[80].mxu1 %v9896_v11  ;;  %v5787_v51 = vld [vmem:[%s15350_s7 + $0x7c0] sm:$0xff] }
 0xaad   : > { %8318 = vmatprep.mubr.bf16.mxu0 %v9903_v52  ;;  %7459 = vmatprep.mubr.bf16.mxu1 %v9905_v6  ;;  %v5791_v11 = vld [vmem:[%s15350_s7 + $0x7e0] sm:$0xff]  ;;  %v9918_v52 = vcombine.low %v5774_v1, %v5778_v63 }
 0xaaf   : > { %v8104_v25 = vpop.f32.mrb[92].mxu0  ;;  %v7245_v50 = vpop.f32.mrb[232].mxu1 }
 0xab0   : > { %v10885_v47 = vadd.f32 %v8104_v25, %v7238_v32  ;;  %v8106_v41 = vpop.f32.mrb[93].mxu0  ;;  %v7247_v31 = vpop.f32.mrb[233].mxu1  ;;  %v7246_v20 = vadd.f32 %v7245_v50, %v5861_v19  ;;  %v9927_v50 = vcombine.high %v5782_v14, %v5786_v57  ;;  %v5866_v19 = vld [vmem:[%s15351_s8 + $0x38] sm:$0xff] }
 0xab1   : > { %v8107_v26 = vpop.f32.mrb[94].mxu0  ;;  %v7248_v61 = vpop.f32.mrb[234].mxu1 }
 0xab2   : > { %v8359_v22 = vmul.f32 0.2, %v10885_v47  ;;  %v10887_v35 = vadd.f32 %v8107_v26, %v7241_v2  ;;  %v8109_v5 = vpop.f32.mrb[95].mxu0  ;;  %v7250_v42 = vpop.f32.mrb[235].mxu1  ;;  %v7249_v44 = vadd.f32 %v7248_v61, %v5862_v27 }
 0xab3   : > { %v9926_v42 = vcombine.low %v5782_v14, %v5786_v57  ;;  %v5869_v14 = vld [vmem:[%s15351_s8 + $0x50] sm:$0xff] }
 0xab4   : > { %v8360_v54 = vmul.f32 0.2, %v10887_v35  ;;  %8319 = vmatmul.mubr.bf16.gmra.mrb[200].mxu0 %v9902_v9  ;;  %7460 = vmatmul.mubr.bf16.gmra.mrb[84].mxu1 %v9904_v23  ;;  %v8423_v16 = vmax.f32 %v10885_v47, %v8359_v22  ;;  %v9929_v47 = vcombine.high %v5787_v51, %v5791_v11  ;;  %v5794_v22 = vld [vmem:[%s15350_s7 + $0x7f8] sm:$0xff] }
 0xab5   : > { %8326 = vmatprep.mubr.bf16.mxu0 %v9911_v3  ;;  %7467 = vmatprep.mubr.bf16.mxu1 %v9913_v56  ;;  %v5790_v56 = vld [vmem:[%s15350_s7 + $0x7d8] sm:$0xff] }
 0xab6   : > { %v8424_v29 = vmax.f32 %v10887_v35, %v8360_v54 }
 0xab7   : > { %v8112_v40 = vpop.f32.mrb[96].mxu0  ;;  %v7253_v24 = vpop.f32.mrb[236].mxu1 }
 0xab8   : > { %v14856_v0 = vpack.c.bf16 %v8424_v29, %v8423_v16  ;;  %v10889_v59 = vadd.f32 %v8112_v40, %v7246_v20  ;;  %v8114_v53 = vpop.f32.mrb[97].mxu0  ;;  %v7255_v46 = vpop.f32.mrb[237].mxu1  ;;  %v7254_v55 = vadd.f32 %v7253_v24, %v5863_v49  ;;  %v9928_v29 = vcombine.low %v5787_v51, %v5791_v11  ;;  %v11407_v24 = vld [vmem:[#allocation5 + $0x4] ss:$16 sps:$4 sm:$0xff]  }
 0xab9   : > { %v8115_v33 = vpop.f32.mrb[98].mxu0  ;;  %v7256_v38 = vpop.f32.mrb[238].mxu1  ;;  %v9935_v40 = vcombine.high %v5790_v56, %v5794_v22 }
 0xaba   : > { %v8361_v43 = vmul.f32 0.2, %v10889_v59  ;;  %v10891_v28 = vadd.f32 %v8115_v33, %v7249_v44  ;;  %v8117_v48 = vpop.f32.mrb[99].mxu0  ;;  %v7258_v36 = vpop.f32.mrb[239].mxu1  ;;  %v7257_v15 = vadd.f32 %v7256_v38, %v5864_v4  ;;  %v5868_v33 = vld [vmem:[%s15351_s8 + $0x48] sm:$0xff] }
 0xabc   : > { %v8362_v13 = vmul.f32 0.2, %v10891_v28  ;;  %8327 = vmatmul.mubr.bf16.gmra.mrb[204].mxu0 %v9910_v60  ;;  %7468 = vmatmul.mubr.bf16.gmra.mrb[88].mxu1 %v9912_v21  ;;  %v8425_v39 = vmax.f32 %v10889_v59, %v8361_v43 }
 0xabd   : > { %8334 = vmatprep.mubr.bf16.mxu0 %v9919_v58  ;;  %7475 = vmatprep.mubr.bf16.mxu1 %v9921_v7 }
 0xabe   : > { %v8426_v30 = vmax.f32 %v10891_v28, %v8362_v13 }
 0xabf   : > { %v8120_v34 = vpop.f32.mrb[100].mxu0  ;;  %v7261_v18 = vpop.f32.mrb[240].mxu1 }
 0xac0   : > { %v14876_v6 = vpack.c.bf16 %v8426_v30, %v8425_v39  ;;  %v10893_v32 = vadd.f32 %v8120_v34, %v7254_v55  ;;  %v8122_v45 = vpop.f32.mrb[101].mxu0  ;;  %v7263_v62 = vpop.f32.mrb[241].mxu1  ;;  %v7262_v26 = vadd.f32 %v7261_v18, %v5865_v10  ;;  %v9934_v55 = vcombine.low %v5790_v56, %v5794_v22 }
 0xac1   : > { %v8123_v12 = vpop.f32.mrb[102].mxu0  ;;  %v7264_v25 = vpop.f32.mrb[242].mxu1 }
 0xac2   : > { %v8363_v41 = vmul.f32 0.2, %v10893_v32  ;;  %v10895_v2 = vadd.f32 %v8123_v12, %v7257_v15  ;;  %v8125_v31 = vpop.f32.mrb[103].mxu0  ;;  %v7266_v9 = vpop.f32.mrb[243].mxu1  ;;  %v7265_v20 = vadd.f32 %v7264_v25, %v5866_v19 }
 0xac4   : > { %v8364_v23 = vmul.f32 0.2, %v10895_v2  ;;  %8335 = vmatmul.mubr.bf16.gmra.mrb[208].mxu0 %v9918_v52  ;;  %7476 = vmatmul.mubr.bf16.gmra.mrb[92].mxu1 %v9920_v8  ;;  %v8427_v61 = vmax.f32 %v10893_v32, %v8363_v41  ;;  %v5870_v52 = vld [vmem:[%s15351_s8 + $0x58] sm:$0xff]  ;;  %v5871_v41 = vld [vmem:[%s15351_s8 + $0x60] sm:$0xff] }
 0xac5   : > { %8342 = vmatprep.mubr.bf16.mxu0 %v9927_v50  ;;  %7483 = vmatprep.mubr.bf16.mxu1 %v9929_v47 }
 0xac6   : > { %v8428_v3 = vmax.f32 %v10895_v2, %v8364_v23 }
 0xac7   : > { %v8128_v35 = vpop.f32.mrb[104].mxu0  ;;  %v7269_v5 = vpop.f32.mrb[244].mxu1 }
 0xac8   : > { %v14890_v54 = vpack.c.bf16 %v8428_v3, %v8427_v61  ;;  %v10897_v27 = vadd.f32 %v8128_v35, %v7262_v26  ;;  %v8130_v1 = vpop.f32.mrb[105].mxu0  ;;  %v7271_v16 = vpop.f32.mrb[245].mxu1  ;;  %v7270_v21 = vadd.f32 %v7269_v5, %v5867_v17  ;;  %v5872_v3 = vld [vmem:[%s15351_s8 + $0x68] sm:$0xff] }
 0xac9   : > { %v8131_v63 = vpop.f32.mrb[106].mxu0  ;;  %v7272_v37 = vpop.f32.mrb[246].mxu1 }
 0xaca   : > { %v8365_v60 = vmul.f32 0.2, %v10897_v27  ;;  %v10899_v44 = vadd.f32 %v8131_v63, %v7265_v20  ;;  %v8133_v59 = vpop.f32.mrb[107].mxu0  ;;  %v7274_v53 = vpop.f32.mrb[247].mxu1  ;;  %v7273_v28 = vadd.f32 %v7272_v37, %v5868_v33  ;;  %v5873_v63 = vld [vmem:[%s15351_s8 + $0x70] sm:$0xff] }
 0xacb   : > { %v5874_v53 = vld [vmem:[%s15351_s8 + $0x78] sm:$0xff] }
 0xacc   : > { %v8366_v46 = vmul.f32 0.2, %v10899_v44  ;;  %8343 = vmatmul.mubr.bf16.gmra.mrb[212].mxu0 %v9926_v42  ;;  %7484 = vmatmul.mubr.bf16.gmra.mrb[96].mxu1 %v9928_v29  ;;  %v8429_v49 = vmax.f32 %v10897_v27, %v8365_v60 }
 0xacd   : > { %8350 = vmatprep.mubr.bf16.mxu0 %v9935_v40  ;;  %8967 = vmatprep.mubr.bf16.mxu1 %v11407_v24 }
 0xace   : > { %v8430_v38 = vmax.f32 %v10899_v44, %v8366_v46 }
 0xacf   : > { %v8136_v58 = vpop.f32.mrb[108].mxu0  ;;  %v7277_v7 = vpop.f32.mrb[248].mxu1 }
 0xad0   : > { %v14898_v43 = vpack.c.bf16 %v8430_v38, %v8429_v49  ;;  %v10901_v48 = vadd.f32 %v8136_v58, %v7270_v21  ;;  %v8138_v36 = vpop.f32.mrb[109].mxu0  ;;  %v7279_v13 = vpop.f32.mrb[249].mxu1  ;;  %v7278_v18 = vadd.f32 %v7277_v7, %v5869_v14 }
 0xad1   : > { %v8139_v4 = vpop.f32.mrb[110].mxu0  ;;  %v7280_v39 = vpop.f32.mrb[250].mxu1  ;;  %v5875_v13 = vld [vmem:[%s15351_s8 + $0x80] sm:$0xff] }
 0xad2   : > { %v8367_v30 = vmul.f32 0.2, %v10901_v48  ;;  %v10903_v57 = vadd.f32 %v8139_v4, %v7273_v28  ;;  %v8141_v51 = vpop.f32.mrb[111].mxu0  ;;  %v7282_v11 = vpop.f32.mrb[251].mxu1  ;;  %v7281_v12 = vadd.f32 %v7280_v39, %v5870_v52 }
 0xad3   : > { %v5876_v11 = vld [vmem:[%s15351_s8 + $0x88] sm:$0xff] }
 0xad4   : > { %v8368_v34 = vmul.f32 0.2, %v10903_v57  ;;  %8351 = vmatmul.mubr.bf16.gmra.mrb[216].mxu0 %v9934_v55  ;;  %v8431_v15 = vmax.f32 %v10901_v48, %v8367_v30 }
 0xad6   : > { %v8432_v32 = vmax.f32 %v10903_v57, %v8368_v34 }
 0xad7   : > { %v8144_v45 = vpop.f32.mrb[112].mxu0  ;;  %v7285_v62 = vpop.f32.mrb[252].mxu1 }
 0xad8   : > { %v14906_v8 = vpack.c.bf16 %v8432_v32, %v8431_v15  ;;  %v10905_v10 = vadd.f32 %v8144_v45, %v7278_v18  ;;  %v8146_v25 = vpop.f32.mrb[113].mxu0  ;;  %v7287_v50 = vpop.f32.mrb[253].mxu1  ;;  %v7286_v61 = vadd.f32 %v7285_v62, %v5871_v41 }
 0xad9   : > { %v8147_v47 = vpop.f32.mrb[114].mxu0  ;;  %v7288_v2 = vpop.f32.mrb[254].mxu1  ;;  %v5877_v50 = vld [vmem:[%s15351_s8 + $0x90] sm:$0xff] }
 0xada   : > { %v8369_v31 = vmul.f32 0.2, %v10905_v10  ;;  %v10907_v9 = vadd.f32 %v8147_v47, %v7281_v12  ;;  %v8149_v23 = vpop.f32.mrb[115].mxu0  ;;  %v7290_v26 = vpop.f32.mrb[255].mxu1  ;;  %v7289_v20 = vadd.f32 %v7288_v2, %v5872_v3 }
 0xadc   : > { %v8370_v19 = vmul.f32 0.2, %v10907_v9  ;;  %v8433_v56 = vmax.f32 %v10905_v10, %v8369_v31 }
 0xade   : > { %v8434_v22 = vmax.f32 %v10907_v9, %v8370_v19  ;;  %v5878_v19 = vld [vmem:[%s15351_s8 + $0x98] sm:$0xff] }
 0xadf   : > { %v8152_v35 = vpop.f32.mrb[116].mxu0  ;;  %v7293_v5 = vpop.f32.mrb[0].mxu1 }
 0xae0   : > { %v14914_v42 = vpack.c.bf16 %v8434_v22, %v8433_v56  ;;  %v10909_v27 = vadd.f32 %v8152_v35, %v7286_v61  ;;  %v8154_v1 = vpop.f32.mrb[117].mxu0  ;;  %v7295_v16 = vpop.f32.mrb[1].mxu1  ;;  %v7294_v59 = vadd.f32 %v7293_v5, %v5873_v63 }
 0xae1   : > { %v8155_v29 = vpop.f32.mrb[118].mxu0  ;;  %v7296_v17 = vpop.f32.mrb[2].mxu1 }
 0xae2   : > { %v8371_v37 = vmul.f32 0.2, %v10909_v27  ;;  %v10911_v40 = vadd.f32 %v8155_v29, %v7289_v20  ;;  %v8157_v24 = vpop.f32.mrb[119].mxu0  ;;  %v7298_v60 = vpop.f32.mrb[3].mxu1  ;;  %v7297_v58 = vadd.f32 %v7296_v17, %v5874_v53  ;;  %v5879_v29 = vld [vmem:[%s15351_s8 + $0xa0] sm:$0xff] }
 0xae4   : > { %v8372_v44 = vmul.f32 0.2, %v10911_v40  ;;  %v8435_v46 = vmax.f32 %v10909_v27, %v8371_v37 }
 0xae6   : > { %v8436_v21 = vmax.f32 %v10911_v40, %v8372_v44 }
 0xae7   : > { %v8160_v33 = vpop.f32.mrb[120].mxu0  ;;  %v7301_v49 = vpop.f32.mrb[4].mxu1 }
 0xae8   : > { %v14922_v38 = vpack.c.bf16 %v8436_v21, %v8435_v46  ;;  %v10913_v7 = vadd.f32 %v8160_v33, %v7294_v59  ;;  %v8162_v28 = vpop.f32.mrb[121].mxu0  ;;  %v7303_v48 = vpop.f32.mrb[5].mxu1  ;;  %v7302_v51 = vadd.f32 %v7301_v49, %v5875_v13  ;;  %v5880_v59 = vld [vmem:[%s15351_s8 + $0xa8] sm:$0xff] }
 0xae9   : > { %v8163_v36 = vpop.f32.mrb[122].mxu0  ;;  %v7304_v55 = vpop.f32.mrb[6].mxu1 }
 0xaea   : > { %v8373_v4 = vmul.f32 0.2, %v10913_v7  ;;  %v10915_v14 = vadd.f32 %v8163_v36, %v7297_v58  ;;  %v8165_v39 = vpop.f32.mrb[123].mxu0  ;;  %v7306_v30 = vpop.f32.mrb[7].mxu1  ;;  %v7305_v45 = vadd.f32 %v7304_v55, %v5876_v11 }
 0xaec   : > { %v8374_v57 = vmul.f32 0.2, %v10915_v14  ;;  %v8437_v34 = vmax.f32 %v10913_v7, %v8373_v4 }
 0xaee   : > { %v8438_v18 = vmax.f32 %v10915_v14, %v8374_v57 }
 0xaef   : > { %v8168_v52 = vpop.f32.mrb[124].mxu0  ;;  %v7309_v15 = vpop.f32.mrb[8].mxu1 }
 0xaf0   : > { %v14930_v32 = vpack.c.bf16 %v8438_v18, %v8437_v34  ;;  %v10917_v62 = vadd.f32 %v8168_v52, %v7302_v51  ;;  %v8170_v12 = vpop.f32.mrb[125].mxu0  ;;  %v7311_v10 = vpop.f32.mrb[9].mxu1  ;;  %v7310_v26 = vadd.f32 %v7309_v15, %v5877_v50  ;;  %v5882_v51 = vld [vmem:[%s15351_s8 + $0xb8] sm:$0xff] }
 0xaf1   : > { %v8171_v25 = vpop.f32.mrb[126].mxu0  ;;  %v7312_v47 = vpop.f32.mrb[10].mxu1 }
 0xaf2   : > { %v8375_v41 = vmul.f32 0.2, %v10917_v62  ;;  %v10919_v2 = vadd.f32 %v8171_v25, %v7305_v45  ;;  %v8173_v31 = vpop.f32.mrb[127].mxu0  ;;  %v7314_v9 = vpop.f32.mrb[11].mxu1  ;;  %v7313_v35 = vadd.f32 %v7312_v47, %v5878_v19 }
 0xaf4   : > { %v8376_v23 = vmul.f32 0.2, %v10919_v2  ;;  %v8439_v61 = vmax.f32 %v10917_v62, %v8375_v41 }
 0xaf6   : > { %v8440_v3 = vmax.f32 %v10919_v2, %v8376_v23 }
 0xaf7   : > { %v8176_v56 = vpop.f32.mrb[128].mxu0  ;;  %v7317_v22 = vpop.f32.mrb[12].mxu1 }
 0xaf8   : > { %v10921_v5 = vadd.f32 %v8176_v56, %v7310_v26  ;;  %v8178_v20 = vpop.f32.mrb[129].mxu0  ;;  %v8559_v27 = vpack.c.bf16 %v8440_v3, %v8439_v61  ;;  %v7319_v1 = vpop.f32.mrb[13].mxu1  ;;  %v7318_v44 = vadd.f32 %v7317_v22, %v5879_v29  ;;  %v5884_v26 = vld [vmem:[%s15351_s8 + $0xc8] sm:$0xff] }
 0xaf9   : > { %v8179_v16 = vpop.f32.mrb[130].mxu0  ;;  %v7320_v63 = vpop.f32.mrb[14].mxu1 }
 0xafa   : > { %v8377_v17 = vmul.f32 0.2, %v10921_v5  ;;  %v10923_v37 = vadd.f32 %v8179_v16, %v7313_v35  ;;  %v8181_v40 = vpop.f32.mrb[131].mxu0  ;;  %10214 = vmatprep.subr.bf16.mxu1 %v8559_v27  ;;  %v7322_v24 = vpop.f32.mrb[15].mxu1  ;;  %v7321_v49 = vadd.f32 %v7320_v63, %v5880_v59 }
 0xafb   : > { %10215 = vmatpush3.bf16.msra.mxu1 %v14856_v0  ;;  %v5881_v0 = vld [vmem:[%s15351_s8 + $0xb0] sm:$0xff] }
 0xafc   : > { %v8378_v60 = vmul.f32 0.2, %v10923_v37  ;;  %v8441_v53 = vmax.f32 %v10921_v5, %v8377_v17 }
 0xafe   : > { %v8442_v46 = vmax.f32 %v10923_v37, %v8378_v60  ;;  %v5886_v60 = vld [vmem:[%s15351_s8 + $0xd8] sm:$0xff] }
 0xaff   : > { %v8184_v21 = vpop.f32.mrb[132].mxu0  ;;  %v7325_v33 = vpop.f32.mrb[16].mxu1 }
 0xb00   : > { %v10925_v58 = vadd.f32 %v8184_v21, %v7318_v44  ;;  %v8186_v7 = vpop.f32.mrb[133].mxu0  ;;  %v8560_v28 = vpack.c.bf16 %v8442_v46, %v8441_v53  ;;  %v7327_v48 = vpop.f32.mrb[17].mxu1  ;;  %v7326_v57 = vadd.f32 %v7325_v33, %v5881_v0 }
 0xb01   : > { %v8187_v36 = vpop.f32.mrb[134].mxu0  ;;  %v7328_v13 = vpop.f32.mrb[18].mxu1 }
 0xb02   : > { %v8379_v55 = vmul.f32 0.2, %v10925_v58  ;;  %v10927_v4 = vadd.f32 %v8187_v36, %v7321_v49  ;;  %v8189_v14 = vpop.f32.mrb[135].mxu0  ;;  %10216 = vmatprep.subr.bf16.mxu1 %v8560_v28  ;;  %v7330_v39 = vpop.f32.mrb[19].mxu1  ;;  %v7329_v15 = vadd.f32 %v7328_v13, %v5882_v51 }
 0xb03   : > { %10217 = vmatpush3.bf16.msra.mxu1 %v14876_v6  ;;  %v5883_v6 = vld [vmem:[%s15351_s8 + $0xc0] sm:$0xff]  ;;  %v5888_v39 = vld [vmem:[%s15351_s8 + $0xe8] sm:$0xff] }
 0xb04   : > { %v8380_v30 = vmul.f32 0.2, %v10927_v4  ;;  %v8443_v11 = vmax.f32 %v10925_v58, %v8379_v55 }
 0xb06   : > { %v8444_v34 = vmax.f32 %v10927_v4, %v8380_v30 }
 0xb07   : > { %v8192_v18 = vpop.f32.mrb[136].mxu0  ;;  %v7333_v52 = vpop.f32.mrb[20].mxu1 }
 0xb08   : > { %v10929_v45 = vadd.f32 %v8192_v18, %v7326_v57  ;;  %v8194_v62 = vpop.f32.mrb[137].mxu0  ;;  %v8561_v12 = vpack.c.bf16 %v8444_v34, %v8443_v11  ;;  %v7335_v10 = vpop.f32.mrb[21].mxu1  ;;  %v7334_v23 = vadd.f32 %v7333_v52, %v5883_v6 }
 0xb09   : > { %v8195_v25 = vpop.f32.mrb[138].mxu0  ;;  %v7336_v50 = vpop.f32.mrb[22].mxu1 }
 0xb0a   : > { %v8381_v47 = vmul.f32 0.2, %v10929_v45  ;;  %v10931_v41 = vadd.f32 %v8195_v25, %v7329_v15  ;;  %v8197_v2 = vpop.f32.mrb[139].mxu0  ;;  %10218 = vmatprep.subr.bf16.mxu1 %v8561_v12  ;;  %v7338_v31 = vpop.f32.mrb[23].mxu1  ;;  %v7337_v22 = vadd.f32 %v7336_v50, %v5884_v26 }
 0xb0b   : > { %10219 = vmatpush3.bf16.msra.mxu1 %v14890_v54  ;;  %v5885_v54 = vld [vmem:[%s15351_s8 + $0xd0] sm:$0xff]  ;;  %v5890_v2 = vld [vmem:[%s15351_s8 + $0xf8] sm:$0xff] }
 0xb0c   : > { %v8382_v9 = vmul.f32 0.2, %v10931_v41  ;;  %v8445_v19 = vmax.f32 %v10929_v45, %v8381_v47 }
 0xb0e   : > { %v8446_v61 = vmax.f32 %v10931_v41, %v8382_v9 }
 0xb0f   : > { %v8200_v3 = vpop.f32.mrb[140].mxu0  ;;  %v7341_v56 = vpop.f32.mrb[24].mxu1 }
 0xb10   : > { %v10933_v35 = vadd.f32 %v8200_v3, %v7334_v23  ;;  %v8202_v5 = vpop.f32.mrb[141].mxu0  ;;  %v8562_v20 = vpack.c.bf16 %v8446_v61, %v8445_v19  ;;  %v7343_v27 = vpop.f32.mrb[25].mxu1  ;;  %v7342_v24 = vadd.f32 %v7341_v56, %v5885_v54 }
 0xb11   : > { %v8203_v1 = vpop.f32.mrb[142].mxu0  ;;  %v7344_v16 = vpop.f32.mrb[26].mxu1 }
 0xb12   : > { %v8383_v29 = vmul.f32 0.2, %v10933_v35  ;;  %v10935_v63 = vadd.f32 %v8203_v1, %v7337_v22  ;;  %v8205_v17 = vpop.f32.mrb[143].mxu0  ;;  %10220 = vmatprep.subr.bf16.mxu1 %v8562_v20  ;;  %v7346_v37 = vpop.f32.mrb[27].mxu1  ;;  %v7345_v21 = vadd.f32 %v7344_v16, %v5886_v60 }
 0xb13   : > { %10221 = vmatpush3.bf16.msra.mxu1 %v14898_v43  ;;  %v5887_v43 = vld [vmem:[%s15351_s8 + $0xe0] sm:$0xff] }
 0xb14   : > { %v8384_v40 = vmul.f32 0.2, %v10935_v63  ;;  %v8447_v44 = vmax.f32 %v10933_v35, %v8383_v29 }
 0xb16   : > { %v8448_v59 = vmax.f32 %v10935_v63, %v8384_v40  ;;  %v5892_v63 = vld [vmem:[%s15351_s8 + $0x108] sm:$0xff] }
 0xb17   : > { %v8208_v53 = vpop.f32.mrb[144].mxu0  ;;  %v7349_v46 = vpop.f32.mrb[28].mxu1 }
 0xb18   : > { %v10937_v33 = vadd.f32 %v8208_v53, %v7342_v24  ;;  %v8210_v49 = vpop.f32.mrb[145].mxu0  ;;  %v8563_v58 = vpack.c.bf16 %v8448_v59, %v8447_v44  ;;  %v7351_v7 = vpop.f32.mrb[29].mxu1  ;;  %v7350_v14 = vadd.f32 %v7349_v46, %v5887_v43 }
 0xb19   : > { %v8211_v28 = vpop.f32.mrb[146].mxu0  ;;  %v7352_v48 = vpop.f32.mrb[30].mxu1 }
 0xb1a   : > { %v8385_v36 = vmul.f32 0.2, %v10937_v33  ;;  %v10939_v0 = vadd.f32 %v8211_v28, %v7345_v21  ;;  %v8213_v13 = vpop.f32.mrb[147].mxu0  ;;  %10222 = vmatprep.subr.bf16.mxu1 %v8563_v58  ;;  %v7354_v55 = vpop.f32.mrb[31].mxu1  ;;  %v7353_v34 = vadd.f32 %v7352_v48, %v5888_v39  ;;  %v11405_v28 = vld [vmem:[#allocation5] ss:$16 sps:$4 sm:$0xff]  }
 0xb1b   : > { %10223 = vmatpush3.bf16.msra.mxu1 %v14906_v8  ;;  %v5889_v8 = vld [vmem:[%s15351_s8 + $0xf0] sm:$0xff]  ;;  %v5894_v13 = vld [vmem:[%s15351_s8 + $0x118] sm:$0xff] }
 0xb1c   : > { %v8386_v4 = vmul.f32 0.2, %v10939_v0  ;;  %v8449_v30 = vmax.f32 %v10937_v33, %v8385_v36  ;;  %v11410_v48 = vld [vmem:[#allocation5 + $0x24] ss:$16 sps:$4 sm:$0xff]  }
 0xb1e   : > { %v8450_v57 = vmax.f32 %v10939_v0, %v8386_v4 }
 0xb1f   : > { %v8216_v51 = vpop.f32.mrb[148].mxu0  ;;  %v7357_v11 = vpop.f32.mrb[32].mxu1 }
 0xb20   : > { %v10941_v18 = vadd.f32 %v8216_v51, %v7350_v14  ;;  %v8218_v52 = vpop.f32.mrb[149].mxu0  ;;  %v8564_v15 = vpack.c.bf16 %v8450_v57, %v8449_v30  ;;  %v7359_v45 = vpop.f32.mrb[33].mxu1  ;;  %v7358_v41 = vadd.f32 %v7357_v11, %v5889_v8  ;;  %v11408_v8 = vld [vmem:[#allocation5 + $0x20] ss:$16 sps:$4 sm:$0xff]  }
 0xb21   : > { %v8219_v62 = vpop.f32.mrb[150].mxu0  ;;  %v7360_v12 = vpop.f32.mrb[34].mxu1 }
 0xb22   : > { %v8387_v10 = vmul.f32 0.2, %v10941_v18  ;;  %v10943_v25 = vadd.f32 %v8219_v62, %v7353_v34  ;;  %v8221_v6 = vpop.f32.mrb[151].mxu0  ;;  %10224 = vmatprep.subr.bf16.mxu1 %v8564_v15  ;;  %v7362_v50 = vpop.f32.mrb[35].mxu1  ;;  %v7361_v19 = vadd.f32 %v7360_v12, %v5890_v2 }
 0xb23   : > { %10225 = vmatpush3.bf16.msra.mxu1 %v14914_v42  ;;  %v5891_v42 = vld [vmem:[%s15351_s8 + $0x100] sm:$0xff]  ;;  %v5896_v50 = vld [vmem:[%s15351_s8 + $0x128] sm:$0xff] }
 0xb24   : > { %v8388_v47 = vmul.f32 0.2, %v10943_v25  ;;  %v8451_v31 = vmax.f32 %v10941_v18, %v8387_v10  ;;  %v5895_v18 = vld [vmem:[%s15351_s8 + $0x120] sm:$0xff] }
 0xb25   : > { %v11413_v10 = vld [vmem:[#allocation5 + $0x44] ss:$16 sps:$4 sm:$0xff]  }
 0xb26   : > { %v8452_v9 = vmax.f32 %v10943_v25, %v8388_v47 }
 0xb27   : > { %v8224_v23 = vpop.f32.mrb[152].mxu0  ;;  %v7365_v26 = vpop.f32.mrb[36].mxu1 }
 0xb28   : > { %v10945_v61 = vadd.f32 %v8224_v23, %v7358_v41  ;;  %v8226_v3 = vpop.f32.mrb[153].mxu0  ;;  %v8565_v56 = vpack.c.bf16 %v8452_v9, %v8451_v31  ;;  %v7367_v22 = vpop.f32.mrb[37].mxu1  ;;  %v7366_v29 = vadd.f32 %v7365_v26, %v5891_v42 }
 0xb29   : > { %v8227_v35 = vpop.f32.mrb[154].mxu0  ;;  %v7368_v5 = vpop.f32.mrb[38].mxu1 }
 0xb2a   : > { %v8389_v20 = vmul.f32 0.2, %v10945_v61  ;;  %v10947_v27 = vadd.f32 %v8227_v35, %v7361_v19  ;;  %v8229_v1 = vpop.f32.mrb[155].mxu0  ;;  %10226 = vmatprep.subr.bf16.mxu1 %v8565_v56  ;;  %v7370_v54 = vpop.f32.mrb[39].mxu1  ;;  %v7369_v60 = vadd.f32 %v7368_v5, %v5892_v63  ;;  %v5897_v56 = vld [vmem:[%s15351_s8 + $0x130] sm:$0xff] }
 0xb2b   : > { %10227 = vmatpush3.bf16.msra.mxu1 %v14922_v38  ;;  %v5893_v38 = vld [vmem:[%s15351_s8 + $0x110] sm:$0xff] }
 0xb2c   : > { %v8390_v16 = vmul.f32 0.2, %v10947_v27  ;;  %v8453_v17 = vmax.f32 %v10945_v61, %v8389_v20  ;;  %v11411_v20 = vld [vmem:[#allocation5 + $0x40] ss:$16 sps:$4 sm:$0xff]   ;;  %v11416_v1 = vld [vmem:[#allocation5 + $0x64] ss:$16 sps:$4 sm:$0xff]  }
 0xb2e   : > { %v8454_v37 = vmax.f32 %v10947_v27, %v8390_v16 }
 0xb2f   : > { %v8232_v40 = vpop.f32.mrb[156].mxu0  ;;  %v7373_v24 = vpop.f32.mrb[40].mxu1 }
 0xb30   : > { %v10949_v44 = vadd.f32 %v8232_v40, %v7366_v29  ;;  %v8234_v59 = vpop.f32.mrb[157].mxu0  ;;  %v8566_v53 = vpack.c.bf16 %v8454_v37, %v8453_v17  ;;  %v7375_v46 = vpop.f32.mrb[41].mxu1  ;;  %v7374_v0 = vadd.f32 %v7373_v24, %v5893_v38  ;;  %v5898_v29 = vld [vmem:[%s15351_s8 + $0x138] sm:$0xff] }
 0xb31   : > { %v8235_v21 = vpop.f32.mrb[158].mxu0  ;;  %v7376_v33 = vpop.f32.mrb[42].mxu1 }
 0xb32   : > { %v8391_v49 = vmul.f32 0.2, %v10949_v44  ;;  %v10951_v58 = vadd.f32 %v8235_v21, %v7369_v60  ;;  %v8237_v7 = vpop.f32.mrb[159].mxu0  ;;  %10228 = vmatprep.subr.bf16.mxu1 %v8566_v53  ;;  %v7378_v43 = vpop.f32.mrb[43].mxu1  ;;  %v7377_v57 = vadd.f32 %v7376_v33, %v5894_v13  ;;  %v5899_v21 = vld [vmem:[%s15351_s8 + $0x140] sm:$0xff] }
 0xb33   : > { %10229 = vmatpush3.bf16.msra.mxu1 %v14930_v32  ;;  %v11414_v7 = vld [vmem:[#allocation5 + $0x60] ss:$16 sps:$4 sm:$0xff]   ;;  %v11419_v43 = vld [vmem:[#allocation5 + $0x84] ss:$16 sps:$4 sm:$0xff]  }
 0xb34   : > { %v8392_v36 = vmul.f32 0.2, %v10951_v58  ;;  %v8455_v55 = vmax.f32 %v10949_v44, %v8391_v49 }
 0xb36   : > { %v8456_v4 = vmax.f32 %v10951_v58, %v8392_v36  ;;  %8968 = vmatmul.mubr.bf16.vlgmr.msra.gmra.mrb[100].mxu1 %v11405_v28 }
 0xb37   : > { %v8240_v14 = vpop.f32.mrb[160].mxu0  ;;  %v7381_v39 = vpop.f32.mrb[44].mxu1  ;;  %8975 = vmatprep.mubr.bf16.mxu1 %v11410_v48 }
 0xb38   : > { %v14994_v30 = vpack.c.bf16 %v8456_v4, %v8455_v55  ;;  %v10953_v51 = vadd.f32 %v8240_v14, %v7374_v0  ;;  %v8242_v11 = vpop.f32.mrb[161].mxu0  ;;  %v7383_v34 = vpop.f32.mrb[45].mxu1  ;;  %v7382_v6 = vadd.f32 %v7381_v39, %v5895_v18  ;;  %v5900_v0 = vld [vmem:[%s15351_s8 + $0x148] sm:$0xff]  ;;  %v5901_v18 = vld [vmem:[%s15351_s8 + $0x150] sm:$0xff] }
 0xb39   : > { %v8243_v32 = vpop.f32.mrb[162].mxu0  ;;  %v7384_v52 = vpop.f32.mrb[46].mxu1 }
 0xb3a   : > { %v8393_v15 = vmul.f32 0.2, %v10953_v51  ;;  %v10955_v45 = vadd.f32 %v8243_v32, %v7377_v57  ;;  %v8245_v62 = vpop.f32.mrb[163].mxu0  ;;  %v7386_v12 = vpop.f32.mrb[47].mxu1  ;;  %v7385_v23 = vadd.f32 %v7384_v52, %v5896_v50  ;;  %v5902_v50 = vld [vmem:[%s15351_s8 + $0x158] sm:$0xff] }
 0xb3c   : > { %v8394_v25 = vmul.f32 0.2, %v10955_v45  ;;  %v8457_v47 = vmax.f32 %v10953_v51, %v8393_v15 }
 0xb3e   : > { %v8458_v41 = vmax.f32 %v10955_v45, %v8394_v25  ;;  %8976 = vmatmul.mubr.bf16.gmra.mrb[104].mxu1 %v11408_v8  ;;  %v11417_v8 = vld [vmem:[#allocation5 + $0x80] ss:$16 sps:$4 sm:$0xff]  }
 0xb3f   : > { %v8248_v2 = vpop.f32.mrb[164].mxu0  ;;  %v7389_v31 = vpop.f32.mrb[48].mxu1  ;;  %8983 = vmatprep.mubr.bf16.mxu1 %v11413_v10  ;;  %v11422_v10 = vld [vmem:[#allocation5 + $0xa4] ss:$16 sps:$4 sm:$0xff]  }
 0xb40   : > { %v15002_v9 = vpack.c.bf16 %v8458_v41, %v8457_v47  ;;  %v10957_v26 = vadd.f32 %v8248_v2, %v7382_v6  ;;  %v8250_v19 = vpop.f32.mrb[165].mxu0  ;;  %v7391_v61 = vpop.f32.mrb[49].mxu1  ;;  %v7390_v16 = vadd.f32 %v7389_v31, %v5897_v56 }
 0xb41   : > { %v8251_v3 = vpop.f32.mrb[166].mxu0  ;;  %v7392_v22 = vpop.f32.mrb[50].mxu1 }
 0xb42   : > { %v8395_v35 = vmul.f32 0.2, %v10957_v26  ;;  %v10959_v42 = vadd.f32 %v8251_v3, %v7385_v23  ;;  %v8253_v5 = vpop.f32.mrb[167].mxu0  ;;  %v7394_v27 = vpop.f32.mrb[51].mxu1  ;;  %v7393_v60 = vadd.f32 %v7392_v22, %v5898_v29  ;;  %v5903_v22 = vld [vmem:[%s15351_s8 + $0x160] sm:$0xff] }
 0xb43   : > { %v11420_v27 = vld [vmem:[#allocation5 + $0xa0] ss:$16 sps:$4 sm:$0xff]  }
 0xb44   : > { %v8396_v54 = vmul.f32 0.2, %v10959_v42  ;;  %v8459_v63 = vmax.f32 %v10957_v26, %v8395_v35 }
 0xb46   : > { %v8460_v17 = vmax.f32 %v10959_v42, %v8396_v54  ;;  %8984 = vmatmul.mubr.bf16.gmra.mrb[108].mxu1 %v11411_v20  ;;  %v11425_v54 = vld [vmem:[#allocation5 + $0xc4] ss:$16 sps:$4 sm:$0xff]  }
 0xb47   : > { %v8256_v37 = vpop.f32.mrb[168].mxu0  ;;  %v7397_v40 = vpop.f32.mrb[52].mxu1  ;;  %8991 = vmatprep.mubr.bf16.mxu1 %v11416_v1 }
 0xb48   : > { %v15010_v24 = vpack.c.bf16 %v8460_v17, %v8459_v63  ;;  %v10961_v44 = vadd.f32 %v8256_v37, %v7390_v16  ;;  %v8258_v59 = vpop.f32.mrb[169].mxu0  ;;  %v7399_v53 = vpop.f32.mrb[53].mxu1  ;;  %v7398_v36 = vadd.f32 %v7397_v40, %v5899_v21  ;;  %v5904_v63 = vld [vmem:[%s15351_s8 + $0x168] sm:$0xff] }
 0xb49   : > { %v8259_v46 = vpop.f32.mrb[170].mxu0  ;;  %v7400_v38 = vpop.f32.mrb[54].mxu1 }
 0xb4a   : > { %v8397_v33 = vmul.f32 0.2, %v10961_v44  ;;  %v10963_v49 = vadd.f32 %v8259_v46, %v7393_v60  ;;  %v8261_v58 = vpop.f32.mrb[171].mxu0  ;;  %v7402_v28 = vpop.f32.mrb[55].mxu1  ;;  %v7401_v57 = vadd.f32 %v7400_v38, %v5900_v0 }
 0xb4c   : > { %v8398_v48 = vmul.f32 0.2, %v10963_v49  ;;  %v8461_v13 = vmax.f32 %v10961_v44, %v8397_v33  ;;  %v5905_v33 = vld [vmem:[%s15351_s8 + $0x170] sm:$0xff] }
 0xb4e   : > { %v8462_v55 = vmax.f32 %v10963_v49, %v8398_v48  ;;  %8992 = vmatmul.mubr.bf16.gmra.mrb[112].mxu1 %v11414_v7 }
 0xb4f   : > { %v8264_v4 = vpop.f32.mrb[172].mxu0  ;;  %v7405_v14 = vpop.f32.mrb[56].mxu1  ;;  %8999 = vmatprep.mubr.bf16.mxu1 %v11419_v43  ;;  %v11423_v43 = vld [vmem:[#allocation5 + $0xc0] ss:$16 sps:$4 sm:$0xff]  }
 0xb50   : > { %v15018_v39 = vpack.c.bf16 %v8462_v55, %v8461_v13  ;;  %v10965_v51 = vadd.f32 %v8264_v4, %v7398_v36  ;;  %v8266_v11 = vpop.f32.mrb[173].mxu0  ;;  %v7407_v34 = vpop.f32.mrb[57].mxu1  ;;  %v7406_v6 = vadd.f32 %v7405_v14, %v5901_v18  ;;  %v11428_v36 = vld [vmem:[#allocation5 + $0xe4] ss:$16 sps:$4 sm:$0xff]   ;;  %v5906_v55 = vld [vmem:[%s15351_s8 + $0x178] sm:$0xff] }
 0xb51   : > { %v8267_v32 = vpop.f32.mrb[174].mxu0  ;;  %v7408_v52 = vpop.f32.mrb[58].mxu1 }
 0xb52   : > { %v8399_v15 = vmul.f32 0.2, %v10965_v51  ;;  %v10967_v45 = vadd.f32 %v8267_v32, %v7401_v57  ;;  %v8269_v62 = vpop.f32.mrb[175].mxu0  ;;  %v7410_v12 = vpop.f32.mrb[59].mxu1  ;;  %v7409_v26 = vadd.f32 %v7408_v52, %v5902_v50  ;;  %v11431_v50 = vld [vmem:[#allocation5 + $0x104] ss:$16 sps:$4 sm:$0xff]  }
 0xb54   : > { %v8400_v25 = vmul.f32 0.2, %v10967_v45  ;;  %v8463_v47 = vmax.f32 %v10965_v51, %v8399_v15 }
 0xb56   : > { %v8464_v41 = vmax.f32 %v10967_v45, %v8400_v25  ;;  %9000 = vmatmul.mubr.bf16.gmra.mrb[116].mxu1 %v11417_v8  ;;  %v5907_v45 = vld [vmem:[%s15351_s8 + $0x180] sm:$0xff] }
 0xb57   : > { %v8272_v2 = vpop.f32.mrb[176].mxu0  ;;  %v7413_v31 = vpop.f32.mrb[60].mxu1  ;;  %9007 = vmatprep.mubr.bf16.mxu1 %v11422_v10  ;;  %v11426_v25 = vld [vmem:[#allocation5 + $0xe0] ss:$16 sps:$4 sm:$0xff]  }
 0xb58   : > { %v15026_v23 = vpack.c.bf16 %v8464_v41, %v8463_v47  ;;  %v10969_v19 = vadd.f32 %v8272_v2, %v7406_v6  ;;  %v8274_v61 = vpop.f32.mrb[177].mxu0  ;;  %v7415_v3 = vpop.f32.mrb[61].mxu1  ;;  %v7414_v29 = vadd.f32 %v7413_v31, %v5903_v22  ;;  %v5908_v2 = vld [vmem:[%s15351_s8 + $0x188] sm:$0xff] }
 0xb59   : > { %v8275_v56 = vpop.f32.mrb[178].mxu0  ;;  %v7416_v35 = vpop.f32.mrb[62].mxu1 }
 0xb5a   : > { %v8401_v42 = vmul.f32 0.2, %v10969_v19  ;;  %v10971_v5 = vadd.f32 %v8275_v56, %v7409_v26  ;;  %v8277_v20 = vpop.f32.mrb[179].mxu0  ;;  %v7418_v1 = vpop.f32.mrb[63].mxu1  ;;  %v7417_v59 = vadd.f32 %v7416_v35, %v5904_v63 }
 0xb5b   : > { %v5909_v20 = vld [vmem:[%s15351_s8 + $0x190] sm:$0xff] }
 0xb5c   : > { %v8402_v16 = vmul.f32 0.2, %v10971_v5  ;;  %v8465_v17 = vmax.f32 %v10969_v19, %v8401_v42 }
 0xb5e   : > { %v8466_v37 = vmax.f32 %v10971_v5, %v8402_v16  ;;  %9008 = vmatmul.mubr.bf16.gmra.mrb[120].mxu1 %v11420_v27 }
 0xb5f   : > { %v8280_v40 = vpop.f32.mrb[180].mxu0  ;;  %v7421_v60 = vpop.f32.mrb[64].mxu1  ;;  %9015 = vmatprep.mubr.bf16.mxu1 %v11425_v54 }
 0xb60   : > { %v15034_v44 = vpack.c.bf16 %v8466_v37, %v8465_v17  ;;  %v10973_v53 = vadd.f32 %v8280_v40, %v7414_v29  ;;  %v8282_v46 = vpop.f32.mrb[181].mxu0  ;;  %v7423_v21 = vpop.f32.mrb[65].mxu1  ;;  %v7422_v13 = vadd.f32 %v7421_v60, %v5905_v33  ;;  %v11429_v29 = vld [vmem:[#allocation5 + $0x100] ss:$16 sps:$4 sm:$0xff]   ;;  %v11434_v17 = vld [vmem:[#allocation5 + $0x124] ss:$16 sps:$4 sm:$0xff]  }
 0xb61   : > { %v8283_v38 = vpop.f32.mrb[182].mxu0  ;;  %v7424_v49 = vpop.f32.mrb[66].mxu1  ;;  %v5910_v60 = vld [vmem:[%s15351_s8 + $0x198] sm:$0xff] }
 0xb62   : > { %v8403_v58 = vmul.f32 0.2, %v10973_v53  ;;  %v10975_v7 = vadd.f32 %v8283_v38, %v7417_v59  ;;  %v8285_v28 = vpop.f32.mrb[183].mxu0  ;;  %v7426_v48 = vpop.f32.mrb[67].mxu1  ;;  %v7425_v34 = vadd.f32 %v7424_v49, %v5906_v55  ;;  %v11432_v55 = vld [vmem:[#allocation5 + $0x120] ss:$16 sps:$4 sm:$0xff]  }
 0xb64   : > { %v8404_v0 = vmul.f32 0.2, %v10975_v7  ;;  %v8467_v4 = vmax.f32 %v10973_v53, %v8403_v58 }
 0xb66   : > { %v8468_v14 = vmax.f32 %v10975_v7, %v8404_v0  ;;  %9016 = vmatmul.mubr.bf16.gmra.mrb[124].mxu1 %v11423_v43  ;;  %v5911_v43 = vld [vmem:[%s15351_s8 + $0x1a0] sm:$0xff] }
 0xb67   : > { %v8288_v57 = vpop.f32.mrb[184].mxu0  ;;  %v7429_v51 = vpop.f32.mrb[68].mxu1  ;;  %9023 = vmatprep.mubr.bf16.mxu1 %v11428_v36 }
 0xb68   : > { %v15042_v11 = vpack.c.bf16 %v8468_v14, %v8467_v4  ;;  %v10977_v32 = vadd.f32 %v8288_v57, %v7422_v13  ;;  %v8290_v18 = vpop.f32.mrb[185].mxu0  ;;  %v7431_v52 = vpop.f32.mrb[69].mxu1  ;;  %v7430_v41 = vadd.f32 %v7429_v51, %v5907_v45  ;;  %v11437_v14 = vld [vmem:[#allocation5 + $0x144] ss:$16 sps:$4 sm:$0xff]  }
 0xb69   : > { %v8291_v15 = vpop.f32.mrb[186].mxu0  ;;  %v7432_v62 = vpop.f32.mrb[70].mxu1 }
 0xb6a   : > { %v8405_v8 = vmul.f32 0.2, %v10977_v32  ;;  %v10979_v12 = vadd.f32 %v8291_v15, %v7425_v34  ;;  %v8293_v10 = vpop.f32.mrb[187].mxu0  ;;  %v7434_v6 = vpop.f32.mrb[71].mxu1  ;;  %v7433_v56 = vadd.f32 %v7432_v62, %v5908_v2  ;;  %v5912_v34 = vld [vmem:[%s15351_s8 + $0x1a8] sm:$0xff] }
 0xb6b   : > { %v11435_v2 = vld [vmem:[#allocation5 + $0x140] ss:$16 sps:$4 sm:$0xff]  }
 0xb6c   : > { %v8406_v47 = vmul.f32 0.2, %v10979_v12  ;;  %v8469_v31 = vmax.f32 %v10977_v32, %v8405_v8 }
 0xb6e   : > { %v8470_v26 = vmax.f32 %v10979_v12, %v8406_v47  ;;  %9024 = vmatmul.mubr.bf16.gmra.mrb[128].mxu1 %v11426_v25 }
 0xb6f   : > { %v8296_v19 = vpop.f32.mrb[188].mxu0  ;;  %v7437_v61 = vpop.f32.mrb[72].mxu1  ;;  %9031 = vmatprep.mubr.bf16.mxu1 %v11431_v50 }
 0xb70   : > { %v15050_v3 = vpack.c.bf16 %v8470_v26, %v8469_v31  ;;  %v10981_v22 = vadd.f32 %v8296_v19, %v7430_v41  ;;  %v8298_v35 = vpop.f32.mrb[189].mxu0  ;;  %v7439_v42 = vpop.f32.mrb[73].mxu1  ;;  %v7438_v40 = vadd.f32 %v7437_v61, %v5909_v20  ;;  %v11440_v26 = vld [vmem:[#allocation5 + $0x164] ss:$16 sps:$4 sm:$0xff]  }
 0xb71   : > { %v8299_v5 = vpop.f32.mrb[190].mxu0  ;;  %v7440_v27 = vpop.f32.mrb[74].mxu1 }
 0xb72   : > { %v8407_v1 = vmul.f32 0.2, %v10981_v22  ;;  %v10983_v54 = vadd.f32 %v8299_v5, %v7433_v56  ;;  %v8301_v16 = vpop.f32.mrb[191].mxu0  ;;  %v7442_v63 = vpop.f32.mrb[75].mxu1  ;;  %v7441_v38 = vadd.f32 %v7440_v27, %v5910_v60  ;;  %v5914_v56 = vld [vmem:[%s15351_s8 + $0x1b8] sm:$0xff] }
 0xb73   : > { %v11438_v60 = vld [vmem:[#allocation5 + $0x160] ss:$16 sps:$4 sm:$0xff]  }
 0xb74   : > { %v8408_v37 = vmul.f32 0.2, %v10983_v54  ;;  %v8471_v59 = vmax.f32 %v10981_v22, %v8407_v1 }
 0xb76   : > { %v8472_v53 = vmax.f32 %v10983_v54, %v8408_v37  ;;  %9032 = vmatmul.mubr.bf16.gmra.mrb[132].mxu1 %v11429_v29 }
 0xb77   : > { %v8304_v46 = vpop.f32.mrb[192].mxu0  ;;  %v7445_v21 = vpop.f32.mrb[76].mxu1  ;;  %9039 = vmatprep.mubr.bf16.mxu1 %v11434_v17 }
 0xb78   : > { %v10985_v33 = vadd.f32 %v8304_v46, %v7438_v40  ;;  %v8306_v49 = vpop.f32.mrb[193].mxu0  ;;  %v8575_v58 = vpack.c.bf16 %v8472_v53, %v8471_v59  ;;  %v7447_v7 = vpop.f32.mrb[77].mxu1  ;;  %v7446_v51 = vadd.f32 %v7445_v21, %v5911_v43  ;;  %v11443_v53 = vld [vmem:[#allocation5 + $0x184] ss:$16 sps:$4 sm:$0xff]  }
 0xb79   : > { %v8307_v28 = vpop.f32.mrb[194].mxu0  ;;  %v7448_v48 = vpop.f32.mrb[78].mxu1 }
 0xb7a   : > { %v8409_v36 = vmul.f32 0.2, %v10985_v33  ;;  %v10987_v0 = vadd.f32 %v8307_v28, %v7441_v38  ;;  %v8309_v13 = vpop.f32.mrb[195].mxu0  ;;  %10326 = vmatprep.subr.bf16.mxu1 %v8575_v58  ;;  %v7450_v4 = vpop.f32.mrb[79].mxu1  ;;  %v7449_v45 = vadd.f32 %v7448_v48, %v5912_v34  ;;  %v5916_v38 = vld [vmem:[%s15351_s8 + $0x1c8] sm:$0xff] }
 0xb7b   : > { %10327 = vmatpush3.bf16.msra.mxu1 %v14994_v30  ;;  %v5913_v30 = vld [vmem:[%s15351_s8 + $0x1b0] sm:$0xff] }
 0xb7c   : > { %v8410_v57 = vmul.f32 0.2, %v10987_v0  ;;  %v8473_v32 = vmax.f32 %v10985_v33, %v8409_v36 }
 0xb7e   : > { %v8474_v18 = vmax.f32 %v10987_v0, %v8410_v57  ;;  %9040 = vmatmul.mubr.bf16.gmra.mrb[136].mxu1 %v11432_v55 }
 0xb7f   : > { %v8312_v52 = vpop.f32.mrb[196].mxu0  ;;  %v7453_v15 = vpop.f32.mrb[80].mxu1  ;;  %9047 = vmatprep.mubr.bf16.mxu1 %v11437_v14 }
 0xb80   : > { %v10989_v62 = vadd.f32 %v8312_v52, %v7446_v51  ;;  %v8314_v8 = vpop.f32.mrb[197].mxu0  ;;  %v8576_v12 = vpack.c.bf16 %v8474_v18, %v8473_v32  ;;  %v7455_v10 = vpop.f32.mrb[81].mxu1  ;;  %v7454_v61 = vadd.f32 %v7453_v15, %v5913_v30  ;;  %v11441_v51 = vld [vmem:[#allocation5 + $0x180] ss:$16 sps:$4 sm:$0xff]   ;;  %v11446_v32 = vld [vmem:[#allocation5 + $0x1a4] ss:$16 sps:$4 sm:$0xff]  }
 0xb81   : > { %v8315_v25 = vpop.f32.mrb[198].mxu0  ;;  %v7456_v6 = vpop.f32.mrb[82].mxu1  ;;  %v5918_v15 = vld [vmem:[%s15351_s8 + $0x1d8] sm:$0xff] }
 0xb82   : > { %v8411_v50 = vmul.f32 0.2, %v10989_v62  ;;  %v10991_v47 = vadd.f32 %v8315_v25, %v7449_v45  ;;  %v8317_v41 = vpop.f32.mrb[199].mxu0  ;;  %10328 = vmatprep.subr.bf16.mxu1 %v8576_v12  ;;  %v7458_v31 = vpop.f32.mrb[83].mxu1  ;;  %v7457_v20 = vadd.f32 %v7456_v6, %v5914_v56  ;;  %v11449_v56 = vld [vmem:[#allocation5 + $0x1c4] ss:$16 sps:$4 sm:$0xff]  }
 0xb83   : > { %10329 = vmatpush3.bf16.msra.mxu1 %v15002_v9  ;;  %v5915_v9 = vld [vmem:[%s15351_s8 + $0x1c0] sm:$0xff] }
 0xb84   : > { %v8412_v19 = vmul.f32 0.2, %v10991_v47  ;;  %v8475_v22 = vmax.f32 %v10989_v62, %v8411_v50 }
 0xb86   : > { %v8476_v35 = vmax.f32 %v10991_v47, %v8412_v19  ;;  %9048 = vmatmul.mubr.bf16.gmra.mrb[140].mxu1 %v11435_v2  ;;  %v11444_v19 = vld [vmem:[#allocation5 + $0x1a0] ss:$16 sps:$4 sm:$0xff]  }
 0xb87   : > { %v8320_v42 = vpop.f32.mrb[200].mxu0  ;;  %v7461_v5 = vpop.f32.mrb[84].mxu1  ;;  %9055 = vmatprep.mubr.bf16.mxu1 %v11440_v26 }
 0xb88   : > { %v10993_v27 = vadd.f32 %v8320_v42, %v7454_v61  ;;  %v8322_v1 = vpop.f32.mrb[201].mxu0  ;;  %v8577_v54 = vpack.c.bf16 %v8476_v35, %v8475_v22  ;;  %v7463_v16 = vpop.f32.mrb[85].mxu1  ;;  %v7462_v21 = vadd.f32 %v7461_v5, %v5915_v9  ;;  %v5920_v42 = vld [vmem:[%s15351_s8 + $0x1e8] sm:$0xff] }
 0xb89   : > { %v8323_v29 = vpop.f32.mrb[202].mxu0  ;;  %v7464_v63 = vpop.f32.mrb[86].mxu1 }
 0xb8a   : > { %v8413_v17 = vmul.f32 0.2, %v10993_v27  ;;  %v10995_v37 = vadd.f32 %v8323_v29, %v7457_v20  ;;  %v8325_v40 = vpop.f32.mrb[203].mxu0  ;;  %10330 = vmatprep.subr.bf16.mxu1 %v8577_v54  ;;  %v7466_v59 = vpop.f32.mrb[87].mxu1  ;;  %v7465_v28 = vadd.f32 %v7464_v63, %v5916_v38 }
 0xb8b   : > { %10331 = vmatpush3.bf16.msra.mxu1 %v15010_v24  ;;  %v5917_v24 = vld [vmem:[%s15351_s8 + $0x1d0] sm:$0xff] }
 0xb8c   : > { %v8414_v46 = vmul.f32 0.2, %v10995_v37  ;;  %v8477_v33 = vmax.f32 %v10993_v27, %v8413_v17 }
 0xb8e   : > { %v8478_v49 = vmax.f32 %v10995_v37, %v8414_v46  ;;  %9056 = vmatmul.mubr.bf16.gmra.mrb[144].mxu1 %v11438_v60 }
 0xb8f   : > { %v8328_v58 = vpop.f32.mrb[204].mxu0  ;;  %v7469_v7 = vpop.f32.mrb[88].mxu1  ;;  %9063 = vmatprep.mubr.bf16.mxu1 %v11443_v53  ;;  %v11447_v53 = vld [vmem:[#allocation5 + $0x1c0] ss:$16 sps:$4 sm:$0xff]  }
 0xb90   : > { %v10997_v43 = vadd.f32 %v8328_v58, %v7462_v21  ;;  %v8330_v48 = vpop.f32.mrb[205].mxu0  ;;  %v8578_v36 = vpack.c.bf16 %v8478_v49, %v8477_v33  ;;  %v7471_v0 = vpop.f32.mrb[89].mxu1  ;;  %v7470_v52 = vadd.f32 %v7469_v7, %v5917_v24  ;;  %v11452_v21 = vld [vmem:[#allocation5 + $0x1e4] ss:$16 sps:$4 sm:$0xff]   ;;  %v5922_v49 = vld [vmem:[%s15351_s8 + $0x1f8] sm:$0xff] }
 0xb91   : > { %v8331_v13 = vpop.f32.mrb[206].mxu0  ;;  %v7472_v55 = vpop.f32.mrb[90].mxu1 }
 0xb92   : > { %v8415_v4 = vmul.f32 0.2, %v10997_v43  ;;  %v10999_v14 = vadd.f32 %v8331_v13, %v7465_v28  ;;  %v8333_v57 = vpop.f32.mrb[207].mxu0  ;;  %10332 = vmatprep.subr.bf16.mxu1 %v8578_v36  ;;  %v7474_v34 = vpop.f32.mrb[91].mxu1  ;;  %v7473_v10 = vadd.f32 %v7472_v55, %v5918_v15  ;;  %v11456_v15 = vld [vmem:[#allocation5 + $0x28] ss:$16 sps:$4 sm:$0xff]  }
 0xb93   : > { %10333 = vmatpush3.bf16.msra.mxu1 %v15018_v39  ;;  %v5919_v39 = vld [vmem:[%s15351_s8 + $0x1e0] sm:$0xff] }
 0xb94   : > { %v8416_v18 = vmul.f32 0.2, %v10999_v14  ;;  %v8479_v45 = vmax.f32 %v10997_v43, %v8415_v4  ;;  %v11450_v4 = vld [vmem:[#allocation5 + $0x1e0] ss:$16 sps:$4 sm:$0xff]  }
 0xb96   : > { %v8480_v62 = vmax.f32 %v10999_v14, %v8416_v18  ;;  %9064 = vmatmul.mubr.bf16.gmra.mrb[148].mxu1 %v11441_v51  ;;  %v11455_v14 = vld [vmem:[#allocation5 + $0xc] ss:$16 sps:$4 sm:$0xff]   ;;  %v11453_v18 = vld [vmem:[#allocation5 + $0x8] ss:$16 sps:$4 sm:$0xff]  }
 0xb97   : > { %v8336_v8 = vpop.f32.mrb[208].mxu0  ;;  %v7477_v12 = vpop.f32.mrb[92].mxu1  ;;  %9071 = vmatprep.mubr.bf16.mxu1 %v11446_v32 }
 0xb98   : > { %v11001_v25 = vadd.f32 %v8336_v8, %v7470_v52  ;;  %v8338_v30 = vpop.f32.mrb[209].mxu0  ;;  %v8579_v6 = vpack.c.bf16 %v8480_v62, %v8479_v45  ;;  %v7479_v50 = vpop.f32.mrb[93].mxu1  ;;  %v7478_v35 = vadd.f32 %v7477_v12, %v5919_v39  ;;  %v11458_v52 = vld [vmem:[#allocation5 + $0x2c] ss:$16 sps:$4 sm:$0xff]   ;;  %v11459_v62 = vld [vmem:[#allocation5 + $0x48] ss:$16 sps:$4 sm:$0xff]  }
 0xb99   : > { %v8339_v47 = vpop.f32.mrb[210].mxu0  ;;  %v7480_v41 = vpop.f32.mrb[94].mxu1  ;;  %v11461_v45 = vld [vmem:[#allocation5 + $0x4c] ss:$16 sps:$4 sm:$0xff]   ;;  %v11462_v8 = vld [vmem:[#allocation5 + $0x68] ss:$16 sps:$4 sm:$0xff]  }
 0xb9a   : > { %v8417_v2 = vmul.f32 0.2, %v11001_v25  ;;  %v11003_v31 = vadd.f32 %v8339_v47, %v7473_v10  ;;  %v8341_v26 = vpop.f32.mrb[211].mxu0  ;;  %10334 = vmatprep.subr.bf16.mxu1 %v8579_v6  ;;  %v7482_v61 = vpop.f32.mrb[95].mxu1  ;;  %v7481_v54 = vadd.f32 %v7480_v41, %v5920_v42  ;;  %v11467_v12 = vld [vmem:[#allocation5 + $0x8c] ss:$16 sps:$4 sm:$0xff]  }
 0xb9b   : > { %10335 = vmatpush3.bf16.msra.mxu1 %v15026_v23  ;;  %v5921_v23 = vld [vmem:[%s15351_s8 + $0x1f0] sm:$0xff]  ;;  %v11465_v10 = vld [vmem:[#allocation5 + $0x88] ss:$16 sps:$4 sm:$0xff]   ;;  %v11473_v30 = vld [vmem:[#allocation5 + $0xcc] ss:$16 sps:$4 sm:$0xff]  }
 0xb9c   : > { %v8418_v22 = vmul.f32 0.2, %v11003_v31  ;;  %v8481_v5 = vmax.f32 %v11001_v25, %v8417_v2  ;;  %v11470_v25 = vld [vmem:[#allocation5 + $0xac] ss:$16 sps:$4 sm:$0xff]   ;;  %v11471_v6 = vld [vmem:[#allocation5 + $0xc8] ss:$16 sps:$4 sm:$0xff]  }
 0xb9d   : > { %v11476_v50 = vld [vmem:[#allocation5 + $0xec] ss:$16 sps:$4 sm:$0xff]   ;;  %v11474_v47 = vld [vmem:[#allocation5 + $0xe8] ss:$16 sps:$4 sm:$0xff]  }
 0xb9e   : > { %v8482_v20 = vmax.f32 %v11003_v31, %v8418_v22  ;;  %9072 = vmatmul.mubr.bf16.gmra.mrb[152].mxu1 %v11444_v19  ;;  %v11479_v39 = vld [vmem:[#allocation5 + $0x10c] ss:$16 sps:$4 sm:$0xff]   ;;  %v11477_v41 = vld [vmem:[#allocation5 + $0x108] ss:$16 sps:$4 sm:$0xff]  }
 0xb9f   : > { %v8344_v27 = vpop.f32.mrb[212].mxu0  ;;  %v7485_v1 = vpop.f32.mrb[96].mxu1  ;;  %9079 = vmatprep.mubr.bf16.mxu1 %v11449_v56  ;;  %v11482_v2 = vld [vmem:[#allocation5 + $0x12c] ss:$16 sps:$4 sm:$0xff]   ;;  %v11480_v31 = vld [vmem:[#allocation5 + $0x128] ss:$16 sps:$4 sm:$0xff]  }
 0xba0   : > { %v11005_v16 = vadd.f32 %v8344_v27, %v7478_v35  ;;  %v8346_v29 = vpop.f32.mrb[213].mxu0  ;;  %v8580_v9 = vpack.c.bf16 %v8482_v20, %v8481_v5  ;;  %v7487_v63 = vpop.f32.mrb[97].mxu1  ;;  %v7486_v33 = vadd.f32 %v7485_v1, %v5921_v23  ;;  %v11485_v26 = vld [vmem:[#allocation5 + $0x14c] ss:$16 sps:$4 sm:$0xff]   ;;  %v11483_v19 = vld [vmem:[#allocation5 + $0x148] ss:$16 sps:$4 sm:$0xff]  }
 0xba1   : > { %v8347_v17 = vpop.f32.mrb[214].mxu0  ;;  %v7488_v37 = vpop.f32.mrb[98].mxu1  ;;  %v11488_v61 = vld [vmem:[#allocation5 + $0x16c] ss:$16 sps:$4 sm:$0xff]   ;;  %v11486_v22 = vld [vmem:[#allocation5 + $0x168] ss:$16 sps:$4 sm:$0xff]  }
 0xba2   : > { %v8419_v40 = vmul.f32 0.2, %v11005_v16  ;;  %v11007_v60 = vadd.f32 %v8347_v17, %v7481_v54  ;;  %v8349_v59 = vpop.f32.mrb[215].mxu0  ;;  %10336 = vmatprep.subr.bf16.mxu1 %v8580_v9  ;;  %v7490_v46 = vpop.f32.mrb[99].mxu1  ;;  %v7489_v43 = vadd.f32 %v7488_v37, %v5922_v49  ;;  %v11491_v42 = vld [vmem:[#allocation5 + $0x18c] ss:$16 sps:$4 sm:$0xff]  }
 0xba3   : > { %10337 = vmatpush3.bf16.msra.mxu1 %v15034_v44  ;;  %v11494_v9 = vld [vmem:[#allocation5 + $0x1ac] ss:$16 sps:$4 sm:$0xff]  }
 0xba4   : > { %v8420_v38 = vmul.f32 0.2, %v11007_v60  ;;  %v8483_v58 = vmax.f32 %v11005_v16, %v8419_v40  ;;  %v11489_v16 = vld [vmem:[#allocation5 + $0x188] ss:$16 sps:$4 sm:$0xff]  }
 0xba6   : > { %v8484_v7 = vmax.f32 %v11007_v60, %v8420_v38  ;;  %9080 = vmatmul.mubr.bf16.gmra.mrb[156].mxu1 %v11447_v53  ;;  %v11492_v60 = vld [vmem:[#allocation5 + $0x1a8] ss:$16 sps:$4 sm:$0xff]   ;;  %v11497_v53 = vld [vmem:[#allocation5 + $0x1cc] ss:$16 sps:$4 sm:$0xff]  }
 0xba7   : > { %v8352_v28 = vpop.f32.mrb[216].mxu0  ;;  %9087 = vmatprep.mubr.bf16.mxu1 %v11452_v21 }
 0xba8   : > { %v11009_v48 = vadd.f32 %v8352_v28, %v7486_v33  ;;  %v8354_v36 = vpop.f32.mrb[217].mxu0  ;;  %v8581_v0 = vpack.c.bf16 %v8484_v7, %v8483_v58  ;;  %v11495_v58 = vld [vmem:[#allocation5 + $0x1c8] ss:$16 sps:$4 sm:$0xff]   ;;  %v11500_v28 = vld [vmem:[#allocation5 + $0x1ec] ss:$16 sps:$4 sm:$0xff]  }
 0xba9   : > { %v8355_v13 = vpop.f32.mrb[218].mxu0 }
 0xbaa   : > { %v8421_v24 = vmul.f32 0.2, %v11009_v48  ;;  %v11011_v55 = vadd.f32 %v8355_v13, %v7489_v43  ;;  %v8357_v44 = vpop.f32.mrb[219].mxu0  ;;  %10338 = vmatprep.subr.bf16.mxu1 %v8581_v0 }
 0xbab   : > { %10339 = vmatpush3.bf16.msra.mxu1 %v15042_v11  ;;  %v11464_v11 = vld [vmem:[#allocation5 + $0x6c] ss:$16 sps:$4 sm:$0xff]  }
 0xbac   : > { %v8422_v57 = vmul.f32 0.2, %v11011_v55  ;;  %v8485_v51 = vmax.f32 %v11009_v48, %v8421_v24  ;;  %v11498_v24 = vld [vmem:[#allocation5 + $0x1e8] ss:$16 sps:$4 sm:$0xff]  }
 0xbae   : > { %v8486_v34 = vmax.f32 %v11011_v55, %v8422_v57  ;;  %9088 = vmatmul.mubr.bf16.gmra.mrb[160].mxu1 %v11450_v4 }
 0xbaf   : > { %9128 = vmatprep.mubr.bf16.mxu1 %v11455_v14 }
 0xbb0   : > { %v8582_v32 = vpack.c.bf16 %v8486_v34, %v8485_v51 }
 0xbb2   : > { %10340 = vmatprep.subr.bf16.mxu1 %v8582_v32 }
 0xbb3   : > { %10341 = vmatpush3.bf16.msra.mxu1 %v15050_v3  ;;  %v11468_v3 = vld [vmem:[#allocation5 + $0xa8] ss:$16 sps:$4 sm:$0xff]  }
 0xbb6   : > { %9129 = vmatmul.mubr.bf16.vlgmr.msra.gmra.mrb[164].mxu1 %v11453_v18 }
 0xbb7   : > { %9136 = vmatprep.mubr.bf16.mxu1 %v11458_v52 }
 0xbbe   : > { %9137 = vmatmul.mubr.bf16.gmra.mrb[168].mxu1 %v11456_v15 }
 0xbbf   : > { %9144 = vmatprep.mubr.bf16.mxu1 %v11461_v45 }
 0xbc6   : > { %9145 = vmatmul.mubr.bf16.gmra.mrb[172].mxu1 %v11459_v62 }
 0xbc7   : > { %9152 = vmatprep.mubr.bf16.mxu1 %v11464_v11 }
 0xbce   : > { %9153 = vmatmul.mubr.bf16.gmra.mrb[176].mxu1 %v11462_v8 }
 0xbcf   : > { %9160 = vmatprep.mubr.bf16.mxu1 %v11467_v12 }
 0xbd6   : > { %9161 = vmatmul.mubr.bf16.gmra.mrb[180].mxu1 %v11465_v10 }
 0xbd7   : > { %9168 = vmatprep.mubr.bf16.mxu1 %v11470_v25 }
 0xbde   : > { %9169 = vmatmul.mubr.bf16.gmra.mrb[184].mxu1 %v11468_v3 }
 0xbdf   : > { %9176 = vmatprep.mubr.bf16.mxu1 %v11473_v30 }
 0xbe6   : > { %9177 = vmatmul.mubr.bf16.gmra.mrb[188].mxu1 %v11471_v6 }
 0xbe7   : > { %9184 = vmatprep.mubr.bf16.mxu1 %v11476_v50 }
 0xbee   : > { %9185 = vmatmul.mubr.bf16.gmra.mrb[192].mxu1 %v11474_v47 }
 0xbef   : > { %9192 = vmatprep.mubr.bf16.mxu1 %v11479_v39 }
 0xbf6   : > { %9193 = vmatmul.mubr.bf16.gmra.mrb[196].mxu1 %v11477_v41 }
 0xbf7   : > { %9200 = vmatprep.mubr.bf16.mxu1 %v11482_v2 }
 0xbfe   : > { %9201 = vmatmul.mubr.bf16.gmra.mrb[200].mxu1 %v11480_v31 }
 0xbff   : > { %9208 = vmatprep.mubr.bf16.mxu1 %v11485_v26 }
 0xc06   : > { %9209 = vmatmul.mubr.bf16.gmra.mrb[204].mxu1 %v11483_v19 }
 0xc07   : > { %9216 = vmatprep.mubr.bf16.mxu1 %v11488_v61 }
 0xc09   : > { %v10230_v56 = vpop.f32.mrb[100].mxu1 }
 0xc0a   : > { %v10231_v35 = vpop.f32.mrb[101].mxu1 }
 0xc0b   : > { %v15102_v5 = vadd.f32 %v10231_v35, %v10230_v56  ;;  %v10233_v20 = vpop.f32.mrb[102].mxu1 }
 0xc0c   : > { %v10234_v27 = vpop.f32.mrb[103].mxu1 }
 0xc0d   : > { %v15104_v1 = vadd.f32 %v10234_v27, %v10233_v20 }
 0xc0e   : > { %9217 = vmatmul.mubr.bf16.gmra.mrb[208].mxu1 %v11486_v22 }
 0xc0f   : > { %9224 = vmatprep.mubr.bf16.mxu1 %v11491_v42 }
 0xc11   : > { %v10236_v54 = vpop.f32.mrb[104].mxu1 }
 0xc12   : > { %v10237_v29 = vpop.f32.mrb[105].mxu1 }
 0xc13   : > { %v15106_v63 = vadd.f32 %v10237_v29, %v10236_v54  ;;  %v10239_v17 = vpop.f32.mrb[106].mxu1 }
 0xc14   : > { %v10240_v23 = vpop.f32.mrb[107].mxu1 }
 0xc15   : > { %v15108_v37 = vadd.f32 %v10240_v23, %v10239_v17 }
 0xc16   : > { %9225 = vmatmul.mubr.bf16.gmra.mrb[212].mxu1 %v11489_v16 }
 0xc17   : > { %9232 = vmatprep.mubr.bf16.mxu1 %v11494_v9 }
 0xc19   : > { %v10242_v40 = vpop.f32.mrb[108].mxu1 }
 0xc1a   : > { %v10243_v59 = vpop.f32.mrb[109].mxu1 }
 0xc1b   : > { %v15110_v46 = vadd.f32 %v10243_v59, %v10242_v40  ;;  %v10245_v21 = vpop.f32.mrb[110].mxu1 }
 0xc1c   : > { %v10246_v38 = vpop.f32.mrb[111].mxu1 }
 0xc1d   : > { %v15112_v33 = vadd.f32 %v10246_v38, %v10245_v21 }
 0xc1e   : > { %9233 = vmatmul.mubr.bf16.gmra.mrb[216].mxu1 %v11492_v60 }
 0xc1f   : > { %9240 = vmatprep.mubr.bf16.mxu1 %v11497_v53 }
 0xc21   : > { %v10248_v49 = vpop.f32.mrb[112].mxu1 }
 0xc22   : > { %v10249_v7 = vpop.f32.mrb[113].mxu1 }
 0xc23   : > { %v15114_v43 = vadd.f32 %v10249_v7, %v10248_v49  ;;  %v10251_v48 = vpop.f32.mrb[114].mxu1 }
 0xc24   : > { %v10252_v36 = vpop.f32.mrb[115].mxu1 }
 0xc25   : > { %v15116_v0 = vadd.f32 %v10252_v36, %v10251_v48 }
 0xc26   : > { %9241 = vmatmul.mubr.bf16.gmra.mrb[220].mxu1 %v11495_v58 }
 0xc27   : > { %9248 = vmatprep.mubr.bf16.mxu1 %v11500_v28 }
 0xc29   : > { %v10254_v13 = vpop.f32.mrb[116].mxu1 }
 0xc2a   : > { %v10255_v55 = vpop.f32.mrb[117].mxu1 }
 0xc2b   : > { %v15118_v44 = vadd.f32 %v10255_v55, %v10254_v13  ;;  %v10257_v4 = vpop.f32.mrb[118].mxu1 }
 0xc2c   : > { %v10258_v14 = vpop.f32.mrb[119].mxu1 }
 0xc2d   : > { %v15120_v57 = vadd.f32 %v10258_v14, %v10257_v4 }
 0xc2e   : > { %9249 = vmatmul.mubr.bf16.gmra.mrb[224].mxu1 %v11498_v24 }
 0xc31   : > { %v10260_v51 = vpop.f32.mrb[120].mxu1 }
 0xc32   : > { %v10261_v34 = vpop.f32.mrb[121].mxu1 }
 0xc33   : > { %v15122_v32 = vadd.f32 %v10261_v34, %v10260_v51  ;;  %v10263_v18 = vpop.f32.mrb[122].mxu1 }
 0xc34   : > { %v10264_v52 = vpop.f32.mrb[123].mxu1 }
 0xc35   : > { %v15124_v15 = vadd.f32 %v10264_v52, %v10263_v18 }
 0xc39   : > { %v10266_v45 = vpop.f32.mrb[124].mxu1 }
 0xc3a   : > { %v10267_v62 = vpop.f32.mrb[125].mxu1 }
 0xc3b   : > { %v15126_v11 = vadd.f32 %v10267_v62, %v10266_v45  ;;  %v10269_v8 = vpop.f32.mrb[126].mxu1 }
 0xc3c   : > { %v10270_v12 = vpop.f32.mrb[127].mxu1 }
 0xc3d   : > { %v15128_v10 = vadd.f32 %v10270_v12, %v10269_v8 }
 0xc41   : > { %v10272_v25 = vpop.f32.mrb[128].mxu1 }
 0xc42   : > { %v10273_v3 = vpop.f32.mrb[129].mxu1 }
 0xc43   : > { %v15130_v30 = vadd.f32 %v10273_v3, %v10272_v25  ;;  %v10275_v6 = vpop.f32.mrb[130].mxu1 }
 0xc44   : > { %v10276_v50 = vpop.f32.mrb[131].mxu1 }
 0xc45   : > { %v15132_v47 = vadd.f32 %v10276_v50, %v10275_v6 }
 0xc49   : > { %v10278_v39 = vpop.f32.mrb[132].mxu1 }
 0xc4a   : > { %v10279_v41 = vpop.f32.mrb[133].mxu1 }
 0xc4b   : > { %v15134_v2 = vadd.f32 %v10279_v41, %v10278_v39  ;;  %v10281_v31 = vpop.f32.mrb[134].mxu1  ;;  %v8583_v39 = vld [vmem:[%s15353_s10] sm:$0xff] }
 0xc4c   : > { %v10282_v26 = vpop.f32.mrb[135].mxu1 }
 0xc4d   : > { %v15136_v19 = vadd.f32 %v10282_v26, %v10281_v31  ;;  %v8584_v31 = vld [vmem:[%s15353_s10 + $0x8] sm:$0xff] }
 0xc51   : > { %v10284_v61 = vpop.f32.mrb[136].mxu1 }
 0xc52   : > { %v10285_v56 = vpop.f32.mrb[137].mxu1 }
 0xc53   : > { %v15138_v22 = vadd.f32 %v10285_v56, %v10284_v61  ;;  %v10287_v35 = vpop.f32.mrb[138].mxu1  ;;  %v8970_v61 = vadd.f32 %v15102_v5, %v8583_v39  ;;  %v8586_v5 = vld [vmem:[%s15353_s10 + $0x18] sm:$0xff] }
 0xc54   : > { %v10288_v42 = vpop.f32.mrb[139].mxu1 }
 0xc55   : > { %v15140_v20 = vadd.f32 %v10288_v42, %v10287_v35 }
 0xc59   : > { %v10290_v27 = vpop.f32.mrb[140].mxu1 }
 0xc5a   : > { %v10291_v54 = vpop.f32.mrb[141].mxu1 }
 0xc5b   : > { %v15142_v16 = vadd.f32 %v10291_v54, %v10290_v27  ;;  %v10293_v29 = vpop.f32.mrb[142].mxu1  ;;  %v8973_v27 = vadd.f32 %v15104_v1, %v8584_v31 }
 0xc5c   : > { %v10294_v9 = vpop.f32.mrb[143].mxu1 }
 0xc5d   : > { %v15144_v17 = vadd.f32 %v10294_v9, %v10293_v29 }
 0xc61   : > { %v10296_v23 = vpop.f32.mrb[144].mxu1 }
 0xc62   : > { %v10297_v40 = vpop.f32.mrb[145].mxu1 }
 0xc63   : > { %v15146_v60 = vadd.f32 %v10297_v40, %v10296_v23  ;;  %v10299_v59 = vpop.f32.mrb[146].mxu1  ;;  %v8585_v40 = vld [vmem:[%s15353_s10 + $0x10] sm:$0xff] }
 0xc64   : > { %v10300_v53 = vpop.f32.mrb[147].mxu1  ;;  %v8978_v1 = vadd.f32 %v15106_v63, %v8585_v40  ;;  %v8588_v63 = vld [vmem:[%s15353_s10 + $0x28] sm:$0xff] }
 0xc65   : > { %v15148_v21 = vadd.f32 %v10300_v53, %v10299_v59  ;;  %v11503_v59 = vld [vmem:[%s15354_s11 + $0x4] ss:$8 sps:$4 sm:$0x1f]  }
 0xc66   : > { %9383 = vmatprep.mubr.bf16.mxu1 %v11503_v59 }
 0xc69   : > { %v10302_v38 = vpop.f32.mrb[148].mxu1 }
 0xc6a   : > { %v10303_v49 = vpop.f32.mrb[149].mxu1 }
 0xc6b   : > { %v15150_v58 = vadd.f32 %v10303_v49, %v10302_v38  ;;  %v10305_v7 = vpop.f32.mrb[150].mxu1 }
 0xc6c   : > { %v10306_v28 = vpop.f32.mrb[151].mxu1 }
 0xc6d   : > { %v15152_v48 = vadd.f32 %v10306_v28, %v10305_v7 }
 0xc71   : > { %v10308_v36 = vpop.f32.mrb[152].mxu1 }
 0xc72   : > { %v10309_v13 = vpop.f32.mrb[153].mxu1 }
 0xc73   : > { %v15154_v24 = vadd.f32 %v10309_v13, %v10308_v36  ;;  %v10311_v55 = vpop.f32.mrb[154].mxu1 }
 0xc74   : > { %v10312_v4 = vpop.f32.mrb[155].mxu1 }
 0xc75   : > { %v15156_v14 = vadd.f32 %v10312_v4, %v10311_v55  ;;  %v8981_v4 = vadd.f32 %v15108_v37, %v8586_v5 }
 0xc79   : > { %v10314_v51 = vpop.f32.mrb[156].mxu1 }
 0xc7a   : > { %v10315_v34 = vpop.f32.mrb[157].mxu1 }
 0xc7b   : > { %v15158_v18 = vadd.f32 %v10315_v34, %v10314_v51  ;;  %v10317_v52 = vpop.f32.mrb[158].mxu1 }
 0xc7c   : > { %v10318_v45 = vpop.f32.mrb[159].mxu1 }
 0xc7d   : > { %v15160_v62 = vadd.f32 %v10318_v45, %v10317_v52 }
 0xc81   : > { %v10320_v8 = vpop.f32.mrb[160].mxu1 }
 0xc82   : > { %v10321_v12 = vpop.f32.mrb[161].mxu1 }
 0xc83   : > { %v15162_v25 = vadd.f32 %v10321_v12, %v10320_v8  ;;  %v10323_v3 = vpop.f32.mrb[162].mxu1  ;;  %v8587_v12 = vld [vmem:[%s15353_s10 + $0x20] sm:$0xff] }
 0xc84   : > { %v10324_v6 = vpop.f32.mrb[163].mxu1 }
 0xc85   : > { %v15164_v50 = vadd.f32 %v10324_v6, %v10323_v3 }
 0xc89   : > { %v10342_v41 = vpop.f32.mrb[164].mxu1 }
 0xc8a   : > { %v10343_v26 = vpop.f32.mrb[165].mxu1 }
 0xc8b   : > { %v10344_v56 = vadd.f32 %v10343_v26, %v10342_v41  ;;  %v10345_v35 = vpop.f32.mrb[166].mxu1  ;;  %v8986_v41 = vadd.f32 %v15110_v46, %v8587_v12  ;;  %v8590_v46 = vld [vmem:[%s15353_s10 + $0x38] sm:$0xff] }
 0xc8c   : > { %v10346_v42 = vpop.f32.mrb[167].mxu1 }
 0xc8d   : > { %v9131_v54 = vadd.f32 %v10344_v56, %v8970_v61  ;;  %v10347_v29 = vadd.f32 %v10346_v42, %v10345_v35  ;;  %v8989_v35 = vadd.f32 %v15112_v33, %v8588_v63 }
 0xc8f   : > { %v9257_v9 = vmul.f32 0.2, %v9131_v54  ;;  %v9134_v23 = vadd.f32 %v10347_v29, %v8973_v27 }
 0xc91   : > { %v9258_v53 = vmul.f32 0.2, %v9134_v23  ;;  %v10348_v38 = vpop.f32.mrb[168].mxu1  ;;  %v9289_v7 = vmax.f32 %v9131_v54, %v9257_v9 }
 0xc92   : > { %v10349_v49 = vpop.f32.mrb[169].mxu1 }
 0xc93   : > { %v9290_v28 = vmax.f32 %v9134_v23, %v9258_v53  ;;  %v10350_v36 = vadd.f32 %v10349_v49, %v10348_v38  ;;  %v10351_v13 = vpop.f32.mrb[170].mxu1  ;;  %v8589_v23 = vld [vmem:[%s15353_s10 + $0x30] sm:$0xff] }
 0xc94   : > { %v10352_v55 = vpop.f32.mrb[171].mxu1  ;;  %v8994_v38 = vadd.f32 %v15114_v43, %v8589_v23  ;;  %v8592_v43 = vld [vmem:[%s15353_s10 + $0x48] sm:$0xff] }
 0xc95   : > { %v15185_v51 = vpack.c.bf16 %v9290_v28, %v9289_v7  ;;  %v9139_v34 = vadd.f32 %v10350_v36, %v8978_v1  ;;  %v10353_v52 = vadd.f32 %v10352_v55, %v10351_v13  ;;  %v8997_v28 = vadd.f32 %v15116_v0, %v8590_v46 }
 0xc97   : > { %v9259_v45 = vmul.f32 0.2, %v9139_v34  ;;  %v9142_v8 = vadd.f32 %v10353_v52, %v8981_v4  ;;  %v8591_v52 = vld [vmem:[%s15353_s10 + $0x40] sm:$0xff] }
 0xc99   : > { %v9260_v3 = vmul.f32 0.2, %v9142_v8  ;;  %v10354_v6 = vpop.f32.mrb[172].mxu1  ;;  %v9291_v37 = vmax.f32 %v9139_v34, %v9259_v45 }
 0xc9a   : > { %v10355_v39 = vpop.f32.mrb[173].mxu1 }
 0xc9b   : > { %v9292_v31 = vmax.f32 %v9142_v8, %v9260_v3  ;;  %v10356_v26 = vadd.f32 %v10355_v39, %v10354_v6  ;;  %v10357_v61 = vpop.f32.mrb[174].mxu1  ;;  %v9002_v3 = vadd.f32 %v15118_v44, %v8591_v52  ;;  %v8594_v44 = vld [vmem:[%s15353_s10 + $0x58] sm:$0xff] }
 0xc9c   : > { %v10358_v56 = vpop.f32.mrb[175].mxu1 }
 0xc9d   : > { %v15195_v42 = vpack.c.bf16 %v9292_v31, %v9291_v37  ;;  %v9147_v27 = vadd.f32 %v10356_v26, %v8986_v41  ;;  %v10359_v54 = vadd.f32 %v10358_v56, %v10357_v61  ;;  %v9005_v37 = vadd.f32 %v15120_v57, %v8592_v43 }
 0xc9f   : > { %v9261_v29 = vmul.f32 0.2, %v9147_v27  ;;  %v9150_v9 = vadd.f32 %v10359_v54, %v8989_v35 }
 0xca1   : > { %v9262_v40 = vmul.f32 0.2, %v9150_v9  ;;  %v10360_v59 = vpop.f32.mrb[176].mxu1  ;;  %v9293_v33 = vmax.f32 %v9147_v27, %v9261_v29  ;;  %v8593_v27 = vld [vmem:[%s15353_s10 + $0x50] sm:$0xff] }
 0xca2   : > { %v10361_v53 = vpop.f32.mrb[177].mxu1  ;;  %v9010_v23 = vadd.f32 %v15122_v32, %v8593_v27  ;;  %v8596_v32 = vld [vmem:[%s15353_s10 + $0x68] sm:$0xff] }
 0xca3   : > { %v9294_v5 = vmax.f32 %v9150_v9, %v9262_v40  ;;  %v10362_v49 = vadd.f32 %v10361_v53, %v10360_v59  ;;  %v10363_v1 = vpop.f32.mrb[178].mxu1 }
 0xca4   : > { %v10364_v7 = vpop.f32.mrb[179].mxu1 }
 0xca5   : > { %v15205_v36 = vpack.c.bf16 %v9294_v5, %v9293_v33  ;;  %v9155_v13 = vadd.f32 %v10362_v49, %v8994_v38  ;;  %v10365_v55 = vadd.f32 %v10364_v7, %v10363_v1  ;;  %v9013_v38 = vadd.f32 %v15124_v15, %v8594_v44 }
 0xca7   : > { %v9263_v4 = vmul.f32 0.2, %v9155_v13  ;;  %v9158_v34 = vadd.f32 %v10365_v55, %v8997_v28  ;;  %v8595_v28 = vld [vmem:[%s15353_s10 + $0x60] sm:$0xff] }
 0xca9   : > { %v9264_v45 = vmul.f32 0.2, %v9158_v34  ;;  %v10366_v8 = vpop.f32.mrb[180].mxu1  ;;  %v9295_v0 = vmax.f32 %v9155_v13, %v9263_v4 }
 0xcaa   : > { %v10367_v12 = vpop.f32.mrb[181].mxu1 }
 0xcab   : > { %v9296_v6 = vmax.f32 %v9158_v34, %v9264_v45  ;;  %v10368_v63 = vadd.f32 %v10367_v12, %v10366_v8  ;;  %v10369_v39 = vpop.f32.mrb[182].mxu1  ;;  %v9018_v34 = vadd.f32 %v15126_v11, %v8595_v28  ;;  %v9021_v12 = vadd.f32 %v15128_v10, %v8596_v32  ;;  %v8598_v11 = vld [vmem:[%s15353_s10 + $0x78] sm:$0xff] }
 0xcac   : > { %v10370_v41 = vpop.f32.mrb[183].mxu1  ;;  %v9029_v44 = vadd.f32 %v15132_v47, %v8598_v11 }
 0xcad   : > { %v15215_v31 = vpack.c.bf16 %v9296_v6, %v9295_v0  ;;  %v9163_v26 = vadd.f32 %v10368_v63, %v9002_v3  ;;  %v10371_v61 = vadd.f32 %v10370_v41, %v10369_v39  ;;  %v8597_v41 = vld [vmem:[%s15353_s10 + $0x70] sm:$0xff] }
 0xcaf   : > { %v9265_v56 = vmul.f32 0.2, %v9163_v26  ;;  %v9166_v35 = vadd.f32 %v10371_v61, %v9005_v37 }
 0xcb1   : > { %v9266_v54 = vmul.f32 0.2, %v9166_v35  ;;  %v10372_v29 = vpop.f32.mrb[184].mxu1  ;;  %v9297_v57 = vmax.f32 %v9163_v26, %v9265_v56  ;;  %v9026_v56 = vadd.f32 %v15130_v30, %v8597_v41  ;;  %v8600_v30 = vld [vmem:[%s15353_s10 + $0x88] sm:$0xff] }
 0xcb2   : > { %v10373_v9 = vpop.f32.mrb[185].mxu1 }
 0xcb3   : > { %v9298_v40 = vmax.f32 %v9166_v35, %v9266_v54  ;;  %v10374_v59 = vadd.f32 %v10373_v9, %v10372_v29  ;;  %v10375_v46 = vpop.f32.mrb[186].mxu1 }
 0xcb4   : > { %v10376_v53 = vpop.f32.mrb[187].mxu1 }
 0xcb5   : > { %v15225_v33 = vpack.c.bf16 %v9298_v40, %v9297_v57  ;;  %v9171_v5 = vadd.f32 %v10374_v59, %v9010_v23  ;;  %v10377_v49 = vadd.f32 %v10376_v53, %v10375_v46  ;;  %v8599_v46 = vld [vmem:[%s15353_s10 + $0x80] sm:$0xff] }
 0xcb7   : > { %v9267_v1 = vmul.f32 0.2, %v9171_v5  ;;  %v9174_v7 = vadd.f32 %v10377_v49, %v9013_v38  ;;  %v9034_v49 = vadd.f32 %v15134_v2, %v8599_v46  ;;  %v8602_v2 = vld [vmem:[%s15353_s10 + $0x98] sm:$0xff] }
 0xcb9   : > { %v9268_v13 = vmul.f32 0.2, %v9174_v7  ;;  %v10378_v55 = vpop.f32.mrb[188].mxu1  ;;  %v9299_v15 = vmax.f32 %v9171_v5, %v9267_v1 }
 0xcba   : > { %v10379_v4 = vpop.f32.mrb[189].mxu1 }
 0xcbb   : > { %v9300_v52 = vmax.f32 %v9174_v7, %v9268_v13  ;;  %v10380_v45 = vadd.f32 %v10379_v4, %v10378_v55  ;;  %v10381_v8 = vpop.f32.mrb[190].mxu1  ;;  %v9037_v55 = vadd.f32 %v15136_v19, %v8600_v30 }
 0xcbc   : > { %v10382_v43 = vpop.f32.mrb[191].mxu1 }
 0xcbd   : > { %v15235_v3 = vpack.c.bf16 %v9300_v52, %v9299_v15  ;;  %v9179_v0 = vadd.f32 %v10380_v45, %v9018_v34  ;;  %v10383_v6 = vadd.f32 %v10382_v43, %v10381_v8  ;;  %v8601_v45 = vld [vmem:[%s15353_s10 + $0x90] sm:$0xff] }
 0xcbf   : > { %v9269_v63 = vmul.f32 0.2, %v9179_v0  ;;  %v9182_v39 = vadd.f32 %v10383_v6, %v9021_v12 }
 0xcc1   : > { %v9270_v37 = vmul.f32 0.2, %v9182_v39  ;;  %v10384_v26 = vpop.f32.mrb[192].mxu1  ;;  %v9301_v10 = vmax.f32 %v9179_v0, %v9269_v63  ;;  %v9042_v0 = vadd.f32 %v15138_v22, %v8601_v45 }
 0xcc2   : > { %v10385_v61 = vpop.f32.mrb[193].mxu1 }
 0xcc3   : > { %v9302_v35 = vmax.f32 %v9182_v39, %v9270_v37  ;;  %v10386_v27 = vadd.f32 %v10385_v61, %v10384_v26  ;;  %v10387_v54 = vpop.f32.mrb[194].mxu1  ;;  %v9045_v37 = vadd.f32 %v15140_v20, %v8602_v2  ;;  %v8607_v2 = vld [vmem:[%s15353_s10 + $0xc0] sm:$0xff] }
 0xcc4   : > { %v10388_v29 = vpop.f32.mrb[195].mxu1 }
 0xcc5   : > { %v15245_v9 = vpack.c.bf16 %v9302_v35, %v9301_v10  ;;  %v9187_v23 = vadd.f32 %v10386_v27, %v9026_v56  ;;  %v10389_v57 = vadd.f32 %v10388_v29, %v10387_v54  ;;  %v8603_v35 = vld [vmem:[%s15353_s10 + $0xa0] sm:$0xff]  ;;  %v8604_v54 = vld [vmem:[%s15353_s10 + $0xa8] sm:$0xff] }
 0xcc6   : > { %v9050_v20 = vadd.f32 %v15142_v16, %v8603_v35  ;;  %v9053_v46 = vadd.f32 %v15144_v17, %v8604_v54  ;;  %v8609_v35 = vld [vmem:[%s15353_s10 + $0xd0] sm:$0xff] }
 0xcc7   : > { %v9271_v40 = vmul.f32 0.2, %v9187_v23  ;;  %v9190_v59 = vadd.f32 %v10389_v57, %v9029_v44 }
 0xcc9   : > { %v9272_v53 = vmul.f32 0.2, %v9190_v59  ;;  %v10390_v38 = vpop.f32.mrb[196].mxu1  ;;  %v9303_v47 = vmax.f32 %v9187_v23, %v9271_v40 }
 0xcca   : > { %v10391_v5 = vpop.f32.mrb[197].mxu1 }
 0xccb   : > { %v9304_v1 = vmax.f32 %v9190_v59, %v9272_v53  ;;  %v10392_v7 = vadd.f32 %v10391_v5, %v10390_v38  ;;  %v10393_v28 = vpop.f32.mrb[198].mxu1 }
 0xccc   : > { %v10394_v13 = vpop.f32.mrb[199].mxu1 }
 0xccd   : > { %v15255_v32 = vpack.c.bf16 %v9304_v1, %v9303_v47  ;;  %v9195_v4 = vadd.f32 %v10392_v7, %v9034_v49  ;;  %v10395_v34 = vadd.f32 %v10394_v13, %v10393_v28  ;;  %v8605_v49 = vld [vmem:[%s15353_s10 + $0xb0] sm:$0xff]  ;;  %v8606_v1 = vld [vmem:[%s15353_s10 + $0xb8] sm:$0xff] }
 0xcce   : > { %v9058_v17 = vadd.f32 %v15146_v60, %v8605_v49 }
 0xccf   : > { %v9273_v15 = vmul.f32 0.2, %v9195_v4  ;;  %v9198_v52 = vadd.f32 %v10395_v34, %v9037_v55 }
 0xcd1   : > { %v9274_v8 = vmul.f32 0.2, %v9198_v52  ;;  %v10396_v43 = vpop.f32.mrb[200].mxu1  ;;  %v9305_v19 = vmax.f32 %v9195_v4, %v9273_v15  ;;  %v9061_v15 = vadd.f32 %v15148_v21, %v8606_v1  ;;  %v9066_v21 = vadd.f32 %v15150_v58, %v8607_v2 }
 0xcd2   : > { %v10397_v12 = vpop.f32.mrb[201].mxu1 }
 0xcd3   : > { %v9306_v6 = vmax.f32 %v9198_v52, %v9274_v8  ;;  %v10398_v63 = vadd.f32 %v10397_v12, %v10396_v43  ;;  %v10399_v39 = vpop.f32.mrb[202].mxu1 }
 0xcd4   : > { %v10400_v41 = vpop.f32.mrb[203].mxu1 }
 0xcd5   : > { %v9203_v26 = vadd.f32 %v10398_v63, %v9042_v0  ;;  %v10401_v11 = vadd.f32 %v10400_v41, %v10399_v39  ;;  %v9331_v61 = vpack.c.bf16 %v9306_v6, %v9305_v19  ;;  %v8608_v0 = vld [vmem:[%s15353_s10 + $0xc8] sm:$0xff] }
 0xcd7   : > { %v9275_v56 = vmul.f32 0.2, %v9203_v26  ;;  %v9206_v10 = vadd.f32 %v10401_v11, %v9045_v37  ;;  %10438 = vmatprep.subr.bf16.mxu1 %v9331_v61 }
 0xcd8   : > { %10439 = vmatpush3.bf16.msra.mxu1 %v15185_v51 }
 0xcd9   : > { %v9276_v22 = vmul.f32 0.2, %v9206_v10  ;;  %v10402_v27 = vpop.f32.mrb[204].mxu1  ;;  %v9307_v44 = vmax.f32 %v9203_v26, %v9275_v56  ;;  %v9069_v26 = vadd.f32 %v15152_v48, %v8608_v0  ;;  %v9074_v48 = vadd.f32 %v15154_v24, %v8609_v35 }
 0xcda   : > { %v10403_v29 = vpop.f32.mrb[205].mxu1 }
 0xcdb   : > { %v9308_v23 = vmax.f32 %v9206_v10, %v9276_v22  ;;  %v10404_v57 = vadd.f32 %v10403_v29, %v10402_v27  ;;  %v10405_v40 = vpop.f32.mrb[206].mxu1  ;;  %v8610_v27 = vld [vmem:[%s15353_s10 + $0xd8] sm:$0xff] }
 0xcdc   : > { %v10406_v59 = vpop.f32.mrb[207].mxu1 }
 0xcdd   : > { %v9211_v53 = vadd.f32 %v10404_v57, %v9050_v20  ;;  %v10407_v38 = vadd.f32 %v10406_v59, %v10405_v40  ;;  %v9332_v30 = vpack.c.bf16 %v9308_v23, %v9307_v44  ;;  %v9077_v40 = vadd.f32 %v15156_v14, %v8610_v27 }
 0xcdf   : > { %v9277_v51 = vmul.f32 0.2, %v9211_v53  ;;  %v9214_v5 = vadd.f32 %v10407_v38, %v9053_v46  ;;  %10440 = vmatprep.subr.bf16.mxu1 %v9332_v30  ;;  %v8611_v30 = vld [vmem:[%s15353_s10 + $0xe0] sm:$0xff] }
 0xce0   : > { %10441 = vmatpush3.bf16.msra.mxu1 %v15195_v42  ;;  %v9082_v14 = vadd.f32 %v15158_v18, %v8611_v30 }
 0xce1   : > { %v9278_v16 = vmul.f32 0.2, %v9214_v5  ;;  %v10408_v47 = vpop.f32.mrb[208].mxu1  ;;  %v9309_v28 = vmax.f32 %v9211_v53, %v9277_v51 }
 0xce2   : > { %v10409_v7 = vpop.f32.mrb[209].mxu1 }
 0xce3   : > { %v9310_v13 = vmax.f32 %v9214_v5, %v9278_v16  ;;  %v10410_v55 = vadd.f32 %v10409_v7, %v10408_v47  ;;  %v10411_v4 = vpop.f32.mrb[210].mxu1  ;;  %v8612_v5 = vld [vmem:[%s15353_s10 + $0xe8] sm:$0xff] }
 0xce4   : > { %v10412_v34 = vpop.f32.mrb[211].mxu1 }
 0xce5   : > { %v9219_v52 = vadd.f32 %v10410_v55, %v9058_v17  ;;  %v10413_v45 = vadd.f32 %v10412_v34, %v10411_v4  ;;  %v9333_v8 = vpack.c.bf16 %v9310_v13, %v9309_v28  ;;  %v9085_v28 = vadd.f32 %v15160_v62, %v8612_v5 }
 0xce7   : > { %v9279_v42 = vmul.f32 0.2, %v9219_v52  ;;  %v9222_v43 = vadd.f32 %v10413_v45, %v9061_v15  ;;  %10442 = vmatprep.subr.bf16.mxu1 %v9333_v8  ;;  %v8613_v15 = vld [vmem:[%s15353_s10 + $0xf0] sm:$0xff]  ;;  %v8614_v45 = vld [vmem:[%s15353_s10 + $0xf8] sm:$0xff] }
 0xce8   : > { %10443 = vmatpush3.bf16.msra.mxu1 %v15205_v36  ;;  %v9090_v62 = vadd.f32 %v15162_v25, %v8613_v15  ;;  %v9093_v0 = vadd.f32 %v15164_v50, %v8614_v45 }
 0xce9   : > { %v9280_v60 = vmul.f32 0.2, %v9222_v43  ;;  %v10414_v12 = vpop.f32.mrb[212].mxu1  ;;  %v9311_v6 = vmax.f32 %v9219_v52, %v9279_v42 }
 0xcea   : > { %v10415_v19 = vpop.f32.mrb[213].mxu1 }
 0xceb   : > { %v9312_v63 = vmax.f32 %v9222_v43, %v9280_v60  ;;  %v10416_v39 = vadd.f32 %v10415_v19, %v10414_v12  ;;  %v10417_v41 = vpop.f32.mrb[214].mxu1 }
 0xcec   : > { %v10418_v37 = vpop.f32.mrb[215].mxu1 }
 0xced   : > { %v9227_v11 = vadd.f32 %v10416_v39, %v9066_v21  ;;  %v10419_v61 = vadd.f32 %v10418_v37, %v10417_v41  ;;  %v9334_v56 = vpack.c.bf16 %v9312_v63, %v9311_v6 }
 0xcef   : > { %v9281_v36 = vmul.f32 0.2, %v9227_v11  ;;  %v9230_v10 = vadd.f32 %v10419_v61, %v9069_v26  ;;  %10444 = vmatprep.subr.bf16.mxu1 %v9334_v56  ;;  %v11501_v26 = vld [vmem:[%s15354_s11] ss:$8 sps:$4 sm:$0x1f]  }
 0xcf0   : > { %10445 = vmatpush3.bf16.msra.mxu1 %v15215_v31 }
 0xcf1   : > { %v9282_v58 = vmul.f32 0.2, %v9230_v10  ;;  %v10420_v22 = vpop.f32.mrb[216].mxu1  ;;  %v9313_v29 = vmax.f32 %v9227_v11, %v9281_v36  ;;  %v9339_v11 = vld [vmem:[%s15355_s12] sm:$0xff]  ;;  %v9340_v36 = vld [vmem:[%s15355_s12 + $0x8] sm:$0x1] }
 0xcf2   : > { %v10421_v54 = vpop.f32.mrb[217].mxu1 }
 0xcf3   : > { %v9314_v20 = vmax.f32 %v9230_v10, %v9282_v58  ;;  %v10422_v44 = vadd.f32 %v10421_v54, %v10420_v22  ;;  %v10423_v23 = vpop.f32.mrb[218].mxu1 }
 0xcf4   : > { %v10424_v57 = vpop.f32.mrb[219].mxu1 }
 0xcf5   : > { %v9235_v59 = vadd.f32 %v10422_v44, %v9074_v48  ;;  %v10425_v46 = vadd.f32 %v10424_v57, %v10423_v23  ;;  %v9335_v53 = vpack.c.bf16 %v9314_v20, %v9313_v29 }
 0xcf7   : > { %v9283_v31 = vmul.f32 0.2, %v9235_v59  ;;  %v9238_v38 = vadd.f32 %v10425_v46, %v9077_v40  ;;  %10446 = vmatprep.subr.bf16.mxu1 %v9335_v53 }
 0xcf8   : > { %10447 = vmatpush3.bf16.msra.mxu1 %v15225_v33 }
 0xcf9   : > { %v9284_v24 = vmul.f32 0.2, %v9238_v38  ;;  %v10426_v51 = vpop.f32.mrb[220].mxu1  ;;  %v9315_v16 = vmax.f32 %v9235_v59, %v9283_v31 }
 0xcfa   : > { %v10427_v49 = vpop.f32.mrb[221].mxu1 }
 0xcfb   : > { %v9316_v47 = vmax.f32 %v9238_v38, %v9284_v24  ;;  %v10428_v1 = vadd.f32 %v10427_v49, %v10426_v51  ;;  %v10429_v7 = vpop.f32.mrb[222].mxu1 }
 0xcfc   : > { %v10430_v17 = vpop.f32.mrb[223].mxu1 }
 0xcfd   : > { %v9243_v13 = vadd.f32 %v10428_v1, %v9082_v14  ;;  %v10431_v55 = vadd.f32 %v10430_v17, %v10429_v7  ;;  %v9336_v4 = vpack.c.bf16 %v9316_v47, %v9315_v16 }
 0xcff   : > { %v9285_v33 = vmul.f32 0.2, %v9243_v13  ;;  %v9246_v34 = vadd.f32 %v10431_v55, %v9085_v28  ;;  %10448 = vmatprep.subr.bf16.mxu1 %v9336_v4 }
 0xd00   : > { %10449 = vmatpush3.bf16.msra.mxu1 %v15235_v3 }
 0xd01   : > { %v9286_v18 = vmul.f32 0.2, %v9246_v34  ;;  %v10432_v52 = vpop.f32.mrb[224].mxu1  ;;  %v9317_v42 = vmax.f32 %v9243_v13, %v9285_v33 }
 0xd02   : > { %v10433_v8 = vpop.f32.mrb[225].mxu1 }
 0xd03   : > { %v9318_v43 = vmax.f32 %v9246_v34, %v9286_v18  ;;  %v10434_v2 = vadd.f32 %v10433_v8, %v10432_v52  ;;  %v10435_v60 = vpop.f32.mrb[226].mxu1 }
 0xd04   : > { %v10436_v12 = vpop.f32.mrb[227].mxu1 }
 0xd05   : > { %v9251_v19 = vadd.f32 %v10434_v2, %v9090_v62  ;;  %v10437_v21 = vadd.f32 %v10436_v12, %v10435_v60  ;;  %v9337_v3 = vpack.c.bf16 %v9318_v43, %v9317_v42 }
 0xd07   : > { %v9287_v6 = vmul.f32 0.2, %v9251_v19  ;;  %v9254_v63 = vadd.f32 %v10437_v21, %v9093_v0  ;;  %10450 = vmatprep.subr.bf16.mxu1 %v9337_v3 }
 0xd08   : > { %10451 = vmatpush3.bf16.msra.mxu1 %v15245_v9 }
 0xd09   : > { %v9288_v39 = vmul.f32 0.2, %v9254_v63  ;;  %v9319_v41 = vmax.f32 %v9251_v19, %v9287_v6 }
 0xd0b   : > { %v9320_v37 = vmax.f32 %v9254_v63, %v9288_v39 }
 0xd0d   : > { %v9338_v25 = vpack.c.bf16 %v9320_v37, %v9319_v41 }
 0xd0f   : > { %10452 = vmatprep.subr.bf16.mxu1 %v9338_v25 }
 0xd10   : > { %10453 = vmatpush3.bf16.msra.mxu1 %v15255_v32 }
 0xd13   : > { %9384 = vmatmul.mubr.bf16.vlgmr.msra.gmra.mrb[228].mxu1 %v11501_v26 }
 0xde6   : > { %v10454_v50 = vpop.f32.mrb[228].mxu1 }
 0xde7   : > { %v10455_v61 = vpop.f32.mrb[229].mxu1 }
 0xde8   : > { %v10456_v9 = vadd.f32 %v10455_v61, %v10454_v50  ;;  %v10457_v56 = vpop.f32.mrb[230].mxu1 }
 0xde9   : > { %v10458_v32 = vpop.f32.mrb[231].mxu1 }
 0xdea   : > { %v9386_v10 = vadd.f32 %v10456_v9, %v9339_v11  ;;  %v10459_v35 = vadd.f32 %v10458_v32, %v10457_v56 }
 0xdec   : > { %9393 = vst.msk [vmem:[%s493_s14] sm:$0xff] %vm9392_vm4, %v9386_v10  ;;  %v9389_v58 = vadd.f32 %v10459_v35, %v9340_v36 }
 0xdee   : > { %9395 = vst.msk [vmem:[%s493_s14 + $0x8] sm:$0x1] %vm9394_vm5, %v9389_v58 }
 0xdef PF: > { %s15606_s25 = sld [smem:[#allocation10_spill]]  ;;  %s15608_s26 = sld [smem:[#allocation11_spill]] }
 0xdf5   : > { %s25_s27 = sadd.s32 1, %s15606_s25   ;;  %s15607_s25 = sld [smem:[#allocation9_spill]] }
 0xdf6   : > { %p22_p6 = scmp.ge.s32.totalorder %s25_s27, 4  }
 0xdf8   :  { %24 = sbr.rel (!%p22_p6) target bundleno = 3 (0x3), region = 126 }
 0xdff   :  { %9417 = vsyncpa [#allocation4], 1 }
 0xe00   :  { %9419 = vsyncpa [#allocation4 + $0x1], 1 }
 0xe01   :  { %9420 = vsyncpa [#allocation6], 1 }

</bundles_post_ra>
